<compile_context>
chip_gen: v5e
topology: v5e:2x2
jax: 0.10.0
libtpu: 0.0.40
codegen_flags: <defaults>
</compile_context>

<pallas_src>
import functools

import jax
import jax.numpy as jnp
from jax.experimental import pallas as pl
from jax.experimental.pallas import tpu as pltpu

EPS = 1e-5
LANE = 128


def _round_up(v, m):
    return (v + m - 1) // m * m


# ----------------------------- Pallas kernels ------------------------------ #

def _conv_stats_kernel(xm_ref, xh_ref, mo_ref, w_ref, y_ref, st_ref, win_ref,
                       *, tm, halo, cp, wp2):
    # xm_ref : (TM, Cp)      bf16  window rows [0, TM)
    # xh_ref : (HALO, Cp)    bf16  window rows [TM, TM+HALO)
    # mo_ref : (TM, 1)       f32   validity mask of the TM output rows
    # w_ref  : (3, 3*Cp, Cp) bf16  K-packed conv weights (per kh)
    # y_ref  : (TM, Cp)      bf16  raw conv output
    # st_ref : (1, 2, Cp)    f32   [sum, sum-of-squares] over valid output rows
    # win_ref: (TM+HALO, Cp) f32   scratch window
    win_ref[0:tm, :] = xm_ref[...].astype(jnp.float32)
    win_ref[tm:tm + halo, :] = xh_ref[...].astype(jnp.float32)

    acc = jnp.zeros((tm, cp), jnp.float32)
    for kh in range(3):
        b = kh * wp2
        lhs = jnp.concatenate(
            [win_ref[b:b + tm, :],
             win_ref[b + 1:b + 1 + tm, :],
             win_ref[b + 2:b + 2 + tm, :]], axis=-1).astype(jnp.bfloat16)
        acc = acc + jnp.dot(lhs, w_ref[kh], preferred_element_type=jnp.float32)

    ym = acc * mo_ref[...]
    st_ref[...] = jnp.concatenate(
        [jnp.sum(ym, axis=0, keepdims=True),
         jnp.sum(ym * ym, axis=0, keepdims=True)], axis=0)[None]
    y_ref[...] = acc.astype(y_ref.dtype)


def _bnrelu_conv_stats_kernel(y1m_ref, y1h_ref, mwm_ref, mwh_ref, mo_ref,
                              sc_ref, sh_ref, w_ref, y_ref, st_ref, win_ref,
                              *, tm, halo, cp, wp2):
    # BN1+ReLU (folded scale/shift) applied once to the whole window, then
    # conv2 (K-packed taps) + BN2 partial stats.  The ReLU'd intermediate
    # never touches HBM.
    sc = sc_ref[...]
    sh = sh_ref[...]
    am = jnp.maximum(y1m_ref[...].astype(jnp.float32) * sc + sh, 0.0)
    win_ref[0:tm, :] = jnp.where(mwm_ref[...] > 0.5, am, 0.0)
    ah = jnp.maximum(y1h_ref[...].astype(jnp.float32) * sc + sh, 0.0)
    win_ref[tm:tm + halo, :] = jnp.where(mwh_ref[...] > 0.5, ah, 0.0)

    acc = jnp.zeros((tm, cp), jnp.float32)
    for kh in range(3):
        b = kh * wp2
        lhs = jnp.concatenate(
            [win_ref[b:b + tm, :],
             win_ref[b + 1:b + 1 + tm, :],
             win_ref[b + 2:b + 2 + tm, :]], axis=-1).astype(jnp.bfloat16)
        acc = acc + jnp.dot(lhs, w_ref[kh], preferred_element_type=jnp.float32)

    ym = acc * mo_ref[...]
    st_ref[...] = jnp.concatenate(
        [jnp.sum(ym, axis=0, keepdims=True),
         jnp.sum(ym * ym, axis=0, keepdims=True)], axis=0)[None]
    y_ref[...] = acc.astype(y_ref.dtype)


def _bn_add_relu_kernel(y2_ref, id_ref, sc_ref, sh_ref, o_ref):
    # out = relu(BN2(conv2) + identity); garbage in invalid rows is finite and
    # is sliced away by the wrapper.
    o_ref[...] = jnp.maximum(
        y2_ref[...].astype(jnp.float32) * sc_ref[...] + sh_ref[...]
        + id_ref[...], 0.0)


# ------------------------------- JAX wrapper -------------------------------- #

def basic_block_forward(x_nchw, params, *, tile_rows=1024):
    """BasicBlock(inplanes=planes, stride=1, downsample=None) forward (train-mode BN)."""
    w1, g1, b1, w2, g2, b2 = params
    x = jnp.transpose(x_nchw, (0, 2, 3, 1)).astype(jnp.float32)      # NHWC
    N, H, W, C = x.shape
    assert w1.shape == (3, 3, C, C) and w2.shape == (3, 3, C, C), \
        "stride=1 / no-downsample BasicBlock requires inplanes == planes"

    Cp = _round_up(C, LANE)              # lane-dense channel padding
    Hp2, Wp2 = H + 2, W + 2
    P = Hp2 * Wp2                        # padded pixels per image
    NP = N * P
    LPAD = Wp2 + 1                       # rows a 3x3 window reaches back
    HALO = _round_up(2 * Wp2 + 2, 8)     # extra rows a TM-row tile needs
    # TM: multiple of HALO, <= tile_rows, and small enough that the grid has
    # >= 2 steps when the problem allows (megacore / v7x dual-TC).
    tm_cap = max(HALO, (tile_rows // HALO) * HALO)
    tm_half = _round_up(-(-(NP + LPAD) // 2), HALO)
    TM = max(HALO, min(tm_cap, tm_half))
    nt = -(-(NP + LPAD) // TM)           # pass-1 tiles start LPAD rows early
    Mp = nt * TM                         # rows of plain-layout arrays
    R = (nt + 1) * TM                    # rows of extended-layout arrays
    hpb = TM // HALO
    M = N * H * W                        # BN population (valid pixels)
    assert TM % HALO == 0 and TM % 8 == 0 and HALO >= 2 * LPAD

    # ---- layout plumbing (one pass per array, no halo gathers) --------------
    xp = jnp.pad(x, ((0, 0), (1, 1), (1, 1), (0, Cp - C)))           # spatial+chan pad
    xflat = xp.reshape(NP, Cp)
    # conv1 input: flat row p lives at extended row p + 2*LPAD, bf16 in HBM
    x_e2 = jnp.pad(xflat, ((2 * LPAD, R - 2 * LPAD - NP), (0, 0))).astype(jnp.bfloat16)
    # residual identity, plain layout, kept f32 for the final add
    id_f = jnp.pad(xflat, ((0, Mp - NP), (0, 0)))

    mask_img = jnp.zeros((Hp2, Wp2), jnp.float32).at[1:H + 1, 1:W + 1].set(1.0)
    mvec = jnp.tile(mask_img.reshape(-1), N)                         # (NP,)
    mask_P = jnp.pad(mvec, (0, Mp - NP)).reshape(Mp, 1)              # plain layout
    mask_L = jnp.pad(mvec, (LPAD, R - LPAD - NP)).reshape(R, 1)      # +LPAD layout

    def pack_w(w):       # (3,3,C,C) HWIO -> (3, 3*Cp, Cp) bf16, K-packed per kh
        wp = jnp.pad(w.astype(jnp.float32),
                     ((0, 0), (0, 0), (0, Cp - C), (0, Cp - C)))
        return wp.reshape(3, 3 * Cp, Cp).astype(jnp.bfloat16)

    def pad_vec(v):      # (C,) -> (Cp,) f32, zeros in padded channels
        return jnp.pad(v.reshape(-1).astype(jnp.float32), (0, Cp - C))

    w1b, w2b = pack_w(w1), pack_w(w2)
    g1p, b1p, g2p, b2p = map(pad_vec, (g1, b1, g2, b2))

    # ---- specs ---------------------------------------------------------------
    main_spec = pl.BlockSpec((TM, Cp), lambda t: (t, 0))
    tail_spec = pl.BlockSpec((HALO, Cp), lambda t: ((t + 1) * hpb, 0))
    mmain_spec = pl.BlockSpec((TM, 1), lambda t: (t, 0))
    mtail_spec = pl.BlockSpec((HALO, 1), lambda t: ((t + 1) * hpb, 0))
    w_spec = pl.BlockSpec((3, 3 * Cp, Cp), lambda t: (0, 0, 0))
    vec_spec = pl.BlockSpec((1, Cp), lambda t: (0, 0))
    st_spec = pl.BlockSpec((1, 2, Cp), lambda t: (t, 0, 0))

    cparams = pltpu.CompilerParams(
        dimension_semantics=("parallel",),
        vmem_limit_bytes=48 * 1024 * 1024)
    scratch = [pltpu.VMEM((TM + HALO, Cp), jnp.float32)]

    # ---- pass 1: conv1 + BN1 partial statistics -----------------------------
    # Tile t computes conv1 for flat rows [t*TM - LPAD, (t+1)*TM - LPAD),
    # written at y1_ext rows [t*TM, (t+1)*TM)  (y1_ext row = flat row + LPAD).
    k1 = functools.partial(_conv_stats_kernel, tm=TM, halo=HALO, cp=Cp, wp2=Wp2)
    y1e, st1 = pl.pallas_call(
        k1, grid=(nt,),
        in_specs=[main_spec, tail_spec, mmain_spec, w_spec],
        out_specs=[main_spec, st_spec],
        out_shape=[jax.ShapeDtypeStruct((R, Cp), jnp.bfloat16),
                   jax.ShapeDtypeStruct((nt, 2, Cp), jnp.float32)],
        scratch_shapes=scratch,
        compiler_params=cparams,
    )(x_e2, x_e2, mask_L, w1b)

    def finalize(st, g, b):
        s = jnp.sum(st[:, 0, :], axis=0)
        sq = jnp.sum(st[:, 1, :], axis=0)
        mean = s / M
        # TODO(synk): E[x^2]-mean^2 in f32 is fine here (conv outputs are near
        # zero-mean); a mean-shifted / Welford combine would be more robust.
        var = jnp.maximum(sq / M - mean * mean, 0.0)      # biased (train-mode BN)
        inv = jax.lax.rsqrt(var + EPS)
        scale = g * inv
        shift = b - mean * scale
        return scale.reshape(1, Cp), shift.reshape(1, Cp)

    sc1, sh1 = finalize(st1, g1p, b1p)

    # ---- pass 2: fused BN1+ReLU -> conv2 + BN2 partial statistics -----------
    # Tile t computes conv2 for flat rows [t*TM, (t+1)*TM) (plain layout).
    k2 = functools.partial(_bnrelu_conv_stats_kernel,
                           tm=TM, halo=HALO, cp=Cp, wp2=Wp2)
    y2, st2 = pl.pallas_call(
        k2, grid=(nt,),
        in_specs=[main_spec, tail_spec, mmain_spec, mtail_spec, mmain_spec,
                  vec_spec, vec_spec, w_spec],
        out_specs=[main_spec, st_spec],
        out_shape=[jax.ShapeDtypeStruct((Mp, Cp), jnp.bfloat16),
                   jax.ShapeDtypeStruct((nt, 2, Cp), jnp.float32)],
        scratch_shapes=scratch,
        compiler_params=cparams,
    )(y1e, y1e, mask_L, mask_L, mask_P, sc1, sh1, w2b)

    sc2, sh2 = finalize(st2, g2p, b2p)

    # ---- pass 3: BN2 + residual add + ReLU ----------------------------------
    out_flat = pl.pallas_call(
        _bn_add_relu_kernel, grid=(nt,),
        in_specs=[main_spec, main_spec, vec_spec, vec_spec],
        out_specs=main_spec,
        out_shape=jax.ShapeDtypeStruct((Mp, Cp), jnp.float32),
        compiler_params=cparams,
    )(y2, id_f, sc2, sh2)

    # TODO(synk): returning NHWC (or the consumer's layout) would save this
    # final de-pad + transpose pass; NCHW kept to match the PyTorch module.
    out = out_flat[:NP].reshape(N, Hp2, Wp2, Cp)[:, 1:H + 1, 1:W + 1, :C]
    return jnp.transpose(out, (0, 3, 1, 2))                 # NHWC -> NCHW


# ------------------------------- Reference ---------------------------------- #

def _reference(x_nchw, params, *, conv_dtype, storage_dtype=None):
    """Module semantics in plain JAX.

    conv_dtype selects MXU input precision; storage_dtype (optional) models the
    kernel's inter-pass activation storage (conv outputs rounded before BN is
    applied, while BN statistics are computed from the unrounded f32 values).
    """
    w1, g1, b1, w2, g2, b2 = params
    x = jnp.transpose(x_nchw, (0, 2, 3, 1)).astype(jnp.float32)

    def conv(v, w):
        return jax.lax.conv_general_dilated(
            v.astype(conv_dtype), w.astype(conv_dtype),
            window_strides=(1, 1), padding=((1, 1), (1, 1)),
            dimension_numbers=("NHWC", "HWIO", "NHWC"),
            preferred_element_type=jnp.float32)

    def store(v):
        if storage_dtype is None:
            return v
        return v.astype(storage_dtype).astype(jnp.float32)

    def bn(stats_of, apply_to, g, b):
        mean = jnp.mean(stats_of, axis=(0, 1, 2))
        var = jnp.mean((stats_of - mean.reshape(1, 1, 1, -1)) ** 2, axis=(0, 1, 2))
        scale = g * jax.lax.rsqrt(var + EPS)
        shift = b - mean * scale
        return apply_to * scale.reshape(1, 1, 1, -1) + shift.reshape(1, 1, 1, -1)

    y1 = conv(x, w1)
    h = jnp.maximum(bn(y1, store(y1), g1, b1), 0.0)
    y2 = conv(h, w2)
    out = jnp.maximum(bn(y2, store(y2), g2, b2) + x, 0.0)
    return jnp.transpose(out, (0, 3, 1, 2))


# --------------------------------- Main -------------------------------------- #

if __name__ == "__main__":
    N, C, H, W = 2, 4, 16, 16            # inplanes = planes = 4, stride = 1
    key = jax.random.PRNGKey(0)
    kx, k1, k2, k3, k4, k5, k6 = jax.random.split(key, 7)

    x = jax.random.normal(kx, (N, C, H, W), jnp.float32)
    # conv weights stored HWIO (3,3,Cin,Cout); BN affine params per channel.
    w1 = jax.random.normal(k1, (3, 3, C, C), jnp.float32) * 0.1
    g1 = jax.random.uniform(k2, (C,), jnp.float32, 0.5, 1.5)
    b1 = jax.random.normal(k3, (C,), jnp.float32) * 0.1
    w2 = jax.random.normal(k4, (3, 3, C, C), jnp.float32) * 0.1
    g2 = jax.random.uniform(k5, (C,), jnp.float32, 0.5, 1.5)
    b2 = jax.random.normal(k6, (C,), jnp.float32) * 0.1
    params = (w1, g1, b1, w2, g2, b2)

    out = jax.block_until_ready(jax.jit(basic_block_forward)(x, params))
    assert out.shape == (N, C, H, W), out.shape

    # Tight check vs a reference with matched numerics (bf16 MXU inputs and
    # bf16 inter-pass activation storage; BN stats in f32).
    ref_tight = jax.block_until_ready(
        _reference(x, params, conv_dtype=jnp.bfloat16,
                   storage_dtype=jnp.bfloat16))
    err_tight = float(jnp.max(jnp.abs(out - ref_tight)))
    assert jnp.allclose(out, ref_tight, rtol=1e-2, atol=1e-2), err_tight

    # Loose sanity check vs exact f32 module semantics (bf16 rounding only).
    ref_f32 = jax.block_until_ready(
        _reference(x, params, conv_dtype=jnp.float32))
    err_f32 = float(jnp.max(jnp.abs(out - ref_f32)))
    assert jnp.allclose(out, ref_f32, rtol=1e-1, atol=1e-1), err_f32

    print("KERNEL_OK")
</pallas_src>

<mosaic_0001>
module attributes {stable_mosaic.version = 11 : i64} {
  func.func @_conv_stats_kernel(%arg0: i32, %arg1: memref<360x128xbf16, #tpu.memory_space<vmem>>, %arg2: memref<40x128xbf16, #tpu.memory_space<vmem>>, %arg3: memref<360x1xf32, #tpu.memory_space<vmem>>, %arg4: memref<3x384x128xbf16, #tpu.memory_space<vmem>>, %arg5: memref<360x128xbf16, #tpu.memory_space<vmem>>, %arg6: memref<1x2x128xf32, #tpu.memory_space<vmem>>, %arg7: memref<400x128xf32, #tpu.memory_space<vmem>>) attributes {dimension_semantics = [#tpu.dimension_semantics<parallel>], iteration_bounds = array<i64: 2>, scalar_prefetch = 0 : i64, scratch_operands = 1 : i64, tpu.core_type = #tpu.core_type<tc>, window_params = [{transform_indices = @transform_0, window_bounds = array<i64: 360, 128>}, {transform_indices = @transform_1, window_bounds = array<i64: 40, 128>}, {transform_indices = @transform_2, window_bounds = array<i64: 360, 1>}, {pipeline_mode = #tpu.pipeline_mode<synchronous>, transform_indices = @transform_3, window_bounds = array<i64: 3, 384, 128>}, {transform_indices = @transform_4, window_bounds = array<i64: 360, 128>}, {transform_indices = @transform_5, window_bounds = array<i64: 1, 2, 128>}]} {
    %c0 = arith.constant 0 : index
    %c0_0 = arith.constant 0 : index
    %0 = vector.load %arg1[%c0, %c0_0] : memref<360x128xbf16, #tpu.memory_space<vmem>>, vector<360x128xbf16>
    %1 = arith.extf %0 : vector<360x128xbf16> to vector<360x128xf32>
    %c0_1 = arith.constant 0 : index
    %c0_2 = arith.constant 0 : index
    %2 = vector.load %arg7[%c0_1, %c0_2] : memref<400x128xf32, #tpu.memory_space<vmem>>, vector<360x128xf32>
    tpu.vector_store %arg7[%c0_1, %c0_2], %1 {strides = array<i32>} : memref<400x128xf32, #tpu.memory_space<vmem>>, vector<360x128xf32>,
    %c0_3 = arith.constant 0 : index
    %c0_4 = arith.constant 0 : index
    %3 = vector.load %arg2[%c0_3, %c0_4] : memref<40x128xbf16, #tpu.memory_space<vmem>>, vector<40x128xbf16>
    %4 = arith.extf %3 : vector<40x128xbf16> to vector<40x128xf32>
    %c360 = arith.constant 360 : index
    %c0_5 = arith.constant 0 : index
    %5 = vector.load %arg7[%c360, %c0_5] : memref<400x128xf32, #tpu.memory_space<vmem>>, vector<40x128xf32>
    tpu.vector_store %arg7[%c360, %c0_5], %4 {strides = array<i32>} : memref<400x128xf32, #tpu.memory_space<vmem>>, vector<40x128xf32>,
    %cst = arith.constant 0.000000e+00 : f32
    %6 = vector.broadcast %cst : f32 to vector<360x128xf32>
    %c0_6 = arith.constant 0 : index
    %c0_7 = arith.constant 0 : index
    %7 = vector.load %arg7[%c0_6, %c0_7] : memref<400x128xf32, #tpu.memory_space<vmem>>, vector<360x128xf32>
    %c1 = arith.constant 1 : index
    %c0_8 = arith.constant 0 : index
    %8 = vector.load %arg7[%c1, %c0_8] : memref<400x128xf32, #tpu.memory_space<vmem>>, vector<360x128xf32>
    %c2 = arith.constant 2 : index
    %c0_9 = arith.constant 0 : index
    %9 = vector.load %arg7[%c2, %c0_9] : memref<400x128xf32, #tpu.memory_space<vmem>>, vector<360x128xf32>
    %10 = tpu.concatenate %7, %8, %9 in 1 : vector<360x128xf32>, vector<360x128xf32>, vector<360x128xf32> -> vector<360x384xf32>
    %11 = arith.truncf %10 : vector<360x384xf32> to vector<360x384xbf16>
    %c0_10 = arith.constant 0 : index
    %c0_11 = arith.constant 0 : index
    %c0_12 = arith.constant 0 : index
    %12 = vector.load %arg4[%c0_10, %c0_11, %c0_12] : memref<3x384x128xbf16, #tpu.memory_space<vmem>>, vector<1x384x128xbf16>
    %13 = vector.shape_cast %12 : vector<1x384x128xbf16> to vector<384x128xbf16>
    %cst_13 = arith.constant dense<0.000000e+00> : vector<360x128xf32>
    %14 = tpu.matmul %11, %13, %cst_13 {dimension_numbers = #tpu.dot_dimension_numbers<[1], [0], [0], [1], [0, 0, 1, 1], [], []>} : vector<360x384xbf16>, vector<384x128xbf16>, vector<360x128xf32> -> vector<360x128xf32>
    %15 = arith.addf %6, %14 : vector<360x128xf32>
    %c18 = arith.constant 18 : index
    %c0_14 = arith.constant 0 : index
    %16 = vector.load %arg7[%c18, %c0_14] : memref<400x128xf32, #tpu.memory_space<vmem>>, vector<360x128xf32>
    %c19 = arith.constant 19 : index
    %c0_15 = arith.constant 0 : index
    %17 = vector.load %arg7[%c19, %c0_15] : memref<400x128xf32, #tpu.memory_space<vmem>>, vector<360x128xf32>
    %c20 = arith.constant 20 : index
    %c0_16 = arith.constant 0 : index
    %18 = vector.load %arg7[%c20, %c0_16] : memref<400x128xf32, #tpu.memory_space<vmem>>, vector<360x128xf32>
    %19 = tpu.concatenate %16, %17, %18 in 1 : vector<360x128xf32>, vector<360x128xf32>, vector<360x128xf32> -> vector<360x384xf32>
    %20 = arith.truncf %19 : vector<360x384xf32> to vector<360x384xbf16>
    %c1_17 = arith.constant 1 : index
    %c0_18 = arith.constant 0 : index
    %c0_19 = arith.constant 0 : index
    %21 = vector.load %arg4[%c1_17, %c0_18, %c0_19] : memref<3x384x128xbf16, #tpu.memory_space<vmem>>, vector<1x384x128xbf16>
    %22 = vector.shape_cast %21 : vector<1x384x128xbf16> to vector<384x128xbf16>
    %cst_20 = arith.constant dense<0.000000e+00> : vector<360x128xf32>
    %23 = tpu.matmul %20, %22, %cst_20 {dimension_numbers = #tpu.dot_dimension_numbers<[1], [0], [0], [1], [0, 0, 1, 1], [], []>} : vector<360x384xbf16>, vector<384x128xbf16>, vector<360x128xf32> -> vector<360x128xf32>
    %24 = arith.addf %15, %23 : vector<360x128xf32>
    %c36 = arith.constant 36 : index
    %c0_21 = arith.constant 0 : index
    %25 = vector.load %arg7[%c36, %c0_21] : memref<400x128xf32, #tpu.memory_space<vmem>>, vector<360x128xf32>
    %c37 = arith.constant 37 : index
    %c0_22 = arith.constant 0 : index
    %26 = vector.load %arg7[%c37, %c0_22] : memref<400x128xf32, #tpu.memory_space<vmem>>, vector<360x128xf32>
    %c38 = arith.constant 38 : index
    %c0_23 = arith.constant 0 : index
    %27 = vector.load %arg7[%c38, %c0_23] : memref<400x128xf32, #tpu.memory_space<vmem>>, vector<360x128xf32>
    %28 = tpu.concatenate %25, %26, %27 in 1 : vector<360x128xf32>, vector<360x128xf32>, vector<360x128xf32> -> vector<360x384xf32>
    %29 = arith.truncf %28 : vector<360x384xf32> to vector<360x384xbf16>
    %c2_24 = arith.constant 2 : index
    %c0_25 = arith.constant 0 : index
    %c0_26 = arith.constant 0 : index
    %30 = vector.load %arg4[%c2_24, %c0_25, %c0_26] : memref<3x384x128xbf16, #tpu.memory_space<vmem>>, vector<1x384x128xbf16>
    %31 = vector.shape_cast %30 : vector<1x384x128xbf16> to vector<384x128xbf16>
    %cst_27 = arith.constant dense<0.000000e+00> : vector<360x128xf32>
    %32 = tpu.matmul %29, %31, %cst_27 {dimension_numbers = #tpu.dot_dimension_numbers<[1], [0], [0], [1], [0, 0, 1, 1], [], []>} : vector<360x384xbf16>, vector<384x128xbf16>, vector<360x128xf32> -> vector<360x128xf32>
    %33 = arith.addf %24, %32 : vector<360x128xf32>
    %c0_28 = arith.constant 0 : index
    %c0_29 = arith.constant 0 : index
    %34 = vector.load %arg3[%c0_28, %c0_29] : memref<360x1xf32, #tpu.memory_space<vmem>>, vector<360x1xf32>
    %35 = vector.broadcast %34 : vector<360x1xf32> to vector<360x128xf32>
    %36 = arith.mulf %33, %35 : vector<360x128xf32>
    %cst_30 = arith.constant dense<0.000000e+00> : vector<128xf32>
    %37 = vector.multi_reduction <add>, %36, %cst_30 [0] : vector<360x128xf32> to vector<128xf32>
    %38 = vector.shape_cast %37 : vector<128xf32> to vector<1x128xf32>
    %39 = arith.mulf %36, %36 : vector<360x128xf32>
    %cst_31 = arith.constant dense<0.000000e+00> : vector<128xf32>
    %40 = vector.multi_reduction <add>, %39, %cst_31 [0] : vector<360x128xf32> to vector<128xf32>
    %41 = vector.shape_cast %40 : vector<128xf32> to vector<1x128xf32>
    %42 = tpu.concatenate %38, %41 in 0 : vector<1x128xf32>, vector<1x128xf32> -> vector<2x128xf32>
    %43 = vector.shape_cast %42 : vector<2x128xf32> to vector<1x2x128xf32>
    %c0_32 = arith.constant 0 : index
    %c0_33 = arith.constant 0 : index
    %c0_34 = arith.constant 0 : index
    %44 = vector.load %arg6[%c0_32, %c0_33, %c0_34] : memref<1x2x128xf32, #tpu.memory_space<vmem>>, vector<1x2x128xf32>
    tpu.vector_store %arg6[%c0_32, %c0_33, %c0_34], %43 {strides = array<i32>} : memref<1x2x128xf32, #tpu.memory_space<vmem>>, vector<1x2x128xf32>,
    %45 = arith.truncf %33 : vector<360x128xf32> to vector<360x128xbf16>
    %c0_35 = arith.constant 0 : index
    %c0_36 = arith.constant 0 : index
    %46 = vector.load %arg5[%c0_35, %c0_36] : memref<360x128xbf16, #tpu.memory_space<vmem>>, vector<360x128xbf16>
    tpu.vector_store %arg5[%c0_35, %c0_36], %45 {strides = array<i32>} : memref<360x128xbf16, #tpu.memory_space<vmem>>, vector<360x128xbf16>,
    return
  }
  func.func @transform_0(%arg0: i32) -> (i32, i32) {
    %c0_i32 = arith.constant 0 : i32
    %c0_i32_0 = arith.constant 0 : i32
    return %arg0, %c0_i32 : i32, i32
  }
  func.func @transform_1(%arg0: i32) -> (i32, i32) {
    %c1_i32 = arith.constant 1 : i32
    %0 = arith.addi %arg0, %c1_i32 : i32
    %c9_i32 = arith.constant 9 : i32
    %1 = arith.muli %0, %c9_i32 : i32
    %c0_i32 = arith.constant 0 : i32
    %c0_i32_0 = arith.constant 0 : i32
    return %1, %c0_i32 : i32, i32
  }
  func.func @transform_2(%arg0: i32) -> (i32, i32) {
    %c0_i32 = arith.constant 0 : i32
    %c0_i32_0 = arith.constant 0 : i32
    return %arg0, %c0_i32 : i32, i32
  }
  func.func @transform_3(%arg0: i32) -> (i32, i32, i32) {
    %c0_i32 = arith.constant 0 : i32
    %c0_i32_0 = arith.constant 0 : i32
    %c0_i32_1 = arith.constant 0 : i32
    %c0_i32_2 = arith.constant 0 : i32
    return %c0_i32, %c0_i32_0, %c0_i32_1 : i32, i32, i32
  }
  func.func @transform_4(%arg0: i32) -> (i32, i32) {
    %c0_i32 = arith.constant 0 : i32
    %c0_i32_0 = arith.constant 0 : i32
    return %arg0, %c0_i32 : i32, i32
  }
  func.func @transform_5(%arg0: i32) -> (i32, i32, i32) {
    %c0_i32 = arith.constant 0 : i32
    %c0_i32_0 = arith.constant 0 : i32
    %c0_i32_1 = arith.constant 0 : i32
    return %arg0, %c0_i32, %c0_i32_0 : i32, i32, i32
  }
}

module attributes {stable_mosaic.version = 11 : i64} {
  func.func @_bnrelu_conv_stats_kernel(%arg0: i32, %arg1: memref<360x128xbf16, #tpu.memory_space<vmem>>, %arg2: memref<40x128xbf16, #tpu.memory_space<vmem>>, %arg3: memref<360x1xf32, #tpu.memory_space<vmem>>, %arg4: memref<40x1xf32, #tpu.memory_space<vmem>>, %arg5: memref<360x1xf32, #tpu.memory_space<vmem>>, %arg6: memref<1x128xf32, #tpu.memory_space<vmem>>, %arg7: memref<1x128xf32, #tpu.memory_space<vmem>>, %arg8: memref<3x384x128xbf16, #tpu.memory_space<vmem>>, %arg9: memref<360x128xbf16, #tpu.memory_space<vmem>>, %arg10: memref<1x2x128xf32, #tpu.memory_space<vmem>>, %arg11: memref<400x128xf32, #tpu.memory_space<vmem>>) attributes {dimension_semantics = [#tpu.dimension_semantics<parallel>], iteration_bounds = array<i64: 2>, scalar_prefetch = 0 : i64, scratch_operands = 1 : i64, tpu.core_type = #tpu.core_type<tc>, window_params = [{transform_indices = @transform_0, window_bounds = array<i64: 360, 128>}, {transform_indices = @transform_1, window_bounds = array<i64: 40, 128>}, {transform_indices = @transform_2, window_bounds = array<i64: 360, 1>}, {transform_indices = @transform_3, window_bounds = array<i64: 40, 1>}, {transform_indices = @transform_4, window_bounds = array<i64: 360, 1>}, {pipeline_mode = #tpu.pipeline_mode<synchronous>, transform_indices = @transform_5, window_bounds = array<i64: 1, 128>}, {pipeline_mode = #tpu.pipeline_mode<synchronous>, transform_indices = @transform_6, window_bounds = array<i64: 1, 128>}, {pipeline_mode = #tpu.pipeline_mode<synchronous>, transform_indices = @transform_7, window_bounds = array<i64: 3, 384, 128>}, {transform_indices = @transform_8, window_bounds = array<i64: 360, 128>}, {transform_indices = @transform_9, window_bounds = array<i64: 1, 2, 128>}]} {
    %c0 = arith.constant 0 : index
    %c0_0 = arith.constant 0 : index
    %0 = vector.load %arg6[%c0, %c0_0] : memref<1x128xf32, #tpu.memory_space<vmem>>, vector<1x128xf32>
    %c0_1 = arith.constant 0 : index
    %c0_2 = arith.constant 0 : index
    %1 = vector.load %arg7[%c0_1, %c0_2] : memref<1x128xf32, #tpu.memory_space<vmem>>, vector<1x128xf32>
    %c0_3 = arith.constant 0 : index
    %c0_4 = arith.constant 0 : index
    %2 = vector.load %arg1[%c0_3, %c0_4] : memref<360x128xbf16, #tpu.memory_space<vmem>>, vector<360x128xbf16>
    %3 = arith.extf %2 : vector<360x128xbf16> to vector<360x128xf32>
    %4 = vector.broadcast %0 : vector<1x128xf32> to vector<360x128xf32>
    %5 = arith.mulf %3, %4 : vector<360x128xf32>
    %6 = vector.broadcast %1 : vector<1x128xf32> to vector<360x128xf32>
    %7 = arith.addf %5, %6 : vector<360x128xf32>
    %cst = arith.constant 0.000000e+00 : f32
    %8 = vector.broadcast %cst : f32 to vector<360x128xf32>
    %9 = arith.maximumf %7, %8 : vector<360x128xf32>
    %c0_5 = arith.constant 0 : index
    %c0_6 = arith.constant 0 : index
    %10 = vector.load %arg3[%c0_5, %c0_6] : memref<360x1xf32, #tpu.memory_space<vmem>>, vector<360x1xf32>
    %cst_7 = arith.constant 5.000000e-01 : f32
    %11 = vector.broadcast %cst_7 : f32 to vector<360x1xf32>
    %12 = arith.cmpf ogt, %10, %11 : vector<360x1xf32>
    %cst_8 = arith.constant 0.000000e+00 : f32
    %13 = vector.shape_cast %12 : vector<360x1xi1> to vector<360x1xi1>
    %14 = vector.broadcast %13 : vector<360x1xi1> to vector<360x128xi1>
    %15 = vector.broadcast %cst_8 : f32 to vector<360x128xf32>
    %16 = arith.select %14, %9, %15 : vector<360x128xi1>, vector<360x128xf32>
    %c0_9 = arith.constant 0 : index
    %c0_10 = arith.constant 0 : index
    %17 = vector.load %arg11[%c0_9, %c0_10] : memref<400x128xf32, #tpu.memory_space<vmem>>, vector<360x128xf32>
    tpu.vector_store %arg11[%c0_9, %c0_10], %16 {strides = array<i32>} : memref<400x128xf32, #tpu.memory_space<vmem>>, vector<360x128xf32>,
    %c0_11 = arith.constant 0 : index
    %c0_12 = arith.constant 0 : index
    %18 = vector.load %arg2[%c0_11, %c0_12] : memref<40x128xbf16, #tpu.memory_space<vmem>>, vector<40x128xbf16>
    %19 = arith.extf %18 : vector<40x128xbf16> to vector<40x128xf32>
    %20 = vector.broadcast %0 : vector<1x128xf32> to vector<40x128xf32>
    %21 = arith.mulf %19, %20 : vector<40x128xf32>
    %22 = vector.broadcast %1 : vector<1x128xf32> to vector<40x128xf32>
    %23 = arith.addf %21, %22 : vector<40x128xf32>
    %cst_13 = arith.constant 0.000000e+00 : f32
    %24 = vector.broadcast %cst_13 : f32 to vector<40x128xf32>
    %25 = arith.maximumf %23, %24 : vector<40x128xf32>
    %c0_14 = arith.constant 0 : index
    %c0_15 = arith.constant 0 : index
    %26 = vector.load %arg4[%c0_14, %c0_15] : memref<40x1xf32, #tpu.memory_space<vmem>>, vector<40x1xf32>
    %cst_16 = arith.constant 5.000000e-01 : f32
    %27 = vector.broadcast %cst_16 : f32 to vector<40x1xf32>
    %28 = arith.cmpf ogt, %26, %27 : vector<40x1xf32>
    %cst_17 = arith.constant 0.000000e+00 : f32
    %29 = vector.shape_cast %28 : vector<40x1xi1> to vector<40x1xi1>
    %30 = vector.broadcast %29 : vector<40x1xi1> to vector<40x128xi1>
    %31 = vector.broadcast %cst_17 : f32 to vector<40x128xf32>
    %32 = arith.select %30, %25, %31 : vector<40x128xi1>, vector<40x128xf32>
    %c360 = arith.constant 360 : index
    %c0_18 = arith.constant 0 : index
    %33 = vector.load %arg11[%c360, %c0_18] : memref<400x128xf32, #tpu.memory_space<vmem>>, vector<40x128xf32>
    tpu.vector_store %arg11[%c360, %c0_18], %32 {strides = array<i32>} : memref<400x128xf32, #tpu.memory_space<vmem>>, vector<40x128xf32>,
    %cst_19 = arith.constant 0.000000e+00 : f32
    %34 = vector.broadcast %cst_19 : f32 to vector<360x128xf32>
    %c0_20 = arith.constant 0 : index
    %c0_21 = arith.constant 0 : index
    %35 = vector.load %arg11[%c0_20, %c0_21] : memref<400x128xf32, #tpu.memory_space<vmem>>, vector<360x128xf32>
    %c1 = arith.constant 1 : index
    %c0_22 = arith.constant 0 : index
    %36 = vector.load %arg11[%c1, %c0_22] : memref<400x128xf32, #tpu.memory_space<vmem>>, vector<360x128xf32>
    %c2 = arith.constant 2 : index
    %c0_23 = arith.constant 0 : index
    %37 = vector.load %arg11[%c2, %c0_23] : memref<400x128xf32, #tpu.memory_space<vmem>>, vector<360x128xf32>
    %38 = tpu.concatenate %35, %36, %37 in 1 : vector<360x128xf32>, vector<360x128xf32>, vector<360x128xf32> -> vector<360x384xf32>
    %39 = arith.truncf %38 : vector<360x384xf32> to vector<360x384xbf16>
    %c0_24 = arith.constant 0 : index
    %c0_25 = arith.constant 0 : index
    %c0_26 = arith.constant 0 : index
    %40 = vector.load %arg8[%c0_24, %c0_25, %c0_26] : memref<3x384x128xbf16, #tpu.memory_space<vmem>>, vector<1x384x128xbf16>
    %41 = vector.shape_cast %40 : vector<1x384x128xbf16> to vector<384x128xbf16>
    %cst_27 = arith.constant dense<0.000000e+00> : vector<360x128xf32>
    %42 = tpu.matmul %39, %41, %cst_27 {dimension_numbers = #tpu.dot_dimension_numbers<[1], [0], [0], [1], [0, 0, 1, 1], [], []>} : vector<360x384xbf16>, vector<384x128xbf16>, vector<360x128xf32> -> vector<360x128xf32>
    %43 = arith.addf %34, %42 : vector<360x128xf32>
    %c18 = arith.constant 18 : index
    %c0_28 = arith.constant 0 : index
    %44 = vector.load %arg11[%c18, %c0_28] : memref<400x128xf32, #tpu.memory_space<vmem>>, vector<360x128xf32>
    %c19 = arith.constant 19 : index
    %c0_29 = arith.constant 0 : index
    %45 = vector.load %arg11[%c19, %c0_29] : memref<400x128xf32, #tpu.memory_space<vmem>>, vector<360x128xf32>
    %c20 = arith.constant 20 : index
    %c0_30 = arith.constant 0 : index
    %46 = vector.load %arg11[%c20, %c0_30] : memref<400x128xf32, #tpu.memory_space<vmem>>, vector<360x128xf32>
    %47 = tpu.concatenate %44, %45, %46 in 1 : vector<360x128xf32>, vector<360x128xf32>, vector<360x128xf32> -> vector<360x384xf32>
    %48 = arith.truncf %47 : vector<360x384xf32> to vector<360x384xbf16>
    %c1_31 = arith.constant 1 : index
    %c0_32 = arith.constant 0 : index
    %c0_33 = arith.constant 0 : index
    %49 = vector.load %arg8[%c1_31, %c0_32, %c0_33] : memref<3x384x128xbf16, #tpu.memory_space<vmem>>, vector<1x384x128xbf16>
    %50 = vector.shape_cast %49 : vector<1x384x128xbf16> to vector<384x128xbf16>
    %cst_34 = arith.constant dense<0.000000e+00> : vector<360x128xf32>
    %51 = tpu.matmul %48, %50, %cst_34 {dimension_numbers = #tpu.dot_dimension_numbers<[1], [0], [0], [1], [0, 0, 1, 1], [], []>} : vector<360x384xbf16>, vector<384x128xbf16>, vector<360x128xf32> -> vector<360x128xf32>
    %52 = arith.addf %43, %51 : vector<360x128xf32>
    %c36 = arith.constant 36 : index
    %c0_35 = arith.constant 0 : index
    %53 = vector.load %arg11[%c36, %c0_35] : memref<400x128xf32, #tpu.memory_space<vmem>>, vector<360x128xf32>
    %c37 = arith.constant 37 : index
    %c0_36 = arith.constant 0 : index
    %54 = vector.load %arg11[%c37, %c0_36] : memref<400x128xf32, #tpu.memory_space<vmem>>, vector<360x128xf32>
    %c38 = arith.constant 38 : index
    %c0_37 = arith.constant 0 : index
    %55 = vector.load %arg11[%c38, %c0_37] : memref<400x128xf32, #tpu.memory_space<vmem>>, vector<360x128xf32>
    %56 = tpu.concatenate %53, %54, %55 in 1 : vector<360x128xf32>, vector<360x128xf32>, vector<360x128xf32> -> vector<360x384xf32>
    %57 = arith.truncf %56 : vector<360x384xf32> to vector<360x384xbf16>
    %c2_38 = arith.constant 2 : index
    %c0_39 = arith.constant 0 : index
    %c0_40 = arith.constant 0 : index
    %58 = vector.load %arg8[%c2_38, %c0_39, %c0_40] : memref<3x384x128xbf16, #tpu.memory_space<vmem>>, vector<1x384x128xbf16>
    %59 = vector.shape_cast %58 : vector<1x384x128xbf16> to vector<384x128xbf16>
    %cst_41 = arith.constant dense<0.000000e+00> : vector<360x128xf32>
    %60 = tpu.matmul %57, %59, %cst_41 {dimension_numbers = #tpu.dot_dimension_numbers<[1], [0], [0], [1], [0, 0, 1, 1], [], []>} : vector<360x384xbf16>, vector<384x128xbf16>, vector<360x128xf32> -> vector<360x128xf32>
    %61 = arith.addf %52, %60 : vector<360x128xf32>
    %c0_42 = arith.constant 0 : index
    %c0_43 = arith.constant 0 : index
    %62 = vector.load %arg5[%c0_42, %c0_43] : memref<360x1xf32, #tpu.memory_space<vmem>>, vector<360x1xf32>
    %63 = vector.broadcast %62 : vector<360x1xf32> to vector<360x128xf32>
    %64 = arith.mulf %61, %63 : vector<360x128xf32>
    %cst_44 = arith.constant dense<0.000000e+00> : vector<128xf32>
    %65 = vector.multi_reduction <add>, %64, %cst_44 [0] : vector<360x128xf32> to vector<128xf32>
    %66 = vector.shape_cast %65 : vector<128xf32> to vector<1x128xf32>
    %67 = arith.mulf %64, %64 : vector<360x128xf32>
    %cst_45 = arith.constant dense<0.000000e+00> : vector<128xf32>
    %68 = vector.multi_reduction <add>, %67, %cst_45 [0] : vector<360x128xf32> to vector<128xf32>
    %69 = vector.shape_cast %68 : vector<128xf32> to vector<1x128xf32>
    %70 = tpu.concatenate %66, %69 in 0 : vector<1x128xf32>, vector<1x128xf32> -> vector<2x128xf32>
    %71 = vector.shape_cast %70 : vector<2x128xf32> to vector<1x2x128xf32>
    %c0_46 = arith.constant 0 : index
    %c0_47 = arith.constant 0 : index
    %c0_48 = arith.constant 0 : index
    %72 = vector.load %arg10[%c0_46, %c0_47, %c0_48] : memref<1x2x128xf32, #tpu.memory_space<vmem>>, vector<1x2x128xf32>
    tpu.vector_store %arg10[%c0_46, %c0_47, %c0_48], %71 {strides = array<i32>} : memref<1x2x128xf32, #tpu.memory_space<vmem>>, vector<1x2x128xf32>,
    %73 = arith.truncf %61 : vector<360x128xf32> to vector<360x128xbf16>
    %c0_49 = arith.constant 0 : index
    %c0_50 = arith.constant 0 : index
    %74 = vector.load %arg9[%c0_49, %c0_50] : memref<360x128xbf16, #tpu.memory_space<vmem>>, vector<360x128xbf16>
    tpu.vector_store %arg9[%c0_49, %c0_50], %73 {strides = array<i32>} : memref<360x128xbf16, #tpu.memory_space<vmem>>, vector<360x128xbf16>,
    return
  }
  func.func @transform_0(%arg0: i32) -> (i32, i32) {
    %c0_i32 = arith.constant 0 : i32
    %c0_i32_0 = arith.constant 0 : i32
    return %arg0, %c0_i32 : i32, i32
  }
  func.func @transform_1(%arg0: i32) -> (i32, i32) {
    %c1_i32 = arith.constant 1 : i32
    %0 = arith.addi %arg0, %c1_i32 : i32
    %c9_i32 = arith.constant 9 : i32
    %1 = arith.muli %0, %c9_i32 : i32
    %c0_i32 = arith.constant 0 : i32
    %c0_i32_0 = arith.constant 0 : i32
    return %1, %c0_i32 : i32, i32
  }
  func.func @transform_2(%arg0: i32) -> (i32, i32) {
    %c0_i32 = arith.constant 0 : i32
    %c0_i32_0 = arith.constant 0 : i32
    return %arg0, %c0_i32 : i32, i32
  }
  func.func @transform_3(%arg0: i32) -> (i32, i32) {
    %c1_i32 = arith.constant 1 : i32
    %0 = arith.addi %arg0, %c1_i32 : i32
    %c9_i32 = arith.constant 9 : i32
    %1 = arith.muli %0, %c9_i32 : i32
    %c0_i32 = arith.constant 0 : i32
    %c0_i32_0 = arith.constant 0 : i32
    return %1, %c0_i32 : i32, i32
  }
  func.func @transform_4(%arg0: i32) -> (i32, i32) {
    %c0_i32 = arith.constant 0 : i32
    %c0_i32_0 = arith.constant 0 : i32
    return %arg0, %c0_i32 : i32, i32
  }
  func.func @transform_5(%arg0: i32) -> (i32, i32) {
    %c0_i32 = arith.constant 0 : i32
    %c0_i32_0 = arith.constant 0 : i32
    %c0_i32_1 = arith.constant 0 : i32
    return %c0_i32, %c0_i32_0 : i32, i32
  }
  func.func @transform_6(%arg0: i32) -> (i32, i32) {
    %c0_i32 = arith.constant 0 : i32
    %c0_i32_0 = arith.constant 0 : i32
    %c0_i32_1 = arith.constant 0 : i32
    return %c0_i32, %c0_i32_0 : i32, i32
  }
  func.func @transform_7(%arg0: i32) -> (i32, i32, i32) {
    %c0_i32 = arith.constant 0 : i32
    %c0_i32_0 = arith.constant 0 : i32
    %c0_i32_1 = arith.constant 0 : i32
    %c0_i32_2 = arith.constant 0 : i32
    return %c0_i32, %c0_i32_0, %c0_i32_1 : i32, i32, i32
  }
  func.func @transform_8(%arg0: i32) -> (i32, i32) {
    %c0_i32 = arith.constant 0 : i32
    %c0_i32_0 = arith.constant 0 : i32
    return %arg0, %c0_i32 : i32, i32
  }
  func.func @transform_9(%arg0: i32) -> (i32, i32, i32) {
    %c0_i32 = arith.constant 0 : i32
    %c0_i32_0 = arith.constant 0 : i32
    %c0_i32_1 = arith.constant 0 : i32
    return %arg0, %c0_i32, %c0_i32_0 : i32, i32, i32
  }
}

module attributes {stable_mosaic.version = 11 : i64} {
  func.func @_bn_add_relu_kernel(%arg0: i32, %arg1: memref<360x128xbf16, #tpu.memory_space<vmem>>, %arg2: memref<360x128xf32, #tpu.memory_space<vmem>>, %arg3: memref<1x128xf32, #tpu.memory_space<vmem>>, %arg4: memref<1x128xf32, #tpu.memory_space<vmem>>, %arg5: memref<360x128xf32, #tpu.memory_space<vmem>>) attributes {dimension_semantics = [#tpu.dimension_semantics<parallel>], iteration_bounds = array<i64: 2>, scalar_prefetch = 0 : i64, scratch_operands = 0 : i64, tpu.core_type = #tpu.core_type<tc>, window_params = [{transform_indices = @transform_0, window_bounds = array<i64: 360, 128>}, {transform_indices = @transform_1, window_bounds = array<i64: 360, 128>}, {pipeline_mode = #tpu.pipeline_mode<synchronous>, transform_indices = @transform_2, window_bounds = array<i64: 1, 128>}, {pipeline_mode = #tpu.pipeline_mode<synchronous>, transform_indices = @transform_3, window_bounds = array<i64: 1, 128>}, {transform_indices = @transform_4, window_bounds = array<i64: 360, 128>}]} {
    %c0 = arith.constant 0 : index
    %c0_0 = arith.constant 0 : index
    %0 = vector.load %arg1[%c0, %c0_0] : memref<360x128xbf16, #tpu.memory_space<vmem>>, vector<360x128xbf16>
    %1 = arith.extf %0 : vector<360x128xbf16> to vector<360x128xf32>
    %c0_1 = arith.constant 0 : index
    %c0_2 = arith.constant 0 : index
    %2 = vector.load %arg3[%c0_1, %c0_2] : memref<1x128xf32, #tpu.memory_space<vmem>>, vector<1x128xf32>
    %3 = vector.broadcast %2 : vector<1x128xf32> to vector<360x128xf32>
    %4 = arith.mulf %1, %3 : vector<360x128xf32>
    %c0_3 = arith.constant 0 : index
    %c0_4 = arith.constant 0 : index
    %5 = vector.load %arg4[%c0_3, %c0_4] : memref<1x128xf32, #tpu.memory_space<vmem>>, vector<1x128xf32>
    %6 = vector.broadcast %5 : vector<1x128xf32> to vector<360x128xf32>
    %7 = arith.addf %4, %6 : vector<360x128xf32>
    %c0_5 = arith.constant 0 : index
    %c0_6 = arith.constant 0 : index
    %8 = vector.load %arg2[%c0_5, %c0_6] : memref<360x128xf32, #tpu.memory_space<vmem>>, vector<360x128xf32>
    %9 = arith.addf %7, %8 : vector<360x128xf32>
    %cst = arith.constant 0.000000e+00 : f32
    %10 = vector.broadcast %cst : f32 to vector<360x128xf32>
    %11 = arith.maximumf %9, %10 : vector<360x128xf32>
    %c0_7 = arith.constant 0 : index
    %c0_8 = arith.constant 0 : index
    %12 = vector.load %arg5[%c0_7, %c0_8] : memref<360x128xf32, #tpu.memory_space<vmem>>, vector<360x128xf32>
    tpu.vector_store %arg5[%c0_7, %c0_8], %11 {strides = array<i32>} : memref<360x128xf32, #tpu.memory_space<vmem>>, vector<360x128xf32>,
    return
  }
  func.func @transform_0(%arg0: i32) -> (i32, i32) {
    %c0_i32 = arith.constant 0 : i32
    %c0_i32_0 = arith.constant 0 : i32
    return %arg0, %c0_i32 : i32, i32
  }
  func.func @transform_1(%arg0: i32) -> (i32, i32) {
    %c0_i32 = arith.constant 0 : i32
    %c0_i32_0 = arith.constant 0 : i32
    return %arg0, %c0_i32 : i32, i32
  }
  func.func @transform_2(%arg0: i32) -> (i32, i32) {
    %c0_i32 = arith.constant 0 : i32
    %c0_i32_0 = arith.constant 0 : i32
    %c0_i32_1 = arith.constant 0 : i32
    return %c0_i32, %c0_i32_0 : i32, i32
  }
  func.func @transform_3(%arg0: i32) -> (i32, i32) {
    %c0_i32 = arith.constant 0 : i32
    %c0_i32_0 = arith.constant 0 : i32
    %c0_i32_1 = arith.constant 0 : i32
    return %c0_i32, %c0_i32_0 : i32, i32
  }
  func.func @transform_4(%arg0: i32) -> (i32, i32) {
    %c0_i32 = arith.constant 0 : i32
    %c0_i32_0 = arith.constant 0 : i32
    return %arg0, %c0_i32 : i32, i32
  }
}

</mosaic_0001>

<bundles_post_ra>
// kernel: tile.6
= control target key start
LH: loop header
LB: loop body
LE: loop exit
PB: predicated region body
PF: predicated region fallthrough
CT: control target
= control target key end

     0   :  { %s46_s0 = inlined_call_operand.vmem [shape: f32[324], index: 0, kind: input, shape index: {}]   ;;  %s47_s1 = inlined_call_operand.vmem [shape: f32[2,324], index: 1, kind: output, shape index: {}]  }
   0x1   :  { %v4_v0 = vld [vmem:[%s46_s0] ss:$0 sm:$0xff]  ;;  %v14_v1 = vld [vmem:[%s46_s0 + $0x1] ss:$0 sm:$0xff]  ;;  %v16_v2 = vld [vmem:[%s46_s0 + $0x2] ss:$0 sm:$0xff] }
   0x2   :  { %5 = vst [vmem:[%s47_s1] sm:$0x3] %v4_v0 }
   0x3   :  { %15 = vst [vmem:[%s47_s1 + $0x2] sm:$0x3] %v14_v1 }
   0x4   :  { %17 = vst [vmem:[%s47_s1 + $0x4] sm:$0x3] %v16_v2 }

// kernel: tile.5
= control target key start
LH: loop header
LB: loop body
LE: loop exit
PB: predicated region body
PF: predicated region fallthrough
CT: control target
= control target key end

     0   :  { %vm9_vm0 = vcmask 15360   ;;  %s173_s10 = smov 108   ;;  %s174_s13 = smov 126   ;;  %vm22_vm1 = vcmask 31744   ;;  %vm3_vm2 = vcmask 146432   ;;  %vm13_vm3 = vcmask 130048   ;;  %s263_s0 = inlined_call_operand.vmem [shape: f32[18,18], index: 0, kind: input, shape index: {}]   ;;  %s264_s1 = inlined_call_operand.vmem [shape: f32[324], index: 1, kind: output, shape index: {}]  }
   0x1   :  { %v141_v0 = vld [vmem:[%s263_s0 + $0x6] sm:$0x1]   ;;  %v137_v1 = vld [vmem:[%s263_s0 + $0x7] sm:$0x1]   ;;  %v139_v4 = vld [vmem:[%s263_s0 + $0xe] sm:$0x1]  }
   0x2   :  { %34 = vrot.lane.b32.xlu1 %v141_v0, %s173_s10  ;;  %v138_v2 = vld [vmem:[%s263_s0 + $0x7] sm:$0x1]   ;;  %v140_v5 = vld [vmem:[%s263_s0 + $0xe] sm:$0x1]   ;;  %v143_v6 = vld [vmem:[%s263_s0 + $0x5] sm:$0x1]  }
   0x3   :  { %v10_v3 = vsel %vm9_vm0, %v138_v2, %v137_v1  ;;  %v142_v7 = vld [vmem:[%s263_s0 + $0xd] sm:$0x1]   ;;  %s175_s22 = smov 90   ;;  %v23_v8 = vsel %vm22_vm1, %v140_v5, %v139_v4  ;;  %s176_s23 = smov 106   ;;  %v144_v9 = vld [vmem:[%s263_s0 + $0xc] sm:$0x1]  }
   0x4   :  { %11 = vrot.lane.b32.xlu0 %v10_v3, %s174_s13  ;;  %47 = vrot.lane.b32.xlu2 %v143_v6, %s175_s22  ;;  %s177_s24 = smov 124   ;;  %v146_v10 = vld [vmem:[%s263_s0 + $0xb] sm:$0x1]   ;;  %s178_s29 = smov 88   ;;  %v145_v11 = vld [vmem:[%s263_s0 + $0x4] sm:$0x1]  }
   0x5   :  { %s179_s3 = smov 70   ;;  %s180_s4 = smov 72   ;;  %v147_v12 = vld [vmem:[%s263_s0 + $0x3] sm:$0x1]   ;;  %v149_v13 = vld [vmem:[%s263_s0 + $0x11] sm:$0x1]  }
   0x6   :  { %s181_s9 = smov 54   ;;  %v148_v14 = vld [vmem:[%s263_s0 + $0xa] sm:$0x1]   ;;  %s182_s12 = smov 50   ;;  %v150_v15 = vld [vmem:[%s263_s0 + $0x2] sm:$0x1]  }
   0x7   :  { %s183_s13 = smov 52   ;;  %v152_v16 = vld [vmem:[%s263_s0 + $0x10] sm:$0x1]   ;;  %s184_s18 = smov 36   ;;  %v151_v17 = vld [vmem:[%s263_s0 + $0x9] sm:$0x1]  }
   0x8   :  { %s185_s21 = smov 32   ;;  %s186_s22 = smov 34   ;;  %v153_v18 = vld [vmem:[%s263_s0 + $0x1] sm:$0x1]   ;;  %v155_v19 = vld [vmem:[%s263_s0 + $0xf] sm:$0x1]  }
   0x9   :  { %s187_s27 = smov 18   ;;  %v154_v20 = vld [vmem:[%s263_s0 + $0x8] sm:$0x1]   ;;  %s188_s30 = smov 14   ;;  %v2_v21 = vld [vmem:[%s263_s0] sm:$0x1]  }
   0xa   :  { %40 = vrot.lane.b32.xlu1 %v142_v7, %s176_s23  ;;  %s189_s2 = smov 16   ;;  %4 = vst.msk [vmem:[#allocation0] sm:$0x1] %vm3_vm2, %v2_v21   ;;  %vm16_vm4 = vcmask 1048560   ;;  %vm36_vm5 = vcmask 1032032   ;;  %vm49_vm6 = vcmask 884432  }
   0xb   :  { %vm26_vm7 = vcmask 113664   ;;  %vm29_vm8 = vcmask 1048544   ;;  %vm42_vm9 = vcmask 1015632   ;;  %vm55_vm10 = vcmask 868032  }
   0xc   :  { %24 = vrot.lane.b32.xlu0 %v23_v8, %s177_s24  ;;  %53 = vrot.lane.b32.xlu2 %v144_v9, %s178_s29  ;;  %vm68_vm11 = vcmask 720432   ;;  %vm62_vm12 = vcmask 736832   ;;  %vm75_vm13 = vcmask 589232   ;;  %vm95_vm14 = vcmask 441632  }
   0xd   :  { %vm115_vm15 = vcmask 294032   ;;  %vm88_vm0 = vcmask 556432   ;;  %vm81_vm1 = vcmask 572832   ;;  %vm108_vm2 = vcmask 408832  }
  0x12   :  { %66 = vrot.lane.b32.xlu1 %v146_v10, %s179_s3 }
  0x14   :  { %60 = vrot.lane.b32.xlu0 %v145_v11, %s180_s4  ;;  %73 = vrot.lane.b32.xlu2 %v147_v12, %s181_s9 }
  0x1a   :  { %86 = vrot.lane.b32.xlu1 %v149_v13, %s182_s12 }
  0x1c   :  { %79 = vrot.lane.b32.xlu0 %v148_v14, %s183_s13  ;;  %93 = vrot.lane.b32.xlu2 %v150_v15, %s184_s18 }
  0x22   :  { %106 = vrot.lane.b32.xlu1 %v152_v16, %s185_s21 }
  0x24   :  { %99 = vrot.lane.b32.xlu0 %v151_v17, %s186_s22  ;;  %113 = vrot.lane.b32.xlu2 %v153_v18, %s187_s27 }
  0x2a   :  { %126 = vrot.lane.b32.xlu1 %v155_v19, %s188_s30 }
  0x2c   :  { %119 = vrot.lane.b32.xlu0 %v154_v20, %s189_s2 }
  0x5e   :  { %v48_v22 = vpop.permute.xlu2 %47  }
  0x66   :  { %v54_v23 = vpop.permute.xlu2 %53  }
  0x6e   :  { %v74_v24 = vpop.permute.xlu2 %73  }
  0x74   :  { %v35_v25 = vpop.permute.xlu1 %34  }
  0x76   :  { %v12_v26 = vpop.permute.xlu0 %11   ;;  %v94_v27 = vpop.permute.xlu2 %93  }
  0x77   :  { %15 = vst.msk [vmem:[#allocation0 + $0x1] sm:$0x1] %vm13_vm3, %v12_v26   ;;  %vm101_vm3 = vcmask 425232  }
  0x78   :  { %17 = vst.msk [vmem:[#allocation0] sm:$0x1] %vm16_vm4, %v12_v26   ;;  %vm128_vm4 = vcmask 261232  }
  0x79   :  { %37 = vst.msk [vmem:[#allocation0] sm:$0x1] %vm36_vm5, %v35_v25   ;;  %vm121_vm5 = vcmask 277632  }
  0x7a   :  { %50 = vst.msk [vmem:[#allocation0] sm:$0x1] %vm49_vm6, %v48_v22  }
  0x7c   :  { %v41_v28 = vpop.permute.xlu1 %40  }
  0x7e   :  { %v25_v29 = vpop.permute.xlu0 %24   ;;  %v114_v30 = vpop.permute.xlu2 %113  }
  0x7f   :  { %28 = vst.msk [vmem:[#allocation0 + $0x2] sm:$0x1] %vm26_vm7, %v25_v29  }
  0x80   :  { %31 = vst.msk [vmem:[#allocation0 + $0x1] sm:$0x1] %vm29_vm8, %v25_v29  }
  0x81   :  { %44 = vst.msk [vmem:[#allocation0 + $0x1] sm:$0x1] %vm42_vm9, %v41_v28  }
  0x82   :  { %57 = vst.msk [vmem:[#allocation0 + $0x1] sm:$0x1] %vm55_vm10, %v54_v23  }
  0x84   :  { %v67_v31 = vpop.permute.xlu1 %66  }
  0x85   :  { %70 = vst.msk [vmem:[#allocation0 + $0x1] sm:$0x1] %vm68_vm11, %v67_v31  }
  0x86   :  { %v61_v32 = vpop.permute.xlu0 %60  }
  0x87   :  { %63 = vst.msk [vmem:[#allocation0] sm:$0x1] %vm62_vm12, %v61_v32  }
  0x88   :  { %76 = vst.msk [vmem:[#allocation0] sm:$0x1] %vm75_vm13, %v74_v24  }
  0x89   :  { %96 = vst.msk [vmem:[#allocation0] sm:$0x1] %vm95_vm14, %v94_v27  }
  0x8a   :  { %116 = vst.msk [vmem:[#allocation0] sm:$0x1] %vm115_vm15, %v114_v30  }
  0x8c   :  { %v87_v33 = vpop.permute.xlu1 %86  }
  0x8d   :  { %90 = vst.msk [vmem:[#allocation0 + $0x2] sm:$0x1] %vm88_vm0, %v87_v33  }
  0x8e   :  { %v80_v34 = vpop.permute.xlu0 %79  }
  0x8f   :  { %83 = vst.msk [vmem:[#allocation0 + $0x1] sm:$0x1] %vm81_vm1, %v80_v34  }
  0x94   :  { %v107_v35 = vpop.permute.xlu1 %106  }
  0x95   :  { %110 = vst.msk [vmem:[#allocation0 + $0x2] sm:$0x1] %vm108_vm2, %v107_v35  }
  0x96   :  { %v100_v36 = vpop.permute.xlu0 %99  }
  0x97   :  { %103 = vst.msk [vmem:[#allocation0 + $0x1] sm:$0x1] %vm101_vm3, %v100_v36  }
  0x9c   :  { %v127_v37 = vpop.permute.xlu1 %126  }
  0x9d   :  { %130 = vst.msk [vmem:[#allocation0 + $0x2] sm:$0x1] %vm128_vm4, %v127_v37  }
  0x9e   :  { %v120_v38 = vpop.permute.xlu0 %119  }
  0x9f   :  { %123 = vst.msk [vmem:[#allocation0 + $0x1] sm:$0x1] %vm121_vm5, %v120_v38  }
  0xa6   :  { %v133_v39 = vld [vmem:[#allocation0] sm:$0xf] }
  0xa7   :  { %136 = vst [vmem:[%s264_s1] sm:$0xf] %v133_v39 }

// kernel: tile.7
= control target key start
LH: loop header
LB: loop body
LE: loop exit
PB: predicated region body
PF: predicated region fallthrough
CT: control target
= control target key end

     0   :  { %vm26_vm0 = vcmask 490496   ;;  %s51_s12 = smov 68   ;;  %s37_s15 = smov 3  ;;  %vm16_vm1 = vcmask 556032   ;;  %vm30_vm2 = vcmask 64512   ;;  %vm33_vm3 = vcmask 1048096   ;;  %s86_s0 = inlined_call_operand.vmem [shape: f32[2,324], index: 0, kind: input, shape index: {}]   ;;  %s87_s1 = inlined_call_operand.vmem [shape: f32[648], index: 1, kind: output, shape index: {}]  }
   0x1   :  { %v44_v0 = vld [vmem:[%s86_s0 + $0x4] sm:$0x3]  ;;  %v45_v1 = vld [vmem:[%s86_s0 + $0x2] sm:$0x3]  ;;  %v12_v2 = vld [vmem:[%s86_s0] sm:$0x3] }
   0x2   :  { %7 = vst [vmem:[#allocation0 + $0x10] sm:$0x3] %v44_v0  ;;  %s19_s0 = smov 3 }
   0x3   :  { %11 = vst [vmem:[#allocation0 + $0x8] sm:$0x3] %v45_v1 }
   0x4   :  { %13 = vst [vmem:[#allocation0] sm:$0x3] %v12_v2 }
   0x9   :  { %v23_v3 = vld [vmem:[#allocation0 + $0x11] sm:$0x1]   ;;  %v15_v8 = vld [vmem:[#allocation0 + $0x10] sm:$0x1]  }
   0xa   :  { %46 = vst.msk [vmem:[%s87_s1 + $0x2] sm:$0x1] %vm16_vm1, %v15_v8  }
   0xb   :  { %v25_v4 = vld [vmem:[#allocation0 + $0x1] ss:$8 sm:$0x7]   ;;  %v20_v6 = vld [vmem:[#allocation0] ss:$8 sm:%s19_s0]  }
   0xc   :  { %v27_v5 = vsel %vm26_vm0, %v25_v4, %v23_v3  ;;  %21 = vst [vmem:[%s87_s1] sm:$0x3] %v20_v6   ;;  %v38_v7 = vld [vmem:[#allocation0 + $0x1] ss:$8 sm:%s37_s15]  }
   0xd   :  { %28 = vrot.lane.b32.xlu0 %v27_v5, %s51_s12 }
  0x15   :  { %39 = vrot.lane.b32.xlu0 %v38_v7, %s51_s12 }
  0x7f   :  { %v29_v9 = vpop.permute.xlu0 %28  }
  0x80   :  { %47 = vst.msk [vmem:[%s87_s1 + $0x5] sm:$0x1] %vm30_vm2, %v29_v9  }
  0x81   :  { %48 = vst.msk [vmem:[%s87_s1 + $0x2] sm:$0x7] %vm33_vm3, %v29_v9  }
  0x87   :  { %v40_v10 = vpop.permute.xlu0 %39  }
  0x88   :  { %49 = vst.msk [vmem:[%s87_s1 + $0x3] sm:$0x3] %vm16_vm1, %v40_v10  }

// kernel: basic_block_forward.5
= control target key start
LH: loop header
LB: loop body
LE: loop exit
PB: predicated region body
PF: predicated region fallthrough
CT: control target
= control target key end

     0   :  { %s821_s15 = smov 0   ;;  %s1068_s0 = inlined_call_operand.vmem [shape: bf16[720,128], index: 0, kind: input, shape index: {}]   ;;  %s1069_s1 = inlined_call_operand.vmem [shape: f32[720,128], index: 1, kind: input, shape index: {}]   ;;  %s1070_s2 = inlined_call_operand.vmem [shape: f32[1,128], index: 2, kind: input, shape index: {}]   ;;  %s1071_s3 = inlined_call_operand.vmem [shape: f32[1,128], index: 3, kind: input, shape index: {}]   ;;  %s1072_s4 = inlined_call_operand.vmem [shape: f32[720,128], index: 4, kind: output, shape index: {}]  }
   0x1 LB: > { %s659_s16 = sadd.s32 4294967295, %s794_s15   ;;  %p663_p0 = scmp.ge.s32.totalorder %s794_s15, 1  ;;  %s794_s15 = sphi %s821_s15, %s14_s15  }
   0x2   : > { %p174_p1 = scmp.lt.s32.totalorder %s794_s15, 3 }
   0x4   : > { %p175_p2 = pnand %p663_p0, %p174_p1 }
   0x5   : > { %s205_s17 = smul.u32 (!%p175_p2), 45, %s659_s16 }
   0x6   : > { %178 = sbr.rel (%p175_p2) target bundleno = 79 (0x4f), region = 36 }
   0x7   : > { %p206_p3 = scmp.lt.s32.totalorder (!%p175_p2), %s205_s17, 89 }
   0xb   : > { %s1074_s17 = smov (!%p206_p3, %s205_s17), 89  ;;  %v841_v0 = vld [vmem:[%s1070_s2] ss:$0 sm:$0xff] }
   0xc   : > { %s664_s18 = sshll.u32 %s1074_s17, 2  ;;  %s665_s19 = sshll.u32 %s1074_s17, 3  ;;  %v854_v3 = vld [vmem:[%s1071_s3] ss:$0 sm:$0xff] }
   0xd   : > { %s836_s22 = scalar_lea.vmem %s1068_s0, %s664_s18  ;;  %s849_s27 = scalar_lea.vmem %s1069_s1, %s665_s19 }
   0xe   : > { %v670_v1 = vld [vmem:[%s836_s22] sm:$0xff]   ;;  %v757_v5 = vld [vmem:[%s836_s22 + $0x8] sm:$0xff]   ;;  %v758_v8 = vld [vmem:[%s836_s22 + $0x10] sm:$0xff]   ;;  %s886_s6 = scalar_lea.vmem %s1072_s4, %s665_s19 }
   0xf   : > { %v671_v2 = vunpack.c.l.bf16 %v670_v1  ;;  %v672_v4 = vunpack.c.h.bf16 %v670_v1  ;;  %v675_v6 = vunpack.c.l.bf16 %v757_v5  ;;  %v676_v7 = vunpack.c.h.bf16 %v757_v5  ;;  %v759_v13 = vld [vmem:[%s836_s22 + $0x18] sm:$0xff]   ;;  %v411_v14 = vld [vmem:[%s849_s27] sm:$0xff]  ;;  %v412_v15 = vld [vmem:[%s849_s27 + $0x8] sm:$0xff] }
  0x10   : > { %v679_v11 = vunpack.c.l.bf16 %v758_v8  ;;  %v680_v12 = vunpack.c.h.bf16 %v758_v8  ;;  %v683_v18 = vunpack.c.l.bf16 %v759_v13  ;;  %v684_v19 = vunpack.c.h.bf16 %v759_v13  ;;  %v413_v22 = vld [vmem:[%s849_s27 + $0x10] sm:$0xff]  ;;  %v414_v23 = vld [vmem:[%s849_s27 + $0x18] sm:$0xff]  ;;  %v415_v28 = vld [vmem:[%s849_s27 + $0x20] sm:$0xff] }
  0x11   : > { %v317_v9 = vmul.f32 %v841_v0, %v671_v2  ;;  %v318_v10 = vmul.f32 %v841_v0, %v672_v4  ;;  %v319_v16 = vmul.f32 %v841_v0, %v675_v6  ;;  %v320_v17 = vmul.f32 %v841_v0, %v676_v7  ;;  %v416_v29 = vld [vmem:[%s849_s27 + $0x28] sm:$0xff]  ;;  %v417_v36 = vld [vmem:[%s849_s27 + $0x30] sm:$0xff]  ;;  %v418_v37 = vld [vmem:[%s849_s27 + $0x38] sm:$0xff] }
  0x12   : > { %v321_v24 = vmul.f32 %v841_v0, %v679_v11  ;;  %v322_v25 = vmul.f32 %v841_v0, %v680_v12  ;;  %v323_v30 = vmul.f32 %v841_v0, %v683_v18  ;;  %v324_v31 = vmul.f32 %v841_v0, %v684_v19  ;;  %v760_v42 = vld [vmem:[%s836_s22 + $0x20] sm:$0xff]   ;;  %v761_v47 = vld [vmem:[%s836_s22 + $0x28] sm:$0xff]   ;;  %v762_v52 = vld [vmem:[%s836_s22 + $0x30] sm:$0xff]  }
  0x13   : > { %v366_v20 = vadd.f32 %v854_v3, %v317_v9  ;;  %v367_v21 = vadd.f32 %v854_v3, %v318_v10  ;;  %v368_v26 = vadd.f32 %v854_v3, %v319_v16  ;;  %v369_v27 = vadd.f32 %v854_v3, %v320_v17  ;;  %v763_v57 = vld [vmem:[%s836_s22 + $0x38] sm:$0xff]   ;;  %v419_v4 = vld [vmem:[%s849_s27 + $0x40] sm:$0xff]  ;;  %v420_v5 = vld [vmem:[%s849_s27 + $0x48] sm:$0xff] }
  0x14   : > { %v370_v34 = vadd.f32 %v854_v3, %v321_v24  ;;  %v371_v35 = vadd.f32 %v854_v3, %v322_v25  ;;  %v372_v40 = vadd.f32 %v854_v3, %v323_v30  ;;  %v373_v41 = vadd.f32 %v854_v3, %v324_v31  ;;  %v421_v12 = vld [vmem:[%s849_s27 + $0x50] sm:$0xff]  ;;  %v422_v13 = vld [vmem:[%s849_s27 + $0x58] sm:$0xff]  ;;  %v423_v18 = vld [vmem:[%s849_s27 + $0x60] sm:$0xff] }
  0x15   : > { %v456_v32 = vadd.f32 %v411_v14, %v366_v20  ;;  %v457_v33 = vadd.f32 %v412_v15, %v367_v21  ;;  %v458_v38 = vadd.f32 %v413_v22, %v368_v26  ;;  %v459_v39 = vadd.f32 %v414_v23, %v369_v27  ;;  %v424_v19 = vld [vmem:[%s849_s27 + $0x68] sm:$0xff]  ;;  %v425_v26 = vld [vmem:[%s849_s27 + $0x70] sm:$0xff]  ;;  %v426_v27 = vld [vmem:[%s849_s27 + $0x78] sm:$0xff] }
  0x16   : > { %v460_v45 = vadd.f32 %v415_v28, %v370_v34  ;;  %v461_v46 = vadd.f32 %v416_v29, %v371_v35  ;;  %v462_v50 = vadd.f32 %v417_v36, %v372_v40  ;;  %v463_v51 = vadd.f32 %v418_v37, %v373_v41  ;;  %v765_v37 = vld [vmem:[%s836_s22 + $0x48] sm:$0xff]  }
  0x17   : > { %v501_v43 = vmax.f32 %v456_v32, 0.0  ;;  %v502_v44 = vmax.f32 %v457_v33, 0.0  ;;  %v503_v48 = vmax.f32 %v458_v38, 0.0  ;;  %v504_v49 = vmax.f32 %v459_v39, 0.0  ;;  %v764_v32 = vld [vmem:[%s836_s22 + $0x40] sm:$0xff]  }
  0x18   : > { %v505_v53 = vmax.f32 %v460_v45, 0.0  ;;  %v506_v54 = vmax.f32 %v461_v46, 0.0  ;;  %v687_v55 = vunpack.c.l.bf16 %v760_v42  ;;  %v688_v56 = vunpack.c.h.bf16 %v760_v42  ;;  %v766_v42 = vld [vmem:[%s836_s22 + $0x50] sm:$0xff]  }
  0x19   : > { %546 = vst [vmem:[%s886_s6] sm:$0xff] %v501_v43  ;;  %v507_v58 = vmax.f32 %v462_v50, 0.0  ;;  %v508_v59 = vmax.f32 %v463_v51, 0.0  ;;  %v691_v60 = vunpack.c.l.bf16 %v761_v47  ;;  %v692_v61 = vunpack.c.h.bf16 %v761_v47  ;;  %v767_v47 = vld [vmem:[%s836_s22 + $0x58] sm:$0xff]  }
  0x1a   : > { %547 = vst [vmem:[%s886_s6 + $0x8] sm:$0xff] %v502_v44  ;;  %v325_v62 = vmul.f32 %v841_v0, %v687_v55  ;;  %v326_v63 = vmul.f32 %v841_v0, %v688_v56  ;;  %v695_v1 = vunpack.c.l.bf16 %v762_v52  ;;  %v696_v2 = vunpack.c.h.bf16 %v762_v52  ;;  %v427_v56 = vld [vmem:[%s849_s27 + $0x80] sm:$0xff] }
  0x1b   : > { %548 = vst [vmem:[%s886_s6 + $0x10] sm:$0xff] %v503_v48  ;;  %v327_v6 = vmul.f32 %v841_v0, %v691_v60  ;;  %v328_v7 = vmul.f32 %v841_v0, %v692_v61  ;;  %v699_v8 = vunpack.c.l.bf16 %v763_v57  ;;  %v700_v9 = vunpack.c.h.bf16 %v763_v57  ;;  %v428_v57 = vld [vmem:[%s849_s27 + $0x88] sm:$0xff] }
  0x1c   : > { %549 = vst [vmem:[%s886_s6 + $0x18] sm:$0xff] %v504_v49  ;;  %v374_v10 = vadd.f32 %v854_v3, %v325_v62  ;;  %v375_v11 = vadd.f32 %v854_v3, %v326_v63  ;;  %v329_v14 = vmul.f32 %v841_v0, %v695_v1  ;;  %v330_v15 = vmul.f32 %v841_v0, %v696_v2  ;;  %v429_v1 = vld [vmem:[%s849_s27 + $0x90] sm:$0xff]  ;;  %v430_v2 = vld [vmem:[%s849_s27 + $0x98] sm:$0xff] }
  0x1d   : > { %550 = vst [vmem:[%s886_s6 + $0x20] sm:$0xff] %v505_v53  ;;  %v376_v16 = vadd.f32 %v854_v3, %v327_v6  ;;  %v377_v17 = vadd.f32 %v854_v3, %v328_v7  ;;  %v331_v20 = vmul.f32 %v841_v0, %v699_v8  ;;  %v332_v21 = vmul.f32 %v841_v0, %v700_v9  ;;  %v431_v8 = vld [vmem:[%s849_s27 + $0xa0] sm:$0xff]  ;;  %v432_v9 = vld [vmem:[%s849_s27 + $0xa8] sm:$0xff] }
  0x1e   : > { %551 = vst [vmem:[%s886_s6 + $0x28] sm:$0xff] %v506_v54  ;;  %v464_v22 = vadd.f32 %v419_v4, %v374_v10  ;;  %v465_v23 = vadd.f32 %v420_v5, %v375_v11  ;;  %v378_v24 = vadd.f32 %v854_v3, %v329_v14  ;;  %v379_v25 = vadd.f32 %v854_v3, %v330_v15 }
  0x1f   : > { %552 = vst [vmem:[%s886_s6 + $0x30] sm:$0xff] %v507_v58  ;;  %v466_v28 = vadd.f32 %v421_v12, %v376_v16  ;;  %v467_v29 = vadd.f32 %v422_v13, %v377_v17  ;;  %v380_v30 = vadd.f32 %v854_v3, %v331_v20  ;;  %v381_v31 = vadd.f32 %v854_v3, %v332_v21  ;;  %v433_v16 = vld [vmem:[%s849_s27 + $0xb0] sm:$0xff]  ;;  %v434_v17 = vld [vmem:[%s849_s27 + $0xb8] sm:$0xff] }
  0x20   : > { %553 = vst [vmem:[%s886_s6 + $0x38] sm:$0xff] %v508_v59  ;;  %v509_v33 = vmax.f32 %v464_v22, 0.0  ;;  %v510_v34 = vmax.f32 %v465_v23, 0.0  ;;  %v468_v35 = vadd.f32 %v423_v18, %v378_v24  ;;  %v469_v36 = vadd.f32 %v424_v19, %v379_v25  ;;  %v768_v22 = vld [vmem:[%s836_s22 + $0x60] sm:$0xff]  }
  0x21   : > { %v511_v38 = vmax.f32 %v466_v28, 0.0  ;;  %v512_v39 = vmax.f32 %v467_v29, 0.0  ;;  %v470_v40 = vadd.f32 %v425_v26, %v380_v30  ;;  %v471_v41 = vadd.f32 %v426_v27, %v381_v31  ;;  %v769_v27 = vld [vmem:[%s836_s22 + $0x68] sm:$0xff]  }
  0x22   : > { %554 = vst [vmem:[%s886_s6 + $0x40] sm:$0xff] %v509_v33  ;;  %v513_v43 = vmax.f32 %v468_v35, 0.0  ;;  %v514_v44 = vmax.f32 %v469_v36, 0.0  ;;  %v703_v45 = vunpack.c.l.bf16 %v764_v32  ;;  %v704_v46 = vunpack.c.h.bf16 %v764_v32  ;;  %v770_v32 = vld [vmem:[%s836_s22 + $0x70] sm:$0xff]  }
  0x23   : > { %555 = vst [vmem:[%s886_s6 + $0x48] sm:$0xff] %v510_v34  ;;  %v515_v48 = vmax.f32 %v470_v40, 0.0  ;;  %v516_v49 = vmax.f32 %v471_v41, 0.0  ;;  %v707_v50 = vunpack.c.l.bf16 %v765_v37  ;;  %v708_v51 = vunpack.c.h.bf16 %v765_v37  ;;  %v771_v37 = vld [vmem:[%s836_s22 + $0x78] sm:$0xff]  }
  0x24   : > { %556 = vst [vmem:[%s886_s6 + $0x50] sm:$0xff] %v511_v38  ;;  %v333_v52 = vmul.f32 %v841_v0, %v703_v45  ;;  %v334_v53 = vmul.f32 %v841_v0, %v704_v46  ;;  %v711_v54 = vunpack.c.l.bf16 %v766_v42  ;;  %v712_v55 = vunpack.c.h.bf16 %v766_v42  ;;  %v435_v46 = vld [vmem:[%s849_s27 + $0xc0] sm:$0xff] }
  0x25   : > { %557 = vst [vmem:[%s886_s6 + $0x58] sm:$0xff] %v512_v39  ;;  %v335_v58 = vmul.f32 %v841_v0, %v707_v50  ;;  %v336_v59 = vmul.f32 %v841_v0, %v708_v51  ;;  %v715_v60 = vunpack.c.l.bf16 %v767_v47  ;;  %v716_v61 = vunpack.c.h.bf16 %v767_v47  ;;  %v436_v47 = vld [vmem:[%s849_s27 + $0xc8] sm:$0xff] }
  0x26   : > { %558 = vst [vmem:[%s886_s6 + $0x60] sm:$0xff] %v513_v43  ;;  %v382_v62 = vadd.f32 %v854_v3, %v333_v52  ;;  %v383_v63 = vadd.f32 %v854_v3, %v334_v53  ;;  %v337_v4 = vmul.f32 %v841_v0, %v711_v54  ;;  %v338_v5 = vmul.f32 %v841_v0, %v712_v55  ;;  %v437_v54 = vld [vmem:[%s849_s27 + $0xd0] sm:$0xff]  ;;  %v438_v55 = vld [vmem:[%s849_s27 + $0xd8] sm:$0xff] }
  0x27   : > { %559 = vst [vmem:[%s886_s6 + $0x68] sm:$0xff] %v514_v44  ;;  %v384_v6 = vadd.f32 %v854_v3, %v335_v58  ;;  %v385_v7 = vadd.f32 %v854_v3, %v336_v59  ;;  %v339_v10 = vmul.f32 %v841_v0, %v715_v60  ;;  %v340_v11 = vmul.f32 %v841_v0, %v716_v61  ;;  %v439_v60 = vld [vmem:[%s849_s27 + $0xe0] sm:$0xff]  ;;  %v440_v61 = vld [vmem:[%s849_s27 + $0xe8] sm:$0xff] }
  0x28   : > { %560 = vst [vmem:[%s886_s6 + $0x70] sm:$0xff] %v515_v48  ;;  %v472_v12 = vadd.f32 %v427_v56, %v382_v62  ;;  %v473_v13 = vadd.f32 %v428_v57, %v383_v63  ;;  %v386_v14 = vadd.f32 %v854_v3, %v337_v4  ;;  %v387_v15 = vadd.f32 %v854_v3, %v338_v5 }
  0x29   : > { %561 = vst [vmem:[%s886_s6 + $0x78] sm:$0xff] %v516_v49  ;;  %v474_v18 = vadd.f32 %v429_v1, %v384_v6  ;;  %v475_v19 = vadd.f32 %v430_v2, %v385_v7  ;;  %v388_v20 = vadd.f32 %v854_v3, %v339_v10  ;;  %v389_v21 = vadd.f32 %v854_v3, %v340_v11  ;;  %v441_v6 = vld [vmem:[%s849_s27 + $0xf0] sm:$0xff]  ;;  %v442_v7 = vld [vmem:[%s849_s27 + $0xf8] sm:$0xff] }
  0x2a   : > { %v517_v23 = vmax.f32 %v472_v12, 0.0  ;;  %v518_v24 = vmax.f32 %v473_v13, 0.0  ;;  %v476_v25 = vadd.f32 %v431_v8, %v386_v14  ;;  %v477_v26 = vadd.f32 %v432_v9, %v387_v15  ;;  %v772_v12 = vld [vmem:[%s836_s22 + $0x80] sm:$0xff]  }
  0x2b   : > { %v519_v28 = vmax.f32 %v474_v18, 0.0  ;;  %v520_v29 = vmax.f32 %v475_v19, 0.0  ;;  %v478_v30 = vadd.f32 %v433_v16, %v388_v20  ;;  %v479_v31 = vadd.f32 %v434_v17, %v389_v21  ;;  %v773_v17 = vld [vmem:[%s836_s22 + $0x88] sm:$0xff]  }
  0x2c   : > { %562 = vst [vmem:[%s886_s6 + $0x80] sm:$0xff] %v517_v23  ;;  %v521_v33 = vmax.f32 %v476_v25, 0.0  ;;  %v522_v34 = vmax.f32 %v477_v26, 0.0  ;;  %v719_v35 = vunpack.c.l.bf16 %v768_v22  ;;  %v720_v36 = vunpack.c.h.bf16 %v768_v22  ;;  %v774_v22 = vld [vmem:[%s836_s22 + $0x90] sm:$0xff]  }
  0x2d   : > { %563 = vst [vmem:[%s886_s6 + $0x88] sm:$0xff] %v518_v24  ;;  %v523_v38 = vmax.f32 %v478_v30, 0.0  ;;  %v524_v39 = vmax.f32 %v479_v31, 0.0  ;;  %v723_v40 = vunpack.c.l.bf16 %v769_v27  ;;  %v724_v41 = vunpack.c.h.bf16 %v769_v27  ;;  %v775_v27 = vld [vmem:[%s836_s22 + $0x98] sm:$0xff]  }
  0x2e   : > { %564 = vst [vmem:[%s886_s6 + $0x90] sm:$0xff] %v519_v28  ;;  %v341_v42 = vmul.f32 %v841_v0, %v719_v35  ;;  %v342_v43 = vmul.f32 %v841_v0, %v720_v36  ;;  %v727_v44 = vunpack.c.l.bf16 %v770_v32  ;;  %v728_v45 = vunpack.c.h.bf16 %v770_v32  ;;  %v443_v36 = vld [vmem:[%s849_s27 + $0x100] sm:$0xff] }
  0x2f   : > { %565 = vst [vmem:[%s886_s6 + $0x98] sm:$0xff] %v520_v29  ;;  %v343_v48 = vmul.f32 %v841_v0, %v723_v40  ;;  %v344_v49 = vmul.f32 %v841_v0, %v724_v41  ;;  %v731_v50 = vunpack.c.l.bf16 %v771_v37  ;;  %v732_v51 = vunpack.c.h.bf16 %v771_v37  ;;  %v444_v37 = vld [vmem:[%s849_s27 + $0x108] sm:$0xff] }
  0x30   : > { %566 = vst [vmem:[%s886_s6 + $0xa0] sm:$0xff] %v521_v33  ;;  %v390_v52 = vadd.f32 %v854_v3, %v341_v42  ;;  %v391_v53 = vadd.f32 %v854_v3, %v342_v43  ;;  %v345_v56 = vmul.f32 %v841_v0, %v727_v44  ;;  %v346_v57 = vmul.f32 %v841_v0, %v728_v45  ;;  %v445_v44 = vld [vmem:[%s849_s27 + $0x110] sm:$0xff]  ;;  %v446_v45 = vld [vmem:[%s849_s27 + $0x118] sm:$0xff] }
  0x31   : > { %567 = vst [vmem:[%s886_s6 + $0xa8] sm:$0xff] %v522_v34  ;;  %v392_v58 = vadd.f32 %v854_v3, %v343_v48  ;;  %v393_v59 = vadd.f32 %v854_v3, %v344_v49  ;;  %v347_v62 = vmul.f32 %v841_v0, %v731_v50  ;;  %v348_v63 = vmul.f32 %v841_v0, %v732_v51  ;;  %v447_v50 = vld [vmem:[%s849_s27 + $0x120] sm:$0xff]  ;;  %v448_v51 = vld [vmem:[%s849_s27 + $0x128] sm:$0xff] }
  0x32   : > { %568 = vst [vmem:[%s886_s6 + $0xb0] sm:$0xff] %v523_v38  ;;  %v480_v1 = vadd.f32 %v435_v46, %v390_v52  ;;  %v481_v2 = vadd.f32 %v436_v47, %v391_v53  ;;  %v394_v4 = vadd.f32 %v854_v3, %v345_v56  ;;  %v395_v5 = vadd.f32 %v854_v3, %v346_v57 }
  0x33   : > { %569 = vst [vmem:[%s886_s6 + $0xb8] sm:$0xff] %v524_v39  ;;  %v482_v8 = vadd.f32 %v437_v54, %v392_v58  ;;  %v483_v9 = vadd.f32 %v438_v55, %v393_v59  ;;  %v396_v10 = vadd.f32 %v854_v3, %v347_v62  ;;  %v397_v11 = vadd.f32 %v854_v3, %v348_v63  ;;  %v449_v58 = vld [vmem:[%s849_s27 + $0x130] sm:$0xff]  ;;  %v450_v59 = vld [vmem:[%s849_s27 + $0x138] sm:$0xff] }
  0x34   : > { %v525_v13 = vmax.f32 %v480_v1, 0.0  ;;  %v526_v14 = vmax.f32 %v481_v2, 0.0  ;;  %v484_v15 = vadd.f32 %v439_v60, %v394_v4  ;;  %v485_v16 = vadd.f32 %v440_v61, %v395_v5  ;;  %v776_v1 = vld [vmem:[%s836_s22 + $0xa0] sm:$0xff]  }
  0x35   : > { %v527_v18 = vmax.f32 %v482_v8, 0.0  ;;  %v528_v19 = vmax.f32 %v483_v9, 0.0  ;;  %v486_v20 = vadd.f32 %v441_v6, %v396_v10  ;;  %v487_v21 = vadd.f32 %v442_v7, %v397_v11  ;;  %v777_v7 = vld [vmem:[%s836_s22 + $0xa8] sm:$0xff]  }
  0x36   : > { %570 = vst [vmem:[%s886_s6 + $0xc0] sm:$0xff] %v525_v13  ;;  %v529_v23 = vmax.f32 %v484_v15, 0.0  ;;  %v530_v24 = vmax.f32 %v485_v16, 0.0  ;;  %v735_v25 = vunpack.c.l.bf16 %v772_v12  ;;  %v736_v26 = vunpack.c.h.bf16 %v772_v12  ;;  %v267_v12 = vld [vmem:[%s836_s22 + $0xb0] sm:$0xf] }
  0x37   : > { %571 = vst [vmem:[%s886_s6 + $0xc8] sm:$0xff] %v526_v14  ;;  %v531_v28 = vmax.f32 %v486_v20, 0.0  ;;  %v532_v29 = vmax.f32 %v487_v21, 0.0  ;;  %v739_v30 = vunpack.c.l.bf16 %v773_v17  ;;  %v740_v31 = vunpack.c.h.bf16 %v773_v17 }
  0x38   : > { %572 = vst [vmem:[%s886_s6 + $0xd0] sm:$0xff] %v527_v18  ;;  %v349_v32 = vmul.f32 %v841_v0, %v735_v25  ;;  %v350_v33 = vmul.f32 %v841_v0, %v736_v26  ;;  %v743_v34 = vunpack.c.l.bf16 %v774_v22  ;;  %v744_v35 = vunpack.c.h.bf16 %v774_v22  ;;  %v452_v25 = vld [vmem:[%s849_s27 + $0x148] sm:$0xff] }
  0x39   : > { %573 = vst [vmem:[%s886_s6 + $0xd8] sm:$0xff] %v528_v19  ;;  %v351_v38 = vmul.f32 %v841_v0, %v739_v30  ;;  %v352_v39 = vmul.f32 %v841_v0, %v740_v31  ;;  %v747_v40 = vunpack.c.l.bf16 %v775_v27  ;;  %v748_v41 = vunpack.c.h.bf16 %v775_v27  ;;  %v453_v30 = vld [vmem:[%s849_s27 + $0x150] sm:$0xff]  ;;  %v454_v31 = vld [vmem:[%s849_s27 + $0x158] sm:$0xff] }
  0x3a   : > { %574 = vst [vmem:[%s886_s6 + $0xe0] sm:$0xff] %v529_v23  ;;  %v398_v42 = vadd.f32 %v854_v3, %v349_v32  ;;  %v399_v43 = vadd.f32 %v854_v3, %v350_v33  ;;  %v353_v46 = vmul.f32 %v841_v0, %v743_v34  ;;  %v354_v47 = vmul.f32 %v841_v0, %v744_v35  ;;  %v455_v35 = vld [vmem:[%s849_s27 + $0x160] sm:$0xff] }
  0x3b   : > { %575 = vst [vmem:[%s886_s6 + $0xe8] sm:$0xff] %v530_v24  ;;  %v400_v48 = vadd.f32 %v854_v3, %v351_v38  ;;  %v401_v49 = vadd.f32 %v854_v3, %v352_v39  ;;  %v355_v52 = vmul.f32 %v841_v0, %v747_v40  ;;  %v356_v53 = vmul.f32 %v841_v0, %v748_v41  ;;  %v451_v24 = vld [vmem:[%s849_s27 + $0x140] sm:$0xff] }
  0x3c   : > { %576 = vst [vmem:[%s886_s6 + $0xf0] sm:$0xff] %v531_v28  ;;  %v488_v54 = vadd.f32 %v443_v36, %v398_v42  ;;  %v489_v55 = vadd.f32 %v444_v37, %v399_v43  ;;  %v402_v56 = vadd.f32 %v854_v3, %v353_v46  ;;  %v403_v57 = vadd.f32 %v854_v3, %v354_v47 }
  0x3d   : > { %577 = vst [vmem:[%s886_s6 + $0xf8] sm:$0xff] %v532_v29  ;;  %v490_v60 = vadd.f32 %v445_v44, %v400_v48  ;;  %v491_v61 = vadd.f32 %v446_v45, %v401_v49  ;;  %v404_v62 = vadd.f32 %v854_v3, %v355_v52  ;;  %v405_v63 = vadd.f32 %v854_v3, %v356_v53 }
  0x3e   : > { %v533_v2 = vmax.f32 %v488_v54, 0.0  ;;  %v534_v4 = vmax.f32 %v489_v55, 0.0  ;;  %v492_v5 = vadd.f32 %v447_v50, %v402_v56  ;;  %v493_v6 = vadd.f32 %v448_v51, %v403_v57 }
  0x3f   : > { %v535_v8 = vmax.f32 %v490_v60, 0.0  ;;  %v536_v9 = vmax.f32 %v491_v61, 0.0  ;;  %v494_v10 = vadd.f32 %v449_v58, %v404_v62  ;;  %v495_v11 = vadd.f32 %v450_v59, %v405_v63 }
  0x40   : > { %578 = vst [vmem:[%s886_s6 + $0x100] sm:$0xff] %v533_v2  ;;  %v537_v13 = vmax.f32 %v492_v5, 0.0  ;;  %v751_v14 = vunpack.c.l.bf16 %v776_v1  ;;  %v752_v15 = vunpack.c.h.bf16 %v776_v1  ;;  %v538_v16 = vmax.f32 %v493_v6, 0.0 }
  0x41   : > { %579 = vst [vmem:[%s886_s6 + $0x108] sm:$0xff] %v534_v4  ;;  %v755_v17 = vunpack.c.l.bf16 %v777_v7  ;;  %v756_v18 = vunpack.c.h.bf16 %v777_v7  ;;  %v539_v19 = vmax.f32 %v494_v10, 0.0  ;;  %v312_v22 = vunpack.c.l.bf16 %v267_v12 }
  0x42   : > { %580 = vst [vmem:[%s886_s6 + $0x110] sm:$0xff] %v535_v8  ;;  %v357_v20 = vmul.f32 %v841_v0, %v751_v14  ;;  %v358_v21 = vmul.f32 %v841_v0, %v752_v15  ;;  %v540_v23 = vmax.f32 %v495_v11, 0.0 }
  0x43   : > { %581 = vst [vmem:[%s886_s6 + $0x118] sm:$0xff] %v536_v9  ;;  %v359_v26 = vmul.f32 %v841_v0, %v755_v17  ;;  %v360_v27 = vmul.f32 %v841_v0, %v756_v18  ;;  %v361_v32 = vmul.f32 %v841_v0, %v312_v22 }
  0x44   : > { %582 = vst [vmem:[%s886_s6 + $0x120] sm:$0xff] %v537_v13  ;;  %v406_v28 = vadd.f32 %v854_v3, %v357_v20  ;;  %v407_v29 = vadd.f32 %v854_v3, %v358_v21 }
  0x45   : > { %583 = vst [vmem:[%s886_s6 + $0x128] sm:$0xff] %v538_v16  ;;  %v408_v33 = vadd.f32 %v854_v3, %v359_v26  ;;  %v409_v34 = vadd.f32 %v854_v3, %v360_v27  ;;  %v410_v38 = vadd.f32 %v854_v3, %v361_v32 }
  0x46   : > { %584 = vst [vmem:[%s886_s6 + $0x130] sm:$0xff] %v539_v19  ;;  %v496_v36 = vadd.f32 %v451_v24, %v406_v28  ;;  %v497_v37 = vadd.f32 %v452_v25, %v407_v29 }
  0x47   : > { %585 = vst [vmem:[%s886_s6 + $0x138] sm:$0xff] %v540_v23  ;;  %v498_v39 = vadd.f32 %v453_v30, %v408_v33  ;;  %v499_v40 = vadd.f32 %v454_v31, %v409_v34  ;;  %v500_v42 = vadd.f32 %v455_v35, %v410_v38 }
  0x48   : > { %v541_v0 = vmax.f32 %v496_v36, 0.0  ;;  %v542_v41 = vmax.f32 %v497_v37, 0.0 }
  0x49   : > { %v543_v43 = vmax.f32 %v498_v39, 0.0  ;;  %v544_v44 = vmax.f32 %v499_v40, 0.0  ;;  %v545_v45 = vmax.f32 %v500_v42, 0.0 }
  0x4a   : > { %586 = vst [vmem:[%s886_s6 + $0x140] sm:$0xff] %v541_v0 }
  0x4b   : > { %587 = vst [vmem:[%s886_s6 + $0x148] sm:$0xff] %v542_v41 }
  0x4c   : > { %588 = vst [vmem:[%s886_s6 + $0x150] sm:$0xff] %v543_v43 }
  0x4d   : > { %589 = vst [vmem:[%s886_s6 + $0x158] sm:$0xff] %v544_v44 }
  0x4e   : > { %590 = vst [vmem:[%s886_s6 + $0x160] sm:$0xff] %v545_v45 }
  0x4f PF: > { %s14_s15 = sadd.s32 1, %s794_s15  }
  0x50   : > { %p11_p4 = scmp.ge.s32.totalorder %s14_s15, 4  }
  0x52   :  { %13 = sbr.rel (!%p11_p4) target bundleno = 1 (0x1), region = 69 }

// kernel: basic_block_forward.3
= control target key start
LH: loop header
LB: loop body
LE: loop exit
PB: predicated region body
PF: predicated region fallthrough
CT: control target
= control target key end

     0   :  { %s4193_s18 = smov 0   ;;  %s4980_s0 = inlined_call_operand.vmem [shape: bf16[1080,128], index: 0, kind: input, shape index: {}, may-alias: {0,1}]   ;;  %s4981_s1 = inlined_call_operand.vmem [shape: bf16[1080,128], index: 1, kind: input, shape index: {}, may-alias: {0,1}]   ;;  %s4982_s2 = inlined_call_operand.vmem [shape: f32[1080,1], index: 2, kind: input, shape index: {}]   ;;  %s4983_s3 = inlined_call_operand.vmem [shape: bf16[3,384,128], index: 3, kind: input, shape index: {}]   ;;  %s4984_s4 = inlined_call_operand.vmem [shape: bf16[1080,128], index: 4, kind: output, shape index: {0}]   ;;  %s4985_s5 = inlined_call_operand.vmem [shape: f32[2,2,128], index: 5, kind: output, shape index: {1}]  }
   0x1 LB: > { %s4199_s19 = sadd.s32 4294967295, %s4160_s18   ;;  %p3393_p0 = scmp.ge.s32.totalorder %s4160_s18, 1  ;;  %s4160_s18 = sphi %s4193_s18, %s16_s18  }
   0x2   : > { %p221_p1 = scmp.lt.s32.totalorder %s4160_s18, 3 }
   0x4   : > { %p222_p2 = pnand %p3393_p0, %p221_p1 }
   0x6   : > { %225 = sbr.rel (%p222_p2) target bundleno = 1018 (0x3fa), region = 36 }
   0xb   : > { %v3817_v0 = vld [vmem:[%s4983_s3 + $0xf8] sm:$0xff]  ;;  %s265_s22 = smul.u32 45, %s4199_s19  ;;  %v3816_v1 = vld [vmem:[%s4983_s3 + $0xf0] sm:$0xff]  ;;  %v3815_v2 = vld [vmem:[%s4983_s3 + $0xe8] sm:$0xff]  ;;  %s271_s14 = sadd.s32 1, %s4199_s19  ;;  %vm3185_vm0 = vcmask 1040384  }
   0xc   : > { %1032 = vmatpush.bf16.msra.mxu0 %v3817_v0  ;;  %4107 = vmatpush.bf16.msra.mxu1 %v3817_v0  ;;  %v3814_v10 = vld [vmem:[%s4983_s3 + $0xe0] sm:$0xff]  ;;  %v3813_v18 = vld [vmem:[%s4983_s3 + $0xd8] sm:$0xff]  ;;  %v3812_v25 = vld [vmem:[%s4983_s3 + $0xd0] sm:$0xff]  ;;  %s4280_s17 = smul.u32 45, %s271_s14  ;;  %p293_p5 = scmp.lt.s32.totalorder %s4199_s19, 1 }
   0xd   : > { %p266_p3 = scmp.lt.s32.totalorder %s265_s22, 134  ;;  %4108 = vmatpush.bf16.msra.mxu2 %v3817_v0  ;;  %4109 = vmatpush.bf16.msra.mxu3 %v3817_v0  ;;  %v3811_v32 = vld [vmem:[%s4983_s3 + $0xc8] sm:$0xff]  ;;  %v3810_v37 = vld [vmem:[%s4983_s3 + $0xc0] sm:$0xff]  ;;  %v3833_v49 = vld [vmem:[%s4983_s3 + $0x178] sm:$0xff] }
   0xe   : > { %v3825_v51 = vld [vmem:[%s4983_s3 + $0x138] sm:$0xff]  ;;  %p274_p4 = scmp.lt.s32.totalorder %s4280_s17, 134  ;;  %s5087_s19 = smov (!%p293_p5, %s4199_s19), 1 }
   0xf   : > { %s5083_s22 = smov (!%p266_p3, %s265_s22), 134  ;;  %v3801_v61 = vld [vmem:[%s4983_s3 + $0x78] sm:$0xff] }
  0x10   : > { %1033 = vmatpush.bf16.msra.mxu0 %v3816_v1  ;;  %4110 = vmatpush.bf16.msra.mxu1 %v3816_v1  ;;  %s3394_s27 = sshll.u32 %s5083_s22, 2  ;;  %v3793_v62 = vld [vmem:[%s4983_s3 + $0x38] sm:$0xff]  ;;  %s5085_s17 = smov (!%p274_p4, %s4280_s17), 134 }
  0x11   : > { %4111 = vmatpush.bf16.msra.mxu2 %v3816_v1  ;;  %4112 = vmatpush.bf16.msra.mxu3 %v3816_v1  ;;  %s4221_s30 = scalar_lea.vmem %s4980_s0, %s3394_s27  ;;  %v3832_v1 = vld [vmem:[%s4983_s3 + $0x170] sm:$0xff]  ;;  %s3396_s26 = sshll.u32 %s5085_s17, 2 }
  0x12   : > { %v4064_v3 = vld [vmem:[%s4221_s30 + $0x8] sm:$0xff]   ;;  %v4065_v4 = vld [vmem:[%s4221_s30 + $0x10] sm:$0xff]   ;;  %v4070_v5 = vld [vmem:[%s4221_s30 + $0x38] sm:$0xff]   ;;  %s4373_s9 = scalar_lea.vmem %s4981_s1, %s3396_s26  ;;  %s3397_s13 = sshll.u32 %s5083_s22, 3 }
  0x13   : > { %v3864_v6 = vunpack.c.l.bf16 %v4064_v3  ;;  %v3865_v7 = vunpack.c.h.bf16 %v4064_v3  ;;  %v3868_v8 = vunpack.c.l.bf16 %v4065_v4  ;;  %v4227_v9 = vld [vmem:[%s4221_s30 + $0x40] sm:$0xff]   ;;  %v3888_v11 = vunpack.c.l.bf16 %v4070_v5  ;;  %v4076_v12 = vld [vmem:[%s4221_s30 + $0x68] sm:$0xff]   ;;  %v4235_v15 = vld [vmem:[%s4221_s30 + $0x70] sm:$0xff]   ;;  %s4778_s16 = scalar_lea.vmem %s4982_s2, %s3397_s13  ;;  %s4865_s23 = scalar_lea.vmem %s4984_s4, %s3394_s27 }
  0x14   : > { %1034 = vmatpush.bf16.msra.mxu0 %v3815_v2  ;;  %4113 = vmatpush.bf16.msra.mxu1 %v3815_v2  ;;  %v3889_v13 = vunpack.c.h.bf16 %v4070_v5  ;;  %v3892_v14 = vunpack.c.l.bf16 %v4227_v9  ;;  %v3912_v16 = vunpack.c.l.bf16 %v4076_v12  ;;  %v4082_v17 = vld [vmem:[%s4221_s30 + $0x98] sm:$0xff]   ;;  %v3913_v19 = vunpack.c.h.bf16 %v4076_v12  ;;  %v4083_v21 = vld [vmem:[%s4221_s30 + $0xa0] sm:$0xff]   ;;  %v4250_v28 = vld [vmem:[%s4221_s30 + $0x48] sm:$0xff]   ;;  %s3399_s22 = sshll.u32 %s5087_s19, 1 }
  0x15   : > { %4114 = vmatpush.bf16.msra.mxu2 %v3815_v2  ;;  %4115 = vmatpush.bf16.msra.mxu3 %v3815_v2  ;;  %389 = vst [vmem:[#allocation2 + $0x10] sm:$0xff] %v3864_v6  ;;  %v3916_v20 = vunpack.c.l.bf16 %v4235_v15  ;;  %v3936_v22 = vunpack.c.l.bf16 %v4082_v17  ;;  %v3937_v23 = vunpack.c.h.bf16 %v4082_v17  ;;  %v4244_v24 = vld [vmem:[%s4221_s30 + $0x18] sm:$0xff]   ;;  %v3940_v26 = vunpack.c.l.bf16 %v4083_v21  ;;  %v4263_v35 = vld [vmem:[%s4221_s30 + $0xa8] sm:$0xff]   ;;  %v4273_v40 = vld [vmem:[%s4221_s30 + $0x20] sm:$0xff]   ;;  %s296_s24 = scalar_lea.vmem %s4985_s5, %s3399_s22 }
  0x16   : > { %390 = vst [vmem:[#allocation2 + $0x18] sm:$0xff] %v3865_v7  ;;  %v3869_v27 = vunpack.c.h.bf16 %v4065_v4  ;;  %v3872_v29 = vunpack.c.l.bf16 %v4244_v24  ;;  %v4987_v30 = vunpack.c.h.bf16 %v4227_v9  ;;  %v4255_v31 = vld [vmem:[%s4221_s30 + $0x78] sm:$0xff]   ;;  %v3896_v33 = vunpack.c.l.bf16 %v4250_v28  ;;  %v4278_v48 = vld [vmem:[%s4221_s30 + $0x50] sm:$0xff]   ;;  %v4295_v57 = vld [vmem:[%s4221_s30 + $0x80] sm:$0xff]  }
  0x17   : > { %391 = vst [vmem:[#allocation2 + $0x20] sm:$0xff] %v3868_v8  ;;  %v3917_v34 = vunpack.c.h.bf16 %v4235_v15  ;;  %v3920_v36 = vunpack.c.l.bf16 %v4255_v31  ;;  %v3941_v39 = vunpack.c.h.bf16 %v4083_v21  ;;  %v3944_v44 = vunpack.c.l.bf16 %v4263_v35  ;;  %v341_v0 = vld [vmem:[%s4221_s30 + $0xb0] sm:$0xf]  ;;  %v4344_v12 = vld [vmem:[%s4221_s30 + $0x28] sm:$0xff]   ;;  %v4349_v15 = vld [vmem:[%s4221_s30 + $0x58] sm:$0xff]  }
  0x18   : > { %1035 = vmatpush.bf16.msra.mxu0 %v3814_v10  ;;  %4116 = vmatpush.bf16.msra.mxu1 %v3814_v10  ;;  %401 = vst [vmem:[#allocation2 + $0x70] sm:$0xff] %v3888_v11  ;;  %v3873_v47 = vunpack.c.h.bf16 %v4244_v24  ;;  %v3876_v52 = vunpack.c.l.bf16 %v4273_v40  ;;  %v4986_v56 = vunpack.c.h.bf16 %v4250_v28  ;;  %v3900_v60 = vunpack.c.l.bf16 %v4278_v48  ;;  %v3824_v2 = vld [vmem:[%s4983_s3 + $0x130] sm:$0xff]  ;;  %v3823_v11 = vld [vmem:[%s4983_s3 + $0x128] sm:$0xff] }
  0x19   : > { %4117 = vmatpush.bf16.msra.mxu2 %v3814_v10  ;;  %4118 = vmatpush.bf16.msra.mxu3 %v3814_v10  ;;  %402 = vst [vmem:[#allocation2 + $0x78] sm:$0xff] %v3889_v13  ;;  %v3921_v63 = vunpack.c.h.bf16 %v4255_v31  ;;  %v3924_v3 = vunpack.c.l.bf16 %v4295_v57  ;;  %v3945_v4 = vunpack.c.h.bf16 %v4263_v35  ;;  %v386_v5 = vunpack.c.l.bf16 %v341_v0  ;;  %v3800_v6 = vld [vmem:[%s4983_s3 + $0x70] sm:$0xff]  ;;  %v3831_v10 = vld [vmem:[%s4983_s3 + $0x168] sm:$0xff]  ;;  %v3790_v35 = vld [vmem:[%s4983_s3 + $0x20] sm:$0xff] }
  0x1a   : > { %403 = vst [vmem:[#allocation2 + $0x80] sm:$0xff] %v3892_v14  ;;  %v3792_v7 = vld [vmem:[%s4983_s3 + $0x30] sm:$0xff]  ;;  %v3877_v8 = vunpack.c.h.bf16 %v4273_v40  ;;  %v3880_v13 = vunpack.c.l.bf16 %v4344_v12  ;;  %v3901_v14 = vunpack.c.h.bf16 %v4278_v48  ;;  %v3799_v17 = vld [vmem:[%s4983_s3 + $0x68] sm:$0xff] }
  0x1b   : > { %413 = vst [vmem:[#allocation2 + $0xd0] sm:$0xff] %v3912_v16  ;;  %v4352_v16 = vld [vmem:[%s4221_s30 + $0x88] sm:$0xff]   ;;  %v3828_v48 = vld [vmem:[%s4983_s3 + $0x150] sm:$0xff] }
  0x1c   : > { %1036 = vmatpush.bf16.msra.mxu0 %v3813_v18  ;;  %4119 = vmatpush.bf16.msra.mxu1 %v3813_v18  ;;  %414 = vst [vmem:[#allocation2 + $0xd8] sm:$0xff] %v3913_v19  ;;  %v3904_v19 = vunpack.c.l.bf16 %v4349_v15  ;;  %v3928_v24 = vunpack.c.l.bf16 %v4352_v16 }
  0x1d   : > { %4120 = vmatpush.bf16.msra.mxu2 %v3813_v18  ;;  %4121 = vmatpush.bf16.msra.mxu3 %v3813_v18  ;;  %415 = vst [vmem:[#allocation2 + $0xe0] sm:$0xff] %v3916_v20  ;;  %v539_v38 = vld [vmem:[#allocation2 + $0x12] sm:$0xff]  ;;  %v3791_v18 = vld [vmem:[%s4983_s3 + $0x28] sm:$0xff]  ;;  %v3925_v20 = vunpack.c.h.bf16 %v4295_v57 }
  0x1e   : > { %425 = vst [vmem:[#allocation2 + $0x130] sm:$0xff] %v3936_v22  ;;  %v540_v41 = vld [vmem:[#allocation2 + $0x1a] sm:$0xff] }
  0x1f   : > { %426 = vst [vmem:[#allocation2 + $0x138] sm:$0xff] %v3937_v23  ;;  %v4289_v53 = vpack.c.bf16 %v540_v41, %v539_v38  ;;  %v3830_v22 = vld [vmem:[%s4983_s3 + $0x160] sm:$0xff] }
  0x20   : > { %1037 = vmatpush.bf16.msra.mxu0 %v3812_v25  ;;  %4122 = vmatpush.bf16.msra.mxu1 %v3812_v25  ;;  %427 = vst [vmem:[#allocation2 + $0x140] sm:$0xff] %v3940_v26  ;;  %v551_v42 = vld [vmem:[#allocation2 + $0x72] sm:$0xff]  ;;  %v3822_v23 = vld [vmem:[%s4983_s3 + $0x120] sm:$0xff] }
  0x21   : > { %4123 = vmatpush.bf16.msra.mxu2 %v3812_v25  ;;  %4124 = vmatpush.bf16.msra.mxu3 %v3812_v25  ;;  %392 = vst [vmem:[#allocation2 + $0x28] sm:$0xff] %v3869_v27  ;;  %v552_v43 = vld [vmem:[#allocation2 + $0x7a] sm:$0xff] }
  0x22   : > { %393 = vst [vmem:[#allocation2 + $0x30] sm:$0xff] %v3872_v29  ;;  %v4291_v54 = vpack.c.bf16 %v552_v43, %v551_v42  ;;  %v3947_v38 = vld [vmem:[%s4373_s9] sm:$0xff]   ;;  %v3829_v43 = vld [vmem:[%s4983_s3 + $0x158] sm:$0xff] }
  0x23   : > { %404 = vst [vmem:[#allocation2 + $0x88] sm:$0xff] %v4987_v30  ;;  %v563_v45 = vld [vmem:[#allocation2 + $0xd2] sm:$0xff]  ;;  %v3948_v41 = vunpack.c.l.bf16 %v3947_v38  ;;  %v3949_v42 = vunpack.c.h.bf16 %v3947_v38  ;;  %v3819_v38 = vld [vmem:[%s4983_s3 + $0x108] sm:$0xff] }
  0x24   : > { %1038 = vmatpush.bf16.msra.mxu0 %v3811_v32  ;;  %4125 = vmatpush.bf16.msra.mxu1 %v3811_v32  ;;  %405 = vst [vmem:[#allocation2 + $0x90] sm:$0xff] %v3896_v33  ;;  %v564_v46 = vld [vmem:[#allocation2 + $0xda] sm:$0xff] }
  0x25   : > { %4126 = vmatpush.bf16.msra.mxu2 %v3811_v32  ;;  %4127 = vmatpush.bf16.msra.mxu3 %v3811_v32  ;;  %416 = vst [vmem:[#allocation2 + $0xe8] sm:$0xff] %v3917_v34  ;;  %v4297_v58 = vpack.c.bf16 %v564_v46, %v563_v45  ;;  %v3798_v34 = vld [vmem:[%s4983_s3 + $0x60] sm:$0xff]  ;;  %v3881_v45 = vunpack.c.h.bf16 %v4344_v12  ;;  %v3789_v46 = vld [vmem:[%s4983_s3 + $0x18] sm:$0xff] }
  0x26   : > { %v575_v50 = vld [vmem:[#allocation2 + $0x132] sm:$0xff]  ;;  %417 = vst [vmem:[#allocation2 + $0xf0] sm:$0xff] %v3920_v36 }
  0x27   : > { %5006 = vst [vmem:[#allocation3_spill] sm:$0xff] %v4291_v54  ;;  %v576_v55 = vld [vmem:[#allocation2 + $0x13a] sm:$0xff] }
  0x28   : > { %428 = vst [vmem:[#allocation2 + $0x148] sm:$0xff] %v3941_v39  ;;  %1039 = vmatpush.bf16.msra.mxu0 %v3810_v37  ;;  %4128 = vmatpush.bf16.msra.mxu1 %v3810_v37  ;;  %v4299_v59 = vpack.c.bf16 %v576_v55, %v575_v50  ;;  %v541_v21 = vld [vmem:[#allocation2 + $0x22] sm:$0xff]  ;;  %v3905_v55 = vunpack.c.h.bf16 %v4349_v15 }
  0x29   : > { %5007 = vst [vmem:[#allocation4_spill] sm:$0xff] %v4297_v58  ;;  %4129 = vmatpush.bf16.msra.mxu2 %v3810_v37  ;;  %4130 = vmatpush.bf16.msra.mxu3 %v3810_v37  ;;  %v542_v25 = vld [vmem:[#allocation2 + $0x2a] sm:$0xff] }
  0x2a   : > { %5008 = vst [vmem:[#allocation5_spill] sm:$0xff] %v4299_v59  ;;  %v553_v26 = vld [vmem:[#allocation2 + $0x82] sm:$0xff]  ;;  %v4381_v36 = vpack.c.bf16 %v542_v25, %v541_v21 }
  0x2b   : > { %429 = vst [vmem:[#allocation2 + $0x150] sm:$0xff] %v3944_v44  ;;  %1040 = vmatmul.bf16.vlgmr.msra.gmra.mxu0 %v4289_v53  ;;  %1070 = vmatmul.bf16.vlgmr.msra.gmra.mxu1 %v4291_v54  ;;  %v554_v27 = vld [vmem:[#allocation2 + $0x8a] sm:$0xff]  ;;  %v3821_v44 = vld [vmem:[%s4983_s3 + $0x118] sm:$0xff] }
  0x2c   : > { %394 = vst [vmem:[#allocation2 + $0x38] sm:$0xff] %v3873_v47  ;;  %1155 = vmatpush.bf16.msrb.mxu1 %v3825_v51  ;;  %1100 = vmatmul.bf16.vlgmr.msra.gmra.mxu2 %v4297_v58  ;;  %v565_v29 = vld [vmem:[#allocation2 + $0xe2] sm:$0xff]  ;;  %v4383_v37 = vpack.c.bf16 %v554_v27, %v553_v26  ;;  %v3797_v47 = vld [vmem:[%s4983_s3 + $0x58] sm:$0xff] }
  0x2d   : > { %1278 = vmatpush.bf16.msrb.mxu2 %v3833_v49  ;;  %395 = vst [vmem:[#allocation2 + $0x40] sm:$0xff] %v3876_v52  ;;  %1130 = vmatmul.bf16.vlgmr.msra.gmra.mxu3 %v4299_v59  ;;  %v566_v31 = vld [vmem:[#allocation2 + $0xea] sm:$0xff]  ;;  %v4075_v51 = vld [vmem:[%s4221_s30 + $0x60] sm:$0xff]  }
  0x2e   : > { %406 = vst [vmem:[#allocation2 + $0x98] sm:$0xff] %v4986_v56  ;;  %1668 = vmatpush.bf16.msrb.mxu0 %v3801_v61  ;;  %1545 = vmatpush.bf16.msrb.mxu3 %v3793_v62  ;;  %v4386_v39 = vpack.c.bf16 %v566_v31, %v565_v29  ;;  %v4069_v49 = vld [vmem:[%s4221_s30 + $0x30] sm:$0xff]   ;;  %v3908_v57 = vunpack.c.l.bf16 %v4075_v51 }
  0x2f   : > { %407 = vst [vmem:[#allocation2 + $0xa0] sm:$0xff] %v3900_v60  ;;  %v577_v32 = vld [vmem:[#allocation2 + $0x142] sm:$0xff]  ;;  %v3884_v50 = vunpack.c.l.bf16 %v4069_v49  ;;  %v4081_v52 = vld [vmem:[%s4221_s30 + $0x90] sm:$0xff]   ;;  %v3929_v60 = vunpack.c.h.bf16 %v4352_v16  ;;  %v3885_v16 = vunpack.c.h.bf16 %v4069_v49 }
  0x30   : > { %418 = vst [vmem:[#allocation2 + $0xf8] sm:$0xff] %v3921_v63  ;;  %1156 = vmatpush.bf16.msrb.mxu1 %v3824_v2  ;;  %v3932_v61 = vunpack.c.l.bf16 %v4081_v52  ;;  %v3933_v21 = vunpack.c.h.bf16 %v4081_v52 }
  0x31   : > { %1279 = vmatpush.bf16.msrb.mxu2 %v3832_v1  ;;  %419 = vst [vmem:[#allocation2 + $0x100] sm:$0xff] %v3924_v3 }
  0x32   : > { %430 = vst [vmem:[#allocation2 + $0x158] sm:$0xff] %v3945_v4  ;;  %1669 = vmatpush.bf16.msrb.mxu0 %v3800_v6  ;;  %1546 = vmatpush.bf16.msrb.mxu3 %v3792_v7  ;;  %v578_v33 = vld [vmem:[#allocation2 + $0x14a] sm:$0xff] }
  0x33   : > { %431 = vst [vmem:[#allocation2 + $0x160] sm:$0xff] %v386_v5  ;;  %v4388_v40 = vpack.c.bf16 %v578_v33, %v577_v32  ;;  %v543_v62 = vld [vmem:[#allocation2 + $0x32] sm:$0xff] }
  0x34   : > { %396 = vst [vmem:[#allocation2 + $0x48] sm:$0xff] %v3877_v8  ;;  %1157 = vmatpush.bf16.msrb.mxu1 %v3823_v11  ;;  %v544_v63 = vld [vmem:[#allocation2 + $0x3a] sm:$0xff]  ;;  %v4085_v8 = vld [vmem:[%s4373_s9 + $0x8] sm:$0xff]  }
  0x35   : > { %1280 = vmatpush.bf16.msrb.mxu2 %v3831_v10  ;;  %397 = vst [vmem:[#allocation2 + $0x50] sm:$0xff] %v3880_v13  ;;  %v555_v0 = vld [vmem:[#allocation2 + $0x92] sm:$0xff]  ;;  %v4415_v6 = vpack.c.bf16 %v544_v63, %v543_v62  ;;  %v3952_v12 = vunpack.c.l.bf16 %v4085_v8  ;;  %v3953_v15 = vunpack.c.h.bf16 %v4085_v8 }
  0x36   : > { %408 = vst [vmem:[#allocation2 + $0xa8] sm:$0xff] %v3901_v14  ;;  %1670 = vmatpush.bf16.msrb.mxu0 %v3799_v17  ;;  %1547 = vmatpush.bf16.msrb.mxu3 %v3791_v18  ;;  %v556_v1 = vld [vmem:[#allocation2 + $0x9a] sm:$0xff]  ;;  %v3788_v13 = vld [vmem:[%s4983_s3 + $0x10] sm:$0xff]  ;;  %v3827_v18 = vld [vmem:[%s4983_s3 + $0x148] sm:$0xff] }
  0x37   : > { %409 = vst [vmem:[#allocation2 + $0xb0] sm:$0xff] %v3904_v19  ;;  %v567_v2 = vld [vmem:[#allocation2 + $0xf2] sm:$0xff]  ;;  %v4417_v7 = vpack.c.bf16 %v556_v1, %v555_v0  ;;  %v3787_v19 = vld [vmem:[%s4983_s3 + $0x8] sm:$0xff] }
  0x38   : > { %420 = vst [vmem:[#allocation2 + $0x108] sm:$0xff] %v3925_v20  ;;  %1158 = vmatpush.bf16.msrb.mxu1 %v3822_v23  ;;  %v568_v3 = vld [vmem:[#allocation2 + $0xfa] sm:$0xff]  ;;  %v3820_v14 = vld [vmem:[%s4983_s3 + $0x110] sm:$0xff]  ;;  %v3909_v20 = vunpack.c.h.bf16 %v4075_v51 }
  0x39   : > { %1281 = vmatpush.bf16.msrb.mxu2 %v3830_v22  ;;  %421 = vst [vmem:[#allocation2 + $0x110] sm:$0xff] %v3928_v24  ;;  %v579_v4 = vld [vmem:[#allocation2 + $0x152] sm:$0xff]  ;;  %v4420_v10 = vpack.c.bf16 %v568_v3, %v567_v2 }
  0x3a   : > { %5009 = vst [vmem:[#allocation6_spill] sm:$0xff] %v4383_v37  ;;  %1671 = vmatpush.bf16.msrb.mxu0 %v3798_v34  ;;  %1548 = vmatpush.bf16.msrb.mxu3 %v3790_v35  ;;  %v580_v5 = vld [vmem:[#allocation2 + $0x15a] sm:$0xff]  ;;  %v3796_v17 = vld [vmem:[%s4983_s3 + $0x50] sm:$0xff] }
  0x3b   : > { %5010 = vst [vmem:[#allocation7_spill] sm:$0xff] %v4386_v39  ;;  %1045 = vmatmul.bf16.gmra.mxu0 %v4381_v36  ;;  %1075 = vmatmul.bf16.gmra.mxu1 %v4383_v37  ;;  %v4422_v11 = vpack.c.bf16 %v580_v5, %v579_v4  ;;  %v545_v22 = vld [vmem:[#allocation2 + $0x42] sm:$0xff]  ;;  %v3841_v1 = vld [vmem:[%s4983_s3 + $0x1b8] sm:$0xff]  ;;  %v5031_v37 = vunpack.c.h.bf16 %v4227_v9 }
  0x3c   : > { %5011 = vst [vmem:[#allocation8_spill] sm:$0xff] %v4388_v40  ;;  %1105 = vmatmul.bf16.gmra.mxu2 %v4386_v39  ;;  %1159 = vmatpush.bf16.msrb.mxu1 %v3821_v44  ;;  %v546_v23 = vld [vmem:[#allocation2 + $0x4a] sm:$0xff]  ;;  %v3859_v44 = vld [vmem:[%s4221_s30] sm:$0xff]   ;;  %v3849_v2 = vld [vmem:[%s4983_s3 + $0x1f8] sm:$0xff] }
  0x3d   : > { %442 = vst [vmem:[#allocation2 + $0x168] sm:$0xff] %v3948_v41  ;;  %1135 = vmatmul.bf16.gmra.mxu3 %v4388_v40  ;;  %1282 = vmatpush.bf16.msrb.mxu2 %v3829_v43  ;;  %v557_v24 = vld [vmem:[#allocation2 + $0xa2] sm:$0xff]  ;;  %v4443_v32 = vpack.c.bf16 %v546_v23, %v545_v22  ;;  %v3809_v3 = vld [vmem:[%s4983_s3 + $0xb8] sm:$0xff] }
  0x3e   : > { %443 = vst [vmem:[#allocation2 + $0x170] sm:$0xff] %v3949_v42  ;;  %1549 = vmatpush.bf16.msrb.mxu3 %v3789_v46  ;;  %1672 = vmatpush.bf16.msrb.mxu0 %v3797_v47  ;;  %v558_v25 = vld [vmem:[#allocation2 + $0xaa] sm:$0xff]  ;;  %v3826_v42 = vld [vmem:[%s4983_s3 + $0x140] sm:$0xff]  ;;  %v3861_v46 = vunpack.c.h.bf16 %v3859_v44  ;;  %v3857_v4 = vld [vmem:[%s4983_s3 + $0x238] sm:$0xff] }
  0x3f   : > { %398 = vst [vmem:[#allocation2 + $0x58] sm:$0xff] %v3881_v45  ;;  %v569_v26 = vld [vmem:[#allocation2 + $0x102] sm:$0xff]  ;;  %v4445_v33 = vpack.c.bf16 %v558_v25, %v557_v24  ;;  %v3860_v45 = vunpack.c.l.bf16 %v3859_v44  ;;  %v746_v24 = vld [vmem:[#allocation2 + $0x14] sm:$0xff]  ;;  %v749_v44 = vld [vmem:[#allocation2 + $0x2c] sm:$0xff] }
  0x40   : > { %399 = vst [vmem:[#allocation2 + $0x60] sm:$0xff] %v3884_v50  ;;  %1160 = vmatpush.bf16.msrb.mxu1 %v3820_v14  ;;  %v570_v27 = vld [vmem:[#allocation2 + $0x10a] sm:$0xff]  ;;  %v3786_v43 = vld [vmem:[%s4983_s3] sm:$0xff] }
  0x41   : > { %1283 = vmatpush.bf16.msrb.mxu2 %v3828_v48  ;;  %410 = vst [vmem:[#allocation2 + $0xb8] sm:$0xff] %v3905_v55  ;;  %v4447_v34 = vpack.c.bf16 %v570_v27, %v569_v26  ;;  %v3795_v41 = vld [vmem:[%s4983_s3 + $0x48] sm:$0xff]  ;;  %v3818_v47 = vld [vmem:[%s4983_s3 + $0x100] sm:$0xff] }
  0x42   : > { %411 = vst [vmem:[#allocation2 + $0xc0] sm:$0xff] %v3908_v57  ;;  %1550 = vmatpush.bf16.msrb.mxu3 %v3788_v13  ;;  %1673 = vmatpush.bf16.msrb.mxu0 %v3796_v17  ;;  %v3794_v48 = vld [vmem:[%s4983_s3 + $0x40] sm:$0xff] }
  0x43   : > { %422 = vst [vmem:[#allocation2 + $0x118] sm:$0xff] %v3929_v60  ;;  %v747_v25 = vld [vmem:[#allocation2 + $0x1c] sm:$0xff] }
  0x44   : > { %423 = vst [vmem:[#allocation2 + $0x120] sm:$0xff] %v3932_v61  ;;  %v581_v29 = vld [vmem:[#allocation2 + $0x162] sm:$0xff]  ;;  %1161 = vmatpush.bf16.msrb.mxu1 %v3819_v38  ;;  %v704_v38 = vld [vmem:[#allocation2 + $0x2b] sm:$0xff] }
  0x45   : > { %5012 = vst [vmem:[#allocation9_spill] sm:$0xff] %v4417_v7  ;;  %1284 = vmatpush.bf16.msrb.mxu2 %v3827_v18  ;;  %v699_v31 = vld [vmem:[#allocation2 + $0x16a] sm:$0xff] }
  0x46   : > { %5013 = vst [vmem:[#allocation10_spill] sm:$0xff] %v4420_v10  ;;  %1551 = vmatpush.bf16.msrb.mxu3 %v3787_v19  ;;  %v833_v35 = vpack.c.bf16 %v699_v31, %v581_v29  ;;  %1674 = vmatpush.bf16.msrb.mxu0 %v3795_v41  ;;  %v547_v49 = vld [vmem:[#allocation2 + $0x52] sm:$0xff]  ;;  %v4143_v19 = vld [vmem:[%s4221_s30] sm:$0xff]  ;;  %v792_v29 = vpack.c.bf16 %v747_v25, %v746_v24  ;;  %v4144_v31 = vld [vmem:[%s4221_s30 + $0x8] sm:$0xff] }
  0x47   : > { %5014 = vst [vmem:[#allocation11_spill] sm:$0xff] %v4422_v11  ;;  %v548_v50 = vld [vmem:[#allocation2 + $0x5a] sm:$0xff]  ;;  %v494_v41 = vld [vmem:[#allocation2 + $0x11] sm:$0xff]  ;;  %v752_v25 = vld [vmem:[#allocation2 + $0x44] sm:$0xff] }
  0x48   : > { %444 = vst [vmem:[#allocation2 + $0x178] sm:$0xff] %v3952_v12  ;;  %1162 = vmatpush.bf16.msrb.mxu1 %v3818_v47  ;;  %v559_v51 = vld [vmem:[#allocation2 + $0xb2] sm:$0xff]  ;;  %v4471_v61 = vpack.c.bf16 %v548_v50, %v547_v49 }
  0x49   : > { %445 = vst [vmem:[#allocation2 + $0x180] sm:$0xff] %v3953_v15  ;;  %1285 = vmatpush.bf16.msrb.mxu2 %v3826_v42  ;;  %v560_v52 = vld [vmem:[#allocation2 + $0xba] sm:$0xff]  ;;  %v3840_v49 = vld [vmem:[%s4983_s3 + $0x1b0] sm:$0xff] }
  0x4a   : > { %400 = vst [vmem:[#allocation2 + $0x68] sm:$0xff] %v3885_v16  ;;  %1552 = vmatpush.bf16.msrb.mxu3 %v3786_v43  ;;  %1675 = vmatpush.bf16.msrb.mxu0 %v3794_v48  ;;  %v571_v55 = vld [vmem:[#allocation2 + $0x112] sm:$0xff]  ;;  %v4473_v62 = vpack.c.bf16 %v560_v52, %v559_v51  ;;  %v748_v43 = vld [vmem:[#allocation2 + $0x24] sm:$0xff] }
  0x4b   : > { %1050 = vmatmul.bf16.gmra.mxu0 %v4415_v6  ;;  %1080 = vmatmul.bf16.gmra.mxu1 %v4417_v7  ;;  %412 = vst [vmem:[#allocation2 + $0xc8] sm:$0xff] %v3909_v20  ;;  %v572_v57 = vld [vmem:[#allocation2 + $0x11a] sm:$0xff]  ;;  %v794_v47 = vpack.c.bf16 %v749_v44, %v748_v43  ;;  %v4145_v48 = vld [vmem:[%s4221_s30 + $0x10] sm:$0xff] }
  0x4c   : > { %1110 = vmatmul.bf16.gmra.mxu2 %v4420_v10  ;;  %424 = vst [vmem:[#allocation2 + $0x128] sm:$0xff] %v3933_v21  ;;  %v4475_v63 = vpack.c.bf16 %v572_v57, %v571_v55  ;;  %1791 = vmatpush.bf16.msra.mxu1 %v3809_v3  ;;  %v701_v20 = vld [vmem:[#allocation2 + $0x13] sm:$0xff]  ;;  %v702_v21 = vld [vmem:[#allocation2 + $0x1b] sm:$0xff] }
  0x4d   : > { %1140 = vmatmul.bf16.gmra.mxu3 %v4422_v11  ;;  %5015 = vst [vmem:[#allocation12_spill] sm:$0xff] %v4443_v32  ;;  %2311 = vmatpush.bf16.msra.mxu2 %v3841_v1  ;;  %v791_v26 = vpack.c.bf16 %v702_v21, %v701_v20  ;;  %v495_v42 = vld [vmem:[#allocation2 + $0x19] sm:$0xff]  ;;  %v3848_v50 = vld [vmem:[%s4983_s3 + $0x1f0] sm:$0xff]  ;;  %v707_v21 = vld [vmem:[#allocation2 + $0x43] sm:$0xff] }
  0x4e   : > { %5016 = vst [vmem:[#allocation13_spill] sm:$0xff] %v4445_v33  ;;  %2434 = vmatpush.bf16.msra.mxu3 %v3849_v2  ;;  %2557 = vmatpush.bf16.msra.mxu0 %v3857_v4  ;;  %v3808_v51 = vld [vmem:[%s4983_s3 + $0xb0] sm:$0xff]  ;;  %v706_v57 = vld [vmem:[#allocation2 + $0x3b] sm:$0xff] }
  0x4f   : > { %5017 = vst [vmem:[#allocation14_spill] sm:$0xff] %v4447_v34  ;;  %v700_v60 = vld [vmem:[#allocation2 + $0x172] sm:$0xff]  ;;  %v751_v2 = vld [vmem:[#allocation2 + $0x3c] sm:$0xff] }
  0x50   : > { %387 = vst [vmem:[#allocation2] sm:$0xff] %v3860_v45  ;;  %v836_v0 = vpack.c.bf16 %v700_v60, %v700_v60  ;;  %v3856_v52 = vld [vmem:[%s4983_s3 + $0x230] sm:$0xff]  ;;  %1792 = vmatpush.bf16.msra.mxu1 %v3808_v51  ;;  %v496_v60 = vld [vmem:[#allocation2 + $0x21] sm:$0xff]  ;;  %v499_v24 = vld [vmem:[#allocation2 + $0x39] sm:$0xff] }
  0x51   : > { %388 = vst [vmem:[#allocation2 + $0x8] sm:$0xff] %v3861_v46  ;;  %v549_v5 = vld [vmem:[#allocation2 + $0x62] sm:$0xff]  ;;  %v550_v8 = vld [vmem:[#allocation2 + $0x6a] sm:$0xff]  ;;  %v586_v46 = vpack.c.bf16 %v495_v42, %v494_v41  ;;  %2312 = vmatpush.bf16.msra.mxu2 %v3840_v49  ;;  %v705_v55 = vld [vmem:[#allocation2 + $0x33] sm:$0xff] }
  0x52   : > { %5018 = vst [vmem:[#allocation15_spill] sm:$0xff] %v4471_v61  ;;  %v561_v12 = vld [vmem:[#allocation2 + $0xc2] sm:$0xff]  ;;  %v562_v13 = vld [vmem:[#allocation2 + $0xca] sm:$0xff]  ;;  %v4492_v16 = vpack.c.bf16 %v550_v8, %v549_v5  ;;  %2435 = vmatpush.bf16.msra.mxu3 %v3848_v50  ;;  %2558 = vmatpush.bf16.msra.mxu0 %v3856_v52  ;;  %v750_v1 = vld [vmem:[#allocation2 + $0x34] sm:$0xff]  ;;  %v795_v3 = vpack.c.bf16 %v706_v57, %v705_v55 }
  0x53   : > { %5019 = vst [vmem:[#allocation16_spill] sm:$0xff] %v4473_v62  ;;  %v573_v14 = vld [vmem:[#allocation2 + $0x122] sm:$0xff]  ;;  %v574_v15 = vld [vmem:[#allocation2 + $0x12a] sm:$0xff]  ;;  %v4494_v17 = vpack.c.bf16 %v562_v13, %v561_v12  ;;  %v796_v12 = vpack.c.bf16 %v751_v2, %v750_v1  ;;  %v4146_v13 = vld [vmem:[%s4221_s30 + $0x18] sm:$0xff] }
  0x54   : > { %5020 = vst [vmem:[#allocation17_spill] sm:$0xff] %v4475_v63  ;;  %v4496_v18 = vpack.c.bf16 %v574_v15, %v573_v14  ;;  %v4147_v43 = vld [vmem:[%s4221_s30 + $0x20] sm:$0xff]  ;;  %v501_v51 = vld [vmem:[#allocation2 + $0x49] sm:$0xff]  ;;  %v754_v52 = vld [vmem:[#allocation2 + $0x54] sm:$0xff] }
  0x55   : > { %5021 = vst [vmem:[#allocation18_spill] sm:$0xff] %v4492_v16  ;;  %v710_v49 = vld [vmem:[#allocation2 + $0x5b] sm:$0xff]  ;;  %v3839_v2 = vld [vmem:[%s4983_s3 + $0x1a8] sm:$0xff] }
  0x56   : > { %5022 = vst [vmem:[#allocation19_spill] sm:$0xff] %v4494_v17  ;;  %v500_v50 = vld [vmem:[#allocation2 + $0x41] sm:$0xff]  ;;  %2313 = vmatpush.bf16.msra.mxu2 %v3839_v2  ;;  %v505_v30 = vld [vmem:[#allocation2 + $0x69] sm:$0xff] }
  0x57   : > { %5023 = vst [vmem:[#allocation20_spill] sm:$0xff] %v4496_v18  ;;  %v755_v55 = vld [vmem:[#allocation2 + $0x5c] sm:$0xff] }
  0x58   : > { %v492_v22 = vld [vmem:[#allocation2 + $0x1] sm:$0xff]  ;;  %v493_v23 = vld [vmem:[#allocation2 + $0x9] sm:$0xff] }
  0x59   : > { %v583_v27 = vpack.c.bf16 %v493_v23, %v492_v22  ;;  %v708_v22 = vld [vmem:[#allocation2 + $0x4b] sm:$0xff]  ;;  %v504_v56 = vld [vmem:[#allocation2 + $0x61] sm:$0xff] }
  0x5a   : > { %v498_v23 = vld [vmem:[#allocation2 + $0x31] sm:$0xff]  ;;  %v759_v11 = vld [vmem:[#allocation2 + $0x7c] sm:$0xff] }
  0x5b   : > { %1055 = vmatmul.bf16.gmra.mxu0 %v4443_v32  ;;  %1085 = vmatmul.bf16.gmra.mxu1 %v4445_v33 }
  0x5c   : > { %1115 = vmatmul.bf16.gmra.mxu2 %v4447_v34 }
  0x5d   : > { %1145 = vmatmul.bf16.gmra.mxu3 %v833_v35  ;;  %v703_v35 = vld [vmem:[#allocation2 + $0x23] sm:$0xff] }
  0x5e   : > { %v793_v45 = vpack.c.bf16 %v704_v38, %v703_v35 }
  0x6b   : > { %1060 = vmatmul.bf16.gmra.mxu0 %v4471_v61  ;;  %1090 = vmatmul.bf16.gmra.mxu1 %v4473_v62 }
  0x6c   : > { %1120 = vmatmul.bf16.gmra.mxu2 %v4475_v63 }
  0x6d   : > { %1150 = vmatmul.bf16.gmra.mxu3 %v836_v0  ;;  %v497_v0 = vld [vmem:[#allocation2 + $0x29] sm:$0xff] }
  0x6e   : > { %v589_v4 = vpack.c.bf16 %v497_v0, %v496_v60  ;;  %v595_v0 = vpack.c.bf16 %v501_v51, %v500_v50  ;;  %v757_v50 = vld [vmem:[#allocation2 + $0x6c] sm:$0xff] }
  0x7b   : > { %1065 = vmatmul.bf16.gmra.mxu0 %v4492_v16  ;;  %1095 = vmatmul.bf16.gmra.mxu1 %v4494_v17 }
  0x7c   : > { %1125 = vmatmul.bf16.gmra.mxu2 %v4496_v18 }
  0x7d   : > { %1553 = vmatmul.bf16.vlgmr.msrb.gmra.mxu3 %v4143_v19 }
  0x8b   : > { %1163 = vmatmul.bf16.vlgmr.msrb.gmra.mxu1 %v791_v26  ;;  %1676 = vmatmul.bf16.vlgmr.msrb.gmra.mxu0 %v583_v27  ;;  %v753_v26 = vld [vmem:[#allocation2 + $0x4c] sm:$0xff] }
  0x8c   : > { %1286 = vmatmul.bf16.vlgmr.msrb.gmra.mxu2 %v792_v29  ;;  %v797_v29 = vpack.c.bf16 %v708_v22, %v707_v21  ;;  %v798_v42 = vpack.c.bf16 %v753_v26, %v752_v25  ;;  %v4148_v21 = vld [vmem:[%s4221_s30 + $0x28] sm:$0xff] }
  0x8d   : > { %1558 = vmatmul.bf16.gmra.mxu3 %v4144_v31  ;;  %v592_v31 = vpack.c.bf16 %v499_v24, %v498_v23  ;;  %v3807_v24 = vld [vmem:[%s4983_s3 + $0xa8] sm:$0xff] }
  0x8e   : > { %v3855_v25 = vld [vmem:[%s4983_s3 + $0x228] sm:$0xff]  ;;  %1793 = vmatpush.bf16.msra.mxu1 %v3807_v24 }
  0x8f   : > { %2559 = vmatpush.bf16.msra.mxu0 %v3855_v25 }
  0x9b   : > { %1168 = vmatmul.bf16.gmra.mxu1 %v793_v45  ;;  %1681 = vmatmul.bf16.gmra.mxu0 %v586_v46 }
  0x9c   : > { %1291 = vmatmul.bf16.gmra.mxu2 %v794_v47 }
  0x9d   : > { %1563 = vmatmul.bf16.gmra.mxu3 %v4145_v48  ;;  %v709_v48 = vld [vmem:[#allocation2 + $0x53] sm:$0xff] }
  0x9e   : > { %v799_v60 = vpack.c.bf16 %v710_v49, %v709_v48  ;;  %v503_v48 = vld [vmem:[#allocation2 + $0x59] sm:$0xff]  ;;  %v756_v49 = vld [vmem:[#allocation2 + $0x64] sm:$0xff] }
  0xa8   : > { %v4516_v5 = vpop.f32.mrf.mxu0  ;;  %v4518_v8 = vpop.f32.mrf.mxu1 }
  0xab   : > { %1173 = vmatmul.bf16.gmra.mxu1 %v795_v3  ;;  %1686 = vmatmul.bf16.gmra.mxu0 %v589_v4  ;;  %v3847_v3 = vld [vmem:[%s4983_s3 + $0x1e8] sm:$0xff] }
  0xac   : > { %1296 = vmatmul.bf16.gmra.mxu2 %v796_v12  ;;  %2436 = vmatpush.bf16.msra.mxu3 %v3847_v3  ;;  %v802_v3 = vpack.c.bf16 %v757_v50, %v756_v49  ;;  %v461_v49 = vld [vmem:[#allocation2 + $0x70] sm:$0xff]  ;;  %v462_v50 = vld [vmem:[#allocation2 + $0x78] sm:$0xff] }
  0xad   : > { %1568 = vmatmul.bf16.gmra.mxu3 %v4146_v13  ;;  %v800_v13 = vpack.c.bf16 %v755_v55, %v754_v52  ;;  %v603_v63 = vpack.c.bf16 %v462_v50, %v461_v49  ;;  %v761_v49 = vld [vmem:[#allocation2 + $0x8c] sm:$0xff]  ;;  %v463_v50 = vld [vmem:[#allocation2 + $0x80] sm:$0xff] }
  0xaf   : > { %v4521_v14 = vpop.f32.mrf.mxu2 }
  0xb0   : > { %v4523_v15 = vpop.f32.mrf.mxu3  ;;  %v4525_v19 = vpop.f32.mrf.mxu0 }
  0xb1   : > { %v4527_v20 = vpop.f32.mrf.mxu1 }
  0xb7   : > { %v4529_v27 = vpop.f32.mrf.mxu2 }
  0xb8   : > { %v4531_v35 = vpop.f32.mrf.mxu3  ;;  %v4533_v38 = vpop.f32.mrf.mxu0 }
  0xb9   : > { %v4535_v41 = vpop.f32.mrf.mxu1 }
  0xbb   : > { %1178 = vmatmul.bf16.gmra.mxu1 %v797_v29  ;;  %1691 = vmatmul.bf16.gmra.mxu0 %v592_v31  ;;  %v711_v31 = vld [vmem:[#allocation2 + $0x63] sm:$0xff] }
  0xbc   : > { %1301 = vmatmul.bf16.gmra.mxu2 %v798_v42  ;;  %v712_v42 = vld [vmem:[#allocation2 + $0x6b] sm:$0xff] }
  0xbd   : > { %1573 = vmatmul.bf16.gmra.mxu3 %v4147_v43  ;;  %v502_v43 = vld [vmem:[#allocation2 + $0x51] sm:$0xff]  ;;  %v801_v52 = vpack.c.bf16 %v712_v42, %v711_v31 }
  0xbe   : > { %v598_v55 = vpack.c.bf16 %v503_v48, %v502_v43  ;;  %v713_v42 = vld [vmem:[#allocation2 + $0x73] sm:$0xff]  ;;  %v714_v43 = vld [vmem:[#allocation2 + $0x7b] sm:$0xff] }
  0xbf   : > { %v4538_v44 = vpop.f32.mrf.mxu2  ;;  %v758_v48 = vld [vmem:[#allocation2 + $0x74] sm:$0xff] }
  0xc0   : > { %v4540_v45 = vpop.f32.mrf.mxu3  ;;  %v4542_v46 = vpop.f32.mrf.mxu0  ;;  %v804_v18 = vpack.c.bf16 %v759_v11, %v758_v48  ;;  %v715_v11 = vld [vmem:[#allocation2 + $0x83] sm:$0xff] }
  0xc1   : > { %5024 = vst [vmem:[#allocation21_spill] sm:$0xff] %v4540_v45  ;;  %v4544_v47 = vpop.f32.mrf.mxu1  ;;  %v760_v48 = vld [vmem:[#allocation2 + $0x84] sm:$0xff] }
  0xc2   : > { %v806_v7 = vpack.c.bf16 %v761_v49, %v760_v48  ;;  %v465_v48 = vld [vmem:[#allocation2 + $0x90] sm:$0xff] }
  0xc7   : > { %v4546_v57 = vpop.f32.mrf.mxu2 }
  0xc8   : > { %v4548_v1 = vpop.f32.mrf.mxu3  ;;  %v4556_v4 = vpop.f32.mrf.mxu0 }
  0xc9   : > { %5025 = vst [vmem:[#allocation22_spill] sm:$0xff] %v4548_v1  ;;  %v4558_v12 = vpop.f32.mrf.mxu1 }
  0xcb   : > { %1183 = vmatmul.bf16.gmra.mxu1 %v799_v60  ;;  %1696 = vmatmul.bf16.gmra.mxu0 %v595_v0 }
  0xcc   : > { %1306 = vmatmul.bf16.gmra.mxu2 %v800_v13  ;;  %v4149_v13 = vld [vmem:[%s4221_s30 + $0x30] sm:$0xff] }
  0xcd   : > { %1578 = vmatmul.bf16.gmra.mxu3 %v4148_v21 }
  0xcf   : > { %v4561_v22 = vpop.f32.mrf.mxu2 }
  0xd0   : > { %v4563_v23 = vpop.f32.mrf.mxu3  ;;  %v4571_v26 = vpop.f32.mrf.mxu0 }
  0xd1   : > { %5026 = vst [vmem:[#allocation23_spill] sm:$0xff] %v4563_v23  ;;  %v4573_v29 = vpop.f32.mrf.mxu1 }
  0xd7   : > { %v4575_v51 = vpop.f32.mrf.mxu2 }
  0xd8   : > { %v4577_v60 = vpop.f32.mrf.mxu3  ;;  %v4579_v0 = vpop.f32.mrf.mxu0 }
  0xd9   : > { %5027 = vst [vmem:[#allocation24_spill] sm:$0xff] %v4577_v60  ;;  %v4581_v2 = vpop.f32.mrf.mxu1 }
  0xdb   : > { %1188 = vmatmul.bf16.gmra.mxu1 %v801_v52  ;;  %1701 = vmatmul.bf16.gmra.mxu0 %v598_v55  ;;  %v803_v55 = vpack.c.bf16 %v714_v43, %v713_v42  ;;  %v716_v43 = vld [vmem:[#allocation2 + $0x8b] sm:$0xff] }
  0xdc   : > { %1311 = vmatmul.bf16.gmra.mxu2 %v802_v3  ;;  %v601_v3 = vpack.c.bf16 %v505_v30, %v504_v56  ;;  %v3838_v30 = vld [vmem:[%s4983_s3 + $0x1a0] sm:$0xff] }
  0xdd   : > { %1583 = vmatmul.bf16.gmra.mxu3 %v4149_v13  ;;  %v3846_v56 = vld [vmem:[%s4983_s3 + $0x1e0] sm:$0xff]  ;;  %2314 = vmatpush.bf16.msra.mxu2 %v3838_v30 }
  0xde   : > { %2437 = vmatpush.bf16.msra.mxu3 %v3846_v56  ;;  %v3806_v30 = vld [vmem:[%s4983_s3 + $0xa0] sm:$0xff] }
  0xdf   : > { %v4584_v21 = vpop.f32.mrf.mxu2  ;;  %1794 = vmatpush.bf16.msra.mxu1 %v3806_v30 }
  0xe0   : > { %v4586_v24 = vpop.f32.mrf.mxu3  ;;  %v4588_v25 = vpop.f32.mrf.mxu0 }
  0xe1   : > { %5028 = vst [vmem:[#allocation25_spill] sm:$0xff] %v4586_v24  ;;  %v4590_v31 = vpop.f32.mrf.mxu1  ;;  %v5032_v24 = vunpack.c.h.bf16 %v4250_v28  ;;  %v764_v28 = vld [vmem:[#allocation2 + $0xa4] sm:$0xff] }
  0xe3   : > { %v609_v16 = vpack.c.bf16 %v5032_v24, %v465_v48  ;;  %v765_v24 = vld [vmem:[#allocation2 + $0xac] sm:$0xff] }
  0xe7   : > { %v4592_v52 = vpop.f32.mrf.mxu2 }
  0xe8   : > { %v4594_v13 = vpop.f32.mrf.mxu3  ;;  %v4596_v40 = vpop.f32.mrf.mxu0 }
  0xe9   : > { %5029 = vst [vmem:[#allocation26_spill] sm:$0xff] %v4594_v13  ;;  %v4598_v59 = vpop.f32.mrf.mxu1 }
  0xeb   : > { %1193 = vmatmul.bf16.gmra.mxu1 %v803_v55  ;;  %1706 = vmatmul.bf16.gmra.mxu0 %v601_v3  ;;  %v805_v3 = vpack.c.bf16 %v716_v43, %v715_v11 }
  0xec   : > { %1316 = vmatmul.bf16.gmra.mxu2 %v804_v18  ;;  %v506_v18 = vld [vmem:[#allocation2 + $0x71] sm:$0xff] }
  0xed   : > { %1588 = vmatmul.bf16.gmra.mxu3 %v603_v63  ;;  %v507_v63 = vld [vmem:[#allocation2 + $0x79] sm:$0xff] }
  0xee   : > { %v604_v58 = vpack.c.bf16 %v507_v63, %v506_v18  ;;  %v762_v18 = vld [vmem:[#allocation2 + $0x94] sm:$0xff]  ;;  %v763_v63 = vld [vmem:[#allocation2 + $0x9c] sm:$0xff] }
  0xef   : > { %v4600_v34 = vpop.f32.mrf.mxu2  ;;  %v808_v13 = vpack.c.bf16 %v763_v63, %v762_v18  ;;  %v511_v18 = vld [vmem:[#allocation2 + $0x99] sm:$0xff] }
  0xf0   : > { %v4602_v10 = vpop.f32.mrf.mxu3  ;;  %v4604_v39 = vpop.f32.mrf.mxu0 }
  0xf1   : > { %5030 = vst [vmem:[#allocation27_spill] sm:$0xff] %v4602_v10  ;;  %v4606_v42 = vpop.f32.mrf.mxu1  ;;  %v606_v10 = vpack.c.bf16 %v5031_v37, %v463_v50  ;;  %v718_v37 = vld [vmem:[#allocation2 + $0x9b] sm:$0xff] }
  0xf7   : > { %v4614_v55 = vpop.f32.mrf.mxu2 }
  0xf8   : > { %v1153_v17 = vpop.f32.mrf.mxu3  ;;  %v4616_v62 = vpop.f32.mrf.mxu0 }
  0xf9   : > { %v4618_v33 = vpop.f32.mrf.mxu1  ;;  %v3854_v17 = vld [vmem:[%s4983_s3 + $0x220] sm:$0xff] }
  0xfa   : > { %2560 = vmatpush.bf16.msra.mxu0 %v3854_v17 }
  0xfb   : > { %1198 = vmatmul.bf16.gmra.mxu1 %v805_v3  ;;  %1711 = vmatmul.bf16.gmra.mxu0 %v604_v58  ;;  %v717_v58 = vld [vmem:[#allocation2 + $0x93] sm:$0xff] }
  0xfc   : > { %1321 = vmatmul.bf16.gmra.mxu2 %v806_v7  ;;  %v508_v7 = vld [vmem:[#allocation2 + $0x81] sm:$0xff]  ;;  %v807_v50 = vpack.c.bf16 %v718_v37, %v717_v58 }
  0xfd   : > { %1593 = vmatmul.bf16.gmra.mxu3 %v606_v10  ;;  %v509_v10 = vld [vmem:[#allocation2 + $0x89] sm:$0xff] }
  0xfe   : > { %v607_v3 = vpack.c.bf16 %v509_v10, %v508_v7  ;;  %v719_v37 = vld [vmem:[#allocation2 + $0xa3] sm:$0xff]  ;;  %v720_v7 = vld [vmem:[#allocation2 + $0xab] sm:$0xff] }
  0xff   : > { %v4628_v56 = vpop.f32.mrf.mxu2  ;;  %v510_v10 = vld [vmem:[#allocation2 + $0x91] sm:$0xff]  ;;  %v809_v48 = vpack.c.bf16 %v720_v7, %v719_v37 }
 0x100   : > { %v1554_v11 = vpop.f32.mrf.mxu3  ;;  %v4630_v43 = vpop.f32.mrf.mxu0 }
 0x101   : > { %v4632_v9 = vpop.f32.mrf.mxu1 }
 0x107   : > { %v4634_v49 = vpop.f32.mrf.mxu2 }
 0x108   : > { %v1556_v30 = vpop.f32.mrf.mxu3  ;;  %v1677_v54 = vpop.f32.mrf.mxu0 }
 0x109   : > { %v1164_v17 = vpop.f32.mrf.mxu1 }
 0x10a   : > { %v1165_v60 = vadd.f32 %v1164_v17, %v4516_v5  ;;  %v610_v5 = vpack.c.bf16 %v511_v18, %v510_v10  ;;  %v810_v17 = vpack.c.bf16 %v765_v24, %v764_v28  ;;  %v3837_v18 = vld [vmem:[%s4983_s3 + $0x198] sm:$0xff] }
 0x10b   : > { %1203 = vmatmul.bf16.gmra.mxu1 %v807_v50  ;;  %1716 = vmatmul.bf16.gmra.mxu0 %v607_v3  ;;  %v721_v28 = vld [vmem:[#allocation2 + $0xb3] sm:$0xff]  ;;  %v722_v24 = vld [vmem:[#allocation2 + $0xbb] sm:$0xff] }
 0x10c   : > { %1326 = vmatmul.bf16.gmra.mxu2 %v808_v13 }
 0x10d   : > { %1598 = vmatmul.bf16.gmra.mxu3 %v609_v16  ;;  %2315 = vmatpush.bf16.msra.mxu2 %v3837_v18 }
 0x10f   : > { %v1287_v23 = vpop.f32.mrf.mxu2 }
 0x110   : > { %v1559_v61 = vpop.f32.mrf.mxu3  ;;  %v1288_v1 = vadd.f32 %v1287_v23, %v1165_v60  ;;  %v1679_v32 = vpop.f32.mrf.mxu0 }
 0x111   : > { %v1166_v45 = vpop.f32.mrf.mxu1 }
 0x112   : > { %v1555_v58 = vadd.f32 %v1554_v11, %v1288_v1  ;;  %v1167_v13 = vadd.f32 %v1166_v45, %v4525_v19  ;;  %v4150_v1 = vld [vmem:[%s4221_s30 + $0x50] sm:$0xff] }
 0x114   : > { %v4639_v63 = vadd.f32 %v1677_v54, %v1555_v58 }
 0x116   : > { %5033 = vst [vmem:[#allocation28_spill] sm:$0xff] %v4639_v63 }
 0x117   : > { %v1289_v16 = vpop.f32.mrf.mxu2 }
 0x118   : > { %v1561_v50 = vpop.f32.mrf.mxu3  ;;  %v1290_v3 = vadd.f32 %v1289_v16, %v1167_v13  ;;  %v1682_v60 = vpop.f32.mrf.mxu0  ;;  %v513_v13 = vld [vmem:[#allocation2 + $0xa9] sm:$0xff]  ;;  %v767_v16 = vld [vmem:[#allocation2 + $0xbc] sm:$0xff] }
 0x119   : > { %v1169_v23 = vpop.f32.mrf.mxu1 }
 0x11a   : > { %v1557_v11 = vadd.f32 %v1556_v30, %v1290_v3  ;;  %v1170_v58 = vadd.f32 %v1169_v23, %v4533_v38  ;;  %v3845_v30 = vld [vmem:[%s4983_s3 + $0x1d8] sm:$0xff] }
 0x11b   : > { %1208 = vmatmul.bf16.gmra.mxu1 %v809_v48  ;;  %1721 = vmatmul.bf16.gmra.mxu0 %v610_v5  ;;  %v811_v5 = vpack.c.bf16 %v722_v24, %v721_v28 }
 0x11c   : > { %1331 = vmatmul.bf16.gmra.mxu2 %v810_v17  ;;  %v4643_v54 = vadd.f32 %v1679_v32, %v1557_v11  ;;  %v512_v32 = vld [vmem:[#allocation2 + $0xa1] sm:$0xff]  ;;  %2438 = vmatpush.bf16.msra.mxu3 %v3845_v30 }
 0x11d   : > { %1603 = vmatmul.bf16.gmra.mxu3 %v4150_v1  ;;  %v613_v3 = vpack.c.bf16 %v513_v13, %v512_v32  ;;  %v723_v13 = vld [vmem:[#allocation2 + $0xc3] sm:$0xff] }
 0x11e   : > { %5034 = vst [vmem:[#allocation29_spill] sm:$0xff] %v4643_v54 }
 0x11f   : > { %v1292_v63 = vpop.f32.mrf.mxu2 }
 0x120   : > { %v1564_v19 = vpop.f32.mrf.mxu3  ;;  %v1293_v45 = vadd.f32 %v1292_v63, %v1170_v58  ;;  %v1684_v7 = vpop.f32.mrf.mxu0  ;;  %v766_v63 = vld [vmem:[#allocation2 + $0xb4] sm:$0xff] }
 0x121   : > { %v1171_v37 = vpop.f32.mrf.mxu1  ;;  %v812_v58 = vpack.c.bf16 %v767_v16, %v766_v63  ;;  %v724_v63 = vld [vmem:[#allocation2 + $0xcb] sm:$0xff] }
 0x122   : > { %v1560_v10 = vadd.f32 %v1559_v61, %v1293_v45  ;;  %v1172_v61 = vadd.f32 %v1171_v37, %v4542_v46  ;;  %v4151_v45 = vld [vmem:[%s4221_s30 + $0x58] sm:$0xff] }
 0x123   : > { %v3853_v46 = vld [vmem:[%s4983_s3 + $0x218] sm:$0xff] }
 0x124   : > { %v4652_v38 = vadd.f32 %v1682_v60, %v1560_v10  ;;  %v3805_v60 = vld [vmem:[%s4983_s3 + $0x98] sm:$0xff]  ;;  %2561 = vmatpush.bf16.msra.mxu0 %v3853_v46 }
 0x125   : > { %1795 = vmatpush.bf16.msra.mxu1 %v3805_v60  ;;  %v514_v16 = vld [vmem:[#allocation2 + $0xb1] sm:$0xff] }
 0x127   : > { %v1294_v48 = vpop.f32.mrf.mxu2 }
 0x128   : > { %v1566_v23 = vpop.f32.mrf.mxu3  ;;  %v1295_v17 = vadd.f32 %v1294_v48, %v1172_v61  ;;  %v1687_v11 = vpop.f32.mrf.mxu0  ;;  %v515_v61 = vld [vmem:[#allocation2 + $0xb9] sm:$0xff] }
 0x129   : > { %v1174_v1 = vpop.f32.mrf.mxu1 }
 0x12a   : > { %v1562_v54 = vadd.f32 %v1561_v50, %v1295_v17  ;;  %v1175_v10 = vadd.f32 %v1174_v1, %v4556_v4  ;;  %v616_v17 = vpack.c.bf16 %v515_v61, %v514_v16  ;;  %v725_v16 = vld [vmem:[#allocation2 + $0xd3] sm:$0xff]  ;;  %v726_v61 = vld [vmem:[#allocation2 + $0xdb] sm:$0xff] }
 0x12b   : > { %1213 = vmatmul.bf16.gmra.mxu1 %v811_v5  ;;  %1726 = vmatmul.bf16.gmra.mxu0 %v613_v3  ;;  %v768_v5 = vld [vmem:[#allocation2 + $0xc4] sm:$0xff]  ;;  %v813_v3 = vpack.c.bf16 %v724_v63, %v723_v13 }
 0x12c   : > { %1336 = vmatmul.bf16.gmra.mxu2 %v812_v58  ;;  %v4662_v37 = vadd.f32 %v1684_v7, %v1562_v54  ;;  %v769_v54 = vld [vmem:[#allocation2 + $0xcc] sm:$0xff] }
 0x12d   : > { %1608 = vmatmul.bf16.gmra.mxu3 %v4151_v45  ;;  %v814_v46 = vpack.c.bf16 %v769_v54, %v768_v5  ;;  %v516_v5 = vld [vmem:[#allocation2 + $0xc1] sm:$0xff]  ;;  %v517_v54 = vld [vmem:[#allocation2 + $0xc9] sm:$0xff] }
 0x12f   : > { %v1297_v18 = vpop.f32.mrf.mxu2 }
 0x130   : > { %v1569_v50 = vpop.f32.mrf.mxu3  ;;  %v1298_v30 = vadd.f32 %v1297_v18, %v1175_v10  ;;  %v1689_v24 = vpop.f32.mrf.mxu0 }
 0x131   : > { %v1176_v28 = vpop.f32.mrf.mxu1 }
 0x132   : > { %v1565_v32 = vadd.f32 %v1564_v19, %v1298_v30  ;;  %v1177_v7 = vadd.f32 %v1176_v28, %v4571_v26  ;;  %v4152_v19 = vld [vmem:[%s4221_s30 + $0x60] sm:$0xff] }
 0x134   : > { %v4665_v48 = vadd.f32 %v1687_v11, %v1565_v32 }
 0x137   : > { %v1299_v4 = vpop.f32.mrf.mxu2 }
 0x138   : > { %v1571_v1 = vpop.f32.mrf.mxu3  ;;  %v1300_v58 = vadd.f32 %v1299_v4, %v1177_v7  ;;  %v1692_v60 = vpop.f32.mrf.mxu0  ;;  %v770_v7 = vld [vmem:[#allocation2 + $0xd4] sm:$0xff]  ;;  %v771_v4 = vld [vmem:[#allocation2 + $0xdc] sm:$0xff] }
 0x139   : > { %v1179_v45 = vpop.f32.mrf.mxu1 }
 0x13a   : > { %v1567_v10 = vadd.f32 %v1566_v23, %v1300_v58  ;;  %v1180_v18 = vadd.f32 %v1179_v45, %v4579_v0  ;;  %v815_v0 = vpack.c.bf16 %v726_v61, %v725_v16  ;;  %v619_v45 = vpack.c.bf16 %v517_v54, %v516_v5  ;;  %v727_v54 = vld [vmem:[#allocation2 + $0xe3] sm:$0xff] }
 0x13b   : > { %1218 = vmatmul.bf16.gmra.mxu1 %v813_v3  ;;  %1731 = vmatmul.bf16.gmra.mxu0 %v616_v17  ;;  %v473_v3 = vld [vmem:[#allocation2 + $0xd0] sm:$0xff]  ;;  %v474_v17 = vld [vmem:[#allocation2 + $0xd8] sm:$0xff] }
 0x13c   : > { %1341 = vmatmul.bf16.gmra.mxu2 %v814_v46  ;;  %v4669_v11 = vadd.f32 %v1689_v24, %v1567_v10 }
 0x13d   : > { %1613 = vmatmul.bf16.gmra.mxu3 %v4152_v19 }
 0x13f   : > { %v1302_v30 = vpop.f32.mrf.mxu2 }
 0x140   : > { %v1574_v26 = vpop.f32.mrf.mxu3  ;;  %v1303_v28 = vadd.f32 %v1302_v30, %v1180_v18  ;;  %v1694_v13 = vpop.f32.mrf.mxu0  ;;  %v621_v30 = vpack.c.bf16 %v474_v17, %v473_v3  ;;  %v518_v3 = vld [vmem:[#allocation2 + $0xd1] sm:$0xff]  ;;  %v519_v17 = vld [vmem:[#allocation2 + $0xd9] sm:$0xff] }
 0x141   : > { %v1181_v32 = vpop.f32.mrf.mxu1 }
 0x142   : > { %v1570_v63 = vadd.f32 %v1569_v50, %v1303_v28  ;;  %v1182_v24 = vadd.f32 %v1181_v32, %v4588_v25  ;;  %v816_v50 = vpack.c.bf16 %v771_v4, %v770_v7  ;;  %v3836_v7 = vld [vmem:[%s4983_s3 + $0x190] sm:$0xff] }
 0x143   : > { %v728_v4 = vld [vmem:[#allocation2 + $0xeb] sm:$0xff]  ;;  %2316 = vmatpush.bf16.msra.mxu2 %v3836_v7 }
 0x144   : > { %v4672_v23 = vadd.f32 %v1692_v60, %v1570_v63 }
 0x146   : > { %5035 = vst [vmem:[#allocation30_spill] sm:$0xff] %v4672_v23 }
 0x147   : > { %v1304_v58 = vpop.f32.mrf.mxu2 }
 0x148   : > { %v1576_v46 = vpop.f32.mrf.mxu3  ;;  %v1305_v19 = vadd.f32 %v1304_v58, %v1182_v24  ;;  %v1697_v18 = vpop.f32.mrf.mxu0  ;;  %v475_v24 = vld [vmem:[#allocation2 + $0xe0] sm:$0xff] }
 0x149   : > { %v1184_v10 = vpop.f32.mrf.mxu1 }
 0x14a   : > { %v1572_v28 = vadd.f32 %v1571_v1, %v1305_v19  ;;  %v1185_v63 = vadd.f32 %v1184_v10, %v4596_v40  ;;  %v3844_v1 = vld [vmem:[%s4983_s3 + $0x1d0] sm:$0xff]  ;;  %v622_v19 = vpack.c.bf16 %v519_v17, %v518_v3  ;;  %v730_v17 = vld [vmem:[#allocation2 + $0xfb] sm:$0xff] }
 0x14b   : > { %1223 = vmatmul.bf16.gmra.mxu1 %v815_v0  ;;  %1736 = vmatmul.bf16.gmra.mxu0 %v619_v45  ;;  %v817_v45 = vpack.c.bf16 %v728_v4, %v727_v54  ;;  %v729_v3 = vld [vmem:[#allocation2 + $0xf3] sm:$0xff] }
 0x14c   : > { %1346 = vmatmul.bf16.gmra.mxu2 %v816_v50  ;;  %v4675_v60 = vadd.f32 %v1694_v13, %v1572_v28  ;;  %v772_v13 = vld [vmem:[#allocation2 + $0xe4] sm:$0xff]  ;;  %2439 = vmatpush.bf16.msra.mxu3 %v3844_v1 }
 0x14d   : > { %1618 = vmatmul.bf16.gmra.mxu3 %v621_v30 }
 0x14e   : > { %5036 = vst [vmem:[#allocation31_spill] sm:$0xff] %v4675_v60 }
 0x14f   : > { %v1307_v23 = vpop.f32.mrf.mxu2 }
 0x150   : > { %v1579_v25 = vpop.f32.mrf.mxu3  ;;  %v1308_v32 = vadd.f32 %v1307_v23, %v1185_v63  ;;  %v1699_v61 = vpop.f32.mrf.mxu0  ;;  %v773_v23 = vld [vmem:[#allocation2 + $0xec] sm:$0xff] }
 0x151   : > { %v1186_v16 = vpop.f32.mrf.mxu1  ;;  %v818_v63 = vpack.c.bf16 %v773_v23, %v772_v13  ;;  %v774_v23 = vld [vmem:[#allocation2 + $0xf4] sm:$0xff] }
 0x152   : > { %v1575_v5 = vadd.f32 %v1574_v26, %v1308_v32  ;;  %v476_v26 = vld [vmem:[#allocation2 + $0xe8] sm:$0xff]  ;;  %v1187_v58 = vadd.f32 %v1186_v16, %v4604_v39 }
 0x153   : > { %v624_v32 = vpack.c.bf16 %v476_v26, %v475_v24  ;;  %v520_v24 = vld [vmem:[#allocation2 + $0xe1] sm:$0xff]  ;;  %v521_v26 = vld [vmem:[#allocation2 + $0xe9] sm:$0xff] }
 0x154   : > { %v4684_v40 = vadd.f32 %v1697_v18, %v1575_v5  ;;  %v3804_v18 = vld [vmem:[%s4983_s3 + $0x90] sm:$0xff] }
 0x155   : > { %v3852_v5 = vld [vmem:[%s4983_s3 + $0x210] sm:$0xff]  ;;  %1796 = vmatpush.bf16.msra.mxu1 %v3804_v18 }
 0x156   : > { %2562 = vmatpush.bf16.msra.mxu0 %v3852_v5 }
 0x157   : > { %v1309_v0 = vpop.f32.mrf.mxu2 }
 0x158   : > { %v1581_v10 = vpop.f32.mrf.mxu3  ;;  %v1310_v50 = vadd.f32 %v1309_v0, %v1187_v58  ;;  %v1702_v28 = vpop.f32.mrf.mxu0  ;;  %v775_v0 = vld [vmem:[#allocation2 + $0xfc] sm:$0xff] }
 0x159   : > { %v1189_v30 = vpop.f32.mrf.mxu1 }
 0x15a   : > { %v1577_v60 = vadd.f32 %v1576_v46, %v1310_v50  ;;  %v1190_v16 = vadd.f32 %v1189_v30, %v4616_v62  ;;  %v819_v62 = vpack.c.bf16 %v730_v17, %v729_v3  ;;  %v625_v50 = vpack.c.bf16 %v521_v26, %v520_v24  ;;  %v731_v24 = vld [vmem:[#allocation2 + $0x103] sm:$0xff]  ;;  %v732_v26 = vld [vmem:[#allocation2 + $0x10b] sm:$0xff] }
 0x15b   : > { %1228 = vmatmul.bf16.gmra.mxu1 %v817_v45  ;;  %1741 = vmatmul.bf16.gmra.mxu0 %v622_v19 }
 0x15c   : > { %1351 = vmatmul.bf16.gmra.mxu2 %v818_v63  ;;  %v4693_v39 = vadd.f32 %v1699_v61, %v1577_v60  ;;  %v477_v60 = vld [vmem:[#allocation2 + $0xf0] sm:$0xff]  ;;  %v478_v61 = vld [vmem:[#allocation2 + $0xf8] sm:$0xff] }
 0x15d   : > { %1623 = vmatmul.bf16.gmra.mxu3 %v624_v32  ;;  %v627_v5 = vpack.c.bf16 %v478_v61, %v477_v60  ;;  %v777_v60 = vld [vmem:[#allocation2 + $0x10c] sm:$0xff]  ;;  %v479_v61 = vld [vmem:[#allocation2 + $0x100] sm:$0xff] }
 0x15f   : > { %v1312_v7 = vpop.f32.mrf.mxu2 }
 0x160   : > { %v1584_v46 = vpop.f32.mrf.mxu3  ;;  %v1313_v1 = vadd.f32 %v1312_v7, %v1190_v16  ;;  %v1704_v4 = vpop.f32.mrf.mxu0 }
 0x161   : > { %v1191_v54 = vpop.f32.mrf.mxu1 }
 0x162   : > { %v1580_v13 = vadd.f32 %v1579_v25, %v1313_v1  ;;  %v1192_v45 = vadd.f32 %v1191_v54, %v4630_v43  ;;  %v820_v25 = vpack.c.bf16 %v775_v0, %v774_v23  ;;  %v522_v23 = vld [vmem:[#allocation2 + $0xf1] sm:$0xff]  ;;  %v523_v0 = vld [vmem:[#allocation2 + $0xf9] sm:$0xff] }
 0x164   : > { %v4696_v58 = vadd.f32 %v1702_v28, %v1580_v13 }
 0x167   : > { %v1314_v19 = vpop.f32.mrf.mxu2 }
 0x168   : > { %v1586_v30 = vpop.f32.mrf.mxu3  ;;  %v1315_v63 = vadd.f32 %v1314_v19, %v1192_v45  ;;  %v1707_v18 = vpop.f32.mrf.mxu0  ;;  %v776_v45 = vld [vmem:[#allocation2 + $0x104] sm:$0xff] }
 0x169   : > { %v1194_v32 = vpop.f32.mrf.mxu1  ;;  %v480_v19 = vld [vmem:[#allocation2 + $0x108] sm:$0xff] }
 0x16a   : > { %v1582_v16 = vadd.f32 %v1581_v10, %v1315_v63  ;;  %v1195_v7 = vadd.f32 %v1194_v32, %v4518_v8  ;;  %v821_v8 = vpack.c.bf16 %v732_v26, %v731_v24 }
 0x16b   : > { %1233 = vmatmul.bf16.gmra.mxu1 %v819_v62  ;;  %1746 = vmatmul.bf16.gmra.mxu0 %v625_v50  ;;  %v628_v50 = vpack.c.bf16 %v523_v0, %v522_v23  ;;  %v733_v23 = vld [vmem:[#allocation2 + $0x113] sm:$0xff]  ;;  %v734_v0 = vld [vmem:[#allocation2 + $0x11b] sm:$0xff] }
 0x16c   : > { %1356 = vmatmul.bf16.gmra.mxu2 %v820_v25  ;;  %v4699_v28 = vadd.f32 %v1704_v4, %v1582_v16  ;;  %v630_v16 = vpack.c.bf16 %v480_v19, %v479_v61  ;;  %v525_v61 = vld [vmem:[#allocation2 + $0x109] sm:$0xff]  ;;  %v779_v19 = vld [vmem:[#allocation2 + $0x11c] sm:$0xff] }
 0x16d   : > { %1628 = vmatmul.bf16.gmra.mxu3 %v627_v5 }
 0x16f   : > { %v1317_v1 = vpop.f32.mrf.mxu2 }
 0x170   : > { %v1589_v43 = vpop.f32.mrf.mxu3  ;;  %v1318_v54 = vadd.f32 %v1317_v1, %v1195_v7  ;;  %v1709_v3 = vpop.f32.mrf.mxu0 }
 0x171   : > { %v1196_v13 = vpop.f32.mrf.mxu1 }
 0x172   : > { %v1585_v17 = vadd.f32 %v1584_v46, %v1318_v54  ;;  %v1197_v4 = vadd.f32 %v1196_v13, %v4527_v20  ;;  %v822_v46 = vpack.c.bf16 %v777_v60, %v776_v45  ;;  %v3835_v45 = vld [vmem:[%s4983_s3 + $0x188] sm:$0xff] }
 0x173   : > { %v524_v60 = vld [vmem:[#allocation2 + $0x101] sm:$0xff]  ;;  %2317 = vmatpush.bf16.msra.mxu2 %v3835_v45 }
 0x174   : > { %v4702_v10 = vadd.f32 %v1707_v18, %v1585_v17 }
 0x177   : > { %v1319_v62 = vpop.f32.mrf.mxu2 }
 0x178   : > { %v1591_v63 = vpop.f32.mrf.mxu3  ;;  %v1320_v32 = vadd.f32 %v1319_v62, %v1197_v4  ;;  %v1712_v5 = vpop.f32.mrf.mxu0  ;;  %v481_v4 = vld [vmem:[#allocation2 + $0x110] sm:$0xff] }
 0x179   : > { %v1199_v25 = vpop.f32.mrf.mxu1 }
 0x17a   : > { %v1587_v7 = vadd.f32 %v1586_v30, %v1320_v32  ;;  %v1200_v1 = vadd.f32 %v1199_v25, %v4535_v41  ;;  %v3843_v30 = vld [vmem:[%s4983_s3 + $0x1c8] sm:$0xff]  ;;  %v631_v32 = vpack.c.bf16 %v525_v61, %v524_v60 }
 0x17b   : > { %1238 = vmatmul.bf16.gmra.mxu1 %v821_v8  ;;  %1751 = vmatmul.bf16.gmra.mxu0 %v628_v50  ;;  %v823_v50 = vpack.c.bf16 %v734_v0, %v733_v23  ;;  %v735_v60 = vld [vmem:[#allocation2 + $0x123] sm:$0xff]  ;;  %v736_v61 = vld [vmem:[#allocation2 + $0x12b] sm:$0xff] }
 0x17c   : > { %1361 = vmatmul.bf16.gmra.mxu2 %v822_v46  ;;  %v4705_v18 = vadd.f32 %v1709_v3, %v1587_v7  ;;  %v778_v3 = vld [vmem:[#allocation2 + $0x114] sm:$0xff]  ;;  %2440 = vmatpush.bf16.msra.mxu3 %v3843_v30 }
 0x17d   : > { %1633 = vmatmul.bf16.gmra.mxu3 %v630_v16 }
 0x17f   : > { %v1322_v54 = vpop.f32.mrf.mxu2 }
 0x180   : > { %v1594_v20 = vpop.f32.mrf.mxu3  ;;  %v1323_v13 = vadd.f32 %v1322_v54, %v1200_v1  ;;  %v1714_v24 = vpop.f32.mrf.mxu0  ;;  %v824_v1 = vpack.c.bf16 %v779_v19, %v778_v3  ;;  %v780_v19 = vld [vmem:[#allocation2 + $0x124] sm:$0xff] }
 0x181   : > { %v1201_v17 = vpop.f32.mrf.mxu1 }
 0x182   : > { %v1590_v26 = vadd.f32 %v1589_v43, %v1323_v13  ;;  %v482_v43 = vld [vmem:[#allocation2 + $0x118] sm:$0xff]  ;;  %v1202_v62 = vadd.f32 %v1201_v17, %v4544_v47 }
 0x183   : > { %v633_v54 = vpack.c.bf16 %v482_v43, %v481_v4  ;;  %v526_v4 = vld [vmem:[#allocation2 + $0x111] sm:$0xff]  ;;  %v527_v43 = vld [vmem:[#allocation2 + $0x119] sm:$0xff] }
 0x184   : > { %v4714_v41 = vadd.f32 %v1712_v5, %v1590_v26  ;;  %v3803_v5 = vld [vmem:[%s4983_s3 + $0x88] sm:$0xff] }
 0x185   : > { %v3851_v26 = vld [vmem:[%s4983_s3 + $0x208] sm:$0xff]  ;;  %1797 = vmatpush.bf16.msra.mxu1 %v3803_v5 }
 0x186   : > { %2563 = vmatpush.bf16.msra.mxu0 %v3851_v26 }
 0x187   : > { %v1324_v8 = vpop.f32.mrf.mxu2 }
 0x188   : > { %v1596_v25 = vpop.f32.mrf.mxu3  ;;  %v1325_v46 = vadd.f32 %v1324_v8, %v1202_v62  ;;  %v1717_v7 = vpop.f32.mrf.mxu0  ;;  %v781_v8 = vld [vmem:[#allocation2 + $0x12c] sm:$0xff] }
 0x189   : > { %v1204_v16 = vpop.f32.mrf.mxu1 }
 0x18a   : > { %v1592_v13 = vadd.f32 %v1591_v63, %v1325_v46  ;;  %v1205_v17 = vadd.f32 %v1204_v16, %v4558_v12  ;;  %v825_v12 = vpack.c.bf16 %v736_v61, %v735_v60  ;;  %v634_v16 = vpack.c.bf16 %v527_v43, %v526_v4  ;;  %v737_v4 = vld [vmem:[#allocation2 + $0x133] sm:$0xff]  ;;  %v738_v43 = vld [vmem:[#allocation2 + $0x13b] sm:$0xff] }
 0x18b   : > { %1243 = vmatmul.bf16.gmra.mxu1 %v823_v50  ;;  %1756 = vmatmul.bf16.gmra.mxu0 %v631_v32  ;;  %v484_v50 = vld [vmem:[#allocation2 + $0x128] sm:$0xff] }
 0x18c   : > { %1366 = vmatmul.bf16.gmra.mxu2 %v824_v1  ;;  %v4723_v47 = vadd.f32 %v1714_v24, %v1592_v13  ;;  %v483_v24 = vld [vmem:[#allocation2 + $0x120] sm:$0xff] }
 0x18d   : > { %1638 = vmatmul.bf16.gmra.mxu3 %v633_v54  ;;  %v636_v26 = vpack.c.bf16 %v484_v50, %v483_v24  ;;  %v783_v24 = vld [vmem:[#allocation2 + $0x13c] sm:$0xff]  ;;  %v485_v50 = vld [vmem:[#allocation2 + $0x130] sm:$0xff] }
 0x18f   : > { %v1327_v45 = vpop.f32.mrf.mxu2 }
 0x190   : > { %v1599_v63 = vpop.f32.mrf.mxu3  ;;  %v1328_v30 = vadd.f32 %v1327_v45, %v1205_v17  ;;  %v1719_v0 = vpop.f32.mrf.mxu0 }
 0x191   : > { %v1206_v23 = vpop.f32.mrf.mxu1 }
 0x192   : > { %v1595_v3 = vadd.f32 %v1594_v20, %v1328_v30  ;;  %v1207_v32 = vadd.f32 %v1206_v23, %v4573_v29  ;;  %v826_v20 = vpack.c.bf16 %v781_v8, %v780_v19  ;;  %v528_v19 = vld [vmem:[#allocation2 + $0x121] sm:$0xff]  ;;  %v529_v8 = vld [vmem:[#allocation2 + $0x129] sm:$0xff] }
 0x194   : > { %v4726_v62 = vadd.f32 %v1717_v7, %v1595_v3 }
 0x197   : > { %v1329_v46 = vpop.f32.mrf.mxu2 }
 0x198   : > { %v1601_v1 = vpop.f32.mrf.mxu3  ;;  %v1330_v54 = vadd.f32 %v1329_v46, %v1207_v32  ;;  %v1722_v5 = vpop.f32.mrf.mxu0  ;;  %v782_v32 = vld [vmem:[#allocation2 + $0x134] sm:$0xff] }
 0x199   : > { %v1209_v13 = vpop.f32.mrf.mxu1  ;;  %v486_v46 = vld [vmem:[#allocation2 + $0x138] sm:$0xff] }
 0x19a   : > { %v1597_v17 = vadd.f32 %v1596_v25, %v1330_v54  ;;  %v1210_v45 = vadd.f32 %v1209_v13, %v4581_v2  ;;  %v827_v2 = vpack.c.bf16 %v738_v43, %v737_v4 }
 0x19b   : > { %1248 = vmatmul.bf16.gmra.mxu1 %v825_v12  ;;  %1761 = vmatmul.bf16.gmra.mxu0 %v634_v16  ;;  %v637_v16 = vpack.c.bf16 %v529_v8, %v528_v19  ;;  %v3802_v19 = vld [vmem:[%s4983_s3 + $0x80] sm:$0xff] }
 0x19c   : > { %1371 = vmatmul.bf16.gmra.mxu2 %v826_v20  ;;  %v4729_v7 = vadd.f32 %v1719_v0, %v1597_v17  ;;  %v639_v17 = vpack.c.bf16 %v486_v46, %v485_v50  ;;  %v3850_v8 = vld [vmem:[%s4983_s3 + $0x200] sm:$0xff]  ;;  %1798 = vmatpush.bf16.msra.mxu1 %v3802_v19 }
 0x19d   : > { %1643 = vmatmul.bf16.gmra.mxu3 %v636_v26  ;;  %v784_v50 = vld [vmem:[#allocation2 + $0x144] sm:$0xff]  ;;  %v531_v46 = vld [vmem:[#allocation2 + $0x139] sm:$0xff]  ;;  %2564 = vmatpush.bf16.msra.mxu0 %v3850_v8 }
 0x19f   : > { %v1332_v30 = vpop.f32.mrf.mxu2 }
 0x1a0   : > { %v1604_v29 = vpop.f32.mrf.mxu3  ;;  %v1333_v23 = vadd.f32 %v1332_v30, %v1210_v45  ;;  %v1724_v60 = vpop.f32.mrf.mxu0 }
 0x1a1   : > { %v1211_v3 = vpop.f32.mrf.mxu1 }
 0x1a2   : > { %v1600_v61 = vadd.f32 %v1599_v63, %v1333_v23  ;;  %v1212_v0 = vadd.f32 %v1211_v3, %v4590_v31  ;;  %v828_v63 = vpack.c.bf16 %v783_v24, %v782_v32  ;;  %v3842_v31 = vld [vmem:[%s4983_s3 + $0x1c0] sm:$0xff]  ;;  %v740_v24 = vld [vmem:[#allocation2 + $0x14b] sm:$0xff] }
 0x1a3   : > { %2441 = vmatpush.bf16.msra.mxu3 %v3842_v31 }
 0x1a4   : > { %v4732_v25 = vadd.f32 %v1722_v5, %v1600_v61  ;;  %v3834_v5 = vld [vmem:[%s4983_s3 + $0x180] sm:$0xff] }
 0x1a5   : > { %2318 = vmatpush.bf16.msra.mxu2 %v3834_v5 }
 0x1a7   : > { %v1334_v12 = vpop.f32.mrf.mxu2 }
 0x1a8   : > { %v1606_v54 = vpop.f32.mrf.mxu3  ;;  %v1335_v13 = vadd.f32 %v1334_v12, %v1212_v0  ;;  %v1727_v26 = vpop.f32.mrf.mxu0  ;;  %v785_v12 = vld [vmem:[#allocation2 + $0x14c] sm:$0xff] }
 0x1a9   : > { %v1214_v20 = vpop.f32.mrf.mxu1 }
 0x1aa   : > { %v1602_v45 = vadd.f32 %v1601_v1, %v1335_v13  ;;  %v1215_v23 = vadd.f32 %v1214_v20, %v4598_v59  ;;  %v530_v59 = vld [vmem:[#allocation2 + $0x131] sm:$0xff] }
 0x1ab   : > { %1253 = vmatmul.bf16.gmra.mxu1 %v827_v2  ;;  %1766 = vmatmul.bf16.gmra.mxu0 %v637_v16  ;;  %v487_v2 = vld [vmem:[#allocation2 + $0x140] sm:$0xff] }
 0x1ac   : > { %1376 = vmatmul.bf16.gmra.mxu2 %v828_v63  ;;  %v4741_v30 = vadd.f32 %v1724_v60, %v1602_v45  ;;  %v739_v60 = vld [vmem:[#allocation2 + $0x143] sm:$0xff]  ;;  %v640_v63 = vpack.c.bf16 %v531_v46, %v530_v59  ;;  %v741_v59 = vld [vmem:[#allocation2 + $0x153] sm:$0xff]  ;;  %v742_v46 = vld [vmem:[#allocation2 + $0x15b] sm:$0xff] }
 0x1ad   : > { %1648 = vmatmul.bf16.gmra.mxu3 %v639_v17  ;;  %v829_v20 = vpack.c.bf16 %v740_v24, %v739_v60 }
 0x1af   : > { %v1337_v3 = vpop.f32.mrf.mxu2 }
 0x1b0   : > { %v1609_v1 = vpop.f32.mrf.mxu3  ;;  %v1338_v61 = vadd.f32 %v1337_v3, %v1215_v23  ;;  %v1729_v43 = vpop.f32.mrf.mxu0  ;;  %v830_v23 = vpack.c.bf16 %v785_v12, %v784_v50  ;;  %v532_v50 = vld [vmem:[#allocation2 + $0x141] sm:$0xff]  ;;  %v533_v12 = vld [vmem:[#allocation2 + $0x149] sm:$0xff] }
 0x1b1   : > { %v1216_v4 = vpop.f32.mrf.mxu1 }
 0x1b2   : > { %v1605_v32 = vadd.f32 %v1604_v29, %v1338_v61  ;;  %v488_v29 = vld [vmem:[#allocation2 + $0x148] sm:$0xff]  ;;  %v1217_v16 = vadd.f32 %v1216_v4, %v4606_v42 }
 0x1b3   : > { %v642_v3 = vpack.c.bf16 %v488_v29, %v487_v2  ;;  %v787_v2 = vld [vmem:[#allocation2 + $0x15c] sm:$0xff]  ;;  %v489_v29 = vld [vmem:[#allocation2 + $0x150] sm:$0xff] }
 0x1b4   : > { %v4750_v0 = vadd.f32 %v1727_v26, %v1605_v32 }
 0x1b7   : > { %v1339_v13 = vpop.f32.mrf.mxu2 }
 0x1b8   : > { %v1611_v17 = vpop.f32.mrf.mxu3  ;;  %v1340_v45 = vadd.f32 %v1339_v13, %v1217_v16  ;;  %v1732_v31 = vpop.f32.mrf.mxu0  ;;  %v786_v16 = vld [vmem:[#allocation2 + $0x154] sm:$0xff] }
 0x1b9   : > { %v1219_v5 = vpop.f32.mrf.mxu1  ;;  %v490_v13 = vld [vmem:[#allocation2 + $0x158] sm:$0xff] }
 0x1ba   : > { %v1607_v61 = vadd.f32 %v1606_v54, %v1340_v45  ;;  %v1220_v32 = vadd.f32 %v1219_v5, %v4618_v33  ;;  %v831_v33 = vpack.c.bf16 %v742_v46, %v741_v59 }
 0x1bb   : > { %1258 = vmatmul.bf16.gmra.mxu1 %v829_v20  ;;  %1771 = vmatmul.bf16.gmra.mxu0 %v640_v63  ;;  %v643_v63 = vpack.c.bf16 %v533_v12, %v532_v50  ;;  %v743_v50 = vld [vmem:[#allocation2 + $0x163] sm:$0xff]  ;;  %v744_v12 = vld [vmem:[#allocation2 + $0x16b] sm:$0xff] }
 0x1bc   : > { %1381 = vmatmul.bf16.gmra.mxu2 %v830_v23  ;;  %v4753_v26 = vadd.f32 %v1729_v43, %v1607_v61  ;;  %v645_v61 = vpack.c.bf16 %v490_v13, %v489_v29  ;;  %v789_v29 = vld [vmem:[#allocation2 + $0x16c] sm:$0xff]  ;;  %v491_v13 = vld [vmem:[#allocation2 + $0x160] sm:$0xff] }
 0x1bd   : > { %1653 = vmatmul.bf16.gmra.mxu3 %v642_v3 }
 0x1bf   : > { %v1342_v19 = vpop.f32.mrf.mxu2 }
 0x1c0   : > { %v1614_v42 = vpop.f32.mrf.mxu3  ;;  %v1343_v4 = vadd.f32 %v1342_v19, %v1220_v32  ;;  %v1734_v60 = vpop.f32.mrf.mxu0 }
 0x1c1   : > { %v1221_v8 = vpop.f32.mrf.mxu1 }
 0x1c2   : > { %v1610_v24 = vadd.f32 %v1609_v1, %v1343_v4  ;;  %v1222_v43 = vadd.f32 %v1221_v8, %v4632_v9  ;;  %v832_v1 = vpack.c.bf16 %v787_v2, %v786_v16  ;;  %v535_v16 = vld [vmem:[#allocation2 + $0x159] sm:$0xff] }
 0x1c4   : > { %v4756_v54 = vadd.f32 %v1732_v31, %v1610_v24 }
 0x1c7   : > { %v1344_v20 = vpop.f32.mrf.mxu2 }
 0x1c8   : > { %v1616_v45 = vpop.f32.mrf.mxu3  ;;  %v1345_v5 = vadd.f32 %v1344_v20, %v1222_v43  ;;  %v1737_v3 = vpop.f32.mrf.mxu0  ;;  %v534_v43 = vld [vmem:[#allocation2 + $0x151] sm:$0xff] }
 0x1c9   : > { %v1224_v23 = vpop.f32.mrf.mxu1 }
 0x1ca   : > { %v1612_v32 = vadd.f32 %v1611_v17, %v1345_v5  ;;  %v1225_v19 = vadd.f32 %v1224_v23, %v4521_v14  ;;  %v788_v17 = vld [vmem:[#allocation2 + $0x164] sm:$0xff]  ;;  %v646_v14 = vpack.c.bf16 %v535_v16, %v534_v43 }
 0x1cb   : > { %1263 = vmatmul.bf16.gmra.mxu1 %v831_v33  ;;  %1776 = vmatmul.bf16.gmra.mxu0 %v643_v63  ;;  %v834_v33 = vpack.c.bf16 %v744_v12, %v743_v50  ;;  %v745_v12 = vld [vmem:[#allocation2 + $0x173] sm:$0xff]  ;;  %v536_v43 = vld [vmem:[#allocation2 + $0x161] sm:$0xff] }
 0x1cc   : > { %1386 = vmatmul.bf16.gmra.mxu2 %v832_v1  ;;  %v4759_v31 = vadd.f32 %v1734_v60, %v1612_v32 }
 0x1cd   : > { %1658 = vmatmul.bf16.gmra.mxu3 %v645_v61  ;;  %v835_v61 = vpack.c.bf16 %v789_v29, %v788_v17  ;;  %v790_v17 = vld [vmem:[#allocation2 + $0x174] sm:$0xff] }
 0x1ce   : > { %v1960_v29 = vld [vmem:[#allocation2 + $0x2d] sm:$0xff] }
 0x1cf   : > { %v1347_v4 = vpop.f32.mrf.mxu2 }
 0x1d0   : > { %v1619_v9 = vpop.f32.mrf.mxu3  ;;  %v1348_v8 = vadd.f32 %v1347_v4, %v1225_v19  ;;  %v1739_v59 = vpop.f32.mrf.mxu0 }
 0x1d1   : > { %v1226_v24 = vpop.f32.mrf.mxu1 }
 0x1d2   : > { %v1615_v46 = vadd.f32 %v1614_v42, %v1348_v8  ;;  %v1227_v60 = vadd.f32 %v1226_v24, %v4529_v27  ;;  %v648_v42 = vpack.c.bf16 %v491_v13, %v491_v13 }
 0x1d4   : > { %v4762_v2 = vadd.f32 %v1737_v3, %v1615_v46 }
 0x1d7   : > { %v1349_v20 = vpop.f32.mrf.mxu2 }
 0x1d8   : > { %v1621_v63 = vpop.f32.mrf.mxu3  ;;  %v1350_v5 = vadd.f32 %v1349_v20, %v1227_v60  ;;  %v1742_v1 = vpop.f32.mrf.mxu0  ;;  %v837_v60 = vpack.c.bf16 %v745_v12, %v745_v12  ;;  %v649_v20 = vpack.c.bf16 %v536_v43, %v536_v43  ;;  %v538_v12 = vld [vmem:[#allocation2 + $0xa] sm:$0xff] }
 0x1d9   : > { %v1229_v23 = vpop.f32.mrf.mxu1  ;;  %v2004_v43 = vld [vmem:[#allocation2 + $0x26] sm:$0xff] }
 0x1da   : > { %v1617_v32 = vadd.f32 %v1616_v45, %v1350_v5  ;;  %v1230_v19 = vadd.f32 %v1229_v23, %v4538_v44  ;;  %v1959_v45 = vld [vmem:[#allocation2 + $0x25] sm:$0xff]  ;;  %v838_v23 = vpack.c.bf16 %v790_v17, %v790_v17  ;;  %v2005_v17 = vld [vmem:[#allocation2 + $0x2e] sm:$0xff] }
 0x1db   : > { %1268 = vmatmul.bf16.gmra.mxu1 %v834_v33  ;;  %1781 = vmatmul.bf16.gmra.mxu0 %v646_v14 }
 0x1dc   : > { %1391 = vmatmul.bf16.gmra.mxu2 %v835_v61  ;;  %v4765_v3 = vadd.f32 %v1739_v59, %v1617_v32  ;;  %v2050_v61 = vpack.c.bf16 %v1960_v29, %v1959_v45  ;;  %v1915_v29 = vld [vmem:[#allocation2 + $0x2c] sm:$0xff] }
 0x1dd   : > { %1663 = vmatmul.bf16.gmra.mxu3 %v648_v42 }
 0x1df   : > { %v1352_v4 = vpop.f32.mrf.mxu2 }
 0x1e0   : > { %v1624_v27 = vpop.f32.mrf.mxu3  ;;  %v1353_v8 = vadd.f32 %v1352_v4, %v1230_v19  ;;  %v1744_v46 = vpop.f32.mrf.mxu0 }
 0x1e1   : > { %v1231_v24 = vpop.f32.mrf.mxu1 }
 0x1e2   : > { %v1620_v50 = vadd.f32 %v1619_v9, %v1353_v8  ;;  %v1232_v13 = vadd.f32 %v1231_v24, %v4546_v57  ;;  %v4162_v24 = vmov 0  }
 0x1e3   : > { %4140 = vset.pattern.permute.xlu0 %v4162_v24  ;;  %4141 = vset.pattern.permute.xlu1 %v4162_v24 }
 0x1e4   : > { %v4768_v16 = vadd.f32 %v1742_v1, %v1620_v50  ;;  %v2725_v50 = vld [vmem:[%s4778_s16] sm:$0xff]  ;;  %4142 = vset.pattern.permute.xlu2 %v4162_v24  ;;  %v2726_v24 = vld [vmem:[%s4778_s16 + $0x8] sm:$0xff] }
 0x1e5   : > { %2772 = vperm.xlu0 %4140, %v2725_v50  }
 0x1e7   : > { %v1354_v59 = vpop.f32.mrf.mxu2 }
 0x1e8   : > { %v1626_v44 = vpop.f32.mrf.mxu3  ;;  %v1355_v33 = vadd.f32 %v1354_v59, %v1232_v13  ;;  %v1747_v5 = vpop.f32.mrf.mxu0  ;;  %v1961_v13 = vld [vmem:[#allocation2 + $0x35] sm:$0xff]  ;;  %v1962_v59 = vld [vmem:[#allocation2 + $0x3d] sm:$0xff] }
 0x1e9   : > { %v1234_v14 = vpop.f32.mrf.mxu1 }
 0x1ea   : > { %v1622_v9 = vadd.f32 %v1621_v63, %v1355_v33  ;;  %v1235_v42 = vadd.f32 %v1234_v14, %v4561_v22  ;;  %v1914_v22 = vld [vmem:[#allocation2 + $0x24] sm:$0xff]  ;;  %v2051_v33 = vpack.c.bf16 %v2005_v17, %v2004_v43  ;;  %v1916_v17 = vld [vmem:[#allocation2 + $0x34] sm:$0xff] }
 0x1eb   : > { %1273 = vmatmul.bf16.gmra.mxu1 %v837_v60  ;;  %1786 = vmatmul.bf16.gmra.mxu0 %v649_v20 }
 0x1ec   : > { %1396 = vmatmul.bf16.gmra.mxu2 %v838_v23  ;;  %v4772_v1 = vadd.f32 %v1744_v46, %v1622_v9  ;;  %v537_v46 = vld [vmem:[#allocation2 + $0x2] sm:$0xff] }
 0x1ed   : > { %2442 = vmatmul.bf16.vlgmr.msra.gmra.mxu3 %v2050_v61  ;;  %v584_v20 = vpack.c.bf16 %v538_v12, %v537_v46  ;;  %2777 = vperm.xlu0 %4140, %v2726_v24   ;;  %v2728_v24 = vld [vmem:[%s4778_s16 + $0x18] sm:$0xff] }
 0x1ef   : > { %v1357_v57 = vpop.f32.mrf.mxu2 }
 0x1f0   : > { %v1629_v32 = vpop.f32.mrf.mxu3  ;;  %v1358_v19 = vadd.f32 %v1357_v57, %v1235_v42  ;;  %v1749_v63 = vpop.f32.mrf.mxu0  ;;  %v2049_v42 = vpack.c.bf16 %v1915_v29, %v1914_v22  ;;  %v2053_v57 = vpack.c.bf16 %v1962_v59, %v1961_v13  ;;  %v2727_v22 = vld [vmem:[%s4778_s16 + $0x10] sm:$0xff]  ;;  %v2007_v29 = vld [vmem:[#allocation2 + $0x3e] sm:$0xff] }
 0x1f1   : > { %v1236_v4 = vpop.f32.mrf.mxu1  ;;  %2782 = vperm.xlu1 %4141, %v2727_v22   ;;  %v1917_v59 = vld [vmem:[#allocation2 + $0x3c] sm:$0xff] }
 0x1f2   : > { %v1625_v8 = vadd.f32 %v1624_v27, %v1358_v19  ;;  %v1237_v60 = vadd.f32 %v1236_v4, %v4575_v51 }
 0x1f4   : > { %v4781_v45 = vadd.f32 %v1747_v5, %v1625_v8 }
 0x1f7   : > { %v1359_v27 = vpop.f32.mrf.mxu2 }
 0x1f8   : > { %v1631_v14 = vpop.f32.mrf.mxu3  ;;  %v1360_v23 = vadd.f32 %v1359_v27, %v1237_v60  ;;  %v1752_v9 = vpop.f32.mrf.mxu0  ;;  %v1964_v60 = vld [vmem:[#allocation2 + $0x4d] sm:$0xff] }
 0x1f9   : > { %v1239_v61 = vpop.f32.mrf.mxu1  ;;  %2787 = vperm.xlu1 %4141, %v2728_v24  }
 0x1fa   : > { %v1627_v19 = vadd.f32 %v1626_v44, %v1360_v23  ;;  %v1240_v51 = vadd.f32 %v1239_v61, %v4584_v21  ;;  %v2006_v44 = vld [vmem:[#allocation2 + $0x36] sm:$0xff] }
 0x1fb   : > { %1799 = vmatmul.bf16.vlgmr.msra.gmra.mxu1 %v584_v20  ;;  %2565 = vmatmul.bf16.vlgmr.msra.gmra.mxu0 %v2051_v33  ;;  %v2054_v20 = vpack.c.bf16 %v2007_v29, %v2006_v44  ;;  %v2008_v44 = vld [vmem:[#allocation2 + $0x46] sm:$0xff] }
 0x1fc   : > { %2319 = vmatmul.bf16.vlgmr.msra.gmra.mxu2 %v2049_v42  ;;  %v4785_v5 = vadd.f32 %v1749_v63, %v1627_v19  ;;  %v1963_v63 = vld [vmem:[#allocation2 + $0x45] sm:$0xff] }
 0x1fd   : > { %2447 = vmatmul.bf16.gmra.mxu3 %v2053_v57  ;;  %v2056_v57 = vpack.c.bf16 %v1964_v60, %v1963_v63  ;;  %v1966_v63 = vld [vmem:[#allocation2 + $0x5d] sm:$0xff] }
 0x1ff   : > { %v1362_v4 = vpop.f32.mrf.mxu2 }
 0x200   : > { %v1634_v8 = vpop.f32.mrf.mxu3  ;;  %v1363_v50 = vadd.f32 %v1362_v4, %v1240_v51  ;;  %v1754_v12 = vpop.f32.mrf.mxu0 }
 0x201   : > { %v1241_v46 = vpop.f32.mrf.mxu1 }
 0x202   : > { %v1630_v43 = vadd.f32 %v1629_v32, %v1363_v50  ;;  %v1242_v27 = vadd.f32 %v1241_v46, %v4592_v52  ;;  %v2052_v32 = vpack.c.bf16 %v1917_v59, %v1916_v17  ;;  %v1918_v17 = vld [vmem:[#allocation2 + $0x44] sm:$0xff]  ;;  %v1965_v59 = vld [vmem:[#allocation2 + $0x55] sm:$0xff] }
 0x204   : > { %v4789_v13 = vadd.f32 %v1752_v9, %v1630_v43 }
 0x207   : > { %v1364_v21 = vpop.f32.mrf.mxu2 }
 0x208   : > { %v1636_v33 = vpop.f32.mrf.mxu3  ;;  %v1365_v23 = vadd.f32 %v1364_v21, %v1242_v27  ;;  %v1757_v42 = vpop.f32.mrf.mxu0 }
 0x209   : > { %v1244_v61 = vpop.f32.mrf.mxu1 }
 0x20a   : > { %v1632_v19 = vadd.f32 %v1631_v14, %v1365_v23  ;;  %v1245_v52 = vadd.f32 %v1244_v61, %v4600_v34  ;;  %v2009_v14 = vld [vmem:[#allocation2 + $0x4e] sm:$0xff] }
 0x20b   : > { %1804 = vmatmul.bf16.gmra.mxu1 %v4289_v53  ;;  %2570 = vmatmul.bf16.gmra.mxu0 %v2054_v20  ;;  %v1919_v53 = vld [vmem:[#allocation2 + $0x4c] sm:$0xff]  ;;  %v2057_v27 = vpack.c.bf16 %v2009_v14, %v2008_v44  ;;  %v1921_v44 = vld [vmem:[#allocation2 + $0x5c] sm:$0xff] }
 0x20c   : > { %2324 = vmatmul.bf16.gmra.mxu2 %v2052_v32  ;;  %v4794_v9 = vadd.f32 %v1754_v12, %v1632_v19  ;;  %v2055_v61 = vpack.c.bf16 %v1919_v53, %v1918_v17  ;;  %v2059_v32 = vpack.c.bf16 %v1966_v63, %v1965_v59  ;;  %v2010_v17 = vld [vmem:[#allocation2 + $0x56] sm:$0xff]  ;;  %v1968_v14 = vld [vmem:[#allocation2 + $0x6d] sm:$0xff] }
 0x20d   : > { %2452 = vmatmul.bf16.gmra.mxu3 %v2056_v57 }
 0x20f   : > { %v1367_v51 = vpop.f32.mrf.mxu2 }
 0x210   : > { %v1639_v4 = vpop.f32.mrf.mxu3  ;;  %v1368_v50 = vadd.f32 %v1367_v51, %v1245_v52  ;;  %v1759_v43 = vpop.f32.mrf.mxu0 }
 0x211   : > { %v1246_v46 = vpop.f32.mrf.mxu1 }
 0x212   : > { %v1635_v22 = vadd.f32 %v1634_v8, %v1368_v50  ;;  %v1247_v12 = vadd.f32 %v1246_v46, %v4614_v55  ;;  %v2731_v46 = vld [vmem:[%s4778_s16 + $0x30] sm:$0xff] }
 0x213   : > { %2802 = vperm.xlu0 %4140, %v2731_v46   ;;  %v1922_v46 = vld [vmem:[#allocation2 + $0x64] sm:$0xff] }
 0x214   : > { %v4797_v29 = vadd.f32 %v1757_v42, %v1635_v22  ;;  %v1920_v22 = vld [vmem:[#allocation2 + $0x54] sm:$0xff] }
 0x217   : > { %v1369_v60 = vpop.f32.mrf.mxu2 }
 0x218   : > { %v1641_v21 = vpop.f32.mrf.mxu3  ;;  %v1370_v34 = vadd.f32 %v1369_v60, %v1247_v12  ;;  %v1762_v23 = vpop.f32.mrf.mxu0 }
 0x219   : > { %v1249_v20 = vpop.f32.mrf.mxu1 }
 0x21a   : > { %v1637_v8 = vadd.f32 %v1636_v33, %v1370_v34  ;;  %v1250_v57 = vadd.f32 %v1249_v20, %v4628_v56  ;;  %v2011_v33 = vld [vmem:[#allocation2 + $0x5e] sm:$0xff] }
 0x21b   : > { %1809 = vmatmul.bf16.gmra.mxu1 %v4381_v36  ;;  %2575 = vmatmul.bf16.gmra.mxu0 %v2057_v27  ;;  %v2060_v59 = vpack.c.bf16 %v2011_v33, %v2010_v17  ;;  %v2058_v27 = vpack.c.bf16 %v1921_v44, %v1920_v22  ;;  %v2012_v22 = vld [vmem:[#allocation2 + $0x66] sm:$0xff]  ;;  %v2013_v17 = vld [vmem:[#allocation2 + $0x6e] sm:$0xff]  ;;  %v1970_v44 = vld [vmem:[#allocation2 + $0x7d] sm:$0xff] }
 0x21c   : > { %2329 = vmatmul.bf16.gmra.mxu2 %v2055_v61  ;;  %v4801_v42 = vadd.f32 %v1759_v43, %v1637_v8  ;;  %v1967_v43 = vld [vmem:[#allocation2 + $0x65] sm:$0xff] }
 0x21d   : > { %2457 = vmatmul.bf16.gmra.mxu3 %v2059_v32  ;;  %v2062_v34 = vpack.c.bf16 %v1968_v14, %v1967_v43  ;;  %v2729_v61 = vld [vmem:[%s4778_s16 + $0x20] sm:$0xff]  ;;  %v2732_v32 = vld [vmem:[%s4778_s16 + $0x38] sm:$0xff]  ;;  %v1923_v33 = vld [vmem:[#allocation2 + $0x6c] sm:$0xff]  ;;  %v2063_v14 = vpack.c.bf16 %v2013_v17, %v2012_v22 }
 0x21e   : > { %2792 = vperm.xlu2 %4142, %v2729_v61   ;;  %2807 = vperm.xlu1 %4141, %v2732_v32   ;;  %v2015_v22 = vld [vmem:[#allocation2 + $0x7e] sm:$0xff] }
 0x21f   : > { %v1372_v55 = vpop.f32.mrf.mxu2 }
 0x220   : > { %v1644_v19 = vpop.f32.mrf.mxu3  ;;  %v1373_v24 = vadd.f32 %v1372_v55, %v1250_v57  ;;  %v1764_v51 = vpop.f32.mrf.mxu0 }
 0x221   : > { %v1251_v52 = vpop.f32.mrf.mxu1 }
 0x222   : > { %v1640_v50 = vadd.f32 %v1639_v4, %v1373_v24  ;;  %v1252_v56 = vadd.f32 %v1251_v52, %v4634_v49 }
 0x224   : > { %v4805_v36 = vadd.f32 %v1762_v23, %v1640_v50  ;;  %v2730_v50 = vld [vmem:[%s4778_s16 + $0x28] sm:$0xff] }
 0x226   : > { %2797 = vperm.xlu2 %4142, %v2730_v50   ;;  %v2735_v50 = vld [vmem:[%s4778_s16 + $0x50] sm:$0xff] }
 0x227   : > { %v1374_v53 = vpop.f32.mrf.mxu2  ;;  %2822 = vperm.xlu1 %4141, %v2735_v50  }
 0x228   : > { %v1646_v63 = vpop.f32.mrf.mxu3  ;;  %v1375_v12 = vadd.f32 %v1374_v53, %v1252_v56  ;;  %v1767_v4 = vpop.f32.mrf.mxu0 }
 0x229   : > { %v1254_v60 = vpop.f32.mrf.mxu1 }
 0x22a   : > { %v1642_v20 = vadd.f32 %v1641_v21, %v1375_v12  ;;  %v1255_v49 = vadd.f32 %v1254_v60, %v4523_v15 }
 0x22b   : > { %1814 = vmatmul.bf16.gmra.mxu1 %v4415_v6  ;;  %2580 = vmatmul.bf16.gmra.mxu0 %v2060_v59 }
 0x22c   : > { %2334 = vmatmul.bf16.gmra.mxu2 %v2058_v27  ;;  %v4811_v23 = vadd.f32 %v1764_v51, %v1642_v20  ;;  %v1969_v51 = vld [vmem:[#allocation2 + $0x75] sm:$0xff] }
 0x22d   : > { %2462 = vmatmul.bf16.gmra.mxu3 %v2062_v34  ;;  %v2065_v60 = vpack.c.bf16 %v1970_v44, %v1969_v51  ;;  %v2734_v34 = vld [vmem:[%s4778_s16 + $0x48] sm:$0xff]  ;;  %v5037_v20 = vld [vmem:[#allocation12_spill] sm:$0xff] }
 0x22e   : > { %2817 = vperm.xlu0 %4140, %v2734_v34   ;;  %v1972_v51 = vld [vmem:[#allocation2 + $0x8d] sm:$0xff] }
 0x22f   : > { %v1377_v8 = vpop.f32.mrf.mxu2  ;;  %v5041_v44 = vld [vmem:[#allocation22_spill] sm:$0xff] }
 0x230   : > { %v1649_v57 = vpop.f32.mrf.mxu3  ;;  %v1378_v55 = vadd.f32 %v1377_v8, %v1255_v49  ;;  %v1769_v52 = vpop.f32.mrf.mxu0 }
 0x231   : > { %v1256_v24 = vpop.f32.mrf.mxu1 }
 0x232   : > { %v1645_v21 = vadd.f32 %v1644_v19, %v1378_v55  ;;  %v1257_v43 = vadd.f32 %v1256_v24, %v4531_v35  ;;  %v2061_v19 = vpack.c.bf16 %v1923_v33, %v1922_v46  ;;  %v5039_v35 = vld [vmem:[#allocation21_spill] sm:$0xff]  ;;  %v2014_v46 = vld [vmem:[#allocation2 + $0x76] sm:$0xff] }
 0x233   : > { %v1925_v33 = vld [vmem:[#allocation2 + $0x7c] sm:$0xff] }
 0x234   : > { %v4815_v6 = vadd.f32 %v1767_v4, %v1645_v21 }
 0x237   : > { %v1379_v15 = vpop.f32.mrf.mxu2 }
 0x238   : > { %v1651_v56 = vpop.f32.mrf.mxu3  ;;  %v1380_v53 = vadd.f32 %v1379_v15, %v1257_v43  ;;  %v1772_v12 = vpop.f32.mrf.mxu0 }
 0x239   : > { %v1259_v59 = vpop.f32.mrf.mxu1 }
 0x23a   : > { %v1647_v27 = vadd.f32 %v1646_v63, %v1380_v53  ;;  %v1260_v61 = vadd.f32 %v1259_v59, %v5039_v35  ;;  %v1924_v63 = vld [vmem:[#allocation2 + $0x74] sm:$0xff] }
 0x23b   : > { %1819 = vmatmul.bf16.gmra.mxu1 %v5037_v20  ;;  %2585 = vmatmul.bf16.gmra.mxu0 %v2063_v14  ;;  %v2066_v14 = vpack.c.bf16 %v2015_v22, %v2014_v46  ;;  %v2733_v20 = vld [vmem:[%s4778_s16 + $0x40] sm:$0xff]  ;;  %v5042_v35 = vld [vmem:[#allocation15_spill] sm:$0xff] }
 0x23c   : > { %2339 = vmatmul.bf16.gmra.mxu2 %v2061_v19  ;;  %v4820_v4 = vadd.f32 %v1769_v52, %v1647_v27  ;;  %v1971_v52 = vld [vmem:[#allocation2 + $0x85] sm:$0xff]  ;;  %2812 = vperm.xlu2 %4142, %v2733_v20  }
 0x23d   : > { %2467 = vmatmul.bf16.gmra.mxu3 %v2065_v60  ;;  %v2068_v27 = vpack.c.bf16 %v1972_v51, %v1971_v52  ;;  %v2737_v22 = vld [vmem:[%s4778_s16 + $0x60] sm:$0xff]  ;;  %v2017_v52 = vld [vmem:[#allocation2 + $0x8e] sm:$0xff] }
 0x23e   : > { %5038 = vst [vmem:[#allocation12_spill] sm:$0xff] %v4820_v4  ;;  %2832 = vperm.xlu0 %4140, %v2737_v22  }
 0x23f   : > { %v1382_v32 = vpop.f32.mrf.mxu2 }
 0x240   : > { %v1654_v49 = vpop.f32.mrf.mxu3  ;;  %v1383_v8 = vadd.f32 %v1382_v32, %v1260_v61  ;;  %v1774_v24 = vpop.f32.mrf.mxu0  ;;  %v5044_v61 = vld [vmem:[#allocation23_spill] sm:$0xff] }
 0x241   : > { %v1261_v55 = vpop.f32.mrf.mxu1 }
 0x242   : > { %v1650_v21 = vadd.f32 %v1649_v57, %v1383_v8  ;;  %v1262_v43 = vadd.f32 %v1261_v55, %v5041_v44  ;;  %v2064_v57 = vpack.c.bf16 %v1925_v33, %v1924_v63  ;;  %v2016_v33 = vld [vmem:[#allocation2 + $0x86] sm:$0xff] }
 0x243   : > { %v1927_v44 = vld [vmem:[#allocation2 + $0x8c] sm:$0xff] }
 0x244   : > { %v4824_v17 = vadd.f32 %v1772_v12, %v1650_v21 }
 0x246   : > { %5040 = vst [vmem:[#allocation21_spill] sm:$0xff] %v4824_v17 }
 0x247   : > { %v1384_v15 = vpop.f32.mrf.mxu2 }
 0x248   : > { %v1656_v53 = vpop.f32.mrf.mxu3  ;;  %v1385_v59 = vadd.f32 %v1384_v15, %v1262_v43  ;;  %v1777_v60 = vpop.f32.mrf.mxu0  ;;  %v1974_v43 = vld [vmem:[#allocation2 + $0x9d] sm:$0xff] }
 0x249   : > { %v1264_v19 = vpop.f32.mrf.mxu1  ;;  %v5046_v15 = vld [vmem:[#allocation24_spill] sm:$0xff] }
 0x24a   : > { %v1652_v34 = vadd.f32 %v1651_v56, %v1385_v59  ;;  %v1265_v32 = vadd.f32 %v1264_v19, %v5044_v61  ;;  %v1926_v56 = vld [vmem:[#allocation2 + $0x84] sm:$0xff]  ;;  %v2069_v19 = vpack.c.bf16 %v2017_v52, %v2016_v33 }
 0x24b   : > { %1824 = vmatmul.bf16.gmra.mxu1 %v5042_v35  ;;  %2590 = vmatmul.bf16.gmra.mxu0 %v2066_v14  ;;  %v2738_v61 = vld [vmem:[%s4778_s16 + $0x68] sm:$0xff] }
 0x24c   : > { %2344 = vmatmul.bf16.gmra.mxu2 %v2064_v57  ;;  %v4829_v12 = vadd.f32 %v1774_v24, %v1652_v34  ;;  %v1973_v24 = vld [vmem:[#allocation2 + $0x95] sm:$0xff]  ;;  %2837 = vperm.xlu1 %4141, %v2738_v61  }
 0x24d   : > { %2472 = vmatmul.bf16.gmra.mxu3 %v2068_v27  ;;  %v2071_v35 = vpack.c.bf16 %v1974_v43, %v1973_v24  ;;  %v1928_v24 = vld [vmem:[#allocation2 + $0x94] sm:$0xff]  ;;  %v2019_v43 = vld [vmem:[#allocation2 + $0x9e] sm:$0xff] }
 0x24e   : > { %5043 = vst [vmem:[#allocation22_spill] sm:$0xff] %v4829_v12  ;;  %v5059_v12 = vld [vmem:[#allocation9_spill] sm:$0xff] }
 0x24f   : > { %v1387_v8 = vpop.f32.mrf.mxu2 }
 0x250   : > { %v1659_v55 = vpop.f32.mrf.mxu3  ;;  %v1388_v21 = vadd.f32 %v1387_v8, %v1265_v32  ;;  %v1779_v46 = vpop.f32.mrf.mxu0  ;;  %v5047_v8 = vld [vmem:[#allocation18_spill] sm:$0xff] }
 0x251   : > { %v1266_v50 = vpop.f32.mrf.mxu1 }
 0x252   : > { %v1655_v63 = vadd.f32 %v1654_v49, %v1388_v21  ;;  %v1267_v14 = vadd.f32 %v1266_v50, %v5046_v15  ;;  %v2067_v49 = vpack.c.bf16 %v1927_v44, %v1926_v56  ;;  %v5049_v21 = vld [vmem:[#allocation25_spill] sm:$0xff]  ;;  %v2736_v44 = vld [vmem:[%s4778_s16 + $0x58] sm:$0xff] }
 0x253   : > { %2827 = vperm.xlu2 %4142, %v2736_v44   ;;  %v5052_v44 = vld [vmem:[#allocation3_spill] sm:$0xff] }
 0x254   : > { %v4833_v51 = vadd.f32 %v1777_v60, %v1655_v63 }
 0x256   : > { %5045 = vst [vmem:[#allocation15_spill] sm:$0xff] %v4833_v51  ;;  %v2744_v51 = vld [vmem:[%s4778_s16 + $0x98] sm:$0xff] }
 0x257   : > { %v1389_v59 = vpop.f32.mrf.mxu2 }
 0x258   : > { %v1661_v57 = vpop.f32.mrf.mxu3  ;;  %v1390_v27 = vadd.f32 %v1389_v59, %v1267_v14  ;;  %v1782_v20 = vpop.f32.mrf.mxu0  ;;  %v1929_v59 = vld [vmem:[#allocation2 + $0x9c] sm:$0xff] }
 0x259   : > { %v1269_v34 = vpop.f32.mrf.mxu1 }
 0x25a   : > { %v1657_v32 = vadd.f32 %v1656_v53, %v1390_v27  ;;  %v1270_v50 = vadd.f32 %v1269_v34, %v5049_v21  ;;  %v2018_v53 = vld [vmem:[#allocation2 + $0x96] sm:$0xff]  ;;  %v5051_v27 = vld [vmem:[#allocation26_spill] sm:$0xff] }
 0x25b   : > { %1829 = vmatmul.bf16.gmra.mxu1 %v5047_v8  ;;  %2595 = vmatmul.bf16.gmra.mxu0 %v2069_v19  ;;  %v1975_v19 = vld [vmem:[#allocation2 + $0xa5] sm:$0xff] }
 0x25c   : > { %2349 = vmatmul.bf16.gmra.mxu2 %v2067_v49  ;;  %v4838_v60 = vadd.f32 %v1779_v46, %v1657_v32  ;;  %v1976_v46 = vld [vmem:[#allocation2 + $0xad] sm:$0xff] }
 0x25d   : > { %2477 = vmatmul.bf16.gmra.mxu3 %v2071_v35  ;;  %v2072_v35 = vpack.c.bf16 %v2019_v43, %v2018_v53 }
 0x25e   : > { %5048 = vst [vmem:[#allocation23_spill] sm:$0xff] %v4838_v60 }
 0x25f   : > { %v1392_v63 = vpop.f32.mrf.mxu2 }
 0x260   : > { %v1664_v22 = vpop.f32.mrf.mxu3  ;;  %v1393_v33 = vadd.f32 %v1392_v63, %v1270_v50  ;;  %v1784_v15 = vpop.f32.mrf.mxu0  ;;  %v2074_v50 = vpack.c.bf16 %v1976_v46, %v1975_v19  ;;  %v2020_v19 = vld [vmem:[#allocation2 + $0xa6] sm:$0xff]  ;;  %v2021_v46 = vld [vmem:[#allocation2 + $0xae] sm:$0xff] }
 0x261   : > { %v1271_v52 = vpop.f32.mrf.mxu1 }
 0x262   : > { %v1660_v56 = vadd.f32 %v1659_v55, %v1393_v33  ;;  %v1272_v49 = vadd.f32 %v1271_v52, %v5051_v27  ;;  %v2070_v55 = vpack.c.bf16 %v1929_v59, %v1928_v24  ;;  %v2740_v33 = vld [vmem:[%s4778_s16 + $0x78] sm:$0xff]  ;;  %v5054_v52 = vld [vmem:[#allocation27_spill] sm:$0xff]  ;;  %v2741_v59 = vld [vmem:[%s4778_s16 + $0x80] sm:$0xff] }
 0x263   : > { %2847 = vperm.xlu0 %4140, %v2740_v33   ;;  %2852 = vperm.xlu1 %4141, %v2741_v59   ;;  %v2743_v59 = vld [vmem:[%s4778_s16 + $0x90] sm:$0xff] }
 0x264   : > { %v4842_v14 = vadd.f32 %v1782_v20, %v1660_v56 }
 0x266   : > { %5050 = vst [vmem:[#allocation24_spill] sm:$0xff] %v4842_v14 }
 0x267   : > { %v1394_v34 = vpop.f32.mrf.mxu2 }
 0x268   : > { %v1666_v61 = vpop.f32.mrf.mxu3  ;;  %v1395_v32 = vadd.f32 %v1394_v34, %v1272_v49  ;;  %v1787_v21 = vpop.f32.mrf.mxu0 }
 0x269   : > { %v1274_v8 = vpop.f32.mrf.mxu1  ;;  %v1931_v61 = vld [vmem:[#allocation2 + $0xac] sm:$0xff] }
 0x26a   : > { %v1662_v63 = vadd.f32 %v1661_v57, %v1395_v32  ;;  %v1275_v56 = vadd.f32 %v1274_v8, %v5054_v52  ;;  %v1930_v57 = vld [vmem:[#allocation2 + $0xa4] sm:$0xff] }
 0x26b   : > { %1834 = vmatmul.bf16.gmra.mxu1 %v5052_v44  ;;  %2600 = vmatmul.bf16.gmra.mxu0 %v2072_v35  ;;  %v1978_v32 = vld [vmem:[#allocation2 + $0xbd] sm:$0xff]  ;;  %v2073_v44 = vpack.c.bf16 %v1931_v61, %v1930_v57 }
 0x26c   : > { %2354 = vmatmul.bf16.gmra.mxu2 %v2070_v55  ;;  %v4847_v20 = vadd.f32 %v1784_v15, %v1662_v63  ;;  %v1977_v15 = vld [vmem:[#allocation2 + $0xb5] sm:$0xff]  ;;  %2862 = vperm.xlu0 %4140, %v2743_v59   ;;  %v2023_v57 = vld [vmem:[#allocation2 + $0xbe] sm:$0xff] }
 0x26d   : > { %2482 = vmatmul.bf16.gmra.mxu3 %v2074_v50  ;;  %v2075_v50 = vpack.c.bf16 %v2021_v46, %v2020_v19  ;;  %v2077_v52 = vpack.c.bf16 %v1978_v32, %v1977_v15  ;;  %v1932_v46 = vld [vmem:[#allocation2 + $0xb4] sm:$0xff]  ;;  %v1933_v61 = vld [vmem:[#allocation2 + $0xbc] sm:$0xff]  ;;  %v1979_v15 = vld [vmem:[#allocation2 + $0xc5] sm:$0xff]  ;;  %2867 = vperm.xlu1 %4141, %v2744_v51  }
 0x26e   : > { %5053 = vst [vmem:[#allocation18_spill] sm:$0xff] %v4847_v20  ;;  %v1980_v32 = vld [vmem:[#allocation2 + $0xcd] sm:$0xff]  ;;  %v2076_v14 = vpack.c.bf16 %v1933_v61, %v1932_v46 }
 0x26f   : > { %v1397_v53 = vpop.f32.mrf.mxu2  ;;  %v2080_v59 = vpack.c.bf16 %v1980_v32, %v1979_v15 }
 0x270   : > { %v2443_v43 = vpop.f32.mrf.mxu3  ;;  %v1398_v27 = vadd.f32 %v1397_v53, %v1275_v56  ;;  %v1789_v34 = vpop.f32.mrf.mxu0  ;;  %v5056_v56 = vld [vmem:[#allocation6_spill] sm:$0xff] }
 0x271   : > { %v1276_v49 = vpop.f32.mrf.mxu1 }
 0x272   : > { %v1665_v24 = vadd.f32 %v1664_v22, %v1398_v27  ;;  %v2739_v22 = vld [vmem:[%s4778_s16 + $0x70] sm:$0xff] }
 0x273   : > { %2842 = vperm.xlu2 %4142, %v2739_v22  }
 0x274   : > { %v4851_v35 = vadd.f32 %v1787_v21, %v1665_v24  ;;  %v2773_v24 = vpop.permute.xlu0 %2772 }
 0x276   : > { %5055 = vst [vmem:[#allocation25_spill] sm:$0xff] %v4851_v35 }
 0x277   : > { %v1399_v55 = vpop.f32.mrf.mxu2 }
 0x278   : > { %v2445_v8 = vpop.f32.mrf.mxu3  ;;  %v2566_v33 = vpop.f32.mrf.mxu0  ;;  %v2022_v55 = vld [vmem:[#allocation2 + $0xb6] sm:$0xff] }
 0x279   : > { %v1800_v63 = vpop.f32.mrf.mxu1  ;;  %v2078_v22 = vpack.c.bf16 %v2023_v57, %v2022_v55  ;;  %v2783_v57 = vpop.permute.xlu1 %2782 }
 0x27b   : > { %1839 = vmatmul.bf16.gmra.mxu1 %v5056_v56  ;;  %2605 = vmatmul.bf16.gmra.mxu0 %v2075_v50  ;;  %v5057_v50 = vld [vmem:[#allocation28_spill] sm:$0xff] }
 0x27c   : > { %2359 = vmatmul.bf16.gmra.mxu2 %v2073_v44  ;;  %v1801_v44 = vadd.f32 %v1800_v63, %v5057_v50  ;;  %v2778_v17 = vpop.permute.xlu0 %2777  ;;  %v2742_v50 = vld [vmem:[%s4778_s16 + $0x88] sm:$0xff] }
 0x27d   : > { %2487 = vmatmul.bf16.gmra.mxu3 %v2077_v52  ;;  %2857 = vperm.xlu2 %4142, %v2742_v50  }
 0x27f   : > { %v2320_v21 = vpop.f32.mrf.mxu2 }
 0x280   : > { %v2448_v53 = vpop.f32.mrf.mxu3  ;;  %v2444_v27 = vadd.f32 %v2443_v43, %v2320_v21  ;;  %v2568_v34 = vpop.f32.mrf.mxu0 }
 0x281   : > { %v1802_v49 = vpop.f32.mrf.mxu1 }
 0x282   : > { %v2567_v19 = vadd.f32 %v2566_v33, %v2444_v27  ;;  %v5058_v33 = vld [vmem:[#allocation29_spill] sm:$0xff] }
 0x283   : > { %v1803_v27 = vadd.f32 %v1802_v49, %v5058_v33 }
 0x284   : > { %v2680_v35 = vadd.f32 %v2567_v19, %v1801_v44  ;;  %v1934_v44 = vld [vmem:[#allocation2 + $0xc4] sm:$0xff] }
 0x286   : > { %v2995_v4 = vmul.f32 %v2773_v24, %v2680_v35 }
 0x287   : > { %v2322_v52 = vpop.f32.mrf.mxu2 }
 0x288   : > { %v2450_v56 = vpop.f32.mrf.mxu3  ;;  %v2446_v43 = vadd.f32 %v2445_v8, %v2322_v52  ;;  %v2571_v20 = vpop.f32.mrf.mxu0  ;;  %v2025_v52 = vld [vmem:[#allocation2 + $0xce] sm:$0xff] }
 0x289   : > { %v1805_v21 = vpop.f32.mrf.mxu1 }
 0x28a   : > { %v2569_v60 = vadd.f32 %v2568_v34, %v2446_v43  ;;  %v1806_v61 = vadd.f32 %v1805_v21, %v4652_v38 }
 0x28b   : > { %1844 = vmatmul.bf16.gmra.mxu1 %v5059_v12  ;;  %2610 = vmatmul.bf16.gmra.mxu0 %v2078_v22  ;;  %v3090_v12 = vmul.f32 %v2995_v4, %v2995_v4  ;;  %v1981_v22 = vld [vmem:[#allocation2 + $0xd5] sm:$0xff] }
 0x28c   : > { %2364 = vmatmul.bf16.gmra.mxu2 %v2076_v14  ;;  %v2681_v63 = vadd.f32 %v2569_v60, %v1803_v27 }
 0x28d   : > { %2492 = vmatmul.bf16.gmra.mxu3 %v2080_v59 }
 0x28e   : > { %v2996_v8 = vmul.f32 %v2778_v17, %v2681_v63  ;;  %v3957_v49 = vpack.c.bf16 %v2681_v63, %v2680_v35  ;;  %v1935_v17 = vld [vmem:[#allocation2 + $0xcc] sm:$0xff] }
 0x28f   : > { %v2325_v34 = vpop.f32.mrf.mxu2  ;;  %v2024_v35 = vld [vmem:[#allocation2 + $0xc6] sm:$0xff] }
 0x290   : > { %v2453_v19 = vpop.f32.mrf.mxu3  ;;  %v3040_v46 = vadd.f32 %v2996_v8, %v2995_v4  ;;  %v3091_v55 = vmul.f32 %v2996_v8, %v2996_v8  ;;  %3958 = vst [vmem:[%s4865_s23] sm:$0xff] %v3957_v49   ;;  %v2449_v14 = vadd.f32 %v2448_v53, %v2325_v34  ;;  %v2573_v24 = vpop.f32.mrf.mxu0  ;;  %v1982_v4 = vld [vmem:[#allocation2 + $0xdd] sm:$0xff]  ;;  %v2079_v53 = vpack.c.bf16 %v1935_v17, %v1934_v44 }
 0x291   : > { %v1807_v60 = vpop.f32.mrf.mxu1  ;;  %v2081_v33 = vpack.c.bf16 %v2025_v52, %v2024_v35  ;;  %v2083_v49 = vpack.c.bf16 %v1982_v4, %v1981_v22 }
 0x292   : > { %v3135_v15 = vadd.f32 %v3091_v55, %v3090_v12  ;;  %v2572_v32 = vadd.f32 %v2571_v20, %v2449_v14  ;;  %v1808_v34 = vadd.f32 %v1807_v60, %v4662_v37  ;;  %v2746_v14 = vld [vmem:[%s4778_s16 + $0xa8] sm:$0xff] }
 0x293   : > { %2877 = vperm.xlu0 %4140, %v2746_v14  }
 0x294   : > { %v2682_v51 = vadd.f32 %v2572_v32, %v1806_v61  ;;  %v5060_v61 = vld [vmem:[#allocation13_spill] sm:$0xff] }
 0x296   : > { %v2997_v43 = vmul.f32 %v2783_v57, %v2682_v51  ;;  %v2788_v57 = vpop.permute.xlu1 %2787 }
 0x297   : > { %v2327_v59 = vpop.f32.mrf.mxu2 }
 0x298   : > { %v2455_v27 = vpop.f32.mrf.mxu3  ;;  %v3041_v63 = vadd.f32 %v3040_v46, %v2997_v43  ;;  %v3092_v8 = vmul.f32 %v2997_v43, %v2997_v43  ;;  %v2451_v38 = vadd.f32 %v2450_v56, %v2327_v59  ;;  %v2576_v20 = vpop.f32.mrf.mxu0  ;;  %v2747_v43 = vld [vmem:[%s4778_s16 + $0xb0] sm:$0xff] }
 0x299   : > { %v1810_v21 = vpop.f32.mrf.mxu1  ;;  %v1936_v59 = vld [vmem:[#allocation2 + $0xd4] sm:$0xff]  ;;  %2882 = vperm.xlu1 %4141, %v2747_v43  }
 0x29a   : > { %v3136_v12 = vadd.f32 %v3135_v15, %v3092_v8  ;;  %v2574_v55 = vadd.f32 %v2573_v24, %v2451_v38  ;;  %v2793_v15 = vpop.permute.xlu2 %2792  ;;  %v1811_v52 = vadd.f32 %v1810_v21, %v4665_v48  ;;  %v2026_v8 = vld [vmem:[#allocation2 + $0xd6] sm:$0xff]  ;;  %v1983_v38 = vld [vmem:[#allocation2 + $0xe5] sm:$0xff] }
 0x29b   : > { %1849 = vmatmul.bf16.gmra.mxu1 %v5060_v61  ;;  %2615 = vmatmul.bf16.gmra.mxu0 %v2081_v33  ;;  %v1937_v33 = vld [vmem:[#allocation2 + $0xdc] sm:$0xff] }
 0x29c   : > { %2369 = vmatmul.bf16.gmra.mxu2 %v2079_v53  ;;  %v2683_v32 = vadd.f32 %v2574_v55, %v1808_v34 }
 0x29d   : > { %2497 = vmatmul.bf16.gmra.mxu3 %v2083_v49 }
 0x29e   : > { %v2998_v46 = vmul.f32 %v2788_v57, %v2683_v32  ;;  %v3962_v56 = vpack.c.bf16 %v2683_v32, %v2682_v51  ;;  %v2027_v51 = vld [vmem:[#allocation2 + $0xde] sm:$0xff] }
 0x29f   : > { %v2330_v50 = vpop.f32.mrf.mxu2  ;;  %v2084_v55 = vpack.c.bf16 %v2027_v51, %v2026_v8  ;;  %v5062_v8 = vld [vmem:[#allocation30_spill] sm:$0xff] }
 0x2a0   : > { %v2458_v44 = vpop.f32.mrf.mxu3  ;;  %v3042_v17 = vadd.f32 %v3041_v63, %v2998_v46  ;;  %v3093_v35 = vmul.f32 %v2998_v46, %v2998_v46  ;;  %4086 = vst [vmem:[%s4865_s23 + $0x8] sm:$0xff] %v3962_v56   ;;  %v2454_v37 = vadd.f32 %v2453_v19, %v2330_v50  ;;  %v2578_v24 = vpop.f32.mrf.mxu0  ;;  %v1984_v63 = vld [vmem:[#allocation2 + $0xed] sm:$0xff]  ;;  %v2082_v19 = vpack.c.bf16 %v1937_v33, %v1936_v59  ;;  %v2745_v50 = vld [vmem:[%s4778_s16 + $0xa0] sm:$0xff] }
 0x2a1   : > { %v1812_v60 = vpop.f32.mrf.mxu1  ;;  %2872 = vperm.xlu2 %4142, %v2745_v50   ;;  %v2750_v33 = vld [vmem:[%s4778_s16 + $0xc8] sm:$0xff] }
 0x2a2   : > { %v3137_v22 = vadd.f32 %v3136_v12, %v3093_v35  ;;  %v2577_v4 = vadd.f32 %v2576_v20, %v2454_v37  ;;  %v2086_v12 = vpack.c.bf16 %v1984_v63, %v1983_v38  ;;  %v1813_v32 = vadd.f32 %v1812_v60, %v4669_v11  ;;  %v5061_v35 = vld [vmem:[#allocation16_spill] sm:$0xff]  ;;  %v2798_v37 = vpop.permute.xlu2 %2797  ;;  %2897 = vperm.xlu1 %4141, %v2750_v33   ;;  %v5064_v33 = vld [vmem:[#allocation19_spill] sm:$0xff] }
 0x2a4   : > { %v2684_v53 = vadd.f32 %v2577_v4, %v1811_v52  ;;  %v2749_v52 = vld [vmem:[%s4778_s16 + $0xc0] sm:$0xff] }
 0x2a5   : > { %2892 = vperm.xlu0 %4140, %v2749_v52   ;;  %v5063_v52 = vld [vmem:[#allocation31_spill] sm:$0xff] }
 0x2a6   : > { %v2999_v49 = vmul.f32 %v2793_v15, %v2684_v53 }
 0x2a7   : > { %v2332_v34 = vpop.f32.mrf.mxu2 }
 0x2a8   : > { %v2460_v14 = vpop.f32.mrf.mxu3  ;;  %v3043_v61 = vadd.f32 %v3042_v17, %v2999_v49  ;;  %v3094_v57 = vmul.f32 %v2999_v49, %v2999_v49  ;;  %v2456_v48 = vadd.f32 %v2455_v27, %v2332_v34  ;;  %v2581_v20 = vpop.f32.mrf.mxu0  ;;  %v1938_v34 = vld [vmem:[#allocation2 + $0xe4] sm:$0xff] }
 0x2a9   : > { %v1815_v21 = vpop.f32.mrf.mxu1  ;;  %v2803_v49 = vpop.permute.xlu0 %2802 }
 0x2aa   : > { %v3138_v46 = vadd.f32 %v3137_v22, %v3094_v57  ;;  %v2579_v56 = vadd.f32 %v2578_v24, %v2456_v48  ;;  %v1816_v51 = vadd.f32 %v1815_v21, %v5062_v8  ;;  %v2029_v57 = vld [vmem:[#allocation2 + $0xee] sm:$0xff]  ;;  %v1986_v48 = vld [vmem:[#allocation2 + $0xfd] sm:$0xff]  ;;  %v2808_v8 = vpop.permute.xlu1 %2807 }
 0x2ab   : > { %1854 = vmatmul.bf16.gmra.mxu1 %v5061_v35  ;;  %2620 = vmatmul.bf16.gmra.mxu0 %v2084_v55  ;;  %v2028_v55 = vld [vmem:[#allocation2 + $0xe6] sm:$0xff] }
 0x2ac   : > { %2374 = vmatmul.bf16.gmra.mxu2 %v2082_v19  ;;  %v2685_v15 = vadd.f32 %v2579_v56, %v1813_v32  ;;  %v1939_v19 = vld [vmem:[#allocation2 + $0xec] sm:$0xff]  ;;  %v2087_v50 = vpack.c.bf16 %v2029_v57, %v2028_v55  ;;  %v2756_v57 = vld [vmem:[%s4778_s16 + $0xf8] sm:$0xff] }
 0x2ad   : > { %2502 = vmatmul.bf16.gmra.mxu3 %v2086_v12  ;;  %v2085_v56 = vpack.c.bf16 %v1939_v19, %v1938_v34 }
 0x2ae   : > { %v3000_v27 = vmul.f32 %v2798_v37, %v2685_v15  ;;  %v3967_v17 = vpack.c.bf16 %v2685_v15, %v2684_v53 }
 0x2af   : > { %v2335_v4 = vpop.f32.mrf.mxu2 }
 0x2b0   : > { %v2463_v43 = vpop.f32.mrf.mxu3  ;;  %v3044_v11 = vadd.f32 %v3043_v61, %v3000_v27  ;;  %v3095_v60 = vmul.f32 %v3000_v27, %v3000_v27  ;;  %4087 = vst [vmem:[%s4865_s23 + $0x10] sm:$0xff] %v3967_v17   ;;  %v2459_v24 = vadd.f32 %v2458_v44, %v2335_v4  ;;  %v2583_v59 = vpop.f32.mrf.mxu0  ;;  %v1985_v61 = vld [vmem:[#allocation2 + $0xf5] sm:$0xff]  ;;  %v2753_v17 = vld [vmem:[%s4778_s16 + $0xe0] sm:$0xff] }
 0x2b1   : > { %v1817_v22 = vpop.f32.mrf.mxu1  ;;  %v2752_v44 = vld [vmem:[%s4778_s16 + $0xd8] sm:$0xff]  ;;  %v2089_v27 = vpack.c.bf16 %v1986_v48, %v1985_v61  ;;  %2912 = vperm.xlu1 %4141, %v2753_v17   ;;  %v2758_v17 = vld [vmem:[%s4778_s16 + $0x108] sm:$0xff] }
 0x2b2   : > { %v3139_v38 = vadd.f32 %v3138_v46, %v3095_v60  ;;  %v2582_v63 = vadd.f32 %v2581_v20, %v2459_v24  ;;  %2907 = vperm.xlu0 %4140, %v2752_v44   ;;  %v1818_v4 = vadd.f32 %v1817_v22, %v5063_v52  ;;  %v2748_v44 = vld [vmem:[%s4778_s16 + $0xb8] sm:$0xff] }
 0x2b3   : > { %2887 = vperm.xlu2 %4142, %v2748_v44  }
 0x2b4   : > { %v2686_v53 = vadd.f32 %v2582_v63, %v1816_v51  ;;  %v2755_v63 = vld [vmem:[%s4778_s16 + $0xf0] sm:$0xff] }
 0x2b6   : > { %v3001_v12 = vmul.f32 %v2803_v49, %v2686_v53 }
 0x2b7   : > { %v2337_v32 = vpop.f32.mrf.mxu2 }
 0x2b8   : > { %v2465_v35 = vpop.f32.mrf.mxu3  ;;  %v3045_v37 = vadd.f32 %v3044_v11, %v3001_v12  ;;  %v3096_v21 = vmul.f32 %v3001_v12, %v3001_v12  ;;  %v2461_v46 = vadd.f32 %v2460_v14, %v2337_v32  ;;  %v2586_v15 = vpop.f32.mrf.mxu0  ;;  %v1940_v32 = vld [vmem:[#allocation2 + $0xf4] sm:$0xff] }
 0x2b9   : > { %v1820_v20 = vpop.f32.mrf.mxu1  ;;  %2927 = vperm.xlu1 %4141, %v2756_v57   ;;  %v2818_v57 = vpop.permute.xlu0 %2817 }
 0x2ba   : > { %v3140_v60 = vadd.f32 %v3139_v38, %v3096_v21  ;;  %v2584_v24 = vadd.f32 %v2583_v59, %v2461_v46  ;;  %2922 = vperm.xlu0 %4140, %v2755_v63   ;;  %v1821_v61 = vadd.f32 %v1820_v20, %v4684_v40  ;;  %v2030_v21 = vld [vmem:[#allocation2 + $0xf6] sm:$0xff]  ;;  %v1987_v46 = vld [vmem:[#allocation2 + $0x105] sm:$0xff] }
 0x2bb   : > { %1859 = vmatmul.bf16.gmra.mxu1 %v5064_v33  ;;  %2625 = vmatmul.bf16.gmra.mxu0 %v2087_v50  ;;  %v1941_v50 = vld [vmem:[#allocation2 + $0xfc] sm:$0xff] }
 0x2bc   : > { %2379 = vmatmul.bf16.gmra.mxu2 %v2085_v56  ;;  %v2687_v11 = vadd.f32 %v2584_v24, %v1818_v4  ;;  %v2088_v4 = vpack.c.bf16 %v1941_v50, %v1940_v32  ;;  %v2762_v50 = vld [vmem:[%s4778_s16 + $0x128] sm:$0xff] }
 0x2bd   : > { %2507 = vmatmul.bf16.gmra.mxu3 %v2089_v27 }
 0x2be   : > { %v3002_v14 = vmul.f32 %v2808_v8, %v2687_v11  ;;  %v3972_v51 = vpack.c.bf16 %v2687_v11, %v2686_v53  ;;  %v2813_v53 = vpop.permute.xlu2 %2812 }
 0x2bf   : > { %v2340_v49 = vpop.f32.mrf.mxu2 }
 0x2c0   : > { %v2468_v34 = vpop.f32.mrf.mxu3  ;;  %v3046_v19 = vadd.f32 %v3045_v37, %v3002_v14  ;;  %v3097_v22 = vmul.f32 %v3002_v14, %v3002_v14  ;;  %4088 = vst [vmem:[%s4865_s23 + $0x18] sm:$0xff] %v3972_v51   ;;  %v2464_v38 = vadd.f32 %v2463_v43, %v2340_v49  ;;  %v2588_v55 = vpop.f32.mrf.mxu0  ;;  %v2031_v37 = vld [vmem:[#allocation2 + $0xfe] sm:$0xff]  ;;  %v1988_v43 = vld [vmem:[#allocation2 + $0x10d] sm:$0xff] }
 0x2c1   : > { %v1822_v59 = vpop.f32.mrf.mxu1  ;;  %v2090_v24 = vpack.c.bf16 %v2031_v37, %v2030_v21  ;;  %v2092_v11 = vpack.c.bf16 %v1988_v43, %v1987_v46  ;;  %v2759_v14 = vld [vmem:[%s4778_s16 + $0x110] sm:$0xff]  ;;  %v2754_v43 = vld [vmem:[%s4778_s16 + $0xe8] sm:$0xff] }
 0x2c2   : > { %v3141_v48 = vadd.f32 %v3140_v60, %v3097_v22  ;;  %v2587_v12 = vadd.f32 %v2586_v15, %v2464_v38  ;;  %2937 = vperm.xlu0 %4140, %v2758_v17   ;;  %2942 = vperm.xlu1 %4141, %v2759_v14   ;;  %v1823_v51 = vadd.f32 %v1822_v59, %v4693_v39  ;;  %v2751_v22 = vld [vmem:[%s4778_s16 + $0xd0] sm:$0xff]  ;;  %v5065_v38 = vld [vmem:[#allocation4_spill] sm:$0xff] }
 0x2c3   : > { %2902 = vperm.xlu2 %4142, %v2751_v22  }
 0x2c4   : > { %v2688_v56 = vadd.f32 %v2587_v12, %v1821_v61  ;;  %v2761_v12 = vld [vmem:[%s4778_s16 + $0x120] sm:$0xff] }
 0x2c6   : > { %v3003_v27 = vmul.f32 %v2813_v53, %v2688_v56 }
 0x2c7   : > { %v2342_v52 = vpop.f32.mrf.mxu2 }
 0x2c8   : > { %v2470_v40 = vpop.f32.mrf.mxu3  ;;  %v3047_v20 = vadd.f32 %v3046_v19, %v3003_v27  ;;  %v3098_v15 = vmul.f32 %v3003_v27, %v3003_v27  ;;  %v2466_v60 = vadd.f32 %v2465_v35, %v2342_v52  ;;  %v2591_v8 = vpop.f32.mrf.mxu0  ;;  %v1942_v27 = vld [vmem:[#allocation2 + $0x104] sm:$0xff]  ;;  %v1943_v52 = vld [vmem:[#allocation2 + $0x10c] sm:$0xff] }
 0x2c9   : > { %v1825_v33 = vpop.f32.mrf.mxu1  ;;  %v2091_v14 = vpack.c.bf16 %v1943_v52, %v1942_v27 }
 0x2ca   : > { %v3142_v63 = vadd.f32 %v3141_v48, %v3098_v15  ;;  %v2589_v49 = vadd.f32 %v2588_v55, %v2466_v60  ;;  %2952 = vperm.xlu0 %4140, %v2761_v12   ;;  %2957 = vperm.xlu1 %4141, %v2762_v50   ;;  %v1826_v21 = vadd.f32 %v1825_v33, %v4696_v58  ;;  %v1990_v15 = vld [vmem:[#allocation2 + $0x11d] sm:$0xff]  ;;  %v2767_v50 = vld [vmem:[%s4778_s16 + $0x150] sm:$0xff] }
 0x2cb   : > { %1864 = vmatmul.bf16.gmra.mxu1 %v5065_v38  ;;  %2630 = vmatmul.bf16.gmra.mxu0 %v2090_v24  ;;  %v2033_v24 = vld [vmem:[#allocation2 + $0x10e] sm:$0xff]  ;;  %v2764_v60 = vld [vmem:[%s4778_s16 + $0x138] sm:$0xff]  ;;  %v2757_v12 = vld [vmem:[%s4778_s16 + $0x100] sm:$0xff] }
 0x2cc   : > { %2384 = vmatmul.bf16.gmra.mxu2 %v2088_v4  ;;  %v2689_v19 = vadd.f32 %v2589_v49, %v1823_v51  ;;  %v2032_v4 = vld [vmem:[#allocation2 + $0x106] sm:$0xff]  ;;  %2917 = vperm.xlu2 %4142, %v2754_v43  }
 0x2cd   : > { %2512 = vmatmul.bf16.gmra.mxu3 %v2092_v11  ;;  %v2093_v51 = vpack.c.bf16 %v2033_v24, %v2032_v4  ;;  %v2760_v24 = vld [vmem:[%s4778_s16 + $0x118] sm:$0xff] }
 0x2ce   : > { %v3004_v35 = vmul.f32 %v2818_v57, %v2689_v19  ;;  %v3977_v61 = vpack.c.bf16 %v2689_v19, %v2688_v56  ;;  %v2823_v56 = vpop.permute.xlu1 %2822  ;;  %v2765_v57 = vld [vmem:[%s4778_s16 + $0x140] sm:$0xff] }
 0x2cf   : > { %v2345_v44 = vpop.f32.mrf.mxu2 }
 0x2d0   : > { %v2473_v53 = vpop.f32.mrf.mxu3  ;;  %v3048_v39 = vadd.f32 %v3047_v20, %v3004_v35  ;;  %v3099_v59 = vmul.f32 %v3004_v35, %v3004_v35  ;;  %4089 = vst [vmem:[%s4865_s23 + $0x20] sm:$0xff] %v3977_v61   ;;  %v2469_v55 = vadd.f32 %v2468_v34, %v2345_v44  ;;  %v2593_v32 = vpop.f32.mrf.mxu0  ;;  %v1989_v20 = vld [vmem:[#allocation2 + $0x115] sm:$0xff] }
 0x2d1   : > { %v1827_v48 = vpop.f32.mrf.mxu1  ;;  %v2095_v38 = vpack.c.bf16 %v1990_v15, %v1989_v20  ;;  %v5066_v44 = vld [vmem:[#allocation7_spill] sm:$0xff]  ;;  %v2833_v20 = vpop.permute.xlu0 %2832 }
 0x2d2   : > { %v3143_v37 = vadd.f32 %v3142_v63, %v3099_v59  ;;  %v2592_v46 = vadd.f32 %v2591_v8, %v2469_v55  ;;  %2967 = vperm.xlu0 %4140, %v2764_v60   ;;  %2972 = vperm.xlu1 %4141, %v2765_v57   ;;  %v1828_v19 = vadd.f32 %v1827_v48, %v4699_v28  ;;  %v2828_v59 = vpop.permute.xlu2 %2827  ;;  %v2034_v60 = vld [vmem:[#allocation2 + $0x116] sm:$0xff] }
 0x2d4   : > { %v2690_v17 = vadd.f32 %v2592_v46, %v1826_v21  ;;  %2932 = vperm.xlu2 %4142, %v2757_v12  }
 0x2d6   : > { %v3005_v34 = vmul.f32 %v2823_v56, %v2690_v17  ;;  %v2768_v56 = vld [vmem:[%s4778_s16 + $0x158] sm:$0xff] }
 0x2d7   : > { %v2347_v11 = vpop.f32.mrf.mxu2 }
 0x2d8   : > { %v2475_v58 = vpop.f32.mrf.mxu3  ;;  %v3049_v33 = vadd.f32 %v3048_v39, %v3005_v34  ;;  %v3100_v8 = vmul.f32 %v3005_v34, %v3005_v34  ;;  %v2471_v63 = vadd.f32 %v2470_v40, %v2347_v11  ;;  %v2596_v22 = vpop.f32.mrf.mxu0  ;;  %v1945_v34 = vld [vmem:[#allocation2 + $0x11c] sm:$0xff] }
 0x2d9   : > { %v1830_v49 = vpop.f32.mrf.mxu1  ;;  %v2035_v11 = vld [vmem:[#allocation2 + $0x11e] sm:$0xff] }
 0x2da   : > { %v3144_v35 = vadd.f32 %v3143_v37, %v3100_v8  ;;  %v2594_v61 = vadd.f32 %v2593_v32, %v2471_v63  ;;  %2982 = vperm.xlu0 %4140, %v2767_v50   ;;  %2987 = vperm.xlu1 %4141, %v2768_v56   ;;  %v1831_v27 = vadd.f32 %v1830_v49, %v4702_v10 }
 0x2db   : > { %1869 = vmatmul.bf16.gmra.mxu1 %v5066_v44  ;;  %2635 = vmatmul.bf16.gmra.mxu0 %v2093_v51  ;;  %v1992_v51 = vld [vmem:[#allocation2 + $0x12d] sm:$0xff]  ;;  %v2096_v63 = vpack.c.bf16 %v2035_v11, %v2034_v60 }
 0x2dc   : > { %2389 = vmatmul.bf16.gmra.mxu2 %v2091_v14  ;;  %v2691_v39 = vadd.f32 %v2594_v61, %v1828_v19  ;;  %v1991_v14 = vld [vmem:[#allocation2 + $0x125] sm:$0xff]  ;;  %2947 = vperm.xlu2 %4142, %v2760_v24   ;;  %v2843_v24 = vpop.permute.xlu2 %2842  ;;  %v2037_v11 = vld [vmem:[#allocation2 + $0x12e] sm:$0xff] }
 0x2dd   : > { %2517 = vmatmul.bf16.gmra.mxu3 %v2095_v38  ;;  %v2036_v60 = vld [vmem:[#allocation2 + $0x126] sm:$0xff] }
 0x2de   : > { %v3006_v40 = vmul.f32 %v2828_v59, %v2691_v39  ;;  %v3982_v55 = vpack.c.bf16 %v2691_v39, %v2690_v17  ;;  %v1944_v17 = vld [vmem:[#allocation2 + $0x114] sm:$0xff]  ;;  %v5067_v39 = vld [vmem:[#allocation10_spill] sm:$0xff] }
 0x2df   : > { %v2350_v21 = vpop.f32.mrf.mxu2  ;;  %v2094_v8 = vpack.c.bf16 %v1945_v34, %v1944_v17  ;;  %v2763_v59 = vld [vmem:[%s4778_s16 + $0x130] sm:$0xff] }
 0x2e0   : > { %v2478_v46 = vpop.f32.mrf.mxu3  ;;  %v3050_v28 = vadd.f32 %v3049_v33, %v3006_v40  ;;  %v3101_v48 = vmul.f32 %v3006_v40, %v3006_v40  ;;  %4090 = vst [vmem:[%s4865_s23 + $0x28] sm:$0xff] %v3982_v55   ;;  %v2474_v32 = vadd.f32 %v2473_v53, %v2350_v21  ;;  %v2598_v43 = vpop.f32.mrf.mxu0  ;;  %v1947_v34 = vld [vmem:[#allocation2 + $0x12c] sm:$0xff] }
 0x2e1   : > { %v1832_v37 = vpop.f32.mrf.mxu1  ;;  %v2838_v40 = vpop.permute.xlu1 %2837 }
 0x2e2   : > { %v3145_v52 = vadd.f32 %v3144_v35, %v3101_v48  ;;  %v2597_v4 = vadd.f32 %v2596_v22, %v2474_v32  ;;  %v2098_v35 = vpack.c.bf16 %v1992_v51, %v1991_v14  ;;  %v1833_v61 = vadd.f32 %v1832_v37, %v4705_v18  ;;  %v1994_v14 = vld [vmem:[#allocation2 + $0x13d] sm:$0xff] }
 0x2e4   : > { %v2692_v15 = vadd.f32 %v2597_v4, %v1831_v27  ;;  %2962 = vperm.xlu2 %4142, %v2763_v59   ;;  %v2766_v4 = vld [vmem:[%s4778_s16 + $0x148] sm:$0xff]  ;;  %v2848_v59 = vpop.permute.xlu0 %2847 }
 0x2e6   : > { %v3007_v53 = vmul.f32 %v2833_v20, %v2692_v15  ;;  %v1946_v20 = vld [vmem:[#allocation2 + $0x124] sm:$0xff] }
 0x2e7   : > { %v2352_v33 = vpop.f32.mrf.mxu2 }
 0x2e8   : > { %v2480_v38 = vpop.f32.mrf.mxu3  ;;  %v3051_v57 = vadd.f32 %v3050_v28, %v3007_v53  ;;  %v3102_v10 = vmul.f32 %v3007_v53, %v3007_v53  ;;  %v2476_v49 = vadd.f32 %v2475_v58, %v2352_v33  ;;  %v2601_v19 = vpop.f32.mrf.mxu0  ;;  %v2099_v33 = vpack.c.bf16 %v2037_v11, %v2036_v60 }
 0x2e9   : > { %v1835_v22 = vpop.f32.mrf.mxu1 }
 0x2ea   : > { %v3146_v12 = vadd.f32 %v3145_v52, %v3102_v10  ;;  %v2599_v44 = vadd.f32 %v2598_v43, %v2476_v49  ;;  %v1836_v56 = vadd.f32 %v1835_v22, %v4714_v41 }
 0x2eb   : > { %1874 = vmatmul.bf16.gmra.mxu1 %v5067_v39  ;;  %2640 = vmatmul.bf16.gmra.mxu0 %v2096_v63 }
 0x2ec   : > { %2394 = vmatmul.bf16.gmra.mxu2 %v2094_v8  ;;  %v2693_v55 = vadd.f32 %v2599_v44, %v1833_v61  ;;  %2977 = vperm.xlu2 %4142, %v2766_v4   ;;  %v5068_v44 = vld [vmem:[#allocation14_spill] sm:$0xff]  ;;  %v1949_v4 = vld [vmem:[#allocation2 + $0x13c] sm:$0xff] }
 0x2ed   : > { %2522 = vmatmul.bf16.gmra.mxu3 %v2098_v35 }
 0x2ee   : > { %v3008_v50 = vmul.f32 %v2838_v40, %v2693_v55  ;;  %v3987_v58 = vpack.c.bf16 %v2693_v55, %v2692_v15  ;;  %v1993_v15 = vld [vmem:[#allocation2 + $0x135] sm:$0xff] }
 0x2ef   : > { %v2355_v21 = vpop.f32.mrf.mxu2  ;;  %v2101_v22 = vpack.c.bf16 %v1994_v14, %v1993_v15 }
 0x2f0   : > { %v2483_v28 = vpop.f32.mrf.mxu3  ;;  %v3052_v48 = vadd.f32 %v3051_v57, %v3008_v50  ;;  %v3103_v32 = vmul.f32 %v3008_v50, %v3008_v50  ;;  %4091 = vst [vmem:[%s4865_s23 + $0x30] sm:$0xff] %v3987_v58   ;;  %v2479_v18 = vadd.f32 %v2478_v46, %v2355_v21  ;;  %v2603_v43 = vpop.f32.mrf.mxu0  ;;  %v2097_v46 = vpack.c.bf16 %v1947_v34, %v1946_v20  ;;  %v2039_v20 = vld [vmem:[#allocation2 + $0x13e] sm:$0xff] }
 0x2f1   : > { %v1837_v37 = vpop.f32.mrf.mxu1  ;;  %v1995_v34 = vld [vmem:[#allocation2 + $0x145] sm:$0xff] }
 0x2f2   : > { %v3147_v27 = vadd.f32 %v3146_v12, %v3103_v32  ;;  %v2602_v52 = vadd.f32 %v2601_v19, %v2479_v18  ;;  %v1838_v19 = vadd.f32 %v1837_v37, %v4723_v47  ;;  %v2769_v12 = vld [vmem:[%s4778_s16 + $0x160] sm:$0xff] }
 0x2f4   : > { %v2694_v17 = vadd.f32 %v2602_v52, %v1836_v56  ;;  %2992 = vperm.xlu2 %4142, %v2769_v12   ;;  %v2853_v56 = vpop.permute.xlu1 %2852 }
 0x2f6   : > { %v3009_v51 = vmul.f32 %v2843_v24, %v2694_v17  ;;  %v2038_v24 = vld [vmem:[#allocation2 + $0x136] sm:$0xff] }
 0x2f7   : > { %v2357_v53 = vpop.f32.mrf.mxu2  ;;  %v2102_v14 = vpack.c.bf16 %v2039_v20, %v2038_v24 }
 0x2f8   : > { %v2485_v8 = vpop.f32.mrf.mxu3  ;;  %v3053_v63 = vadd.f32 %v3052_v48, %v3009_v51  ;;  %v3104_v41 = vmul.f32 %v3009_v51, %v3009_v51  ;;  %v2481_v57 = vadd.f32 %v2480_v38, %v2357_v53  ;;  %v2606_v49 = vpop.f32.mrf.mxu0 }
 0x2f9   : > { %v1840_v10 = vpop.f32.mrf.mxu1 }
 0x2fa   : > { %v3148_v35 = vadd.f32 %v3147_v27, %v3104_v41  ;;  %v2604_v61 = vadd.f32 %v2603_v43, %v2481_v57  ;;  %v1841_v18 = vadd.f32 %v1840_v10, %v4726_v62  ;;  %v1948_v27 = vld [vmem:[#allocation2 + $0x134] sm:$0xff] }
 0x2fb   : > { %1879 = vmatmul.bf16.gmra.mxu1 %v5068_v44  ;;  %2645 = vmatmul.bf16.gmra.mxu0 %v2099_v33  ;;  %v2100_v15 = vpack.c.bf16 %v1949_v4, %v1948_v27 }
 0x2fc   : > { %2399 = vmatmul.bf16.gmra.mxu2 %v2097_v46  ;;  %v2695_v39 = vadd.f32 %v2604_v61, %v1838_v19 }
 0x2fd   : > { %2527 = vmatmul.bf16.gmra.mxu3 %v2101_v22  ;;  %v2858_v22 = vpop.permute.xlu2 %2857 }
 0x2fe   : > { %v3010_v40 = vmul.f32 %v2848_v59, %v2695_v39  ;;  %v3992_v55 = vpack.c.bf16 %v2695_v39, %v2694_v17  ;;  %v1996_v17 = vld [vmem:[#allocation2 + $0x14d] sm:$0xff] }
 0x2ff   : > { %v2360_v38 = vpop.f32.mrf.mxu2 }
 0x300   : > { %v2488_v50 = vpop.f32.mrf.mxu3  ;;  %v3054_v58 = vadd.f32 %v3053_v63, %v3010_v40  ;;  %v3105_v21 = vmul.f32 %v3010_v40, %v3010_v40  ;;  %4092 = vst [vmem:[%s4865_s23 + $0x38] sm:$0xff] %v3992_v55   ;;  %v2484_v47 = vadd.f32 %v2483_v28, %v2360_v38  ;;  %v2608_v32 = vpop.f32.mrf.mxu0  ;;  %v2104_v63 = vpack.c.bf16 %v1996_v17, %v1995_v34 }
 0x301   : > { %v1842_v48 = vpop.f32.mrf.mxu1 }
 0x302   : > { %v3149_v37 = vadd.f32 %v3148_v35, %v3105_v21  ;;  %v2607_v43 = vadd.f32 %v2606_v49, %v2484_v47  ;;  %v1843_v41 = vadd.f32 %v1842_v48, %v4729_v7  ;;  %v5069_v49 = vld [vmem:[#allocation17_spill] sm:$0xff]  ;;  %v2863_v21 = vpop.permute.xlu0 %2862 }
 0x303   : > { %v1950_v47 = vld [vmem:[#allocation2 + $0x144] sm:$0xff] }
 0x304   : > { %v2696_v52 = vadd.f32 %v2607_v43, %v1841_v18  ;;  %v2040_v18 = vld [vmem:[#allocation2 + $0x146] sm:$0xff]  ;;  %v1997_v43 = vld [vmem:[#allocation2 + $0x155] sm:$0xff] }
 0x306   : > { %v3011_v60 = vmul.f32 %v2853_v56, %v2696_v52  ;;  %v1998_v56 = vld [vmem:[#allocation2 + $0x15d] sm:$0xff] }
 0x307   : > { %v2362_v11 = vpop.f32.mrf.mxu2 }
 0x308   : > { %v2490_v51 = vpop.f32.mrf.mxu3  ;;  %v3055_v28 = vadd.f32 %v3054_v58, %v3011_v60  ;;  %v3106_v53 = vmul.f32 %v3011_v60, %v3011_v60  ;;  %v2486_v46 = vadd.f32 %v2485_v8, %v2362_v11  ;;  %v2611_v62 = vpop.f32.mrf.mxu0  ;;  %v2107_v11 = vpack.c.bf16 %v1998_v56, %v1997_v43 }
 0x309   : > { %v1845_v33 = vpop.f32.mrf.mxu1 }
 0x30a   : > { %v3150_v57 = vadd.f32 %v3149_v37, %v3106_v53  ;;  %v2609_v10 = vadd.f32 %v2608_v32, %v2486_v46  ;;  %v1846_v7 = vadd.f32 %v1845_v33, %v4732_v25  ;;  %v1951_v32 = vld [vmem:[#allocation2 + $0x14c] sm:$0xff]  ;;  %v5070_v53 = vld [vmem:[#allocation20_spill] sm:$0xff]  ;;  %v2868_v46 = vpop.permute.xlu1 %2867 }
 0x30b   : > { %1884 = vmatmul.bf16.gmra.mxu1 %v5069_v49  ;;  %2650 = vmatmul.bf16.gmra.mxu0 %v2102_v14  ;;  %v2041_v37 = vld [vmem:[#allocation2 + $0x14e] sm:$0xff]  ;;  %v2103_v4 = vpack.c.bf16 %v1951_v32, %v1950_v47 }
 0x30c   : > { %2404 = vmatmul.bf16.gmra.mxu2 %v2100_v15  ;;  %v2697_v19 = vadd.f32 %v2609_v10, %v1843_v41  ;;  %v2105_v24 = vpack.c.bf16 %v2041_v37, %v2040_v18  ;;  %v436_v18 = vld [vmem:[%s4373_s9 + $0x10] sm:$0xf] }
 0x30d   : > { %2532 = vmatmul.bf16.gmra.mxu3 %v2104_v63 }
 0x30e   : > { %v3012_v35 = vmul.f32 %v2858_v22, %v2697_v19  ;;  %v3997_v61 = vpack.c.bf16 %v2697_v19, %v2696_v52 }
 0x30f   : > { %v2365_v12 = vpop.f32.mrf.mxu2 }
 0x310   : > { %v2493_v44 = vpop.f32.mrf.mxu3  ;;  %v3056_v8 = vadd.f32 %v3055_v28, %v3012_v35  ;;  %v3107_v59 = vmul.f32 %v3012_v35, %v3012_v35  ;;  %4093 = vst [vmem:[%s4865_s23 + $0x40] sm:$0xff] %v3997_v61   ;;  %v2489_v39 = vadd.f32 %v2488_v50, %v2365_v12  ;;  %v2613_v55 = vpop.f32.mrf.mxu0 }
 0x311   : > { %v1847_v40 = vpop.f32.mrf.mxu1  ;;  %v2873_v12 = vpop.permute.xlu2 %2872 }
 0x312   : > { %v3151_v38 = vadd.f32 %v3150_v57, %v3107_v59  ;;  %v2612_v58 = vadd.f32 %v2611_v62, %v2489_v39  ;;  %v1848_v15 = vadd.f32 %v1847_v40, %v4741_v30  ;;  %v1953_v59 = vld [vmem:[#allocation2 + $0x15c] sm:$0xff] }
 0x313   : > { %v2042_v39 = vld [vmem:[#allocation2 + $0x156] sm:$0xff] }
 0x314   : > { %v2698_v48 = vadd.f32 %v2612_v58, %v1846_v7  ;;  %v1999_v7 = vld [vmem:[#allocation2 + $0x165] sm:$0xff] }
 0x316   : > { %v3013_v27 = vmul.f32 %v2863_v21, %v2698_v48 }
 0x317   : > { %v2367_v52 = vpop.f32.mrf.mxu2 }
 0x318   : > { %v2495_v20 = vpop.f32.mrf.mxu3  ;;  %v3057_v50 = vadd.f32 %v3056_v8, %v3013_v27  ;;  %v3108_v34 = vmul.f32 %v3013_v27, %v3013_v27  ;;  %v2491_v17 = vadd.f32 %v2490_v51, %v2367_v52  ;;  %v2616_v25 = vpop.f32.mrf.mxu0  ;;  %v1952_v8 = vld [vmem:[#allocation2 + $0x154] sm:$0xff]  ;;  %v441_v52 = vunpack.c.l.bf16 %v436_v18 }
 0x319   : > { %v1850_v60 = vpop.f32.mrf.mxu1  ;;  %v2106_v47 = vpack.c.bf16 %v1953_v59, %v1952_v8 }
 0x31a   : > { %v3152_v14 = vadd.f32 %v3151_v38, %v3108_v34  ;;  %v2614_v28 = vadd.f32 %v2613_v55, %v2491_v17  ;;  %v1851_v30 = vadd.f32 %v1850_v60, %v4750_v0  ;;  %v2043_v55 = vld [vmem:[#allocation2 + $0x15e] sm:$0xff]  ;;  %v2000_v38 = vld [vmem:[#allocation2 + $0x16d] sm:$0xff]  ;;  %446 = vst [vmem:[#allocation2 + $0x188] sm:$0xff] %v441_v52  ;;  %v2878_v17 = vpop.permute.xlu0 %2877 }
 0x31b   : > { %1889 = vmatmul.bf16.gmra.mxu1 %v5070_v53  ;;  %2655 = vmatmul.bf16.gmra.mxu0 %v2105_v24  ;;  %v2110_v32 = vpack.c.bf16 %v2000_v38, %v1999_v7  ;;  %v5071_v34 = vld [vmem:[#allocation5_spill] sm:$0xff] }
 0x31c   : > { %2409 = vmatmul.bf16.gmra.mxu2 %v2103_v4  ;;  %v2699_v33 = vadd.f32 %v2614_v28, %v1848_v15 }
 0x31d   : > { %2537 = vmatmul.bf16.gmra.mxu3 %v2107_v11 }
 0x31e   : > { %v3014_v62 = vmul.f32 %v2868_v46, %v2699_v33  ;;  %v4002_v63 = vpack.c.bf16 %v2699_v33, %v2698_v48  ;;  %v2108_v48 = vpack.c.bf16 %v2043_v55, %v2042_v39 }
 0x31f   : > { %v2370_v41 = vpop.f32.mrf.mxu2 }
 0x320   : > { %v2498_v57 = vpop.f32.mrf.mxu3  ;;  %v3058_v51 = vadd.f32 %v3057_v50, %v3014_v62  ;;  %v3109_v10 = vmul.f32 %v3014_v62, %v3014_v62  ;;  %4094 = vst [vmem:[%s4865_s23 + $0x48] sm:$0xff] %v4002_v63   ;;  %v2494_v49 = vadd.f32 %v2493_v44, %v2370_v41  ;;  %v2618_v19 = vpop.f32.mrf.mxu0 }
 0x321   : > { %v1852_v22 = vpop.f32.mrf.mxu1  ;;  %v2883_v41 = vpop.permute.xlu1 %2882 }
 0x322   : > { %v3153_v35 = vadd.f32 %v3152_v14, %v3109_v10  ;;  %v2617_v61 = vadd.f32 %v2616_v25, %v2494_v49  ;;  %v1853_v4 = vadd.f32 %v1852_v22, %v4753_v26  ;;  %v1955_v49 = vld [vmem:[#allocation2 + $0x16c] sm:$0xff] }
 0x323   : > { %v2044_v22 = vld [vmem:[#allocation2 + $0x166] sm:$0xff] }
 0x324   : > { %v2700_v40 = vadd.f32 %v2617_v61, %v1851_v30  ;;  %v2001_v30 = vld [vmem:[#allocation2 + $0x175] sm:$0xff] }
 0x326   : > { %v3015_v58 = vmul.f32 %v2873_v12, %v2700_v40 }
 0x327   : > { %v2372_v21 = vpop.f32.mrf.mxu2 }
 0x328   : > { %v2500_v44 = vpop.f32.mrf.mxu3  ;;  %v3059_v37 = vadd.f32 %v3058_v51, %v3015_v58  ;;  %v3110_v0 = vmul.f32 %v3015_v58, %v3015_v58  ;;  %v2496_v43 = vadd.f32 %v2495_v20, %v2372_v21  ;;  %v2621_v27 = vpop.f32.mrf.mxu0  ;;  %v1954_v51 = vld [vmem:[#allocation2 + $0x164] sm:$0xff] }
 0x329   : > { %v1855_v56 = vpop.f32.mrf.mxu1  ;;  %v2109_v8 = vpack.c.bf16 %v1955_v49, %v1954_v51 }
 0x32a   : > { %v3154_v24 = vadd.f32 %v3153_v35, %v3110_v0  ;;  %v2619_v50 = vadd.f32 %v2618_v19, %v2496_v43  ;;  %v1856_v33 = vadd.f32 %v1855_v56, %v4756_v54  ;;  %v2045_v19 = vld [vmem:[#allocation2 + $0x16e] sm:$0xff]  ;;  %v2002_v35 = vld [vmem:[#allocation2 + $0x17d] sm:$0xff] }
 0x32b   : > { %1894 = vmatmul.bf16.gmra.mxu1 %v5071_v34  ;;  %2660 = vmatmul.bf16.gmra.mxu0 %v2108_v48  ;;  %v2111_v59 = vpack.c.bf16 %v2045_v19, %v2044_v22  ;;  %v2113_v38 = vpack.c.bf16 %v2002_v35, %v2001_v30  ;;  %v5072_v48 = vld [vmem:[#allocation8_spill] sm:$0xff]  ;;  %v5073_v30 = vld [vmem:[#allocation11_spill] sm:$0xff] }
 0x32c   : > { %2414 = vmatmul.bf16.gmra.mxu2 %v2106_v47  ;;  %v2701_v60 = vadd.f32 %v2619_v50, %v1853_v4 }
 0x32d   : > { %2542 = vmatmul.bf16.gmra.mxu3 %v2110_v32  ;;  %v2888_v32 = vpop.permute.xlu2 %2887 }
 0x32e   : > { %v3016_v25 = vmul.f32 %v2878_v17, %v2701_v60  ;;  %v4007_v11 = vpack.c.bf16 %v2701_v60, %v2700_v40  ;;  %v1956_v17 = vld [vmem:[#allocation2 + $0x174] sm:$0xff] }
 0x32f   : > { %v2375_v15 = vpop.f32.mrf.mxu2 }
 0x330   : > { %v2503_v20 = vpop.f32.mrf.mxu3  ;;  %v3060_v14 = vadd.f32 %v3059_v37, %v3016_v25  ;;  %v3111_v28 = vmul.f32 %v3016_v25, %v3016_v25  ;;  %4095 = vst [vmem:[%s4865_s23 + $0x50] sm:$0xff] %v4007_v11   ;;  %v2499_v53 = vadd.f32 %v2498_v57, %v2375_v15  ;;  %v2623_v46 = vpop.f32.mrf.mxu0  ;;  %v1957_v25 = vld [vmem:[#allocation2 + $0x17c] sm:$0xff] }
 0x331   : > { %v1857_v26 = vpop.f32.mrf.mxu1  ;;  %v2046_v11 = vld [vmem:[#allocation2 + $0x176] sm:$0xff]  ;;  %v2047_v15 = vld [vmem:[#allocation2 + $0x17e] sm:$0xff] }
 0x332   : > { %v3155_v62 = vadd.f32 %v3154_v24, %v3111_v28  ;;  %v2622_v63 = vadd.f32 %v2621_v27, %v2499_v53  ;;  %v1858_v58 = vadd.f32 %v1857_v26, %v4759_v31  ;;  %v2003_v28 = vld [vmem:[#allocation2 + $0x185] sm:$0xff] }
 0x334   : > { %v2702_v10 = vadd.f32 %v2622_v63, %v1856_v33  ;;  %v2114_v33 = vpack.c.bf16 %v2047_v15, %v2046_v11 }
 0x336   : > { %v3017_v61 = vmul.f32 %v2883_v41, %v2702_v10 }
 0x337   : > { %v2377_v12 = vpop.f32.mrf.mxu2 }
 0x338   : > { %v2505_v39 = vpop.f32.mrf.mxu3  ;;  %v3061_v57 = vadd.f32 %v3060_v14, %v3017_v61  ;;  %v3112_v40 = vmul.f32 %v3017_v61, %v3017_v61  ;;  %v2501_v55 = vadd.f32 %v2500_v44, %v2377_v12  ;;  %v2626_v54 = vpop.f32.mrf.mxu0 }
 0x339   : > { %v1860_v7 = vpop.f32.mrf.mxu1  ;;  %v2893_v14 = vpop.permute.xlu0 %2892 }
 0x33a   : > { %v3156_v21 = vadd.f32 %v3155_v62, %v3112_v40  ;;  %v2624_v47 = vadd.f32 %v2623_v46, %v2501_v55  ;;  %v1861_v31 = vadd.f32 %v1860_v7, %v4762_v2  ;;  %v2112_v46 = vpack.c.bf16 %v1957_v25, %v1956_v17  ;;  %v2898_v61 = vpop.permute.xlu1 %2897 }
 0x33b   : > { %1899 = vmatmul.bf16.gmra.mxu1 %v5072_v48  ;;  %2665 = vmatmul.bf16.gmra.mxu0 %v2111_v59  ;;  %v2116_v2 = vpack.c.bf16 %v2003_v28, %v2003_v28  ;;  %v2903_v48 = vpop.permute.xlu2 %2902 }
 0x33c   : > { %2419 = vmatmul.bf16.gmra.mxu2 %v2109_v8  ;;  %v2703_v18 = vadd.f32 %v2624_v47, %v1858_v58  ;;  %v2048_v47 = vld [vmem:[#allocation2 + $0x186] sm:$0xff] }
 0x33d   : > { %2547 = vmatmul.bf16.gmra.mxu3 %v2113_v38 }
 0x33e   : > { %v3018_v37 = vmul.f32 %v2888_v32, %v2703_v18  ;;  %v4012_v0 = vpack.c.bf16 %v2703_v18, %v2702_v10  ;;  %v1958_v32 = vld [vmem:[#allocation2 + $0x184] sm:$0xff] }
 0x33f   : > { %v2380_v43 = vpop.f32.mrf.mxu2 }
 0x340   : > { %v2508_v56 = vpop.f32.mrf.mxu3  ;;  %v3062_v44 = vadd.f32 %v3061_v57, %v3018_v37  ;;  %v3113_v27 = vmul.f32 %v3018_v37, %v3018_v37  ;;  %4096 = vst [vmem:[%s4865_s23 + $0x58] sm:$0xff] %v4012_v0   ;;  %v2504_v52 = vadd.f32 %v2503_v20, %v2380_v43  ;;  %v2628_v24 = vpop.f32.mrf.mxu0  ;;  %v4153_v37 = vld [vmem:[#allocation2 + $0x162] sm:$0xff] }
 0x341   : > { %v1862_v4 = vpop.f32.mrf.mxu1  ;;  %v650_v0 = vpack.c.bf16 %v4153_v37, %v4153_v37  ;;  %v2908_v25 = vpop.permute.xlu0 %2907 }
 0x342   : > { %v3157_v50 = vadd.f32 %v3156_v21, %v3113_v27  ;;  %v2627_v34 = vadd.f32 %v2626_v54, %v2504_v52  ;;  %v1863_v22 = vadd.f32 %v1862_v4, %v4765_v3 }
 0x344   : > { %v2704_v60 = vadd.f32 %v2627_v34, %v1861_v31 }
 0x346   : > { %v3019_v53 = vmul.f32 %v2893_v14, %v2704_v60 }
 0x347   : > { %v2382_v26 = vpop.f32.mrf.mxu2 }
 0x348   : > { %v2510_v62 = vpop.f32.mrf.mxu3  ;;  %v3063_v63 = vadd.f32 %v3062_v44, %v3019_v53  ;;  %v3114_v20 = vmul.f32 %v3019_v53, %v3019_v53  ;;  %v2506_v41 = vadd.f32 %v2505_v39, %v2382_v26  ;;  %v2631_v10 = vpop.f32.mrf.mxu0  ;;  %v2117_v44 = vpack.c.bf16 %v2048_v47, %v2048_v47 }
 0x349   : > { %v1865_v51 = vpop.f32.mrf.mxu1  ;;  %v2923_v37 = vpop.permute.xlu0 %2922 }
 0x34a   : > { %v3158_v49 = vadd.f32 %v3157_v50, %v3114_v20  ;;  %v2629_v19 = vadd.f32 %v2628_v24, %v2506_v41  ;;  %v1866_v3 = vadd.f32 %v1865_v51, %v4768_v16  ;;  %v2115_v50 = vpack.c.bf16 %v1958_v32, %v1958_v32  ;;  %v2913_v51 = vpop.permute.xlu1 %2912 }
 0x34b   : > { %1904 = vmatmul.bf16.gmra.mxu1 %v5073_v30  ;;  %2670 = vmatmul.bf16.gmra.mxu0 %v2114_v33 }
 0x34c   : > { %v2705_v35 = vadd.f32 %v2629_v19, %v1863_v22  ;;  %2424 = vmatmul.bf16.gmra.mxu2 %v2112_v46 }
 0x34d   : > { %2552 = vmatmul.bf16.gmra.mxu3 %v2116_v2 }
 0x34e   : > { %v3020_v12 = vmul.f32 %v2898_v61, %v2705_v35  ;;  %v4017_v8 = vpack.c.bf16 %v2705_v35, %v2704_v60 }
 0x34f   : > { %v2385_v59 = vpop.f32.mrf.mxu2 }
 0x350   : > { %v2513_v57 = vpop.f32.mrf.mxu3  ;;  %v3064_v39 = vadd.f32 %v3063_v63, %v3020_v12  ;;  %v3115_v40 = vmul.f32 %v3020_v12, %v3020_v12  ;;  %4097 = vst [vmem:[%s4865_s23 + $0x60] sm:$0xff] %v4017_v8   ;;  %v2509_v55 = vadd.f32 %v2508_v56, %v2385_v59  ;;  %v2633_v54 = vpop.f32.mrf.mxu0 }
 0x351   : > { %v1867_v7 = vpop.f32.mrf.mxu1 }
 0x352   : > { %v3159_v38 = vadd.f32 %v3158_v49, %v3115_v40  ;;  %v2632_v58 = vadd.f32 %v2631_v10, %v2509_v55  ;;  %v1868_v16 = vadd.f32 %v1867_v7, %v4772_v1 }
 0x354   : > { %v2706_v21 = vadd.f32 %v2632_v58, %v1866_v3 }
 0x356   : > { %v3021_v18 = vmul.f32 %v2903_v48, %v2706_v21 }
 0x357   : > { %v2387_v43 = vpop.f32.mrf.mxu2 }
 0x358   : > { %v2515_v27 = vpop.f32.mrf.mxu3  ;;  %v3065_v52 = vadd.f32 %v3064_v39, %v3021_v18  ;;  %v3116_v4 = vmul.f32 %v3021_v18, %v3021_v18  ;;  %v2511_v24 = vadd.f32 %v2510_v62, %v2387_v43  ;;  %v2636_v31 = vpop.f32.mrf.mxu0 }
 0x359   : > { %v1870_v56 = vpop.f32.mrf.mxu1  ;;  %v2918_v39 = vpop.permute.xlu2 %2917 }
 0x35a   : > { %v3160_v34 = vadd.f32 %v3159_v38, %v3116_v4  ;;  %v2634_v17 = vadd.f32 %v2633_v54, %v2511_v24  ;;  %v1871_v20 = vadd.f32 %v1870_v56, %v4781_v45 }
 0x35b   : > { %1909 = vmatmul.bf16.gmra.mxu1 %v650_v0  ;;  %2675 = vmatmul.bf16.gmra.mxu0 %v2117_v44 }
 0x35c   : > { %v2707_v60 = vadd.f32 %v2634_v17, %v1868_v16  ;;  %2429 = vmatmul.bf16.gmra.mxu2 %v2115_v50  ;;  %v2928_v16 = vpop.permute.xlu1 %2927 }
 0x35e   : > { %v3022_v11 = vmul.f32 %v2908_v25, %v2707_v60  ;;  %v4022_v15 = vpack.c.bf16 %v2707_v60, %v2706_v21 }
 0x35f   : > { %v2390_v14 = vpop.f32.mrf.mxu2 }
 0x360   : > { %v2518_v28 = vpop.f32.mrf.mxu3  ;;  %v3066_v53 = vadd.f32 %v3065_v52, %v3022_v11  ;;  %v3117_v26 = vmul.f32 %v3022_v11, %v3022_v11  ;;  %4098 = vst [vmem:[%s4865_s23 + $0x68] sm:$0xff] %v4022_v15   ;;  %v2514_v46 = vadd.f32 %v2513_v57, %v2390_v14  ;;  %v2638_v62 = vpop.f32.mrf.mxu0 }
 0x361   : > { %v1872_v33 = vpop.f32.mrf.mxu1 }
 0x362   : > { %v3161_v63 = vadd.f32 %v3160_v34, %v3117_v26  ;;  %v2637_v1 = vadd.f32 %v2636_v31, %v2514_v46  ;;  %v1873_v8 = vadd.f32 %v1872_v33, %v4785_v5 }
 0x364   : > { %v2708_v41 = vadd.f32 %v2637_v1, %v1871_v20 }
 0x366   : > { %v3023_v10 = vmul.f32 %v2913_v51, %v2708_v41 }
 0x367   : > { %v2392_v2 = vpop.f32.mrf.mxu2 }
 0x368   : > { %v2520_v49 = vpop.f32.mrf.mxu3  ;;  %v3067_v22 = vadd.f32 %v3066_v53, %v3023_v10  ;;  %v3118_v19 = vmul.f32 %v3023_v10, %v3023_v10  ;;  %v2516_v30 = vadd.f32 %v2515_v27, %v2392_v2  ;;  %v2641_v61 = vpop.f32.mrf.mxu0 }
 0x369   : > { %v1875_v35 = vpop.f32.mrf.mxu1 }
 0x36a   : > { %v3162_v12 = vadd.f32 %v3161_v63, %v3118_v19  ;;  %v2639_v59 = vadd.f32 %v2638_v62, %v2516_v30  ;;  %v1876_v48 = vadd.f32 %v1875_v35, %v4789_v13  ;;  %v2933_v63 = vpop.permute.xlu2 %2932 }
 0x36c   : > { %v2709_v57 = vadd.f32 %v2639_v59, %v1873_v8 }
 0x36e   : > { %v3024_v40 = vmul.f32 %v2918_v39, %v2709_v57  ;;  %v4027_v45 = vpack.c.bf16 %v2709_v57, %v2708_v41 }
 0x36f   : > { %v2395_v55 = vpop.f32.mrf.mxu2 }
 0x370   : > { %v2523_v7 = vpop.f32.mrf.mxu3  ;;  %v3068_v54 = vadd.f32 %v3067_v22, %v3024_v40  ;;  %v3119_v38 = vmul.f32 %v3024_v40, %v3024_v40  ;;  %4099 = vst [vmem:[%s4865_s23 + $0x70] sm:$0xff] %v4027_v45   ;;  %v2519_v3 = vadd.f32 %v2518_v28, %v2395_v55  ;;  %v2643_v21 = vpop.f32.mrf.mxu0 }
 0x371   : > { %v1877_v58 = vpop.f32.mrf.mxu1 }
 0x372   : > { %v3163_v47 = vadd.f32 %v3162_v12, %v3119_v38  ;;  %v2642_v32 = vadd.f32 %v2641_v61, %v2519_v3  ;;  %v1878_v31 = vadd.f32 %v1877_v58, %v4794_v9  ;;  %v2938_v61 = vpop.permute.xlu0 %2937  ;;  %v2943_v58 = vpop.permute.xlu1 %2942 }
 0x374   : > { %v2710_v18 = vadd.f32 %v2642_v32, %v1876_v48 }
 0x376   : > { %v3025_v5 = vmul.f32 %v2923_v37, %v2710_v18 }
 0x377   : > { %v2397_v0 = vpop.f32.mrf.mxu2 }
 0x378   : > { %v2525_v43 = vpop.f32.mrf.mxu3  ;;  %v3069_v44 = vadd.f32 %v3068_v54, %v3025_v5  ;;  %v3120_v27 = vmul.f32 %v3025_v5, %v3025_v5  ;;  %v2521_v52 = vadd.f32 %v2520_v49, %v2397_v0  ;;  %v2646_v24 = vpop.f32.mrf.mxu0 }
 0x379   : > { %v1880_v4 = vpop.f32.mrf.mxu1 }
 0x37a   : > { %v3164_v56 = vadd.f32 %v3163_v47, %v3120_v27  ;;  %v2644_v50 = vadd.f32 %v2643_v21, %v2521_v52  ;;  %v1881_v46 = vadd.f32 %v1880_v4, %v4797_v29  ;;  %v2948_v52 = vpop.permute.xlu2 %2947 }
 0x37c   : > { %v2711_v34 = vadd.f32 %v2644_v50, %v1878_v31 }
 0x37e   : > { %v3026_v17 = vmul.f32 %v2928_v16, %v2711_v34  ;;  %v4032_v13 = vpack.c.bf16 %v2711_v34, %v2710_v18 }
 0x37f   : > { %v2400_v60 = vpop.f32.mrf.mxu2 }
 0x380   : > { %v2528_v25 = vpop.f32.mrf.mxu3  ;;  %v3070_v11 = vadd.f32 %v3069_v44, %v3026_v17  ;;  %v3121_v15 = vmul.f32 %v3026_v17, %v3026_v17  ;;  %4100 = vst [vmem:[%s4865_s23 + $0x78] sm:$0xff] %v4032_v13   ;;  %v2524_v14 = vadd.f32 %v2523_v7, %v2400_v60  ;;  %v2648_v53 = vpop.f32.mrf.mxu0 }
 0x381   : > { %v1882_v28 = vpop.f32.mrf.mxu1 }
 0x382   : > { %v3165_v26 = vadd.f32 %v3164_v56, %v3121_v15  ;;  %v2647_v33 = vadd.f32 %v2646_v24, %v2524_v14  ;;  %v1883_v19 = vadd.f32 %v1882_v28, %v4801_v42  ;;  %v2953_v15 = vpop.permute.xlu0 %2952 }
 0x384   : > { %v2712_v62 = vadd.f32 %v2647_v33, %v1881_v46 }
 0x386   : > { %v3027_v9 = vmul.f32 %v2933_v63, %v2712_v62 }
 0x387   : > { %v2402_v20 = vpop.f32.mrf.mxu2 }
 0x388   : > { %v2530_v1 = vpop.f32.mrf.mxu3  ;;  %v3071_v41 = vadd.f32 %v3070_v11, %v3027_v9  ;;  %v3122_v51 = vmul.f32 %v3027_v9, %v3027_v9  ;;  %v2526_v10 = vadd.f32 %v2525_v43, %v2402_v20  ;;  %v2651_v49 = vpop.f32.mrf.mxu0  ;;  %v5074_v9 = vld [vmem:[#allocation12_spill] sm:$0xff] }
 0x389   : > { %v1885_v2 = vpop.f32.mrf.mxu1 }
 0x38a   : > { %v3166_v22 = vadd.f32 %v3165_v26, %v3122_v51  ;;  %v2649_v30 = vadd.f32 %v2648_v53, %v2526_v10  ;;  %v1886_v54 = vadd.f32 %v1885_v2, %v4805_v36  ;;  %v2958_v51 = vpop.permute.xlu1 %2957 }
 0x38c   : > { %v2713_v35 = vadd.f32 %v2649_v30, %v1883_v19 }
 0x38e   : > { %v3028_v12 = vmul.f32 %v2938_v61, %v2713_v35  ;;  %v4037_v29 = vpack.c.bf16 %v2713_v35, %v2712_v62 }
 0x38f   : > { %v2405_v8 = vpop.f32.mrf.mxu2 }
 0x390   : > { %v2533_v59 = vpop.f32.mrf.mxu3  ;;  %v3072_v57 = vadd.f32 %v3071_v41, %v3028_v12  ;;  %v3123_v39 = vmul.f32 %v3028_v12, %v3028_v12  ;;  %4101 = vst [vmem:[%s4865_s23 + $0x80] sm:$0xff] %v4037_v29   ;;  %v2529_v40 = vadd.f32 %v2528_v25, %v2405_v8  ;;  %v2653_v55 = vpop.f32.mrf.mxu0  ;;  %v5075_v29 = vld [vmem:[#allocation21_spill] sm:$0xff] }
 0x391   : > { %v1887_v45 = vpop.f32.mrf.mxu1 }
 0x392   : > { %v3167_v7 = vadd.f32 %v3166_v22, %v3123_v39  ;;  %v2652_v38 = vadd.f32 %v2651_v49, %v2529_v40  ;;  %v1888_v43 = vadd.f32 %v1887_v45, %v4811_v23  ;;  %v2963_v39 = vpop.permute.xlu2 %2962 }
 0x394   : > { %v2714_v3 = vadd.f32 %v2652_v38, %v1886_v54 }
 0x396   : > { %v3029_v42 = vmul.f32 %v2943_v58, %v2714_v3 }
 0x397   : > { %v2407_v21 = vpop.f32.mrf.mxu2 }
 0x398   : > { %v2535_v47 = vpop.f32.mrf.mxu3  ;;  %v3073_v48 = vadd.f32 %v3072_v57, %v3029_v42  ;;  %v3124_v32 = vmul.f32 %v3029_v42, %v3029_v42  ;;  %v2531_v18 = vadd.f32 %v2530_v1, %v2407_v21  ;;  %v2656_v5 = vpop.f32.mrf.mxu0  ;;  %v5076_v21 = vld [vmem:[#allocation22_spill] sm:$0xff] }
 0x399   : > { %v1890_v37 = vpop.f32.mrf.mxu1 }
 0x39a   : > { %v3168_v0 = vadd.f32 %v3167_v7, %v3124_v32  ;;  %v2654_v44 = vadd.f32 %v2653_v55, %v2531_v18  ;;  %v1891_v60 = vadd.f32 %v1890_v37, %v4815_v6  ;;  %v2968_v18 = vpop.permute.xlu0 %2967 }
 0x39c   : > { %v2715_v27 = vadd.f32 %v2654_v44, %v1888_v43 }
 0x39e   : > { %v3030_v4 = vmul.f32 %v2948_v52, %v2715_v27  ;;  %v4042_v36 = vpack.c.bf16 %v2715_v27, %v2714_v3 }
 0x39f   : > { %v2410_v24 = vpop.f32.mrf.mxu2 }
 0x3a0   : > { %v2538_v56 = vpop.f32.mrf.mxu3  ;;  %v3074_v31 = vadd.f32 %v3073_v48, %v3030_v4  ;;  %v3125_v50 = vmul.f32 %v3030_v4, %v3030_v4  ;;  %4102 = vst [vmem:[%s4865_s23 + $0x88] sm:$0xff] %v4042_v36   ;;  %v2534_v34 = vadd.f32 %v2533_v59, %v2410_v24  ;;  %v2658_v17 = vpop.f32.mrf.mxu0 }
 0x3a1   : > { %v1892_v16 = vpop.f32.mrf.mxu1 }
 0x3a2   : > { %v3169_v13 = vadd.f32 %v3168_v0, %v3125_v50  ;;  %v2657_v25 = vadd.f32 %v2656_v5, %v2534_v34  ;;  %v1893_v20 = vadd.f32 %v1892_v16, %v5074_v9  ;;  %v2973_v16 = vpop.permute.xlu1 %2972 }
 0x3a4   : > { %v2716_v11 = vadd.f32 %v2657_v25, %v1891_v60 }
 0x3a6   : > { %v3031_v23 = vmul.f32 %v2953_v15, %v2716_v11 }
 0x3a7   : > { %v2412_v14 = vpop.f32.mrf.mxu2 }
 0x3a8   : > { %v2540_v28 = vpop.f32.mrf.mxu3  ;;  %v3075_v53 = vadd.f32 %v3074_v31, %v3031_v23  ;;  %v3126_v26 = vmul.f32 %v3031_v23, %v3031_v23  ;;  %v2536_v46 = vadd.f32 %v2535_v47, %v2412_v14  ;;  %v2661_v62 = vpop.f32.mrf.mxu0 }
 0x3a9   : > { %v1895_v33 = vpop.f32.mrf.mxu1 }
 0x3aa   : > { %v3170_v63 = vadd.f32 %v3169_v13, %v3126_v26  ;;  %v2659_v1 = vadd.f32 %v2658_v17, %v2536_v46  ;;  %v1896_v8 = vadd.f32 %v1895_v33, %v5075_v29 }
 0x3ac   : > { %v2717_v41 = vadd.f32 %v2659_v1, %v1893_v20 }
 0x3ae   : > { %v3032_v10 = vmul.f32 %v2958_v51, %v2717_v41  ;;  %v4047_v6 = vpack.c.bf16 %v2717_v41, %v2716_v11 }
 0x3af   : > { %v2415_v2 = vpop.f32.mrf.mxu2 }
 0x3b0   : > { %v2543_v49 = vpop.f32.mrf.mxu3  ;;  %v3076_v22 = vadd.f32 %v3075_v53, %v3032_v10  ;;  %v3127_v19 = vmul.f32 %v3032_v10, %v3032_v10  ;;  %4103 = vst [vmem:[%s4865_s23 + $0x90] sm:$0xff] %v4047_v6   ;;  %v2539_v30 = vadd.f32 %v2538_v56, %v2415_v2  ;;  %v2663_v61 = vpop.f32.mrf.mxu0  ;;  %v5077_v56 = vld [vmem:[#allocation15_spill] sm:$0xff] }
 0x3b1   : > { %v1897_v35 = vpop.f32.mrf.mxu1  ;;  %v5078_v53 = vld [vmem:[#allocation23_spill] sm:$0xff] }
 0x3b2   : > { %v3171_v12 = vadd.f32 %v3170_v63, %v3127_v19  ;;  %v2662_v59 = vadd.f32 %v2661_v62, %v2539_v30  ;;  %v1898_v47 = vadd.f32 %v1897_v35, %v5076_v21  ;;  %v2978_v62 = vpop.permute.xlu2 %2977 }
 0x3b4   : > { %v2718_v57 = vadd.f32 %v2662_v59, %v1896_v8 }
 0x3b6   : > { %v3033_v40 = vmul.f32 %v2963_v39, %v2718_v57 }
 0x3b7   : > { %v2417_v45 = vpop.f32.mrf.mxu2 }
 0x3b8   : > { %v2545_v55 = vpop.f32.mrf.mxu3  ;;  %v3077_v7 = vadd.f32 %v3076_v22, %v3033_v40  ;;  %v3128_v54 = vmul.f32 %v3033_v40, %v3033_v40  ;;  %v2541_v38 = vadd.f32 %v2540_v28, %v2417_v45  ;;  %v2666_v58 = vpop.f32.mrf.mxu0  ;;  %v5079_v22 = vld [vmem:[#allocation24_spill] sm:$0xff] }
 0x3b9   : > { %v1900_v3 = vpop.f32.mrf.mxu1 }
 0x3ba   : > { %v3172_v42 = vadd.f32 %v3171_v12, %v3128_v54  ;;  %v2664_v48 = vadd.f32 %v2663_v61, %v2541_v38  ;;  %v1901_v31 = vadd.f32 %v1900_v3, %v5077_v56  ;;  %v2983_v61 = vpop.permute.xlu0 %2982 }
 0x3bc   : > { %v2719_v32 = vadd.f32 %v2664_v48, %v1898_v47 }
 0x3be   : > { %v3034_v37 = vmul.f32 %v2968_v18, %v2719_v32  ;;  %v4052_v5 = vpack.c.bf16 %v2719_v32, %v2718_v57 }
 0x3bf   : > { %v2420_v0 = vpop.f32.mrf.mxu2 }
 0x3c0   : > { %v2548_v43 = vpop.f32.mrf.mxu3  ;;  %v3078_v44 = vadd.f32 %v3077_v7, %v3034_v37  ;;  %v3129_v27 = vmul.f32 %v3034_v37, %v3034_v37  ;;  %4104 = vst [vmem:[%s4865_s23 + $0x98] sm:$0xff] %v4052_v5   ;;  %v2544_v52 = vadd.f32 %v2543_v49, %v2420_v0  ;;  %v2668_v36 = vpop.f32.mrf.mxu0  ;;  %v5080_v7 = vld [vmem:[#allocation18_spill] sm:$0xff] }
 0x3c1   : > { %v1902_v4 = vpop.f32.mrf.mxu1 }
 0x3c2   : > { %v3173_v24 = vadd.f32 %v3172_v42, %v3129_v27  ;;  %v2667_v50 = vadd.f32 %v2666_v58, %v2544_v52  ;;  %v1903_v26 = vadd.f32 %v1902_v4, %v5078_v53  ;;  %v2988_v58 = vpop.permute.xlu1 %2987  ;;  %v2993_v4 = vpop.permute.xlu2 %2992 }
 0x3c4   : > { %v2720_v34 = vadd.f32 %v2667_v50, %v1901_v31 }
 0x3c6   : > { %v3035_v17 = vmul.f32 %v2973_v16, %v2720_v34 }
 0x3c7   : > { %v2422_v13 = vpop.f32.mrf.mxu2 }
 0x3c8   : > { %v2550_v60 = vpop.f32.mrf.mxu3  ;;  %v3079_v25 = vadd.f32 %v3078_v44, %v3035_v17  ;;  %v3130_v11 = vmul.f32 %v3035_v17, %v3035_v17  ;;  %v2546_v15 = vadd.f32 %v2545_v55, %v2422_v13  ;;  %v2671_v14 = vpop.f32.mrf.mxu0 }
 0x3c9   : > { %v1905_v23 = vpop.f32.mrf.mxu1 }
 0x3ca   : > { %v3174_v28 = vadd.f32 %v3173_v24, %v3130_v11  ;;  %v2669_v46 = vadd.f32 %v2668_v36, %v2546_v15  ;;  %v1906_v19 = vadd.f32 %v1905_v23, %v5079_v22 }
 0x3cc   : > { %v2721_v33 = vadd.f32 %v2669_v46, %v1903_v26 }
 0x3ce   : > { %v3036_v63 = vmul.f32 %v2978_v62, %v2721_v33  ;;  %v4057_v9 = vpack.c.bf16 %v2721_v33, %v2720_v34 }
 0x3cf   : > { %v2425_v20 = vpop.f32.mrf.mxu2 }
 0x3d0   : > { %v2553_v1 = vpop.f32.mrf.mxu3  ;;  %v3080_v41 = vadd.f32 %v3079_v25, %v3036_v63  ;;  %v3131_v51 = vmul.f32 %v3036_v63, %v3036_v63  ;;  %4105 = vst [vmem:[%s4865_s23 + $0xa0] sm:$0xff] %v4057_v9   ;;  %v2549_v10 = vadd.f32 %v2548_v43, %v2425_v20  ;;  %v2673_v2 = vpop.f32.mrf.mxu0  ;;  %v5081_v43 = vld [vmem:[#allocation25_spill] sm:$0xff] }
 0x3d1   : > { %v1907_v6 = vpop.f32.mrf.mxu1 }
 0x3d2   : > { %v3175_v49 = vadd.f32 %v3174_v28, %v3131_v51  ;;  %v2672_v30 = vadd.f32 %v2671_v14, %v2549_v10  ;;  %v1908_v54 = vadd.f32 %v1907_v6, %v5080_v7 }
 0x3d4   : > { %v2722_v35 = vadd.f32 %v2672_v30, %v1906_v19 }
 0x3d6   : > { %v3037_v12 = vmul.f32 %v2983_v61, %v2722_v35 }
 0x3d7   : > { %v2427_v29 = vpop.f32.mrf.mxu2 }
 0x3d8   : > { %v2555_v8 = vpop.f32.mrf.mxu3  ;;  %v3081_v59 = vadd.f32 %v3080_v41, %v3037_v12  ;;  %v3132_v57 = vmul.f32 %v3037_v12, %v3037_v12  ;;  %v2551_v39 = vadd.f32 %v2550_v60, %v2427_v29  ;;  %v2676_v45 = vpop.f32.mrf.mxu0 }
 0x3d9   : > { %v1910_v40 = vpop.f32.mrf.mxu1 }
 0x3da   : > { %v3176_v55 = vadd.f32 %v3175_v49, %v3132_v57  ;;  %v2674_v38 = vadd.f32 %v2673_v2, %v2551_v39  ;;  %v1911_v44 = vadd.f32 %v1910_v40, %v5081_v43 }
 0x3dc   : > { %v2723_v3 = vadd.f32 %v2674_v38, %v1908_v54 }
 0x3de   : > { %v3038_v42 = vmul.f32 %v2988_v58, %v2723_v3  ;;  %v4062_v21 = vpack.c.bf16 %v2723_v3, %v2722_v35 }
 0x3df   : > { %v2430_v47 = vpop.f32.mrf.mxu2 }
 0x3e0   : > { %v3082_v48 = vadd.f32 %v3081_v59, %v3038_v42  ;;  %v3133_v32 = vmul.f32 %v3038_v42, %v3038_v42  ;;  %4106 = vst [vmem:[%s4865_s23 + $0xa8] sm:$0xff] %v4062_v21   ;;  %v2554_v18 = vadd.f32 %v2553_v1, %v2430_v47  ;;  %v2678_v5 = vpop.f32.mrf.mxu0 }
 0x3e1   : > { %v1912_v37 = vpop.f32.mrf.mxu1 }
 0x3e2   : > { %v3177_v0 = vadd.f32 %v3176_v55, %v3133_v32  ;;  %v2677_v27 = vadd.f32 %v2676_v45, %v2554_v18 }
 0x3e4   : > { %v2724_v52 = vadd.f32 %v2677_v27, %v1911_v44 }
 0x3e6   : > { %v3039_v36 = vmul.f32 %v2993_v4, %v2724_v52  ;;  %v3232_v24 = vpack.c.bf16 %v2724_v52, %v2724_v52 }
 0x3e7   : > { %v2432_v56 = vpop.f32.mrf.mxu2 }
 0x3e8   : > { %v3083_v31 = vadd.f32 %v3082_v48, %v3039_v36  ;;  %v3134_v50 = vmul.f32 %v3039_v36, %v3039_v36  ;;  %3277 = vst [vmem:[%s4865_s23 + $0xb0] sm:$0xf] %v3232_v24 }
 0x3ea   : > { %v3084_v34 = vrot.slane %v3083_v31, 4  ;;  %v3178_v16 = vadd.f32 %v3177_v0, %v3134_v50 }
 0x3ec   : > { %v3085_v17 = vadd.f32 %v3084_v34, %v3083_v31  ;;  %v3179_v13 = vrot.slane %v3178_v16, 4 }
 0x3ee   : > { %v3086_v60 = vrot.slane %v3085_v17, 2  ;;  %v3180_v25 = vadd.f32 %v3179_v13, %v3178_v16 }
 0x3f0   : > { %v3087_v11 = vadd.f32 %v3086_v60, %v3085_v17  ;;  %v3181_v15 = vrot.slane %v3180_v25, 2 }
 0x3f2   : > { %v3088_v23 = vrot.slane %v3087_v11, 1  ;;  %v3182_v14 = vadd.f32 %v3181_v15, %v3180_v25 }
 0x3f4   : > { %v3183_v28 = vrot.slane %v3182_v14, 1  ;;  %v3089_v53 = vadd.f32 %v3088_v23, %v3087_v11 }
 0x3f6   : > { %v3184_v26 = vadd.f32 %v3183_v28, %v3182_v14 }
 0x3f8   : > { %v3186_v46 = vsel %vm3185_vm0, %v3089_v53, %v3184_v26 }
 0x3f9   : > { %3187 = vst [vmem:[%s296_s24] sm:$0x3] %v3186_v46 }
 0x3fa PF: > { %s16_s18 = sadd.s32 1, %s4160_s18  }
 0x3fb   : > { %p13_p6 = scmp.ge.s32.totalorder %s16_s18, 4  }
 0x3fd   :  { %15 = sbr.rel (!%p13_p6) target bundleno = 1 (0x1), region = 86 }

// kernel: basic_block_forward.4
= control target key start
LH: loop header
LB: loop body
LE: loop exit
PB: predicated region body
PF: predicated region fallthrough
CT: control target
= control target key end

     0   :  { %s4974_s30 = smov 0   ;;  %s6109_s0 = inlined_call_operand.vmem [shape: bf16[1080,128], index: 0, kind: input, shape index: {}, may-alias: {0,1}]   ;;  %s6110_s1 = inlined_call_operand.vmem [shape: bf16[1080,128], index: 1, kind: input, shape index: {}, may-alias: {0,1}]   ;;  %s6111_s2 = inlined_call_operand.vmem [shape: f32[1080,1], index: 2, kind: input, shape index: {}, may-alias: {2,3}]   ;;  %s6112_s3 = inlined_call_operand.vmem [shape: f32[1080,1], index: 3, kind: input, shape index: {}, may-alias: {2,3}]   ;;  %s6113_s4 = inlined_call_operand.vmem [shape: f32[720,1], index: 4, kind: input, shape index: {}]   ;;  %s6114_s5 = inlined_call_operand.vmem [shape: f32[1,128], index: 5, kind: input, shape index: {}]   ;;  %s6115_s6 = inlined_call_operand.vmem [shape: f32[1,128], index: 6, kind: input, shape index: {}]   ;;  %s6116_s7 = inlined_call_operand.vmem [shape: bf16[3,384,128], index: 7, kind: input, shape index: {}]   ;;  %s6117_s8 = inlined_call_operand.vmem [shape: bf16[720,128], index: 8, kind: output, shape index: {0}]   ;;  %s6118_s9 = inlined_call_operand.vmem [shape: f32[2,2,128], index: 9, kind: output, shape index: {1}]  }
   0x1 LB: > { %s4980_s10 = sadd.s32 4294967295, %s4920_s30   ;;  %p4141_p0 = scmp.ge.s32.totalorder %s4920_s30, 1  ;;  %s4920_s30 = sphi %s4974_s30, %s20_s30  }
   0x2   : > { %p351_p1 = scmp.lt.s32.totalorder %s4920_s30, 3 }
   0x4   : > { %p352_p2 = pnand %p4141_p0, %p351_p1 }
   0x6   : > { %355 = sbr.rel (%p352_p2) target bundleno = 1156 (0x484), region = 52 }
   0xb   : > { %s4985_s11 = smul.u32 45, %s4980_s10  ;;  %v4922_v0 = vmov 0   ;;  %s421_s17 = sadd.s32 1, %s4980_s10  ;;  %v4568_v61 = vld [vmem:[%s6116_s7 + $0xf8] sm:$0xff] }
   0xc   : > { %4893 = vset.pattern.permute.xlu2 %v4922_v0  ;;  %4892 = vset.pattern.permute.xlu1 %v4922_v0  ;;  %s4143_s19 = smul.u32 45, %s421_s17  ;;  %p459_p6 = scmp.lt.s32.totalorder %s4980_s10, 1 }
   0xd   : > { %4891 = vset.pattern.permute.xlu0 %v4922_v0  ;;  %p416_p3 = scmp.lt.s32.totalorder %s4985_s11, 134  ;;  %1756 = vmatpush.bf16.msra.mxu0 %v4568_v61  ;;  %p448_p5 = scmp.lt.s32.totalorder %s4985_s11, 89 }
   0xe   : > { %p424_p4 = scmp.lt.s32.totalorder %s4143_s19, 134  ;;  %4859 = vmatpush.bf16.msra.mxu2 %v4568_v61  ;;  %4858 = vmatpush.bf16.msra.mxu1 %v4568_v61  ;;  %s6215_s10 = smov (!%p459_p6, %s4980_s10), 1 }
   0xf   : > { %s4992_s12 = scalar_select %p416_p3, %s4985_s11, 134  ;;  %4860 = vmatpush.bf16.msra.mxu3 %v4568_v61 }
  0x10   : > { %s6211_s19 = smov (!%p424_p4, %s4143_s19), 134  ;;  %s6213_s11 = smov (!%p448_p5, %s4985_s11), 89 }
  0x11   : > { %s4145_s13 = sshll.u32 %s4992_s12, 3  ;;  %s4142_s18 = sshll.u32 %s4992_s12, 2 }
  0x12   : > { %s4998_s16 = scalar_lea.vmem %s6111_s2, %s4145_s13  ;;  %s5070_s24 = scalar_lea.vmem %s6109_s0, %s4142_s18 }
  0x13   : > { %v724_v1 = vld [vmem:[%s4998_s16 + $0xe0] sm:$0xff]  ;;  %v722_v2 = vld [vmem:[%s4998_s16 + $0xd0] sm:$0xff]  ;;  %v699_v3 = vld [vmem:[%s4998_s16 + $0x18] sm:$0xff]  ;;  %s4147_s13 = sshll.u32 %s6211_s19, 3  ;;  %s4144_s12 = sshll.u32 %s6211_s19, 2 }
  0x14   : > { %vm769_vm0 = vcmp.gt.f32.partialorder %v724_v1, 0.5  ;;  %vm767_vm1 = vcmp.gt.f32.partialorder %v722_v2, 0.5  ;;  %vm744_vm2 = vcmp.gt.f32.partialorder %v699_v3, 0.5  ;;  %v723_v7 = vld [vmem:[%s4998_s16 + $0xd8] sm:$0xff]  ;;  %v698_v8 = vld [vmem:[%s4998_s16 + $0x10] sm:$0xff]  ;;  %v700_v9 = vld [vmem:[%s4998_s16 + $0x20] sm:$0xff]  ;;  %s5109_s20 = scalar_lea.vmem %s6112_s3, %s4147_s13  ;;  %s5456_s15 = scalar_lea.vmem %s6110_s1, %s4144_s12 }
  0x15   : > { %v814_v4 = vsel %vm769_vm0, 1, %v4922_v0  ;;  %v812_v5 = vsel %vm767_vm1, 1, %v4922_v0  ;;  %v789_v6 = vsel %vm744_vm2, 1, %v4922_v0  ;;  %vm768_vm3 = vcmp.gt.f32.partialorder %v723_v7, 0.5  ;;  %v710_v13 = vld [vmem:[%s4998_s16 + $0x70] sm:$0xff]  ;;  %v711_v14 = vld [vmem:[%s4998_s16 + $0x78] sm:$0xff] }
  0x16   : > { %916 = vperm.xlu1 %4892, %v814_v4   ;;  %910 = vperm.xlu0 %4891, %v812_v5   ;;  %vm743_vm4 = vcmp.gt.f32.partialorder %v698_v8, 0.5  ;;  %vm745_vm5 = vcmp.gt.f32.partialorder %v700_v9, 0.5  ;;  %v813_v10 = vsel %vm768_vm3, 1, %v4922_v0  ;;  %v712_v15 = vld [vmem:[%s4998_s16 + $0x80] sm:$0xff]  ;;  %vm755_vm6 = vcmp.gt.f32.partialorder %v710_v13, 0.5  ;;  %v725_v19 = vld [vmem:[%s4998_s16 + $0xe8] sm:$0xff] }
  0x17   : > { %841 = vperm.xlu2 %4893, %v789_v6   ;;  %v788_v11 = vsel %vm743_vm4, 1, %v4922_v0  ;;  %v790_v12 = vsel %vm745_vm5, 1, %v4922_v0  ;;  %vm756_vm7 = vcmp.gt.f32.partialorder %v711_v14, 0.5  ;;  %vm757_vm8 = vcmp.gt.f32.partialorder %v712_v15, 0.5  ;;  %v726_v20 = vld [vmem:[%s4998_s16 + $0xf0] sm:$0xff]  ;;  %v735_v25 = vld [vmem:[%s4998_s16 + $0x138] sm:$0xff] }
  0x18   : > { %v800_v16 = vsel %vm755_vm6, 1, %v4922_v0  ;;  %v801_v17 = vsel %vm756_vm7, 1, %v4922_v0  ;;  %v802_v18 = vsel %vm757_vm8, 1, %v4922_v0  ;;  %v734_v21 = vld [vmem:[%s4998_s16 + $0x130] sm:$0xff]  ;;  %vm770_vm9 = vcmp.gt.f32.partialorder %v725_v19, 0.5  ;;  %v736_v26 = vld [vmem:[%s4998_s16 + $0x140] sm:$0xff] }
  0x19   : > { %vm771_vm10 = vcmp.gt.f32.partialorder %v726_v20, 0.5  ;;  %vm779_vm11 = vcmp.gt.f32.partialorder %v734_v21, 0.5  ;;  %v815_v22 = vsel %vm770_vm9, 1, %v4922_v0  ;;  %v701_v27 = vld [vmem:[%s4998_s16 + $0x28] sm:$0xff]  ;;  %vm780_vm12 = vcmp.gt.f32.partialorder %v735_v25, 0.5  ;;  %v702_v31 = vld [vmem:[%s4998_s16 + $0x30] sm:$0xff] }
  0x1a   : > { %v816_v23 = vsel %vm771_vm10, 1, %v4922_v0  ;;  %v824_v24 = vsel %vm779_vm11, 1, %v4922_v0  ;;  %vm781_vm13 = vcmp.gt.f32.partialorder %v736_v26, 0.5  ;;  %vm746_vm14 = vcmp.gt.f32.partialorder %v701_v27, 0.5  ;;  %v713_v32 = vld [vmem:[%s4998_s16 + $0x88] sm:$0xff]  ;;  %v714_v33 = vld [vmem:[%s4998_s16 + $0x90] sm:$0xff] }
  0x1b   : > { %v825_v28 = vsel %vm780_vm12, 1, %v4922_v0  ;;  %v826_v29 = vsel %vm781_vm13, 1, %v4922_v0  ;;  %v791_v30 = vsel %vm746_vm14, 1, %v4922_v0  ;;  %vm747_vm15 = vcmp.gt.f32.partialorder %v702_v31, 0.5  ;;  %v727_v37 = vld [vmem:[%s4998_s16 + $0xf8] sm:$0xff]  ;;  %v728_v38 = vld [vmem:[%s4998_s16 + $0x100] sm:$0xff] }
  0x1c   : > { %vm758_vm0 = vcmp.gt.f32.partialorder %v713_v32, 0.5  ;;  %vm759_vm1 = vcmp.gt.f32.partialorder %v714_v33, 0.5  ;;  %v792_v34 = vsel %vm747_vm15, 1, %v4922_v0  ;;  %v737_v39 = vld [vmem:[%s4998_s16 + $0x148] sm:$0xff]  ;;  %vm772_vm2 = vcmp.gt.f32.partialorder %v727_v37, 0.5  ;;  %v738_v43 = vld [vmem:[%s4998_s16 + $0x150] sm:$0xff] }
  0x1d   : > { %v803_v35 = vsel %vm758_vm0, 1, %v4922_v0  ;;  %v804_v36 = vsel %vm759_vm1, 1, %v4922_v0  ;;  %vm773_vm3 = vcmp.gt.f32.partialorder %v728_v38, 0.5  ;;  %vm782_vm4 = vcmp.gt.f32.partialorder %v737_v39, 0.5  ;;  %v703_v44 = vld [vmem:[%s4998_s16 + $0x38] sm:$0xff]  ;;  %v704_v45 = vld [vmem:[%s4998_s16 + $0x40] sm:$0xff] }
  0x1e   : > { %913 = vperm.xlu0 %4891, %v813_v10   ;;  %838 = vperm.xlu1 %4892, %v788_v11   ;;  %v817_v40 = vsel %vm772_vm2, 1, %v4922_v0  ;;  %v818_v41 = vsel %vm773_vm3, 1, %v4922_v0  ;;  %v827_v42 = vsel %vm782_vm4, 1, %v4922_v0  ;;  %vm783_vm5 = vcmp.gt.f32.partialorder %v738_v43, 0.5  ;;  %v715_v49 = vld [vmem:[%s4998_s16 + $0x98] sm:$0xff]  ;;  %v716_v50 = vld [vmem:[%s4998_s16 + $0xa0] sm:$0xff] }
  0x1f   : > { %844 = vperm.xlu2 %4893, %v790_v12   ;;  %vm748_vm6 = vcmp.gt.f32.partialorder %v703_v44, 0.5  ;;  %vm749_vm7 = vcmp.gt.f32.partialorder %v704_v45, 0.5  ;;  %v828_v46 = vsel %vm783_vm5, 1, %v4922_v0  ;;  %v729_v51 = vld [vmem:[%s4998_s16 + $0x108] sm:$0xff]  ;;  %vm760_vm8 = vcmp.gt.f32.partialorder %v715_v49, 0.5  ;;  %v730_v55 = vld [vmem:[%s4998_s16 + $0x110] sm:$0xff] }
  0x20   : > { %v793_v47 = vsel %vm748_vm6, 1, %v4922_v0  ;;  %v794_v48 = vsel %vm749_vm7, 1, %v4922_v0  ;;  %vm761_vm9 = vcmp.gt.f32.partialorder %v716_v50, 0.5  ;;  %vm774_vm10 = vcmp.gt.f32.partialorder %v729_v51, 0.5  ;;  %v739_v56 = vld [vmem:[%s4998_s16 + $0x158] sm:$0xff]  ;;  %v740_v57 = vld [vmem:[%s4998_s16 + $0x160] sm:$0xff] }
  0x21   : > { %v805_v52 = vsel %vm760_vm8, 1, %v4922_v0  ;;  %v806_v53 = vsel %vm761_vm9, 1, %v4922_v0  ;;  %v819_v54 = vsel %vm774_vm10, 1, %v4922_v0  ;;  %vm775_vm11 = vcmp.gt.f32.partialorder %v730_v55, 0.5  ;;  %v705_v62 = vld [vmem:[%s4998_s16 + $0x48] sm:$0xff]  ;;  %v706_v63 = vld [vmem:[%s4998_s16 + $0x50] sm:$0xff] }
  0x22   : > { %vm784_vm12 = vcmp.gt.f32.partialorder %v739_v56, 0.5  ;;  %vm785_vm13 = vcmp.gt.f32.partialorder %v740_v57, 0.5  ;;  %v820_v58 = vsel %vm775_vm11, 1, %v4922_v0  ;;  %v717_v1 = vld [vmem:[%s4998_s16 + $0xa8] sm:$0xff]  ;;  %vm750_vm14 = vcmp.gt.f32.partialorder %v705_v62, 0.5  ;;  %v4567_v3 = vld [vmem:[%s6116_s7 + $0xf0] sm:$0xff] }
  0x23   : > { %v829_v59 = vsel %vm784_vm12, 1, %v4922_v0  ;;  %v830_v60 = vsel %vm785_vm13, 1, %v4922_v0  ;;  %vm751_vm15 = vcmp.gt.f32.partialorder %v706_v63, 0.5  ;;  %v5074_v2 = vld [vmem:[%s5070_s24 + $0x8] sm:$0xff]   ;;  %vm762_vm0 = vcmp.gt.f32.partialorder %v717_v1, 0.5  ;;  %1757 = vmatpush.bf16.msra.mxu0 %v4567_v3  ;;  %4862 = vmatpush.bf16.msra.mxu2 %v4567_v3  ;;  %v718_v10 = vld [vmem:[%s4998_s16 + $0xb0] sm:$0xff] }
  0x24   : > { %v795_v4 = vsel %vm750_vm14, 1, %v4922_v0  ;;  %v796_v5 = vsel %vm751_vm15, 1, %v4922_v0  ;;  %v5086_v6 = vld [vmem:[%s6114_s5] ss:$0 sm:$0xff]  ;;  %v4616_v7 = vunpack.c.h.bf16 %v5074_v2  ;;  %v807_v8 = vsel %vm762_vm0, 1, %v4922_v0  ;;  %v4566_v9 = vld [vmem:[%s6116_s7 + $0xe8] sm:$0xff]  ;;  %4861 = vmatpush.bf16.msra.mxu1 %v4567_v3  ;;  %4863 = vmatpush.bf16.msra.mxu3 %v4567_v3 }
  0x25   : > { %v731_v11 = vld [vmem:[%s4998_s16 + $0x118] sm:$0xff]  ;;  %v732_v12 = vld [vmem:[%s4998_s16 + $0x120] sm:$0xff]  ;;  %vm763_vm1 = vcmp.gt.f32.partialorder %v718_v10, 0.5  ;;  %v5104_v15 = vld [vmem:[%s5070_s24 + $0x10] sm:$0xff]   ;;  %v4615_v3 = vunpack.c.l.bf16 %v5074_v2  ;;  %s4149_s21 = sshll.u32 %s6213_s11, 2 }
  0x26   : > { %874 = vperm.xlu0 %4891, %v800_v16   ;;  %877 = vperm.xlu1 %4892, %v801_v17   ;;  %v5100_v13 = vld [vmem:[%s6115_s6] ss:$0 sm:$0xff]  ;;  %v561_v14 = vmul.f32 %v5086_v6, %v4616_v7  ;;  %vm776_vm2 = vcmp.gt.f32.partialorder %v731_v11, 0.5  ;;  %vm777_vm3 = vcmp.gt.f32.partialorder %v732_v12, 0.5  ;;  %v808_v17 = vsel %vm763_vm1, 1, %v4922_v0  ;;  %v707_v25 = vld [vmem:[%s4998_s16 + $0x58] sm:$0xff]  ;;  %s6020_s25 = scalar_lea.vmem %s6117_s8, %s4149_s21 }
  0x27   : > { %880 = vperm.xlu2 %4893, %v802_v18   ;;  %1758 = vmatpush.bf16.msra.mxu0 %v4566_v9  ;;  %v4565_v16 = vld [vmem:[%s6116_s7 + $0xe0] sm:$0xff]  ;;  %v821_v18 = vsel %vm776_vm2, 1, %v4922_v0  ;;  %v4619_v20 = vunpack.c.l.bf16 %v5104_v15  ;;  %v822_v21 = vsel %vm777_vm3, 1, %v4922_v0  ;;  %vm752_vm6 = vcmp.gt.f32.partialorder %v707_v25, 0.5  ;;  %v4563_v31 = vld [vmem:[%s6116_s7 + $0xd0] sm:$0xff]  ;;  %v719_v38 = vld [vmem:[%s4998_s16 + $0xb8] sm:$0xff] }
  0x28   : > { %4865 = vmatpush.bf16.msra.mxu2 %v4566_v9  ;;  %4864 = vmatpush.bf16.msra.mxu1 %v4566_v9  ;;  %v609_v19 = vadd.f32 %v5100_v13, %v561_v14  ;;  %v708_v37 = vld [vmem:[%s4998_s16 + $0x60] sm:$0xff]  ;;  %v4562_v39 = vld [vmem:[%s6116_s7 + $0xc8] sm:$0xff]  ;;  %v5145_v43 = vld [vmem:[%s5070_s24 + $0x70] sm:$0xff]   ;;  %vm764_vm9 = vcmp.gt.f32.partialorder %v719_v38, 0.5  ;;  %v4620_v12 = vunpack.c.h.bf16 %v5104_v15 }
  0x29   : > { %4866 = vmatpush.bf16.msra.mxu3 %v4566_v9  ;;  %v562_v27 = vmul.f32 %v5086_v6, %v4619_v20  ;;  %vm753_vm8 = vcmp.gt.f32.partialorder %v708_v37, 0.5  ;;  %v4827_v44 = vld [vmem:[%s5070_s24 + $0x68] sm:$0xff]   ;;  %v5149_v45 = vld [vmem:[%s5070_s24 + $0x98] sm:$0xff]   ;;  %v4561_v50 = vld [vmem:[%s6116_s7 + $0xc0] sm:$0xff] }
  0x2a   : > { %v654_v26 = vmax.f32 %v609_v19, 0.0  ;;  %v4663_v49 = vunpack.c.l.bf16 %v4827_v44  ;;  %v733_v56 = vld [vmem:[%s4998_s16 + $0x128] sm:$0xff]  ;;  %v1128_v57 = vld [vmem:[%s5109_s20 + $0x10] sm:$0xff]  ;;  %v4664_v63 = vunpack.c.h.bf16 %v4827_v44  ;;  %v563_v15 = vmul.f32 %v5086_v6, %v4620_v12 }
  0x2b   : > { %1759 = vmatpush.bf16.msra.mxu0 %v4565_v16  ;;  %vm778_vm12 = vcmp.gt.f32.partialorder %v733_v56, 0.5  ;;  %vm1133_vm13 = vcmp.gt.f32.partialorder %v1128_v57, 0.5 }
  0x2c   : > { %4868 = vmatpush.bf16.msra.mxu2 %v4565_v16  ;;  %4867 = vmatpush.bf16.msra.mxu1 %v4565_v16  ;;  %v1138_v10 = vsel %vm1133_vm13, 1, %v4922_v0  ;;  %v585_v14 = vmul.f32 %v5086_v6, %v4664_v63  ;;  %v611_v38 = vadd.f32 %v5100_v13, %v563_v15 }
  0x2d   : > { %4869 = vmatpush.bf16.msra.mxu3 %v4565_v16  ;;  %v697_v16 = vld [vmem:[%s4998_s16 + $0x8] sm:$0xff] }
  0x2e   : > { %919 = vperm.xlu0 %4891, %v815_v22   ;;  %922 = vperm.xlu1 %4892, %v816_v23   ;;  %v1126_v22 = vld [vmem:[%s5109_s20] sm:$0xff]  ;;  %v1127_v23 = vld [vmem:[%s5109_s20 + $0x8] sm:$0xff]  ;;  %vm742_vm1 = vcmp.gt.f32.partialorder %v697_v16, 0.5 }
  0x2f   : > { %946 = vperm.xlu2 %4893, %v824_v24   ;;  %v4564_v24 = vld [vmem:[%s6116_s7 + $0xd8] sm:$0xff]  ;;  %vm1131_vm4 = vcmp.gt.f32.partialorder %v1126_v22, 0.5  ;;  %vm1132_vm5 = vcmp.gt.f32.partialorder %v1127_v23, 0.5 }
  0x30   : > { %1760 = vmatpush.bf16.msra.mxu0 %v4564_v24  ;;  %4871 = vmatpush.bf16.msra.mxu2 %v4564_v24  ;;  %v1137_v33 = vsel %vm1132_vm5, 1, %v4922_v0 }
  0x31   : > { %4870 = vmatpush.bf16.msra.mxu1 %v4564_v24  ;;  %4872 = vmatpush.bf16.msra.mxu3 %v4564_v24 }
  0x34   : > { %1761 = vmatpush.bf16.msra.mxu0 %v4563_v31  ;;  %4874 = vmatpush.bf16.msra.mxu2 %v4563_v31 }
  0x35   : > { %4873 = vmatpush.bf16.msra.mxu1 %v4563_v31  ;;  %4875 = vmatpush.bf16.msra.mxu3 %v4563_v31 }
  0x36   : > { %949 = vperm.xlu0 %4891, %v825_v28   ;;  %952 = vperm.xlu1 %4892, %v826_v29   ;;  %v5127_v28 = vld [vmem:[%s5070_s24 + $0x40] sm:$0xff]  }
  0x37   : > { %847 = vperm.xlu2 %4893, %v791_v30   ;;  %v1136_v30 = vsel %vm1131_vm4, 1, %v4922_v0 }
  0x38   : > { %1762 = vmatpush.bf16.msra.mxu0 %v4562_v39  ;;  %4877 = vmatpush.bf16.msra.mxu2 %v4562_v39 }
  0x39   : > { %4876 = vmatpush.bf16.msra.mxu1 %v4562_v39  ;;  %4878 = vmatpush.bf16.msra.mxu3 %v4562_v39 }
  0x3c   : > { %1763 = vmatpush.bf16.msra.mxu0 %v4561_v50  ;;  %4880 = vmatpush.bf16.msra.mxu2 %v4561_v50 }
  0x3d   : > { %4879 = vmatpush.bf16.msra.mxu1 %v4561_v50  ;;  %4881 = vmatpush.bf16.msra.mxu3 %v4561_v50 }
  0x3e   : > { %850 = vperm.xlu0 %4891, %v792_v34   ;;  %883 = vperm.xlu1 %4892, %v803_v35   ;;  %v610_v34 = vadd.f32 %v5100_v13, %v562_v27  ;;  %v4643_v35 = vunpack.c.l.bf16 %v5127_v28  ;;  %v5185_v27 = vld [vmem:[%s5070_s24 + $0x48] sm:$0xff]  }
  0x3f   : > { %886 = vperm.xlu2 %4893, %v804_v36   ;;  %v797_v36 = vsel %vm752_vm6, 1, %v4922_v0  ;;  %v4647_v39 = vunpack.c.l.bf16 %v5185_v27 }
  0x41   : > { %v576_v50 = vmul.f32 %v5086_v6, %v4647_v39 }
  0x43   : > { %v624_v63 = vadd.f32 %v5100_v13, %v576_v50 }
  0x46   : > { %925 = vperm.xlu0 %4891, %v817_v40   ;;  %928 = vperm.xlu1 %4892, %v818_v41   ;;  %v720_v40 = vld [vmem:[%s4998_s16 + $0xc0] sm:$0xff]  ;;  %v655_v41 = vmax.f32 %v610_v34, 0.0  ;;  %v1129_v34 = vld [vmem:[%s5109_s20 + $0x18] sm:$0xff] }
  0x47   : > { %955 = vperm.xlu2 %4893, %v827_v42   ;;  %v574_v42 = vmul.f32 %v5086_v6, %v4643_v35  ;;  %vm765_vm10 = vcmp.gt.f32.partialorder %v720_v40, 0.5  ;;  %v787_v40 = vsel %vm742_vm1, 1, %v4922_v0  ;;  %vm1134_vm6 = vcmp.gt.f32.partialorder %v1129_v34, 0.5 }
  0x48   : > { %v810_v55 = vsel %vm765_vm10, 1, %v4922_v0 }
  0x4e   : > { %958 = vperm.xlu0 %4891, %v828_v46   ;;  %853 = vperm.xlu1 %4892, %v793_v47   ;;  %v798_v47 = vsel %vm753_vm8, 1, %v4922_v0 }
  0x4f   : > { %856 = vperm.xlu2 %4893, %v794_v48   ;;  %v4667_v48 = vunpack.c.l.bf16 %v5145_v43 }
  0x56   : > { %889 = vperm.xlu0 %4891, %v805_v52   ;;  %892 = vperm.xlu1 %4892, %v806_v53   ;;  %v809_v52 = vsel %vm764_vm9, 1, %v4922_v0  ;;  %v622_v53 = vadd.f32 %v5100_v13, %v574_v42 }
  0x57   : > { %931 = vperm.xlu2 %4893, %v819_v54   ;;  %v4687_v54 = vunpack.c.l.bf16 %v5149_v45 }
  0x58   : > { %v667_v61 = vmax.f32 %v622_v53, 0.0  ;;  %v1139_v53 = vsel %vm1134_vm6, 1, %v4922_v0 }
  0x59   : > { %v596_v62 = vmul.f32 %v5086_v6, %v4687_v54  ;;  %v4668_v54 = vunpack.c.h.bf16 %v5145_v43 }
  0x5b   : > { %v644_v11 = vadd.f32 %v5100_v13, %v596_v62 }
  0x5d   : > { %v689_v22 = vmax.f32 %v644_v11, 0.0 }
  0x5e   : > { %934 = vperm.xlu0 %4891, %v820_v58   ;;  %961 = vperm.xlu1 %4892, %v829_v59   ;;  %v709_v58 = vld [vmem:[%s4998_s16 + $0x68] sm:$0xff]  ;;  %v586_v59 = vmul.f32 %v5086_v6, %v4667_v48  ;;  %v5205_v48 = vld [vmem:[%s5070_s24 + $0x78] sm:$0xff]  }
  0x5f   : > { %964 = vperm.xlu2 %4893, %v830_v60   ;;  %v584_v60 = vmul.f32 %v5086_v6, %v4663_v49  ;;  %vm754_vm14 = vcmp.gt.f32.partialorder %v709_v58, 0.5  ;;  %v656_v49 = vmax.f32 %v611_v38, 0.0  ;;  %v4671_v58 = vunpack.c.l.bf16 %v5205_v48 }
  0x60   : > { %v799_v2 = vsel %vm754_vm14, 1, %v4922_v0 }
  0x61   : > { %v632_v7 = vadd.f32 %v5100_v13, %v584_v60 }
  0x63   : > { %v677_v20 = vmax.f32 %v632_v7, 0.0 }
  0x66   : > { %859 = vperm.xlu0 %4891, %v795_v4   ;;  %862 = vperm.xlu1 %4892, %v796_v5   ;;  %v823_v4 = vsel %vm778_vm12, 1, %v4922_v0  ;;  %v634_v5 = vadd.f32 %v5100_v13, %v586_v59 }
  0x67   : > { %895 = vperm.xlu2 %4893, %v807_v8   ;;  %v721_v8 = vld [vmem:[%s4998_s16 + $0xc8] sm:$0xff] }
  0x68   : > { %vm766_vm0 = vcmp.gt.f32.partialorder %v721_v8, 0.5  ;;  %v679_v19 = vmax.f32 %v634_v5, 0.0  ;;  %v588_v5 = vmul.f32 %v5086_v6, %v4671_v58 }
  0x69   : > { %v811_v25 = vsel %vm766_vm0, 1, %v4922_v0 }
  0x6e   : > { %898 = vperm.xlu0 %4891, %v808_v17   ;;  %937 = vperm.xlu1 %4892, %v821_v18   ;;  %v696_v17 = vld [vmem:[%s4998_s16] sm:$0xff]  ;;  %v560_v18 = vmul.f32 %v5086_v6, %v4615_v3  ;;  %s4148_s16 = sshll.u32 %s6213_s11, 3  ;;  %s4150_s11 = sshll.u32 %s6215_s10, 1 }
  0x6f   : > { %940 = vperm.xlu2 %4893, %v822_v21   ;;  %v4821_v21 = vld [vmem:[%s5070_s24 + $0x38] sm:$0xff]   ;;  %vm741_vm2 = vcmp.gt.f32.partialorder %v696_v17, 0.5  ;;  %s5216_s17 = scalar_lea.vmem %s6113_s4, %s4148_s16  ;;  %v636_v17 = vadd.f32 %v5100_v13, %v588_v5  ;;  %s462_s27 = scalar_lea.vmem %s6118_s9, %s4150_s11 }
  0x70   : > { %v4639_v31 = vunpack.c.l.bf16 %v4821_v21  ;;  %v4640_v35 = vunpack.c.h.bf16 %v4821_v21  ;;  %v786_v37 = vsel %vm741_vm2, 1, %v4922_v0  ;;  %v3449_v3 = vld [vmem:[%s5216_s17] sm:$0xff]  ;;  %v3454_v58 = vld [vmem:[%s5216_s17 + $0x28] sm:$0xff] }
  0x71   : > { %v842_v29 = vpop.permute.xlu2 %841 }
  0x72   : > { %vm969_vm7 = vcmp.eq.s32.totalorder %v842_v29, 1  ;;  %v572_v42 = vmul.f32 %v5086_v6, %v4639_v31 }
  0x73   : > { %v1014_v32 = vsel %vm969_vm7, %v654_v26, 0.0  ;;  %v633_v26 = vadd.f32 %v5100_v13, %v585_v14  ;;  %v5233_v14 = vld [vmem:[%s5070_s24 + $0x20] sm:$0xff]  }
  0x74   : > { %1059 = vst [vmem:[#allocation2 + $0x18] sm:$0xff] %v1014_v32  ;;  %v620_v57 = vadd.f32 %v5100_v13, %v572_v42  ;;  %v4552_v42 = vld [vmem:[%s6116_s7 + $0x78] sm:$0xff] }
  0x75   : > { %v678_v44 = vmax.f32 %v633_v26, 0.0  ;;  %v3451_v26 = vld [vmem:[%s5216_s17 + $0x10] sm:$0xff]  ;;  %2392 = vmatpush.bf16.msrb.mxu0 %v4552_v42 }
  0x76   : > { %1142 = vperm.xlu0 %4891, %v1136_v30   ;;  %1145 = vperm.xlu1 %4892, %v1137_v33   ;;  %v608_v30 = vadd.f32 %v5100_v13, %v560_v18  ;;  %v665_v7 = vmax.f32 %v620_v57, 0.0  ;;  %v4688_v18 = vunpack.c.h.bf16 %v5149_v45  ;;  %v4627_v45 = vunpack.c.l.bf16 %v5233_v14  ;;  %v3453_v57 = vld [vmem:[%s5216_s17 + $0x20] sm:$0xff] }
  0x77   : > { %865 = vperm.xlu2 %4893, %v797_v36  }
  0x78   : > { %v597_v34 = vmul.f32 %v5086_v6, %v4688_v18 }
  0x79   : > { %v845_v46 = vpop.permute.xlu2 %844 }
  0x7a   : > { %vm970_vm11 = vcmp.eq.s32.totalorder %v845_v46, 1  ;;  %v653_v46 = vmax.f32 %v608_v30, 0.0 }
  0x7b   : > { %v1015_v51 = vsel %vm970_vm11, %v655_v41, 0.0  ;;  %v1130_v41 = vld [vmem:[%s5109_s20 + $0x20] sm:$0xff] }
  0x7c   : > { %1060 = vst [vmem:[#allocation2 + $0x20] sm:$0xff] %v1015_v51  ;;  %vm1135_vm7 = vcmp.gt.f32.partialorder %v1130_v41, 0.5  ;;  %v4576_v41 = vld [vmem:[%s6116_s7 + $0x138] sm:$0xff] }
  0x7d   : > { %v1140_v62 = vsel %vm1135_vm7, 1, %v4922_v0  ;;  %1879 = vmatpush.bf16.msrb.mxu1 %v4576_v41  ;;  %v4582_v41 = vld [vmem:[%s6116_s7 + $0x168] sm:$0xff] }
  0x7e   : > { %868 = vperm.xlu0 %4891, %v798_v47   ;;  %901 = vperm.xlu1 %4892, %v809_v52   ;;  %v573_v47 = vmul.f32 %v5086_v6, %v4640_v35  ;;  %v5250_v35 = vld [vmem:[%s5070_s24 + $0x18] sm:$0xff]  }
  0x7f   : > { %904 = vperm.xlu2 %4893, %v810_v55   ;;  %v5211_v55 = vld [vmem:[%s5070_s24 + $0xa0] sm:$0xff]  }
  0x80   : > { %v621_v43 = vadd.f32 %v5100_v13, %v573_v47  ;;  %v4691_v15 = vunpack.c.l.bf16 %v5211_v55  ;;  %v4623_v47 = vunpack.c.l.bf16 %v5250_v35 }
  0x81   : > { %v881_v1 = vpop.permute.xlu2 %880 }
  0x82   : > { %vm982_vm15 = vcmp.eq.s32.totalorder %v881_v1, 1  ;;  %v4692_v1 = vunpack.c.h.bf16 %v5211_v55  ;;  %v666_v8 = vmax.f32 %v621_v43, 0.0  ;;  %v598_v38 = vmul.f32 %v5086_v6, %v4691_v15  ;;  %v3456_v15 = vld [vmem:[%s5216_s17 + $0x38] sm:$0xff] }
  0x83   : > { %v1027_v9 = vsel %vm982_vm15, %v667_v61, 0.0  ;;  %v1264_v31 = vld [vmem:[#allocation2 + $0x1a] sm:$0xff] }
  0x84   : > { %1072 = vst [vmem:[#allocation2 + $0x80] sm:$0xff] %v1027_v9  ;;  %v669_v9 = vmax.f32 %v624_v63, 0.0  ;;  %v599_v0 = vmul.f32 %v5086_v6, %v4692_v1  ;;  %v646_v55 = vadd.f32 %v5100_v13, %v598_v38 }
  0x86   : > { %943 = vperm.xlu0 %4891, %v823_v4   ;;  %1148 = vperm.xlu1 %4892, %v1138_v10   ;;  %v587_v4 = vmul.f32 %v5086_v6, %v4668_v54  ;;  %v4584_v10 = vld [vmem:[%s6116_s7 + $0x178] sm:$0xff]  ;;  %v691_v5 = vmax.f32 %v646_v55, 0.0 }
  0x87   : > { %871 = vperm.xlu2 %4893, %v799_v2   ;;  %2002 = vmatpush.bf16.msrb.mxu2 %v4584_v10 }
  0x88   : > { %v917_v23 = vpop.permute.xlu1 %916  ;;  %v911_v24 = vpop.permute.xlu0 %910  ;;  %v635_v2 = vadd.f32 %v5100_v13, %v587_v4 }
  0x89   : > { %vm994_vm3 = vcmp.eq.s32.totalorder %v917_v23, 1  ;;  %vm992_vm4 = vcmp.eq.s32.totalorder %v911_v24, 1  ;;  %v947_v29 = vpop.permute.xlu2 %946 }
  0x8a   : > { %v1039_v32 = vsel %vm994_vm3, %v679_v19, 0.0  ;;  %v1037_v33 = vsel %vm992_vm4, %v677_v20, 0.0  ;;  %vm1004_vm5 = vcmp.eq.s32.totalorder %v947_v29, 1  ;;  %v647_v29 = vadd.f32 %v5100_v13, %v599_v0 }
  0x8b   : > { %1084 = vst [vmem:[#allocation2 + $0xe0] sm:$0xff] %v1039_v32  ;;  %v1049_v36 = vsel %vm1004_vm5, %v689_v22, 0.0  ;;  %v3452_v32 = vld [vmem:[%s5216_s17 + $0x18] sm:$0xff] }
  0x8c   : > { %1082 = vst [vmem:[#allocation2 + $0xd0] sm:$0xff] %v1037_v33  ;;  %v692_v39 = vmax.f32 %v647_v29, 0.0 }
  0x8d   : > { %1094 = vst [vmem:[#allocation2 + $0x130] sm:$0xff] %v1049_v36  ;;  %v680_v36 = vmax.f32 %v635_v2, 0.0 }
  0x8e   : > { %907 = vperm.xlu0 %4891, %v811_v25   ;;  %832 = vperm.xlu1 %4892, %v786_v37   ;;  %v3450_v25 = vld [vmem:[%s5216_s17 + $0x8] sm:$0xff]  ;;  %v681_v37 = vmax.f32 %v636_v17, 0.0  ;;  %v4672_v17 = vunpack.c.h.bf16 %v5205_v48 }
  0x8f   : > { %835 = vperm.xlu2 %4893, %v787_v40   ;;  %v566_v40 = vmul.f32 %v5086_v6, %v4627_v45  ;;  %v3458_v45 = vld [vmem:[%s5216_s17 + $0x48] sm:$0xff] }
  0x90   : > { %v914_v51 = vpop.permute.xlu0 %913  ;;  %v839_v52 = vpop.permute.xlu1 %838 }
  0x91   : > { %vm993_vm8 = vcmp.eq.s32.totalorder %v914_v51, 1  ;;  %v848_v56 = vpop.permute.xlu2 %847  ;;  %vm968_vm9 = vcmp.eq.s32.totalorder %v839_v52, 1  ;;  %v645_v51 = vadd.f32 %v5100_v13, %v597_v34  ;;  %v4644_v52 = vunpack.c.h.bf16 %v5127_v28  ;;  %v3455_v28 = vld [vmem:[%s5216_s17 + $0x30] sm:$0xff] }
  0x92   : > { %v1038_v59 = vsel %vm993_vm8, %v678_v44, 0.0  ;;  %vm971_vm10 = vcmp.eq.s32.totalorder %v848_v56, 1  ;;  %v1013_v60 = vsel %vm968_vm9, %v653_v46, 0.0  ;;  %v4551_v34 = vld [vmem:[%s6116_s7 + $0x70] sm:$0xff] }
  0x93   : > { %1083 = vst [vmem:[#allocation2 + $0xd8] sm:$0xff] %v1038_v59  ;;  %v1016_v61 = vsel %vm971_vm10, %v656_v49, 0.0  ;;  %v5263_v49 = vld [vmem:[%s5070_s24 + $0x80] sm:$0xff]   ;;  %v614_v59 = vadd.f32 %v5100_v13, %v566_v40  ;;  %v575_v1 = vmul.f32 %v5086_v6, %v4644_v52  ;;  %v690_v4 = vmax.f32 %v645_v51, 0.0  ;;  %2393 = vmatpush.bf16.msrb.mxu0 %v4551_v34 }
  0x94   : > { %1061 = vst [vmem:[#allocation2 + $0x28] sm:$0xff] %v1016_v61  ;;  %v4624_v52 = vunpack.c.h.bf16 %v5250_v35  ;;  %v3461_v35 = vld [vmem:[%s5216_s17 + $0x60] sm:$0xff] }
  0x95   : > { %1058 = vst [vmem:[#allocation2 + $0x10] sm:$0xff] %v1013_v60  ;;  %v4676_v60 = vunpack.c.h.bf16 %v5263_v49 }
  0x96   : > { %1151 = vperm.xlu0 %4891, %v1139_v53   ;;  %1154 = vperm.xlu1 %4892, %v1140_v62   ;;  %v564_v62 = vmul.f32 %v5086_v6, %v4623_v47  ;;  %v5314_v47 = vld [vmem:[%s5070_s24 + $0x50] sm:$0xff]  }
  0x97   : > { %3496 = vperm.xlu2 %4893, %v3449_v3   ;;  %v4583_v3 = vld [vmem:[%s6116_s7 + $0x170] sm:$0xff] }
  0x98   : > { %v875_v11 = vpop.permute.xlu0 %874  ;;  %v878_v12 = vpop.permute.xlu1 %877  ;;  %2003 = vmatpush.bf16.msrb.mxu2 %v4583_v3 }
  0x99   : > { %vm980_vm11 = vcmp.eq.s32.totalorder %v875_v11, 1  ;;  %v887_v16 = vpop.permute.xlu2 %886  ;;  %vm981_vm12 = vcmp.eq.s32.totalorder %v878_v12, 1  ;;  %v612_v11 = vadd.f32 %v5100_v13, %v564_v62  ;;  %v509_v12 = vld [vmem:[%s5070_s24 + $0xb0] sm:$0xf] }
  0x9a   : > { %v1025_v19 = vsel %vm980_vm11, %v665_v7, 0.0  ;;  %vm984_vm13 = vcmp.eq.s32.totalorder %v887_v16, 1  ;;  %v1026_v20 = vsel %vm981_vm12, %v666_v8, 0.0  ;;  %v1287_v21 = vld [vmem:[#allocation2 + $0xd2] sm:$0xff]  ;;  %v1288_v22 = vld [vmem:[#allocation2 + $0xda] sm:$0xff]  ;;  %v659_v7 = vmax.f32 %v614_v59, 0.0 }
  0x9b   : > { %1070 = vst [vmem:[#allocation2 + $0x70] sm:$0xff] %v1025_v19  ;;  %v1029_v23 = vsel %vm984_vm13, %v669_v9, 0.0  ;;  %v5238_v24 = vpack.c.bf16 %v1288_v22, %v1287_v21  ;;  %v591_v8 = vmul.f32 %v5086_v6, %v4676_v60  ;;  %v4544_v9 = vld [vmem:[%s6116_s7 + $0x38] sm:$0xff]  ;;  %v623_v16 = vadd.f32 %v5100_v13, %v575_v1 }
  0x9c   : > { %1074 = vst [vmem:[#allocation2 + $0x90] sm:$0xff] %v1029_v23  ;;  %v1263_v30 = vld [vmem:[#allocation2 + $0x12] sm:$0xff]  ;;  %2269 = vmatpush.bf16.msrb.mxu3 %v4544_v9  ;;  %v4675_v21 = vunpack.c.l.bf16 %v5263_v49  ;;  %v3457_v23 = vld [vmem:[%s5216_s17 + $0x40] sm:$0xff]  ;;  %2004 = vmatpush.bf16.msrb.mxu2 %v4582_v41  ;;  %v565_v1 = vmul.f32 %v5086_v6, %v4624_v52  ;;  %v4550_v9 = vld [vmem:[%s6116_s7 + $0x68] sm:$0xff] }
  0x9d   : > { %6142 = vst [vmem:[#allocation3_spill] sm:$0xff] %v5238_v24  ;;  %v5245_v33 = vpack.c.bf16 %v1264_v31, %v1263_v30  ;;  %1824 = vmatmul.bf16.vlgmr.msra.gmra.mxu2 %v5238_v24  ;;  %v589_v30 = vmul.f32 %v5086_v6, %v4672_v17  ;;  %v5298_v31 = vld [vmem:[%s5070_s24 + $0xa8] sm:$0xff]   ;;  %v4543_v49 = vld [vmem:[%s6116_s7 + $0x30] sm:$0xff]  ;;  %v3460_v59 = vld [vmem:[%s5216_s17 + $0x58] sm:$0xff]  ;;  %v4648_v17 = vunpack.c.h.bf16 %v5185_v27  ;;  %2394 = vmatpush.bf16.msrb.mxu0 %v4550_v9 }
  0x9e   : > { %1071 = vst [vmem:[#allocation2 + $0x78] sm:$0xff] %v1026_v20  ;;  %3501 = vperm.xlu0 %4891, %v3450_v25   ;;  %3506 = vperm.xlu1 %4892, %v3451_v26   ;;  %v639_v25 = vadd.f32 %v5100_v13, %v591_v8  ;;  %v554_v26 = vunpack.c.l.bf16 %v509_v12  ;;  %v590_v38 = vmul.f32 %v5086_v6, %v4675_v21  ;;  %v4574_v8 = vld [vmem:[%s6116_s7 + $0x128] sm:$0xff]  ;;  %v5341_v12 = vld [vmem:[%s5070_s24 + $0x90] sm:$0xff]  }
  0x9f   : > { %1764 = vmatmul.bf16.vlgmr.msra.gmra.mxu0 %v5245_v33  ;;  %3511 = vperm.xlu2 %4893, %v3452_v32   ;;  %v4575_v32 = vld [vmem:[%s6116_s7 + $0x130] sm:$0xff]  ;;  %v637_v51 = vadd.f32 %v5100_v13, %v589_v30  ;;  %v4683_v27 = vunpack.c.l.bf16 %v5341_v12 }
  0xa0   : > { %v920_v44 = vpop.permute.xlu0 %919  ;;  %v923_v46 = vpop.permute.xlu1 %922  ;;  %v602_v40 = vmul.f32 %v5086_v6, %v554_v26  ;;  %1880 = vmatpush.bf16.msrb.mxu1 %v4575_v32  ;;  %2270 = vmatpush.bf16.msrb.mxu3 %v4543_v49  ;;  %v3463_v26 = vld [vmem:[%s5216_s17 + $0x70] sm:$0xff]  ;;  %v3464_v32 = vld [vmem:[%s5216_s17 + $0x78] sm:$0xff] }
  0xa1   : > { %vm995_vm14 = vcmp.eq.s32.totalorder %v920_v44, 1  ;;  %v956_v50 = vpop.permute.xlu2 %955  ;;  %vm996_vm15 = vcmp.eq.s32.totalorder %v923_v46, 1  ;;  %v4695_v46 = vunpack.c.l.bf16 %v5298_v31  ;;  %v682_v3 = vmax.f32 %v637_v51, 0.0  ;;  %v5371_v51 = vld [vmem:[%s5070_s24 + $0x28] sm:$0xff]  }
  0xa2   : > { %v1040_v53 = vsel %vm995_vm14, %v680_v36, 0.0  ;;  %vm1007_vm0 = vcmp.eq.s32.totalorder %v956_v50, 1  ;;  %v1041_v54 = vsel %vm996_vm15, %v681_v37, 0.0  ;;  %v657_v36 = vmax.f32 %v612_v11, 0.0 }
  0xa3   : > { %1085 = vst [vmem:[#allocation2 + $0xe8] sm:$0xff] %v1040_v53  ;;  %v1052_v56 = vsel %vm1007_vm0, %v692_v39, 0.0  ;;  %v668_v37 = vmax.f32 %v623_v16, 0.0  ;;  %v684_v39 = vmax.f32 %v639_v25, 0.0  ;;  %v650_v60 = vadd.f32 %v5100_v13, %v602_v40  ;;  %v3462_v25 = vld [vmem:[%s5216_s17 + $0x68] sm:$0xff] }
  0xa4   : > { %1097 = vst [vmem:[#allocation2 + $0x148] sm:$0xff] %v1052_v56  ;;  %v638_v56 = vadd.f32 %v5100_v13, %v590_v38  ;;  %v613_v16 = vadd.f32 %v5100_v13, %v565_v1  ;;  %1881 = vmatpush.bf16.msrb.mxu1 %v4574_v8  ;;  %v4581_v38 = vld [vmem:[%s6116_s7 + $0x160] sm:$0xff]  ;;  %v3467_v1 = vld [vmem:[%s5216_s17 + $0x90] sm:$0xff] }
  0xa5   : > { %v1275_v43 = vld [vmem:[#allocation2 + $0x72] sm:$0xff]  ;;  %v1276_v61 = vld [vmem:[#allocation2 + $0x7a] sm:$0xff]  ;;  %1086 = vst [vmem:[#allocation2 + $0xf0] sm:$0xff] %v1041_v54  ;;  %2005 = vmatpush.bf16.msrb.mxu2 %v4581_v38 }
  0xa6   : > { %v5274_v63 = vpack.c.bf16 %v1276_v61, %v1275_v43  ;;  %3516 = vperm.xlu0 %4891, %v3453_v57   ;;  %3521 = vperm.xlu1 %4892, %v3454_v58   ;;  %v3459_v58 = vld [vmem:[%s5216_s17 + $0x50] sm:$0xff]  ;;  %v4652_v43 = vunpack.c.h.bf16 %v5314_v47  ;;  %v658_v41 = vmax.f32 %v613_v16, 0.0  ;;  %v4541_v8 = vld [vmem:[%s6116_s7 + $0x20] sm:$0xff] }
  0xa7   : > { %3526 = vperm.xlu2 %4893, %v3455_v28   ;;  %v600_v28 = vmul.f32 %v5086_v6, %v4695_v46  ;;  %v594_v46 = vmul.f32 %v5086_v6, %v4683_v27  ;;  %v4631_v27 = vunpack.c.l.bf16 %v5371_v51 }
  0xa8   : > { %6143 = vst [vmem:[#allocation4_spill] sm:$0xff] %v5274_v63  ;;  %1794 = vmatmul.bf16.vlgmr.msra.gmra.mxu1 %v5274_v63  ;;  %v950_v0 = vpop.permute.xlu0 %949  ;;  %v953_v10 = vpop.permute.xlu1 %952 }
  0xa9   : > { %vm1005_vm1 = vcmp.eq.s32.totalorder %v950_v0, 1  ;;  %v857_v2 = vpop.permute.xlu2 %856  ;;  %vm1006_vm2 = vcmp.eq.s32.totalorder %v953_v10, 1  ;;  %v648_v11 = vadd.f32 %v5100_v13, %v600_v28 }
  0xaa   : > { %v1050_v18 = vsel %vm1005_vm1, %v690_v4, 0.0  ;;  %vm974_vm3 = vcmp.eq.s32.totalorder %v857_v2, 1  ;;  %v1051_v19 = vsel %vm1006_vm2, %v691_v5, 0.0  ;;  %v1289_v20 = vld [vmem:[#allocation2 + $0xe2] sm:$0xff]  ;;  %v683_v4 = vmax.f32 %v638_v56, 0.0 }
  0xab   : > { %1095 = vst [vmem:[#allocation2 + $0x138] sm:$0xff] %v1050_v18  ;;  %v1019_v22 = vsel %vm974_vm3, %v659_v7, 0.0  ;;  %v695_v5 = vmax.f32 %v650_v60, 0.0  ;;  %v579_v7 = vmul.f32 %v5086_v6, %v4652_v43  ;;  %v693_v40 = vmax.f32 %v648_v11, 0.0  ;;  %v3465_v60 = vld [vmem:[%s5216_s17 + $0x80] sm:$0xff]  ;;  %v3466_v43 = vld [vmem:[%s5216_s17 + $0x88] sm:$0xff] }
  0xac   : > { %1064 = vst [vmem:[#allocation2 + $0x40] sm:$0xff] %v1019_v22  ;;  %v1290_v29 = vld [vmem:[#allocation2 + $0xea] sm:$0xff]  ;;  %v4651_v22 = vunpack.c.l.bf16 %v5314_v47 }
  0xad   : > { %1096 = vst [vmem:[#allocation2 + $0x140] sm:$0xff] %v1051_v19  ;;  %v5294_v48 = vpack.c.bf16 %v1290_v29, %v1289_v20  ;;  %v1265_v20 = vld [vmem:[#allocation2 + $0x22] sm:$0xff]  ;;  %v627_v29 = vadd.f32 %v5100_v13, %v579_v7 }
  0xae   : > { %3531 = vperm.xlu0 %4891, %v3456_v15   ;;  %3536 = vperm.xlu1 %4892, %v3457_v23   ;;  %v4549_v7 = vld [vmem:[%s6116_s7 + $0x60] sm:$0xff] }
  0xaf   : > { %6144 = vst [vmem:[#allocation5_spill] sm:$0xff] %v5294_v48  ;;  %1829 = vmatmul.bf16.gmra.mxu2 %v5294_v48  ;;  %3541 = vperm.xlu2 %4893, %v3458_v45   ;;  %v1231_v48 = vld [vmem:[#allocation2 + $0x79] sm:$0xff] }
  0xb0   : > { %v851_v42 = vpop.permute.xlu0 %850  ;;  %v884_v44 = vpop.permute.xlu1 %883  ;;  %2395 = vmatpush.bf16.msrb.mxu0 %v4549_v7 }
  0xb1   : > { %vm972_vm4 = vcmp.eq.s32.totalorder %v851_v42, 1  ;;  %v932_v50 = vpop.permute.xlu2 %931  ;;  %vm983_vm5 = vcmp.eq.s32.totalorder %v884_v44, 1  ;;  %v578_v42 = vmul.f32 %v5086_v6, %v4651_v22  ;;  %v672_v44 = vmax.f32 %v627_v29, 0.0 }
  0xb2   : > { %v1017_v53 = vsel %vm972_vm4, %v657_v36, 0.0  ;;  %vm999_vm6 = vcmp.eq.s32.totalorder %v932_v50, 1  ;;  %v1028_v54 = vsel %vm983_vm5, %v668_v37, 0.0  ;;  %v1299_v55 = vld [vmem:[#allocation2 + $0x132] sm:$0xff]  ;;  %v577_v36 = vmul.f32 %v5086_v6, %v4648_v17  ;;  %v5358_v37 = vld [vmem:[%s5070_s24 + $0x88] sm:$0xff]  }
  0xb3   : > { %1062 = vst [vmem:[#allocation2 + $0x30] sm:$0xff] %v1017_v53  ;;  %v1044_v57 = vsel %vm999_vm6, %v684_v39, 0.0  ;;  %v4542_v39 = vld [vmem:[%s6116_s7 + $0x28] sm:$0xff]  ;;  %v4679_v50 = vunpack.c.l.bf16 %v5358_v37  ;;  %v4628_v22 = vunpack.c.h.bf16 %v5233_v14 }
  0xb4   : > { %1089 = vst [vmem:[#allocation2 + $0x108] sm:$0xff] %v1044_v57  ;;  %v1300_v61 = vld [vmem:[#allocation2 + $0x13a] sm:$0xff]  ;;  %2271 = vmatpush.bf16.msrb.mxu3 %v4542_v39  ;;  %v625_v53 = vadd.f32 %v5100_v13, %v577_v36 }
  0xb5   : > { %1073 = vst [vmem:[#allocation2 + $0x88] sm:$0xff] %v1028_v54  ;;  %v5328_v62 = vpack.c.bf16 %v1300_v61, %v1299_v55  ;;  %v4696_v54 = vunpack.c.h.bf16 %v5298_v31  ;;  %v642_v61 = vadd.f32 %v5100_v13, %v594_v46  ;;  %v3469_v36 = vld [vmem:[%s5216_s17 + $0xa0] sm:$0xff]  ;;  %v5418_v46 = vld [vmem:[%s5070_s24 + $0x58] sm:$0xff]  }
  0xb6   : > { %3546 = vperm.xlu0 %4891, %v3459_v58   ;;  %3551 = vperm.xlu1 %4892, %v3460_v59   ;;  %v626_v58 = vadd.f32 %v5100_v13, %v578_v42  ;;  %v670_v9 = vmax.f32 %v625_v53, 0.0  ;;  %v4572_v53 = vld [vmem:[%s6116_s7 + $0x118] sm:$0xff] }
  0xb7   : > { %6145 = vst [vmem:[#allocation6_spill] sm:$0xff] %v5328_v62  ;;  %1854 = vmatmul.bf16.vlgmr.msra.gmra.mxu3 %v5328_v62  ;;  %3556 = vperm.xlu2 %4893, %v3461_v35   ;;  %v4632_v35 = vunpack.c.h.bf16 %v5371_v51 }
  0xb8   : > { %v926_v0 = vpop.permute.xlu0 %925  ;;  %v929_v10 = vpop.permute.xlu1 %928  ;;  %2272 = vmatpush.bf16.msrb.mxu3 %v4541_v8 }
  0xb9   : > { %vm997_vm7 = vcmp.eq.s32.totalorder %v926_v0, 1  ;;  %v965_v2 = vpop.permute.xlu2 %964  ;;  %vm998_vm8 = vcmp.eq.s32.totalorder %v929_v10, 1  ;;  %v671_v0 = vmax.f32 %v626_v58, 0.0  ;;  %v687_v10 = vmax.f32 %v642_v61, 0.0 }
  0xba   : > { %v1042_v18 = vsel %vm997_vm7, %v682_v3, 0.0  ;;  %vm1010_vm9 = vcmp.eq.s32.totalorder %v965_v2, 1  ;;  %v1043_v19 = vsel %vm998_vm8, %v683_v4, 0.0  ;;  %v1266_v21 = vld [vmem:[#allocation2 + $0x2a] sm:$0xff]  ;;  %v592_v3 = vmul.f32 %v5086_v6, %v4679_v50  ;;  %v4580_v2 = vld [vmem:[%s6116_s7 + $0x158] sm:$0xff] }
  0xbb   : > { %1087 = vst [vmem:[#allocation2 + $0xf8] sm:$0xff] %v1042_v18  ;;  %v1055_v15 = vsel %vm1010_vm9, %v695_v5, 0.0  ;;  %v5346_v23 = vpack.c.bf16 %v1266_v21, %v1265_v20  ;;  %v601_v4 = vmul.f32 %v5086_v6, %v4696_v54  ;;  %v4573_v5 = vld [vmem:[%s6116_s7 + $0x120] sm:$0xff]  ;;  %v569_v11 = vmul.f32 %v5086_v6, %v4632_v35  ;;  %2006 = vmatpush.bf16.msrb.mxu2 %v4580_v2  ;;  %v4540_v54 = vld [vmem:[%s6116_s7 + $0x18] sm:$0xff] }
  0xbc   : > { %1100 = vst [vmem:[#allocation2 + $0x160] sm:$0xff] %v1055_v15  ;;  %v1277_v45 = vld [vmem:[#allocation2 + $0x82] sm:$0xff]  ;;  %v1278_v30 = vld [vmem:[#allocation2 + $0x8a] sm:$0xff]  ;;  %v640_v18 = vadd.f32 %v5100_v13, %v592_v3  ;;  %1882 = vmatpush.bf16.msrb.mxu1 %v4573_v5  ;;  %v568_v50 = vmul.f32 %v5086_v6, %v4631_v27  ;;  %v4655_v58 = vunpack.c.l.bf16 %v5418_v46  ;;  %2273 = vmatpush.bf16.msrb.mxu3 %v4540_v54 }
  0xbd   : > { %1088 = vst [vmem:[#allocation2 + $0x100] sm:$0xff] %v1043_v19  ;;  %1769 = vmatmul.bf16.gmra.mxu0 %v5346_v23  ;;  %v5354_v34 = vpack.c.bf16 %v1278_v30, %v1277_v45  ;;  %v5401_v19 = vld [vmem:[%s5070_s24 + $0x60] sm:$0xff]   ;;  %v649_v21 = vadd.f32 %v5100_v13, %v601_v4  ;;  %v617_v38 = vadd.f32 %v5100_v13, %v569_v11  ;;  %v3471_v4 = vld [vmem:[%s5216_s17 + $0xb0] sm:$0xff] }
  0xbe   : > { %3561 = vperm.xlu0 %4891, %v3462_v25   ;;  %3566 = vperm.xlu1 %4892, %v3463_v26   ;;  %v1301_v26 = vld [vmem:[#allocation2 + $0x142] sm:$0xff]  ;;  %v4659_v14 = vunpack.c.l.bf16 %v5401_v19  ;;  %v4579_v11 = vld [vmem:[%s6116_s7 + $0x150] sm:$0xff] }
  0xbf   : > { %6146 = vst [vmem:[#allocation7_spill] sm:$0xff] %v5354_v34  ;;  %1799 = vmatmul.bf16.gmra.mxu1 %v5354_v34  ;;  %3571 = vperm.xlu2 %4893, %v3464_v32   ;;  %v3468_v32 = vld [vmem:[%s5216_s17 + $0x98] sm:$0xff]  ;;  %v662_v51 = vmax.f32 %v617_v38, 0.0  ;;  %v5485_v27 = vld [vmem:[%s5070_s24] sm:$0xff]   ;;  %v1188_v34 = vld [vmem:[#allocation2 + $0x88] sm:$0xff] }
  0xc0   : > { %v959_v47 = vpop.permute.xlu0 %958  ;;  %v854_v49 = vpop.permute.xlu1 %853  ;;  %1883 = vmatpush.bf16.msrb.mxu1 %v4572_v53  ;;  %2007 = vmatpush.bf16.msrb.mxu2 %v4579_v11  ;;  %v4612_v53 = vunpack.c.h.bf16 %v5485_v27 }
  0xc1   : > { %vm1008_vm10 = vcmp.eq.s32.totalorder %v959_v47, 1  ;;  %v896_v52 = vpop.permute.xlu2 %895  ;;  %vm973_vm11 = vcmp.eq.s32.totalorder %v854_v49, 1  ;;  %v685_v47 = vmax.f32 %v640_v18, 0.0  ;;  %v694_v49 = vmax.f32 %v649_v21, 0.0 }
  0xc2   : > { %v1053_v55 = vsel %vm1008_vm10, %v693_v40, 0.0  ;;  %vm987_vm12 = vcmp.eq.s32.totalorder %v896_v52, 1  ;;  %v1018_v56 = vsel %vm973_vm11, %v658_v41, 0.0  ;;  %v1291_v57 = vld [vmem:[#allocation2 + $0xf2] sm:$0xff]  ;;  %v3470_v41 = vld [vmem:[%s5216_s17 + $0xa8] sm:$0xff]  ;;  %v582_v52 = vmul.f32 %v5086_v6, %v4659_v14 }
  0xc3   : > { %1098 = vst [vmem:[#allocation2 + $0x150] sm:$0xff] %v1053_v55  ;;  %v1032_v59 = vsel %vm987_vm12, %v672_v44, 0.0  ;;  %v567_v44 = vmul.f32 %v5086_v6, %v4628_v22  ;;  %v4548_v55 = vld [vmem:[%s6116_s7 + $0x58] sm:$0xff] }
  0xc4   : > { %1077 = vst [vmem:[#allocation2 + $0xa8] sm:$0xff] %v1032_v59  ;;  %v1292_v28 = vld [vmem:[#allocation2 + $0xfa] sm:$0xff]  ;;  %v5434_v59 = vld [vmem:[%s5070_s24 + $0x30] sm:$0xff]   ;;  %2396 = vmatpush.bf16.msrb.mxu0 %v4548_v55 }
  0xc5   : > { %1063 = vst [vmem:[#allocation2 + $0x38] sm:$0xff] %v1018_v56  ;;  %v5382_v31 = vpack.c.bf16 %v1292_v28, %v1291_v57  ;;  %v4636_v7 = vunpack.c.h.bf16 %v5434_v59 }
  0xc6   : > { %3576 = vperm.xlu0 %4891, %v3465_v60   ;;  %3581 = vperm.xlu1 %4892, %v3466_v43   ;;  %v5438_v60 = vadd.f32 %v5100_v13, %v567_v44  ;;  %v4680_v43 = vunpack.c.h.bf16 %v5358_v37  ;;  %v3472_v37 = vld [vmem:[%s5216_s17 + $0xb8] sm:$0xff] }
  0xc7   : > { %6147 = vst [vmem:[#allocation8_spill] sm:$0xff] %v5382_v31  ;;  %1834 = vmatmul.bf16.gmra.mxu2 %v5382_v31  ;;  %3586 = vperm.xlu2 %4893, %v3467_v1   ;;  %v5444_v1 = vld [vmem:[%s6115_s6] ss:$0 sm:$0xff] }
  0xc8   : > { %v890_v16 = vpop.permute.xlu0 %889  ;;  %v893_v17 = vpop.permute.xlu1 %892  ;;  %v5447_v3 = vadd.f32 %v5444_v1, %v568_v50  ;;  %v630_v5 = vadd.f32 %v5444_v1, %v582_v52  ;;  %v3476_v50 = vld [vmem:[%s5216_s17 + $0xd8] sm:$0xff]  ;;  %v4589_v31 = vld [vmem:[%s6116_s7 + $0x1a0] sm:$0xff] }
  0xc9   : > { %vm985_vm13 = vcmp.eq.s32.totalorder %v890_v16, 1  ;;  %v941_v20 = vpop.permute.xlu2 %940  ;;  %vm986_vm14 = vcmp.eq.s32.totalorder %v893_v17, 1  ;;  %v660_v17 = vmax.f32 %v5438_v60, 0.0 }
  0xca   : > { %v1030_v15 = vsel %vm985_vm13, %v670_v9, 0.0  ;;  %vm1002_vm15 = vcmp.eq.s32.totalorder %v941_v20, 1  ;;  %v1031_v25 = vsel %vm986_vm14, %v671_v0, 0.0  ;;  %v1302_v29 = vld [vmem:[#allocation2 + $0x14a] sm:$0xff]  ;;  %v3473_v9 = vld [vmem:[%s5216_s17 + $0xc0] sm:$0xff]  ;;  %v6122_v18 = vmax.f32 %v5447_v3, 0.0 }
  0xcb   : > { %1075 = vst [vmem:[#allocation2 + $0x98] sm:$0xff] %v1030_v15  ;;  %v1047_v45 = vsel %vm1002_vm15, %v687_v10, 0.0  ;;  %v5406_v30 = vpack.c.bf16 %v1302_v29, %v1301_v26  ;;  %v5462_v0 = vld [vmem:[%s6114_s5] ss:$0 sm:$0xff]  ;;  %v675_v21 = vmax.f32 %v630_v5, 0.0  ;;  %v4539_v15 = vld [vmem:[%s6116_s7 + $0x10] sm:$0xff] }
  0xcc   : > { %1092 = vst [vmem:[#allocation2 + $0x120] sm:$0xff] %v1047_v45  ;;  %v1267_v39 = vld [vmem:[#allocation2 + $0x32] sm:$0xff]  ;;  %v1268_v40 = vld [vmem:[#allocation2 + $0x3a] sm:$0xff]  ;;  %v580_v10 = vmul.f32 %v5462_v0, %v4655_v58  ;;  %v593_v16 = vmul.f32 %v5462_v0, %v4680_v43  ;;  %v571_v22 = vmul.f32 %v5462_v0, %v4636_v7  ;;  %2274 = vmatpush.bf16.msrb.mxu3 %v4539_v15  ;;  %v4635_v7 = vunpack.c.l.bf16 %v5434_v59  ;;  %v3478_v15 = vld [vmem:[%s5216_s17 + $0xe8] sm:$0xff] }
  0xcd   : > { %6148 = vst [vmem:[#allocation9_spill] sm:$0xff] %v5406_v30  ;;  %v5413_v42 = vpack.c.bf16 %v1268_v40, %v1267_v39  ;;  %1859 = vmatmul.bf16.gmra.mxu3 %v5406_v30  ;;  %v4698_v20 = vld [vmem:[%s5456_s15] sm:$0xff]  }
  0xce   : > { %1076 = vst [vmem:[#allocation2 + $0xa0] sm:$0xff] %v1031_v25  ;;  %3591 = vperm.xlu0 %4891, %v3468_v32   ;;  %3596 = vperm.xlu1 %4892, %v3469_v36   ;;  %v628_v29 = vadd.f32 %v5444_v1, %v580_v10  ;;  %v641_v32 = vadd.f32 %v5444_v1, %v593_v16  ;;  %v4699_v36 = vunpack.c.l.bf16 %v4698_v20  ;;  %v1293_v39 = vld [vmem:[#allocation2 + $0x102] sm:$0xff]  ;;  %v4656_v10 = vunpack.c.h.bf16 %v5418_v46 }
  0xcf   : > { %6149 = vst [vmem:[#allocation10_spill] sm:$0xff] %v5413_v42  ;;  %1774 = vmatmul.bf16.gmra.mxu0 %v5413_v42  ;;  %3601 = vperm.xlu2 %4893, %v3470_v41   ;;  %v4700_v41 = vunpack.c.h.bf16 %v4698_v20  ;;  %v5504_v52 = vadd.f32 %v5444_v1, %v571_v22  ;;  %v3477_v22 = vld [vmem:[%s5216_s17 + $0xe0] sm:$0xff]  ;;  %v1189_v42 = vld [vmem:[#allocation2 + $0x90] sm:$0xff] }
  0xd0   : > { %v935_v56 = vpop.permute.xlu0 %934  ;;  %v962_v57 = vpop.permute.xlu1 %961  ;;  %v1111_v58 = vmul.f32 %v5462_v0, %v4699_v36  ;;  %v673_v43 = vmax.f32 %v628_v29, 0.0  ;;  %v4538_v36 = vld [vmem:[%s6116_s7 + $0x8] sm:$0xff] }
  0xd1   : > { %vm1000_vm0 = vcmp.eq.s32.totalorder %v935_v56, 1  ;;  %v866_v6 = vpop.permute.xlu2 %865  ;;  %vm1009_vm1 = vcmp.eq.s32.totalorder %v962_v57, 1  ;;  %v4571_v56 = vld [vmem:[%s6116_s7 + $0x110] sm:$0xff]  ;;  %2275 = vmatpush.bf16.msrb.mxu3 %v4538_v36  ;;  %v4611_v36 = vunpack.c.l.bf16 %v5485_v27 }
  0xd2   : > { %v1045_v61 = vsel %vm1000_vm0, %v685_v47, 0.0  ;;  %vm977_vm2 = vcmp.eq.s32.totalorder %v866_v6, 1  ;;  %v1054_v35 = vsel %vm1009_vm1, %v694_v49, 0.0  ;;  %v1279_v28 = vld [vmem:[#allocation2 + $0x92] sm:$0xff]  ;;  %v3474_v49 = vld [vmem:[%s5216_s17 + $0xc8] sm:$0xff]  ;;  %1884 = vmatpush.bf16.msrb.mxu1 %v4571_v56 }
  0xd3   : > { %1090 = vst [vmem:[#allocation2 + $0x110] sm:$0xff] %v1045_v61  ;;  %v1022_v13 = vsel %vm977_vm2, %v662_v51, 0.0  ;;  %v3475_v51 = vld [vmem:[%s5216_s17 + $0xd0] sm:$0xff]  ;;  %v686_v61 = vmax.f32 %v641_v32, 0.0  ;;  %v570_v32 = vmul.f32 %v5462_v0, %v4635_v7  ;;  %v3482_v7 = vld [vmem:[%s5216_s17 + $0x108] sm:$0xff] }
  0xd4   : > { %1067 = vst [vmem:[#allocation2 + $0x58] sm:$0xff] %v1022_v13  ;;  %v4547_v6 = vld [vmem:[%s6116_s7 + $0x50] sm:$0xff]  ;;  %v6120_v13 = vmax.f32 %v5504_v52, 0.0 }
  0xd5   : > { %v1280_v8 = vld [vmem:[#allocation2 + $0x9a] sm:$0xff]  ;;  %1099 = vst [vmem:[#allocation2 + $0x158] sm:$0xff] %v1054_v35  ;;  %v1112_v35 = vmul.f32 %v5462_v0, %v4700_v41  ;;  %2397 = vmatpush.bf16.msrb.mxu0 %v4547_v6  ;;  %v4570_v41 = vld [vmem:[%s6116_s7 + $0x108] sm:$0xff] }
  0xd6   : > { %v5468_v2 = vpack.c.bf16 %v1280_v8, %v1279_v28  ;;  %3606 = vperm.xlu0 %4891, %v3471_v4   ;;  %3611 = vperm.xlu1 %4892, %v3472_v37   ;;  %v4578_v28 = vld [vmem:[%s6116_s7 + $0x148] sm:$0xff]  ;;  %v559_v4 = vmul.f32 %v5462_v0, %v4612_v53 }
  0xd7   : > { %3616 = vperm.xlu2 %4893, %v3473_v9   ;;  %v1116_v9 = vadd.f32 %v5444_v1, %v1111_v58  ;;  %2008 = vmatpush.bf16.msrb.mxu2 %v4578_v28  ;;  %v1117_v59 = vadd.f32 %v5444_v1, %v1112_v35  ;;  %v4684_v58 = vunpack.c.h.bf16 %v5341_v12  ;;  %v3481_v12 = vld [vmem:[%s5216_s17 + $0x100] sm:$0xff] }
  0xd8   : > { %6150 = vst [vmem:[#allocation11_spill] sm:$0xff] %v5468_v2  ;;  %1804 = vmatmul.bf16.gmra.mxu1 %v5468_v2  ;;  %v5479_v25 = vpop.permute.xlu0 %859  ;;  %v5481_v26 = vpop.permute.xlu1 %862  ;;  %v5538_v29 = vadd.f32 %v5444_v1, %v559_v4  ;;  %v4557_v2 = vld [vmem:[%s6116_s7 + $0xa0] sm:$0xff] }
  0xd9   : > { %vm975_vm3 = vcmp.eq.s32.totalorder %v5479_v25, 1  ;;  %v905_v45 = vpop.permute.xlu2 %904  ;;  %vm976_vm4 = vcmp.eq.s32.totalorder %v5481_v26, 1  ;;  %1885 = vmatpush.bf16.msrb.mxu1 %v4570_v41  ;;  %v4606_v25 = vld [vmem:[%s6116_s7 + $0x228] sm:$0xff] }
  0xda   : > { %v1020_v38 = vsel %vm975_vm3, %v660_v17, 0.0  ;;  %vm990_vm5 = vcmp.eq.s32.totalorder %v905_v45, 1  ;;  %v1021_v14 = vsel %vm976_vm4, %v6122_v18, 0.0  ;;  %v1294_v40 = vld [vmem:[#allocation2 + $0x10a] sm:$0xff] }
  0xdb   : > { %1065 = vst [vmem:[#allocation2 + $0x48] sm:$0xff] %v1020_v38  ;;  %v1035_v44 = vsel %vm990_vm5, %v675_v21, 0.0  ;;  %v5498_v47 = vpack.c.bf16 %v1294_v40, %v1293_v39  ;;  %v3479_v45 = vld [vmem:[%s5216_s17 + $0xf0] sm:$0xff]  ;;  %v1121_v39 = vmax.f32 %v1116_v9, 0.0  ;;  %v1122_v40 = vmax.f32 %v1117_v59, 0.0 }
  0xdc   : > { %1080 = vst [vmem:[#allocation2 + $0xc0] sm:$0xff] %v1035_v44  ;;  %v1303_v54 = vld [vmem:[#allocation2 + $0x152] sm:$0xff]  ;;  %v1304_v55 = vld [vmem:[#allocation2 + $0x15a] sm:$0xff]  ;;  %v4546_v44 = vld [vmem:[%s6116_s7 + $0x48] sm:$0xff] }
  0xdd   : > { %6151 = vst [vmem:[#allocation12_spill] sm:$0xff] %v5498_v47  ;;  %1839 = vmatmul.bf16.gmra.mxu2 %v5498_v47  ;;  %v5511_v57 = vpack.c.bf16 %v1304_v55, %v1303_v54  ;;  %v5560_v54 = vadd.f32 %v5444_v1, %v570_v32  ;;  %2398 = vmatpush.bf16.msrb.mxu0 %v4546_v44  ;;  %v4660_v32 = vunpack.c.h.bf16 %v5401_v19 }
  0xde   : > { %1066 = vst [vmem:[#allocation2 + $0x50] sm:$0xff] %v1021_v14  ;;  %3621 = vperm.xlu0 %4891, %v3474_v49   ;;  %3626 = vperm.xlu1 %4892, %v3475_v51   ;;  %v581_v14 = vmul.f32 %v5462_v0, %v4656_v10  ;;  %v652_v49 = vmax.f32 %v5538_v29, 0.0  ;;  %v4591_v29 = vld [vmem:[%s6116_s7 + $0x1b0] sm:$0xff] }
  0xdf   : > { %6152 = vst [vmem:[#allocation13_spill] sm:$0xff] %v5511_v57  ;;  %1864 = vmatmul.bf16.gmra.mxu3 %v5511_v57  ;;  %3631 = vperm.xlu2 %4893, %v3476_v50   ;;  %v5557_v50 = vld [vmem:[%s5456_s15 + $0x8] sm:$0xff]   ;;  %v6121_v59 = vmax.f32 %v5560_v54, 0.0 }
  0xe0   : > { %v899_v37 = vpop.permute.xlu0 %898  ;;  %v938_v5 = vpop.permute.xlu1 %937  ;;  %v629_v56 = vadd.f32 %v5444_v1, %v581_v14  ;;  %v4703_v28 = vunpack.c.l.bf16 %v5557_v50  ;;  %v4569_v14 = vld [vmem:[%s6116_s7 + $0x100] sm:$0xff] }
  0xe1   : > { %vm988_vm6 = vcmp.eq.s32.totalorder %v899_v37, 1  ;;  %v5525_v8 = vpop.permute.xlu2 %871  ;;  %vm1001_vm7 = vcmp.eq.s32.totalorder %v938_v5, 1  ;;  %v3480_v5 = vld [vmem:[%s5216_s17 + $0xf8] sm:$0xff]  ;;  %1886 = vmatpush.bf16.msrb.mxu1 %v4569_v14 }
  0xe2   : > { %v1033_v11 = vsel %vm988_vm6, %v673_v43, 0.0  ;;  %vm979_vm8 = vcmp.eq.s32.totalorder %v5525_v8, 1  ;;  %v1046_v16 = vsel %vm1001_vm7, %v686_v61, 0.0  ;;  %v1269_v20 = vld [vmem:[#allocation2 + $0x42] sm:$0xff]  ;;  %vm4923_vm7 = vmmov 1  }
  0xe3   : > { %1078 = vst [vmem:[#allocation2 + $0xb0] sm:$0xff] %v1033_v11  ;;  %v1024_v21 = vsel %vm979_vm8, %v6120_v13, 0.0  ;;  %v1281_v61 = vld [vmem:[#allocation2 + $0xa2] sm:$0xff] }
  0xe4   : > { %1069 = vst [vmem:[#allocation2 + $0x68] sm:$0xff] %v1024_v21  ;;  %v4577_v11 = vld [vmem:[%s6116_s7 + $0x140] sm:$0xff]  ;;  %v674_v21 = vmax.f32 %v629_v56, 0.0 }
  0xe5   : > { %v1270_v46 = vld [vmem:[#allocation2 + $0x4a] sm:$0xff]  ;;  %1091 = vst [vmem:[#allocation2 + $0x118] sm:$0xff] %v1046_v16  ;;  %2009 = vmatpush.bf16.msrb.mxu2 %v4577_v11 }
  0xe6   : > { %v5545_v38 = vpack.c.bf16 %v1270_v46, %v1269_v20  ;;  %3636 = vperm.xlu0 %4891, %v3477_v22   ;;  %3641 = vperm.xlu1 %4892, %v3478_v15   ;;  %v4537_v20 = vld [vmem:[%s6116_s7] sm:$0xff]  ;;  %v595_v22 = vmul.f32 %v5462_v0, %v4684_v58  ;;  %v1113_v15 = vmul.f32 %v5462_v0, %v4703_v28 }
  0xe7   : > { %3646 = vperm.xlu2 %4893, %v3479_v45   ;;  %2276 = vmatpush.bf16.msrb.mxu3 %v4537_v20  ;;  %v3485_v58 = vld [vmem:[%s5216_s17 + $0x120] sm:$0xff] }
  0xe8   : > { %6153 = vst [vmem:[#allocation14_spill] sm:$0xff] %v5545_v38  ;;  %1779 = vmatmul.bf16.gmra.mxu0 %v5545_v38  ;;  %v1143_v51 = vpop.permute.xlu0 %1142  ;;  %v1146_v53 = vpop.permute.xlu1 %1145  ;;  %v643_v19 = vadd.f32 %v5444_v1, %v595_v22  ;;  %v1118_v27 = vadd.f32 %v5444_v1, %v1113_v15  ;;  %v1271_v22 = vld [vmem:[#allocation2 + $0x52] sm:$0xff]  ;;  %v1488_v38 = vld [vmem:[#allocation2 + $0xa4] sm:$0xff] }
  0xe9   : > { %vm1156_vm9 = vcmp.eq.s32.totalorder %v1143_v51, 1  ;;  %vm1157_vm10 = vcmp.eq.s32.totalorder %v1146_v53, 1  ;;  %v5562_v55 = vpop.permute.xlu2 %835  ;;  %v3483_v53 = vld [vmem:[%s5216_s17 + $0x110] sm:$0xff] }
  0xea   : > { %v1161_v6 = vsel %vm1156_vm9, %v1121_v39, 0.0  ;;  %v1162_v43 = vsel %vm1157_vm10, %v1122_v40, 0.0  ;;  %vm967_vm11 = vcmp.eq.s32.totalorder %v5562_v55, 1  ;;  %v1282_v35 = vld [vmem:[#allocation2 + $0xaa] sm:$0xff]  ;;  %v4545_v39 = vld [vmem:[%s6116_s7 + $0x40] sm:$0xff]  ;;  %v1123_v28 = vmax.f32 %v1118_v27, 0.0  ;;  %vm4902_vm9 = vmpackc.low %vm975_vm3, %vm4923_vm7 }
  0xeb   : > { %1166 = vst [vmem:[#allocation2 + $0x168] sm:$0xff] %v1161_v6  ;;  %v1012_v4 = vsel %vm967_vm11, %v652_v49, 0.0  ;;  %v5572_v37 = vpack.c.bf16 %v1282_v35, %v1281_v61  ;;  %2399 = vmatpush.bf16.msrb.mxu0 %v4545_v39  ;;  %v3484_v6 = vld [vmem:[%s5216_s17 + $0x118] sm:$0xff]  ;;  %v558_v61 = vmul.f32 %v5462_v0, %v4611_v36  ;;  %v688_v35 = vmax.f32 %v643_v19, 0.0  ;;  %v3487_v19 = vld [vmem:[%s5216_s17 + $0x130] sm:$0xff]  ;;  %vm4905_vm3 = vmpackc.low %vm4923_vm7, %vm976_vm4 }
  0xec   : > { %1167 = vst [vmem:[#allocation2 + $0x170] sm:$0xff] %v1162_v43  ;;  %v1295_v9 = vld [vmem:[#allocation2 + $0x112] sm:$0xff]  ;;  %v1296_v10 = vld [vmem:[#allocation2 + $0x11a] sm:$0xff]  ;;  %v583_v43 = vmul.f32 %v5462_v0, %v4660_v32  ;;  %vm3909_vm10 = vcmask 1040384  }
  0xed   : > { %6154 = vst [vmem:[#allocation15_spill] sm:$0xff] %v5572_v37  ;;  %1809 = vmatmul.bf16.gmra.mxu1 %v5572_v37  ;;  %v5581_v16 = vpack.c.bf16 %v1296_v10, %v1295_v9  ;;  %v5623_v11 = vadd.f32 %v5444_v1, %v558_v61  ;;  %v1218_v55 = vld [vmem:[#allocation2 + $0x11] sm:$0xff] }
  0xee   : > { %1057 = vst [vmem:[#allocation2 + $0x8] sm:$0xff] %v1012_v4  ;;  %3651 = vperm.xlu0 %4891, %v3480_v5   ;;  %3656 = vperm.xlu1 %4892, %v3481_v12   ;;  %v4592_v4 = vld [vmem:[%s6116_s7 + $0x1b8] sm:$0xff]  ;;  %v5620_v10 = vadd.f32 %v5444_v1, %v583_v43  ;;  %v1436_v57 = vld [vmem:[#allocation2 + $0x6b] sm:$0xff] }
  0xef   : > { %6155 = vst [vmem:[#allocation16_spill] sm:$0xff] %v5581_v16  ;;  %1844 = vmatmul.bf16.gmra.mxu2 %v5581_v16  ;;  %3661 = vperm.xlu2 %4893, %v3482_v7   ;;  %v4600_v5 = vld [vmem:[%s6116_s7 + $0x1f8] sm:$0xff]  ;;  %v1105_v7 = vld [vmem:[%s5456_s15 + $0x10] sm:$0xf] }
  0xf0   : > { %v5590_v46 = vpop.permute.xlu0 %868  ;;  %v902_v45 = vpop.permute.xlu1 %901  ;;  %3035 = vmatpush.bf16.msra.mxu2 %v4592_v4  ;;  %3158 = vmatpush.bf16.msra.mxu3 %v4600_v5  ;;  %v1110_v32 = vunpack.c.l.bf16 %v1105_v7  ;;  %v6119_v27 = vmax.f32 %v5620_v10, 0.0 }
  0xf1   : > { %vm978_vm12 = vcmp.eq.s32.totalorder %v5590_v46, 1  ;;  %vm989_vm13 = vcmp.eq.s32.totalorder %v902_v45, 1  ;;  %v4704_v45 = vunpack.c.h.bf16 %v5557_v50  ;;  %v651_v50 = vmax.f32 %v5623_v11, 0.0 }
  0xf2   : > { %v1023_v40 = vsel %vm978_vm12, %v6121_v59, 0.0  ;;  %v1034_v41 = vsel %vm989_vm13, %v674_v21, 0.0  ;;  %v1305_v44 = vld [vmem:[#allocation2 + $0x162] sm:$0xff]  ;;  %v1481_v59 = vld [vmem:[#allocation2 + $0x6c] sm:$0xff]  ;;  %vm4908_vm4 = vmpackc.low %vm979_vm8, %vm978_vm12 }
  0xf3   : > { %1068 = vst [vmem:[#allocation2 + $0x60] sm:$0xff] %v1023_v40  ;;  %v1423_v51 = vld [vmem:[#allocation2 + $0x16a] sm:$0xff] }
  0xf4   : > { %1079 = vst [vmem:[#allocation2 + $0xb8] sm:$0xff] %v1034_v41  ;;  %v1557_v56 = vpack.c.bf16 %v1423_v51, %v1305_v44  ;;  %v3486_v40 = vld [vmem:[%s5216_s17 + $0x128] sm:$0xff]  ;;  %v3488_v44 = vld [vmem:[%s5216_s17 + $0x138] sm:$0xff]  ;;  %v1114_v51 = vmul.f32 %v5462_v0, %v4704_v45  ;;  %3036 = vmatpush.bf16.msra.mxu2 %v4591_v29 }
  0xf6   : > { %1869 = vmatmul.bf16.gmra.mxu3 %v1557_v56  ;;  %3666 = vperm.xlu0 %4891, %v3483_v53   ;;  %v1115_v53 = vmul.f32 %v5462_v0, %v1110_v32  ;;  %v4560_v56 = vld [vmem:[%s6116_s7 + $0xb8] sm:$0xff]  ;;  %v1119_v4 = vadd.f32 %v5444_v1, %v1114_v51 }
  0xf7   : > { %3676 = vperm.xlu2 %4893, %v3485_v58   ;;  %3671 = vperm.xlu1 %4892, %v3484_v6   ;;  %v4608_v58 = vld [vmem:[%s6116_s7 + $0x238] sm:$0xff] }
  0xf8   : > { %v944_v12 = vpop.permute.xlu0 %943  ;;  %v1149_v9 = vpop.permute.xlu1 %1148  ;;  %2515 = vmatpush.bf16.msra.mxu1 %v4560_v56  ;;  %3281 = vmatpush.bf16.msra.mxu0 %v4608_v58  ;;  %v1120_v5 = vadd.f32 %v5444_v1, %v1115_v53  ;;  %v3492_v56 = vld [vmem:[%s5216_s17 + $0x158] sm:$0xff]  ;;  %v3493_v58 = vld [vmem:[%s5216_s17 + $0x160] sm:$0xff] }
  0xf9   : > { %vm1003_vm14 = vcmp.eq.s32.totalorder %v944_v12, 1  ;;  %vm1158_vm15 = vcmp.eq.s32.totalorder %v1149_v9, 1  ;;  %v3489_v9 = vld [vmem:[%s5216_s17 + $0x140] sm:$0xff] }
  0xfa   : > { %v1048_v20 = vsel %vm1003_vm14, %v688_v35, 0.0  ;;  %v1163_v21 = vsel %vm1158_vm15, %v1123_v28, 0.0  ;;  %v1272_v15 = vld [vmem:[#allocation2 + $0x5a] sm:$0xff]  ;;  %v1273_v32 = vld [vmem:[#allocation2 + $0x62] sm:$0xff] }
  0xfb   : > { %1093 = vst [vmem:[#allocation2 + $0x128] sm:$0xff] %v1048_v20  ;;  %v5626_v36 = vpack.c.bf16 %v1272_v15, %v1271_v22  ;;  %v1283_v14 = vld [vmem:[#allocation2 + $0xb2] sm:$0xff]  ;;  %v1284_v39 = vld [vmem:[#allocation2 + $0xba] sm:$0xff]  ;;  %v1124_v22 = vmax.f32 %v1119_v4, 0.0  ;;  %v1125_v15 = vmax.f32 %v1120_v5, 0.0 }
  0xfc   : > { %1168 = vst [vmem:[#allocation2 + $0x178] sm:$0xff] %v1163_v21  ;;  %v5629_v41 = vpack.c.bf16 %v1284_v39, %v1283_v14  ;;  %v3491_v20 = vld [vmem:[%s5216_s17 + $0x150] sm:$0xff]  ;;  %v3490_v21 = vld [vmem:[%s5216_s17 + $0x148] sm:$0xff] }
  0xfd   : > { %6156 = vst [vmem:[#allocation17_spill] sm:$0xff] %v5626_v36  ;;  %1784 = vmatmul.bf16.gmra.mxu0 %v5626_v36  ;;  %v1425_v5 = vld [vmem:[#allocation2 + $0x13] sm:$0xff] }
  0xfe   : > { %6157 = vst [vmem:[#allocation18_spill] sm:$0xff] %v5629_v41  ;;  %1814 = vmatmul.bf16.gmra.mxu1 %v5629_v41  ;;  %3681 = vperm.xlu0 %4891, %v3486_v40   ;;  %v1274_v40 = vld [vmem:[#allocation2 + $0x6a] sm:$0xff] }
  0xff   : > { %3691 = vperm.xlu2 %4893, %v3488_v44   ;;  %3686 = vperm.xlu1 %4892, %v3487_v19   ;;  %v5661_v51 = vpack.c.bf16 %v1274_v40, %v1273_v32  ;;  %v1440_v41 = vld [vmem:[#allocation2 + $0x8b] sm:$0xff] }
 0x100   : > { %v5645_v6 = vpop.permute.xlu0 %907  ;;  %v833_v43 = vpop.permute.xlu1 %832 }
 0x101   : > { %vm991_vm0 = vcmp.eq.s32.totalorder %v5645_v6, 1  ;;  %vm966_vm1 = vcmp.eq.s32.totalorder %v833_v43, 1  ;;  %6159 = vst [vmem:[#allocation20_spill] sm:$0xff] %v5661_v51  ;;  %v1174_v43 = vld [vmem:[#allocation2 + $0x18] sm:$0xff] }
 0x102   : > { %v1036_v0 = vsel %vm991_vm0, %v6119_v27, 0.0  ;;  %v1011_v61 = vsel %vm966_vm1, %v651_v50, 0.0  ;;  %v1297_v35 = vld [vmem:[#allocation2 + $0x122] sm:$0xff]  ;;  %v1298_v28 = vld [vmem:[#allocation2 + $0x12a] sm:$0xff]  ;;  %vm4899_vm6 = vmpackc.low %vm967_vm11, %vm966_vm1 }
 0x103   : > { %1081 = vst [vmem:[#allocation2 + $0xc8] sm:$0xff] %v1036_v0  ;;  %v5655_v7 = vpack.c.bf16 %v1298_v28, %v1297_v35  ;;  %v1424_v12 = vld [vmem:[#allocation2 + $0x172] sm:$0xff]  ;;  %v4900_v28 = vpack.c.bf16 %v652_v49, %v651_v50  ;;  %vm4911_vm8 = vmpackc.low %vm991_vm0, %vm4923_vm7 }
 0x104   : > { %1056 = vst [vmem:[#allocation2] sm:$0xff] %v1011_v61  ;;  %v1560_v11 = vpack.c.bf16 %v1424_v12, %v1424_v12  ;;  %v1470_v0 = vld [vmem:[#allocation2 + $0x14] sm:$0xff]  ;;  %v1471_v61 = vld [vmem:[#allocation2 + $0x1c] sm:$0xff]  ;;  %v1217_v12 = vld [vmem:[#allocation2 + $0x9] sm:$0xff] }
 0x105   : > { %6158 = vst [vmem:[#allocation19_spill] sm:$0xff] %v5655_v7  ;;  %1849 = vmatmul.bf16.gmra.mxu2 %v5655_v7  ;;  %v1516_v35 = vpack.c.bf16 %v1471_v61, %v1470_v0  ;;  %v4599_v49 = vld [vmem:[%s6116_s7 + $0x1f0] sm:$0xff]  ;;  %v1475_v61 = vld [vmem:[#allocation2 + $0x3c] sm:$0xff] }
 0x106   : > { %1874 = vmatmul.bf16.gmra.mxu3 %v1560_v11  ;;  %3696 = vperm.xlu0 %4891, %v3489_v9   ;;  %v1426_v9 = vld [vmem:[#allocation2 + $0x1b] sm:$0xff]  ;;  %v1428_v50 = vld [vmem:[#allocation2 + $0x2b] sm:$0xff] }
 0x107   : > { %3706 = vperm.xlu2 %4893, %v3491_v20   ;;  %3701 = vperm.xlu1 %4892, %v3490_v21   ;;  %v1515_v20 = vpack.c.bf16 %v1426_v9, %v1425_v5  ;;  %v1473_v21 = vld [vmem:[#allocation2 + $0x2c] sm:$0xff]  ;;  %v1474_v0 = vld [vmem:[#allocation2 + $0x34] sm:$0xff] }
 0x108   : > { %v1152_v1 = vpop.permute.xlu0 %1151  ;;  %v1155_v45 = vpop.permute.xlu1 %1154  ;;  %3159 = vmatpush.bf16.msra.mxu3 %v4599_v49  ;;  %v1476_v49 = vld [vmem:[#allocation2 + $0x44] sm:$0xff]  ;;  %v1438_v7 = vld [vmem:[#allocation2 + $0x7b] sm:$0xff] }
 0x109   : > { %vm1159_vm2 = vcmp.eq.s32.totalorder %v1152_v1, 1  ;;  %vm1160_vm5 = vcmp.eq.s32.totalorder %v1155_v45, 1 }
 0x10a   : > { %v1164_v14 = vsel %vm1159_vm2, %v1124_v22, 0.0  ;;  %v1165_v39 = vsel %vm1160_vm5, %v1125_v15, 0.0  ;;  %v1285_v44 = vld [vmem:[#allocation2 + $0xc2] sm:$0xff]  ;;  %v1286_v19 = vld [vmem:[#allocation2 + $0xca] sm:$0xff] }
 0x10b   : > { %1169 = vst [vmem:[#allocation2 + $0x180] sm:$0xff] %v1164_v14  ;;  %v5663_v53 = vpack.c.bf16 %v1286_v19, %v1285_v44  ;;  %v1216_v4 = vld [vmem:[#allocation2 + $0x1] sm:$0xff]  ;;  %v1173_v22 = vld [vmem:[#allocation2 + $0x10] sm:$0xff]  ;;  %v1219_v14 = vld [vmem:[#allocation2 + $0x19] sm:$0xff] }
 0x10c   : > { %1170 = vst [vmem:[#allocation2 + $0x188] sm:$0xff] %v1165_v39  ;;  %v1307_v11 = vpack.c.bf16 %v1217_v12, %v1216_v4  ;;  %v1472_v15 = vld [vmem:[#allocation2 + $0x24] sm:$0xff]  ;;  %v1309_v45 = vpack.c.bf16 %v1174_v43, %v1173_v22  ;;  %v1310_v40 = vpack.c.bf16 %v1219_v14, %v1218_v55  ;;  %v4559_v19 = vld [vmem:[%s6116_s7 + $0xb0] sm:$0xff]  ;;  %v1178_v14 = vld [vmem:[#allocation2 + $0x38] sm:$0xff] }
 0x10d   : > { %6160 = vst [vmem:[#allocation21_spill] sm:$0xff] %v5663_v53  ;;  %1789 = vmatmul.bf16.gmra.mxu0 %v5661_v51  ;;  %v1518_v1 = vpack.c.bf16 %v1473_v21, %v1472_v15  ;;  %v1427_v39 = vld [vmem:[#allocation2 + $0x23] sm:$0xff]  ;;  %2516 = vmatpush.bf16.msra.mxu1 %v4559_v19  ;;  %v1430_v21 = vld [vmem:[#allocation2 + $0x3b] sm:$0xff]  ;;  %v1477_v55 = vld [vmem:[#allocation2 + $0x4c] sm:$0xff] }
 0x10e   : > { %1819 = vmatmul.bf16.gmra.mxu1 %v5663_v53  ;;  %3711 = vperm.xlu0 %4891, %v3492_v56   ;;  %v1517_v44 = vpack.c.bf16 %v1428_v50, %v1427_v39  ;;  %v4607_v56 = vld [vmem:[%s6116_s7 + $0x230] sm:$0xff]  ;;  %v1175_v4 = vld [vmem:[#allocation2 + $0x20] sm:$0xff] }
 0x10f   : > { %3716 = vperm.xlu1 %4892, %v3493_v58   ;;  %3282 = vmatpush.bf16.msra.mxu0 %v4607_v56  ;;  %v1220_v15 = vld [vmem:[#allocation2 + $0x21] sm:$0xff] }
 0x110   : > { %v1439_v53 = vld [vmem:[#allocation2 + $0x83] sm:$0xff] }
 0x111   : > { %v1187_v51 = vld [vmem:[#allocation2 + $0x80] sm:$0xff] }
 0x113   : > { %3283 = vmatpush.bf16.msra.mxu0 %v4606_v25  ;;  %v1227_v25 = vld [vmem:[#allocation2 + $0x59] sm:$0xff] }
 0x115   : > { %2010 = vmatmul.bf16.vlgmr.msrb.gmra.mxu2 %v1516_v35  ;;  %v1176_v35 = vld [vmem:[#allocation2 + $0x28] sm:$0xff] }
 0x116   : > { %4901 = vmatmul.msk.bf16.vlgmr.msrb.gmra.mxu3 %vm4899_vm6, %v4900_v28  ;;  %v1520_v28 = vpack.c.bf16 %v1475_v61, %v1474_v0  ;;  %v1312_v9 = vpack.c.bf16 %v1176_v35, %v1175_v4  ;;  %v1222_v61 = vld [vmem:[#allocation2 + $0x31] sm:$0xff]  ;;  %v1223_v35 = vld [vmem:[#allocation2 + $0x39] sm:$0xff] }
 0x117   : > { %v1432_v4 = vld [vmem:[#allocation2 + $0x4b] sm:$0xff] }
 0x11c   : > { %v5688_v58 = vpop.f32.mrf.mxu0 }
 0x11d   : > { %2400 = vmatmul.bf16.vlgmr.msrb.gmra.mxu0 %v1307_v11  ;;  %v1221_v11 = vld [vmem:[#allocation2 + $0x29] sm:$0xff] }
 0x11e   : > { %1887 = vmatmul.bf16.vlgmr.msrb.gmra.mxu1 %v1515_v20  ;;  %v1429_v20 = vld [vmem:[#allocation2 + $0x33] sm:$0xff] }
 0x11f   : > { %v1519_v43 = vpack.c.bf16 %v1430_v21, %v1429_v20 }
 0x120   : > { %v5680_v32 = vpop.f32.mrf.mxu2 }
 0x124   : > { %v5694_v22 = vpop.f32.mrf.mxu0 }
 0x125   : > { %2015 = vmatmul.bf16.gmra.mxu2 %v1518_v1  ;;  %v5690_v5 = vpop.f32.mrf.mxu1  ;;  %v1313_v1 = vpack.c.bf16 %v1221_v11, %v1220_v15  ;;  %v1316_v11 = vpack.c.bf16 %v1223_v35, %v1222_v61 }
 0x126   : > { %2282 = vmatmul.bf16.gmra.mxu3 %v1309_v45 }
 0x128   : > { %v5692_v12 = vpop.f32.mrf.mxu2 }
 0x12d   : > { %2405 = vmatmul.bf16.gmra.mxu0 %v1310_v40  ;;  %v5696_v45 = vpop.f32.mrf.mxu1  ;;  %v1522_v40 = vpack.c.bf16 %v1477_v55, %v1476_v49  ;;  %v1478_v49 = vld [vmem:[#allocation2 + $0x54] sm:$0xff]  ;;  %v4590_v55 = vld [vmem:[%s6116_s7 + $0x1a8] sm:$0xff] }
 0x12e   : > { %1892 = vmatmul.bf16.gmra.mxu1 %v1517_v44  ;;  %v1177_v44 = vld [vmem:[#allocation2 + $0x30] sm:$0xff]  ;;  %3037 = vmatpush.bf16.msra.mxu2 %v4590_v55 }
 0x12f   : > { %v1315_v19 = vpack.c.bf16 %v1178_v14, %v1177_v44  ;;  %v4598_v14 = vld [vmem:[%s6116_s7 + $0x1e8] sm:$0xff]  ;;  %v1433_v55 = vld [vmem:[#allocation2 + $0x53] sm:$0xff] }
 0x130   : > { %3160 = vmatpush.bf16.msra.mxu3 %v4598_v14 }
 0x132   : > { %v5698_v29 = vpop.f32.mrf.mxu2  ;;  %3038 = vmatpush.bf16.msra.mxu2 %v4589_v31  ;;  %v4605_v31 = vld [vmem:[%s6116_s7 + $0x220] sm:$0xff] }
 0x133   : > { %3284 = vmatpush.bf16.msra.mxu0 %v4605_v31  ;;  %v1442_v31 = vld [vmem:[#allocation2 + $0x9b] sm:$0xff] }
 0x135   : > { %2020 = vmatmul.bf16.gmra.mxu2 %v1520_v28  ;;  %v1431_v28 = vld [vmem:[#allocation2 + $0x43] sm:$0xff] }
 0x136   : > { %2287 = vmatmul.bf16.gmra.mxu3 %v1312_v9  ;;  %v1521_v21 = vpack.c.bf16 %v1432_v4, %v1431_v28  ;;  %v1224_v4 = vld [vmem:[#allocation2 + $0x41] sm:$0xff] }
 0x13a   : > { %v5700_v50 = vpop.f32.mrf.mxu3  ;;  %v5702_v39 = vpop.f32.mrf.mxu0 }
 0x13b   : > { %v5706_v0 = vpop.f32.mrf.mxu2 }
 0x13c   : > { %v5704_v56 = vpop.f32.mrf.mxu1 }
 0x13d   : > { %2410 = vmatmul.bf16.gmra.mxu0 %v1313_v1 }
 0x13e   : > { %1897 = vmatmul.bf16.gmra.mxu1 %v1519_v43  ;;  %v1479_v43 = vld [vmem:[#allocation2 + $0x5c] sm:$0xff] }
 0x13f   : > { %v1524_v44 = vpack.c.bf16 %v1479_v43, %v1478_v49  ;;  %v4558_v49 = vld [vmem:[%s6116_s7 + $0xa8] sm:$0xff] }
 0x140   : > { %2517 = vmatpush.bf16.msra.mxu1 %v4558_v49 }
 0x142   : > { %v5708_v9 = vpop.f32.mrf.mxu3  ;;  %v5710_v20 = vpop.f32.mrf.mxu0 }
 0x143   : > { %6161 = vst [vmem:[#allocation22_spill] sm:$0xff] %v5708_v9 }
 0x144   : > { %v5712_v15 = vpop.f32.mrf.mxu1  ;;  %2518 = vmatpush.bf16.msra.mxu1 %v4557_v2  ;;  %v1232_v2 = vld [vmem:[#allocation2 + $0x81] sm:$0xff] }
 0x145   : > { %2025 = vmatmul.bf16.gmra.mxu2 %v1522_v40 }
 0x146   : > { %2292 = vmatmul.bf16.gmra.mxu3 %v1315_v19  ;;  %v1179_v19 = vld [vmem:[#allocation2 + $0x40] sm:$0xff] }
 0x147   : > { %v4903_v35 = vpack.c.bf16 %v660_v17, %v1179_v19  ;;  %v1480_v19 = vld [vmem:[#allocation2 + $0x64] sm:$0xff] }
 0x148   : > { %v1526_v18 = vpack.c.bf16 %v1481_v59, %v1480_v19  ;;  %v1482_v19 = vld [vmem:[#allocation2 + $0x74] sm:$0xff] }
 0x14a   : > { %v5714_v1 = vpop.f32.mrf.mxu2 }
 0x14c   : > { %v5724_v61 = vpop.f32.mrf.mxu0 }
 0x14d   : > { %2415 = vmatmul.bf16.gmra.mxu0 %v1316_v11  ;;  %v1225_v11 = vld [vmem:[#allocation2 + $0x49] sm:$0xff] }
 0x14e   : > { %1902 = vmatmul.bf16.gmra.mxu1 %v1521_v21  ;;  %v1434_v21 = vld [vmem:[#allocation2 + $0x5b] sm:$0xff]  ;;  %v1319_v14 = vpack.c.bf16 %v1225_v11, %v1224_v4  ;;  %v6164_v4 = vmax.f32 %v5447_v3, 0.0 }
 0x14f   : > { %v1523_v60 = vpack.c.bf16 %v1434_v21, %v1433_v55  ;;  %v1435_v55 = vld [vmem:[#allocation2 + $0x63] sm:$0xff] }
 0x150   : > { %v5722_v40 = vpop.f32.mrf.mxu3  ;;  %v1525_v26 = vpack.c.bf16 %v1436_v57, %v1435_v55  ;;  %v1483_v3 = vld [vmem:[#allocation2 + $0x7c] sm:$0xff]  ;;  %v6167_v57 = vmax.f32 %v5560_v54, 0.0  ;;  %v1484_v54 = vld [vmem:[#allocation2 + $0x84] sm:$0xff] }
 0x151   : > { %6162 = vst [vmem:[#allocation23_spill] sm:$0xff] %v5722_v40  ;;  %v1528_v30 = vpack.c.bf16 %v1483_v3, %v1482_v19 }
 0x152   : > { %v5733_v43 = vpop.f32.mrf.mxu2 }
 0x155   : > { %2030 = vmatmul.bf16.gmra.mxu2 %v1524_v44  ;;  %v5731_v28 = vpop.f32.mrf.mxu1  ;;  %v5743_v44 = vpop.f32.mrf.mxu0 }
 0x156   : > { %4904 = vmatmul.msk.bf16.gmra.mxu3 %vm4902_vm9, %v4903_v35  ;;  %v1182_v35 = vld [vmem:[#allocation2 + $0x58] sm:$0xff] }
 0x157   : > { %v4906_v11 = vpack.c.bf16 %v1182_v35, %v6164_v4 }
 0x158   : > { %v5741_v17 = vpop.f32.mrf.mxu3 }
 0x159   : > { %6163 = vst [vmem:[#allocation24_spill] sm:$0xff] %v5741_v17 }
 0x15d   : > { %2420 = vmatmul.bf16.gmra.mxu0 %v1319_v14  ;;  %v5745_v27 = vpop.f32.mrf.mxu1 }
 0x15e   : > { %1907 = vmatmul.bf16.gmra.mxu1 %v1523_v60  ;;  %v1226_v60 = vld [vmem:[#allocation2 + $0x51] sm:$0xff] }
 0x15f   : > { %v1322_v59 = vpack.c.bf16 %v1227_v25, %v1226_v60  ;;  %v6168_v25 = vmax.f32 %v5504_v52, 0.0  ;;  %v1228_v60 = vld [vmem:[#allocation2 + $0x61] sm:$0xff]  ;;  %v1485_v52 = vld [vmem:[#allocation2 + $0x8c] sm:$0xff] }
 0x160   : > { %v5747_v13 = vpop.f32.mrf.mxu2 }
 0x161   : > { %v4909_v55 = vpack.c.bf16 %v6168_v25, %v6167_v57  ;;  %v1185_v25 = vld [vmem:[#allocation2 + $0x70] sm:$0xff] }
 0x162   : > { %v5754_v21 = vpop.f32.mrf.mxu3 }
 0x163   : > { %6165 = vst [vmem:[#allocation25_spill] sm:$0xff] %v5754_v21 }
 0x165   : > { %2035 = vmatmul.bf16.gmra.mxu2 %v1526_v18  ;;  %v5756_v49 = vpop.f32.mrf.mxu0 }
 0x166   : > { %4907 = vmatmul.msk.bf16.gmra.mxu3 %vm4905_vm3, %v4906_v11 }
 0x168   : > { %v5760_v18 = vpop.f32.mrf.mxu2 }
 0x16a   : > { %v5758_v14 = vpop.f32.mrf.mxu1  ;;  %v5762_v35 = vpop.f32.mrf.mxu3 }
 0x16b   : > { %6166 = vst [vmem:[#allocation26_spill] sm:$0xff] %v5762_v35 }
 0x16d   : > { %2425 = vmatmul.bf16.gmra.mxu0 %v1322_v59  ;;  %v5764_v4 = vpop.f32.mrf.mxu0 }
 0x16e   : > { %1912 = vmatmul.bf16.gmra.mxu1 %v1525_v26  ;;  %v1437_v26 = vld [vmem:[#allocation2 + $0x73] sm:$0xff] }
 0x16f   : > { %v1527_v16 = vpack.c.bf16 %v1438_v7, %v1437_v26  ;;  %v4597_v7 = vld [vmem:[%s6116_s7 + $0x1e0] sm:$0xff] }
 0x170   : > { %3161 = vmatpush.bf16.msra.mxu3 %v4597_v7  ;;  %v1486_v7 = vld [vmem:[#allocation2 + $0x94] sm:$0xff] }
 0x172   : > { %v5766_v11 = vpop.f32.mrf.mxu1  ;;  %v5768_v62 = vpop.f32.mrf.mxu2 }
 0x175   : > { %2040 = vmatmul.bf16.gmra.mxu2 %v1528_v30  ;;  %v1229_v30 = vld [vmem:[#allocation2 + $0x69] sm:$0xff] }
 0x176   : > { %4910 = vmatmul.msk.bf16.gmra.mxu3 %vm4908_vm4, %v4909_v55  ;;  %v1325_v46 = vpack.c.bf16 %v1229_v30, %v1228_v60  ;;  %v1186_v55 = vld [vmem:[#allocation2 + $0x78] sm:$0xff] }
 0x177   : > { %v1327_v26 = vpack.c.bf16 %v1186_v55, %v1185_v25  ;;  %v1529_v25 = vpack.c.bf16 %v1440_v41, %v1439_v53  ;;  %v1233_v41 = vld [vmem:[#allocation2 + $0x89] sm:$0xff] }
 0x178   : > { %v1331_v35 = vpack.c.bf16 %v1233_v41, %v1232_v2 }
 0x179   : > { %v5778_v59 = vpop.f32.mrf.mxu3 }
 0x17a   : > { %6169 = vst [vmem:[#allocation27_spill] sm:$0xff] %v5778_v59  ;;  %v5780_v19 = vpop.f32.mrf.mxu0  ;;  %v5784_v8 = vpop.f32.mrf.mxu2  ;;  %v1330_v59 = vpack.c.bf16 %v1188_v34, %v1187_v51  ;;  %v1489_v34 = vld [vmem:[#allocation2 + $0xac] sm:$0xff] }
 0x17b   : > { %v5782_v3 = vpop.f32.mrf.mxu1  ;;  %v1534_v9 = vpack.c.bf16 %v1489_v34, %v1488_v38 }
 0x17d   : > { %2430 = vmatmul.bf16.gmra.mxu0 %v1325_v46  ;;  %v1230_v46 = vld [vmem:[#allocation2 + $0x71] sm:$0xff] }
 0x17e   : > { %1917 = vmatmul.bf16.gmra.mxu1 %v1527_v16  ;;  %v1530_v16 = vpack.c.bf16 %v1485_v52, %v1484_v54  ;;  %v1328_v52 = vpack.c.bf16 %v1231_v48, %v1230_v46  ;;  %v1441_v46 = vld [vmem:[#allocation2 + $0x93] sm:$0xff] }
 0x17f   : > { %v1531_v36 = vpack.c.bf16 %v1442_v31, %v1441_v46  ;;  %v1444_v46 = vld [vmem:[#allocation2 + $0xab] sm:$0xff] }
 0x181   : > { %v5786_v57 = vpop.f32.mrf.mxu3 }
 0x182   : > { %6170 = vst [vmem:[#allocation28_spill] sm:$0xff] %v5786_v57  ;;  %v5788_v47 = vpop.f32.mrf.mxu0 }
 0x183   : > { %v5796_v60 = vpop.f32.mrf.mxu1 }
 0x185   : > { %2045 = vmatmul.bf16.gmra.mxu2 %v1530_v16  ;;  %v1487_v16 = vld [vmem:[#allocation2 + $0x9c] sm:$0xff] }
 0x186   : > { %2312 = vmatmul.bf16.gmra.mxu3 %v1327_v26  ;;  %v1532_v57 = vpack.c.bf16 %v1487_v16, %v1486_v7 }
 0x188   : > { %v5798_v30 = vpop.f32.mrf.mxu2 }
 0x189   : > { %v5800_v24 = vpop.f32.mrf.mxu3 }
 0x18a   : > { %6171 = vst [vmem:[#allocation29_spill] sm:$0xff] %v5800_v24  ;;  %v5802_v37 = vpop.f32.mrf.mxu0 }
 0x18b   : > { %v5810_v54 = vpop.f32.mrf.mxu1 }
 0x18d   : > { %2435 = vmatmul.bf16.gmra.mxu0 %v1328_v52 }
 0x18e   : > { %1922 = vmatmul.bf16.gmra.mxu1 %v1529_v25 }
 0x190   : > { %v5812_v55 = vpop.f32.mrf.mxu2 }
 0x191   : > { %v1877_v26 = vpop.f32.mrf.mxu3 }
 0x192   : > { %v5814_v63 = vpop.f32.mrf.mxu0 }
 0x193   : > { %v5816_v24 = vpop.f32.mrf.mxu1 }
 0x195   : > { %2050 = vmatmul.bf16.gmra.mxu2 %v1532_v57 }
 0x196   : > { %2317 = vmatmul.bf16.gmra.mxu3 %v1330_v59  ;;  %v1190_v59 = vld [vmem:[#allocation2 + $0x98] sm:$0xff] }
 0x197   : > { %v1333_v41 = vpack.c.bf16 %v1190_v59, %v1189_v42  ;;  %v1191_v59 = vld [vmem:[#allocation2 + $0xa0] sm:$0xff] }
 0x198   : > { %v2011_v48 = vpop.f32.mrf.mxu2 }
 0x199   : > { %v2278_v53 = vpop.f32.mrf.mxu3 }
 0x19a   : > { %v2401_v52 = vpop.f32.mrf.mxu0 }
 0x19b   : > { %v1888_v25 = vpop.f32.mrf.mxu1 }
 0x19c   : > { %v1889_v26 = vadd.f32 %v1888_v25, %v5688_v58 }
 0x19d   : > { %2440 = vmatmul.bf16.gmra.mxu0 %v1331_v35 }
 0x19e   : > { %v2012_v21 = vadd.f32 %v2011_v48, %v1889_v26  ;;  %1927 = vmatmul.bf16.gmra.mxu1 %v1531_v36  ;;  %v1235_v48 = vld [vmem:[#allocation2 + $0x99] sm:$0xff]  ;;  %v1443_v26 = vld [vmem:[#allocation2 + $0xa3] sm:$0xff] }
 0x19f   : > { %v1533_v34 = vpack.c.bf16 %v1444_v46, %v1443_v26 }
 0x1a0   : > { %v2279_v7 = vadd.f32 %v2278_v53, %v2012_v21  ;;  %v2013_v16 = vpop.f32.mrf.mxu2  ;;  %v1234_v21 = vld [vmem:[#allocation2 + $0x91] sm:$0xff] }
 0x1a1   : > { %v2280_v51 = vpop.f32.mrf.mxu3 }
 0x1a2   : > { %v5819_v57 = vadd.f32 %v2401_v52, %v2279_v7  ;;  %v2403_v17 = vpop.f32.mrf.mxu0  ;;  %v1334_v7 = vpack.c.bf16 %v1235_v48, %v1234_v21 }
 0x1a3   : > { %v1890_v40 = vpop.f32.mrf.mxu1 }
 0x1a4   : > { %v1891_v2 = vadd.f32 %v1890_v40, %v5694_v22  ;;  %v1490_v40 = vld [vmem:[#allocation2 + $0xb4] sm:$0xff] }
 0x1a5   : > { %2055 = vmatmul.bf16.gmra.mxu2 %v1534_v9 }
 0x1a6   : > { %v2014_v58 = vadd.f32 %v2013_v16, %v1891_v2  ;;  %2322 = vmatmul.bf16.gmra.mxu3 %v1333_v41  ;;  %v1491_v16 = vld [vmem:[#allocation2 + $0xbc] sm:$0xff] }
 0x1a7   : > { %v4588_v41 = vld [vmem:[%s6116_s7 + $0x198] sm:$0xff] }
 0x1a8   : > { %v2281_v35 = vadd.f32 %v2280_v51, %v2014_v58  ;;  %v2016_v36 = vpop.f32.mrf.mxu2  ;;  %3039 = vmatpush.bf16.msra.mxu2 %v4588_v41 }
 0x1a9   : > { %v2283_v53 = vpop.f32.mrf.mxu3 }
 0x1aa   : > { %v5822_v31 = vadd.f32 %v2403_v17, %v2281_v35  ;;  %v2406_v52 = vpop.f32.mrf.mxu0  ;;  %v1536_v35 = vpack.c.bf16 %v1491_v16, %v1490_v40  ;;  %v4604_v40 = vld [vmem:[%s6116_s7 + $0x218] sm:$0xff] }
 0x1ab   : > { %v1893_v25 = vpop.f32.mrf.mxu1  ;;  %3285 = vmatpush.bf16.msra.mxu0 %v4604_v40 }
 0x1ac   : > { %v1894_v38 = vadd.f32 %v1893_v25, %v5702_v39  ;;  %v4596_v39 = vld [vmem:[%s6116_s7 + $0x1d8] sm:$0xff]  ;;  %v1237_v25 = vld [vmem:[#allocation2 + $0xa9] sm:$0xff] }
 0x1ad   : > { %2445 = vmatmul.bf16.gmra.mxu0 %v1334_v7  ;;  %3162 = vmatpush.bf16.msra.mxu3 %v4596_v39  ;;  %v1445_v7 = vld [vmem:[#allocation2 + $0xb3] sm:$0xff] }
 0x1ae   : > { %v2017_v42 = vadd.f32 %v2016_v36, %v1894_v38  ;;  %1932 = vmatmul.bf16.gmra.mxu1 %v1533_v34  ;;  %v1192_v36 = vld [vmem:[#allocation2 + $0xa8] sm:$0xff]  ;;  %v1446_v38 = vld [vmem:[#allocation2 + $0xbb] sm:$0xff] }
 0x1af   : > { %v1336_v48 = vpack.c.bf16 %v1192_v36, %v1191_v59  ;;  %v1535_v59 = vpack.c.bf16 %v1446_v38, %v1445_v7 }
 0x1b0   : > { %v2284_v22 = vadd.f32 %v2283_v53, %v2017_v42  ;;  %v2018_v9 = vpop.f32.mrf.mxu2 }
 0x1b1   : > { %v2285_v51 = vpop.f32.mrf.mxu3 }
 0x1b2   : > { %v5825_v2 = vadd.f32 %v2406_v52, %v2284_v22  ;;  %v2408_v17 = vpop.f32.mrf.mxu0  ;;  %v1236_v22 = vld [vmem:[#allocation2 + $0xa1] sm:$0xff] }
 0x1b3   : > { %v1895_v58 = vpop.f32.mrf.mxu1  ;;  %v1337_v16 = vpack.c.bf16 %v1237_v25, %v1236_v22  ;;  %v1193_v25 = vld [vmem:[#allocation2 + $0xb0] sm:$0xff] }
 0x1b4   : > { %v1896_v21 = vadd.f32 %v1895_v58, %v5710_v20  ;;  %v4556_v20 = vld [vmem:[%s6116_s7 + $0x98] sm:$0xff]  ;;  %v1492_v58 = vld [vmem:[#allocation2 + $0xc4] sm:$0xff] }
 0x1b5   : > { %2060 = vmatmul.bf16.gmra.mxu2 %v1536_v35  ;;  %2519 = vmatpush.bf16.msra.mxu1 %v4556_v20  ;;  %v1493_v35 = vld [vmem:[#allocation2 + $0xcc] sm:$0xff]  ;;  %v1239_v20 = vld [vmem:[#allocation2 + $0xb9] sm:$0xff] }
 0x1b6   : > { %v2019_v53 = vadd.f32 %v2018_v9, %v1896_v21  ;;  %2327 = vmatmul.bf16.gmra.mxu3 %v1336_v48  ;;  %v1194_v21 = vld [vmem:[#allocation2 + $0xb8] sm:$0xff] }
 0x1b7   : > { %v1339_v7 = vpack.c.bf16 %v1194_v21, %v1193_v25 }
 0x1b8   : > { %v2286_v46 = vadd.f32 %v2285_v51, %v2019_v53  ;;  %v2021_v52 = vpop.f32.mrf.mxu2 }
 0x1b9   : > { %v2288_v26 = vpop.f32.mrf.mxu3 }
 0x1ba   : > { %v5834_v34 = vadd.f32 %v2408_v17, %v2286_v46  ;;  %v2411_v42 = vpop.f32.mrf.mxu0 }
 0x1bb   : > { %v1898_v9 = vpop.f32.mrf.mxu1 }
 0x1bc   : > { %6172 = vst [vmem:[#allocation30_spill] sm:$0xff] %v5834_v34  ;;  %v1899_v51 = vadd.f32 %v1898_v9, %v5724_v61  ;;  %v1538_v34 = vpack.c.bf16 %v1493_v35, %v1492_v58  ;;  %v1447_v9 = vld [vmem:[#allocation2 + $0xc3] sm:$0xff]  ;;  %v1494_v35 = vld [vmem:[#allocation2 + $0xd4] sm:$0xff] }
 0x1bd   : > { %2450 = vmatmul.bf16.gmra.mxu0 %v1337_v16  ;;  %v1448_v16 = vld [vmem:[#allocation2 + $0xcb] sm:$0xff] }
 0x1be   : > { %v2022_v17 = vadd.f32 %v2021_v52, %v1899_v51  ;;  %1937 = vmatmul.bf16.gmra.mxu1 %v1535_v59  ;;  %v1537_v58 = vpack.c.bf16 %v1448_v16, %v1447_v9  ;;  %v1241_v9 = vld [vmem:[#allocation2 + $0xc9] sm:$0xff] }
 0x1c0   : > { %v2289_v41 = vadd.f32 %v2288_v26, %v2022_v17  ;;  %v2023_v39 = vpop.f32.mrf.mxu2  ;;  %v1238_v26 = vld [vmem:[#allocation2 + $0xb1] sm:$0xff] }
 0x1c1   : > { %v2290_v36 = vpop.f32.mrf.mxu3  ;;  %v1340_v17 = vpack.c.bf16 %v1239_v20, %v1238_v26 }
 0x1c2   : > { %v5843_v48 = vadd.f32 %v2411_v42, %v2289_v41  ;;  %v2413_v53 = vpop.f32.mrf.mxu0 }
 0x1c3   : > { %v1900_v46 = vpop.f32.mrf.mxu1 }
 0x1c4   : > { %v1901_v61 = vadd.f32 %v1900_v46, %v5743_v44 }
 0x1c5   : > { %2065 = vmatmul.bf16.gmra.mxu2 %v1538_v34 }
 0x1c6   : > { %v2024_v38 = vadd.f32 %v2023_v39, %v1901_v61  ;;  %2332 = vmatmul.bf16.gmra.mxu3 %v1339_v7  ;;  %v1195_v7 = vld [vmem:[#allocation2 + $0xc0] sm:$0xff] }
 0x1c8   : > { %v2291_v52 = vadd.f32 %v2290_v36, %v2024_v38  ;;  %v2026_v22 = vpop.f32.mrf.mxu2  ;;  %v1495_v36 = vld [vmem:[#allocation2 + $0xdc] sm:$0xff] }
 0x1c9   : > { %v2293_v40 = vpop.f32.mrf.mxu3 }
 0x1ca   : > { %v5846_v51 = vadd.f32 %v2413_v53, %v2291_v52  ;;  %v2416_v42 = vpop.f32.mrf.mxu0  ;;  %v1540_v53 = vpack.c.bf16 %v1495_v36, %v1494_v35  ;;  %v1496_v35 = vld [vmem:[#allocation2 + $0xe4] sm:$0xff]  ;;  %v1497_v36 = vld [vmem:[#allocation2 + $0xec] sm:$0xff] }
 0x1cb   : > { %v1903_v59 = vpop.f32.mrf.mxu1 }
 0x1cc   : > { %v1904_v41 = vadd.f32 %v1903_v59, %v5756_v49  ;;  %v6173_v49 = vmax.f32 %v5620_v10, 0.0  ;;  %v1450_v59 = vld [vmem:[#allocation2 + $0xdb] sm:$0xff] }
 0x1cd   : > { %2455 = vmatmul.bf16.gmra.mxu0 %v1340_v17 }
 0x1ce   : > { %v2027_v44 = vadd.f32 %v2026_v22, %v1904_v41  ;;  %1942 = vmatmul.bf16.gmra.mxu1 %v1537_v58  ;;  %v4912_v22 = vpack.c.bf16 %v6173_v49, %v1195_v7  ;;  %v1197_v49 = vld [vmem:[#allocation2 + $0xd0] sm:$0xff] }
 0x1d0   : > { %v2294_v34 = vadd.f32 %v2293_v40, %v2027_v44  ;;  %v2028_v39 = vpop.f32.mrf.mxu2  ;;  %v1240_v40 = vld [vmem:[#allocation2 + $0xc1] sm:$0xff] }
 0x1d1   : > { %v2295_v21 = vpop.f32.mrf.mxu3  ;;  %v1343_v58 = vpack.c.bf16 %v1241_v9, %v1240_v40 }
 0x1d2   : > { %v5849_v46 = vadd.f32 %v2416_v42, %v2294_v34  ;;  %v2418_v25 = vpop.f32.mrf.mxu0  ;;  %v1449_v42 = vld [vmem:[#allocation2 + $0xd3] sm:$0xff] }
 0x1d3   : > { %v1905_v61 = vpop.f32.mrf.mxu1  ;;  %v1539_v6 = vpack.c.bf16 %v1450_v59, %v1449_v42  ;;  %v1243_v42 = vld [vmem:[#allocation2 + $0xd9] sm:$0xff] }
 0x1d4   : > { %v1906_v38 = vadd.f32 %v1905_v61, %v5764_v4  ;;  %v1198_v61 = vld [vmem:[#allocation2 + $0xd8] sm:$0xff] }
 0x1d5   : > { %2070 = vmatmul.bf16.gmra.mxu2 %v1540_v53 }
 0x1d6   : > { %v2029_v52 = vadd.f32 %v2028_v39, %v1906_v38  ;;  %4913 = vmatmul.msk.bf16.gmra.mxu3 %vm4911_vm8, %v4912_v22 }
 0x1d8   : > { %v2296_v26 = vadd.f32 %v2295_v21, %v2029_v52  ;;  %v2031_v20 = vpop.f32.mrf.mxu2  ;;  %v1542_v52 = vpack.c.bf16 %v1497_v36, %v1496_v35 }
 0x1d9   : > { %v2298_v16 = vpop.f32.mrf.mxu3 }
 0x1da   : > { %v5857_v17 = vadd.f32 %v2418_v25, %v2296_v26  ;;  %v2421_v4 = vpop.f32.mrf.mxu0  ;;  %v4587_v25 = vld [vmem:[%s6116_s7 + $0x190] sm:$0xff]  ;;  %v1345_v26 = vpack.c.bf16 %v1198_v61, %v1197_v49 }
 0x1db   : > { %v1908_v41 = vpop.f32.mrf.mxu1  ;;  %3040 = vmatpush.bf16.msra.mxu2 %v4587_v25  ;;  %v1499_v25 = vld [vmem:[#allocation2 + $0xfc] sm:$0xff] }
 0x1dc   : > { %v1909_v44 = vadd.f32 %v1908_v41, %v5780_v19  ;;  %v4595_v19 = vld [vmem:[%s6116_s7 + $0x1d0] sm:$0xff] }
 0x1dd   : > { %2460 = vmatmul.bf16.gmra.mxu0 %v1343_v58  ;;  %3163 = vmatpush.bf16.msra.mxu3 %v4595_v19  ;;  %v1452_v41 = vld [vmem:[#allocation2 + $0xeb] sm:$0xff] }
 0x1de   : > { %v2032_v34 = vadd.f32 %v2031_v20, %v1909_v44  ;;  %1947 = vmatmul.bf16.gmra.mxu1 %v1539_v6  ;;  %v4603_v6 = vld [vmem:[%s6116_s7 + $0x210] sm:$0xff] }
 0x1df   : > { %3286 = vmatpush.bf16.msra.mxu0 %v4603_v6  ;;  %v1454_v6 = vld [vmem:[#allocation2 + $0xfb] sm:$0xff] }
 0x1e0   : > { %v2299_v10 = vadd.f32 %v2298_v16, %v2032_v34  ;;  %v2033_v39 = vpop.f32.mrf.mxu2  ;;  %v1242_v16 = vld [vmem:[#allocation2 + $0xd1] sm:$0xff] }
 0x1e1   : > { %v2300_v21 = vpop.f32.mrf.mxu3 }
 0x1e2   : > { %v5860_v53 = vadd.f32 %v2421_v4, %v2299_v10  ;;  %v2423_v7 = vpop.f32.mrf.mxu0  ;;  %v1451_v4 = vld [vmem:[#allocation2 + $0xe3] sm:$0xff]  ;;  %v1346_v10 = vpack.c.bf16 %v1243_v42, %v1242_v16 }
 0x1e3   : > { %v1910_v38 = vpop.f32.mrf.mxu1  ;;  %v1541_v35 = vpack.c.bf16 %v1452_v41, %v1451_v4  ;;  %v1245_v4 = vld [vmem:[#allocation2 + $0xe9] sm:$0xff] }
 0x1e4   : > { %v1911_v22 = vadd.f32 %v1910_v38, %v5788_v47  ;;  %v4555_v47 = vld [vmem:[%s6116_s7 + $0x90] sm:$0xff]  ;;  %v1200_v38 = vld [vmem:[#allocation2 + $0xe8] sm:$0xff] }
 0x1e5   : > { %2075 = vmatmul.bf16.gmra.mxu2 %v1542_v52  ;;  %2520 = vmatpush.bf16.msra.mxu1 %v4555_v47  ;;  %v1453_v47 = vld [vmem:[#allocation2 + $0xf3] sm:$0xff] }
 0x1e6   : > { %v2034_v20 = vadd.f32 %v2033_v39, %v1911_v22  ;;  %2342 = vmatmul.bf16.gmra.mxu3 %v1345_v26 }
 0x1e8   : > { %v2301_v40 = vadd.f32 %v2300_v21, %v2034_v20  ;;  %v2036_v9 = vpop.f32.mrf.mxu2  ;;  %v1199_v20 = vld [vmem:[#allocation2 + $0xe0] sm:$0xff] }
 0x1e9   : > { %v2303_v59 = vpop.f32.mrf.mxu3 }
 0x1ea   : > { %v5869_v58 = vadd.f32 %v2423_v7, %v2301_v40  ;;  %v2426_v44 = vpop.f32.mrf.mxu0  ;;  %v1498_v7 = vld [vmem:[#allocation2 + $0xf4] sm:$0xff]  ;;  %v1348_v40 = vpack.c.bf16 %v1200_v38, %v1199_v20 }
 0x1eb   : > { %v1913_v34 = vpop.f32.mrf.mxu1  ;;  %v1544_v26 = vpack.c.bf16 %v1499_v25, %v1498_v7  ;;  %v1501_v7 = vld [vmem:[#allocation2 + $0x10c] sm:$0xff] }
 0x1ec   : > { %v1914_v39 = vadd.f32 %v1913_v34, %v5802_v37 }
 0x1ed   : > { %2465 = vmatmul.bf16.gmra.mxu0 %v1346_v10 }
 0x1ee   : > { %v2037_v36 = vadd.f32 %v2036_v9, %v1914_v39  ;;  %1952 = vmatmul.bf16.gmra.mxu1 %v1541_v35 }
 0x1f0   : > { %v2304_v21 = vadd.f32 %v2303_v59, %v2037_v36  ;;  %v2038_v61 = vpop.f32.mrf.mxu2  ;;  %v1244_v59 = vld [vmem:[#allocation2 + $0xe1] sm:$0xff]  ;;  %v1543_v36 = vpack.c.bf16 %v1454_v6, %v1453_v47  ;;  %v1456_v47 = vld [vmem:[#allocation2 + $0x10b] sm:$0xff] }
 0x1f1   : > { %v2305_v19 = vpop.f32.mrf.mxu3  ;;  %v1349_v39 = vpack.c.bf16 %v1245_v4, %v1244_v59  ;;  %v1246_v59 = vld [vmem:[#allocation2 + $0xf1] sm:$0xff]  ;;  %v1247_v4 = vld [vmem:[#allocation2 + $0xf9] sm:$0xff] }
 0x1f2   : > { %v5878_v52 = vadd.f32 %v2426_v44, %v2304_v21  ;;  %v2428_v49 = vpop.f32.mrf.mxu0 }
 0x1f3   : > { %v1915_v22 = vpop.f32.mrf.mxu1 }
 0x1f4   : > { %v1916_v37 = vadd.f32 %v1915_v22, %v5814_v63 }
 0x1f5   : > { %2080 = vmatmul.bf16.gmra.mxu2 %v1544_v26  ;;  %v1500_v26 = vld [vmem:[#allocation2 + $0x104] sm:$0xff] }
 0x1f6   : > { %v2039_v16 = vadd.f32 %v2038_v61, %v1916_v37  ;;  %2347 = vmatmul.bf16.gmra.mxu3 %v1348_v40  ;;  %v1546_v20 = vpack.c.bf16 %v1501_v7, %v1500_v26  ;;  %v1201_v37 = vld [vmem:[#allocation2 + $0xf0] sm:$0xff] }
 0x1f8   : > { %v2306_v9 = vadd.f32 %v2305_v19, %v2039_v16  ;;  %v2041_v42 = vpop.f32.mrf.mxu2  ;;  %v1202_v19 = vld [vmem:[#allocation2 + $0xf8] sm:$0xff] }
 0x1f9   : > { %v2308_v41 = vpop.f32.mrf.mxu3  ;;  %v1351_v16 = vpack.c.bf16 %v1202_v19, %v1201_v37  ;;  %v1502_v19 = vld [vmem:[#allocation2 + $0x114] sm:$0xff] }
 0x1fa   : > { %v5881_v34 = vadd.f32 %v2428_v49, %v2306_v9  ;;  %v2431_v44 = vpop.f32.mrf.mxu0 }
 0x1fb   : > { %v1918_v10 = vpop.f32.mrf.mxu1 }
 0x1fc   : > { %v1919_v35 = vadd.f32 %v1918_v10, %v5690_v5  ;;  %v4586_v10 = vld [vmem:[%s6116_s7 + $0x188] sm:$0xff] }
 0x1fd   : > { %2470 = vmatmul.bf16.gmra.mxu0 %v1349_v39  ;;  %3041 = vmatpush.bf16.msra.mxu2 %v4586_v10 }
 0x1fe   : > { %v2042_v63 = vadd.f32 %v2041_v42, %v1919_v35  ;;  %1957 = vmatmul.bf16.gmra.mxu1 %v1543_v36  ;;  %v1455_v35 = vld [vmem:[#allocation2 + $0x103] sm:$0xff]  ;;  %v1352_v36 = vpack.c.bf16 %v1247_v4, %v1246_v59 }
 0x200   : > { %v2309_v21 = vadd.f32 %v2308_v41, %v2042_v63  ;;  %v2043_v61 = vpop.f32.mrf.mxu2 }
 0x201   : > { %v2310_v25 = vpop.f32.mrf.mxu3 }
 0x202   : > { %v5884_v38 = vadd.f32 %v2431_v44, %v2309_v21  ;;  %v2433_v22 = vpop.f32.mrf.mxu0  ;;  %v1545_v21 = vpack.c.bf16 %v1456_v47, %v1455_v35 }
 0x203   : > { %v1920_v49 = vpop.f32.mrf.mxu1 }
 0x204   : > { %v1921_v40 = vadd.f32 %v1920_v49, %v5696_v45  ;;  %v4594_v45 = vld [vmem:[%s6116_s7 + $0x1c8] sm:$0xff]  ;;  %v1203_v49 = vld [vmem:[#allocation2 + $0x100] sm:$0xff] }
 0x205   : > { %2085 = vmatmul.bf16.gmra.mxu2 %v1546_v20  ;;  %3164 = vmatpush.bf16.msra.mxu3 %v4594_v45  ;;  %v1457_v45 = vld [vmem:[#allocation2 + $0x113] sm:$0xff] }
 0x206   : > { %v2044_v5 = vadd.f32 %v2043_v61, %v1921_v40  ;;  %2352 = vmatmul.bf16.gmra.mxu3 %v1351_v16  ;;  %v4554_v40 = vld [vmem:[%s6116_s7 + $0x88] sm:$0xff] }
 0x207   : > { %2521 = vmatpush.bf16.msra.mxu1 %v4554_v40 }
 0x208   : > { %v2311_v9 = vadd.f32 %v2310_v25, %v2044_v5  ;;  %v2046_v42 = vpop.f32.mrf.mxu2 }
 0x209   : > { %v2313_v41 = vpop.f32.mrf.mxu3 }
 0x20a   : > { %v5887_v6 = vadd.f32 %v2433_v22, %v2311_v9  ;;  %v2436_v44 = vpop.f32.mrf.mxu0  ;;  %v1503_v22 = vld [vmem:[#allocation2 + $0x11c] sm:$0xff]  ;;  %v1204_v9 = vld [vmem:[#allocation2 + $0x108] sm:$0xff] }
 0x20b   : > { %v1923_v39 = vpop.f32.mrf.mxu1  ;;  %v1548_v5 = vpack.c.bf16 %v1503_v22, %v1502_v19  ;;  %v1354_v59 = vpack.c.bf16 %v1204_v9, %v1203_v49  ;;  %v1505_v49 = vld [vmem:[#allocation2 + $0x12c] sm:$0xff] }
 0x20c   : > { %v1924_v63 = vadd.f32 %v1923_v39, %v5704_v56  ;;  %v4602_v56 = vld [vmem:[%s6116_s7 + $0x208] sm:$0xff]  ;;  %v1458_v39 = vld [vmem:[#allocation2 + $0x11b] sm:$0xff] }
 0x20d   : > { %2475 = vmatmul.bf16.gmra.mxu0 %v1352_v36 }
 0x20e   : > { %v2047_v61 = vadd.f32 %v2046_v42, %v1924_v63  ;;  %1962 = vmatmul.bf16.gmra.mxu1 %v1545_v21  ;;  %3287 = vmatpush.bf16.msra.mxu0 %v4602_v56  ;;  %v1248_v63 = vld [vmem:[#allocation2 + $0x101] sm:$0xff]  ;;  %v1206_v56 = vld [vmem:[#allocation2 + $0x118] sm:$0xff] }
 0x210   : > { %v2314_v7 = vadd.f32 %v2313_v41, %v2047_v61  ;;  %v2048_v25 = vpop.f32.mrf.mxu2 }
 0x211   : > { %v2315_v26 = vpop.f32.mrf.mxu3 }
 0x212   : > { %v5896_v20 = vadd.f32 %v2436_v44, %v2314_v7  ;;  %v2438_v37 = vpop.f32.mrf.mxu0  ;;  %v1249_v44 = vld [vmem:[#allocation2 + $0x109] sm:$0xff]  ;;  %v1547_v7 = vpack.c.bf16 %v1458_v39, %v1457_v45 }
 0x213   : > { %v1925_v16 = vpop.f32.mrf.mxu1  ;;  %v1355_v61 = vpack.c.bf16 %v1249_v44, %v1248_v63  ;;  %v1250_v44 = vld [vmem:[#allocation2 + $0x111] sm:$0xff]  ;;  %v1459_v39 = vld [vmem:[#allocation2 + $0x123] sm:$0xff] }
 0x214   : > { %v1926_v42 = vadd.f32 %v1925_v16, %v5712_v15  ;;  %v1460_v63 = vld [vmem:[#allocation2 + $0x12b] sm:$0xff] }
 0x215   : > { %2090 = vmatmul.bf16.gmra.mxu2 %v1548_v5 }
 0x216   : > { %v2049_v4 = vadd.f32 %v2048_v25, %v1926_v42  ;;  %2357 = vmatmul.bf16.gmra.mxu3 %v1354_v59  ;;  %v1205_v42 = vld [vmem:[#allocation2 + $0x110] sm:$0xff] }
 0x218   : > { %v2316_v41 = vadd.f32 %v2315_v26, %v2049_v4  ;;  %v2051_v47 = vpop.f32.mrf.mxu2  ;;  %v1504_v26 = vld [vmem:[#allocation2 + $0x124] sm:$0xff]  ;;  %v1357_v4 = vpack.c.bf16 %v1206_v56, %v1205_v42 }
 0x219   : > { %v2318_v10 = vpop.f32.mrf.mxu3  ;;  %v1550_v9 = vpack.c.bf16 %v1505_v49, %v1504_v26  ;;  %v1506_v26 = vld [vmem:[#allocation2 + $0x134] sm:$0xff]  ;;  %v1507_v49 = vld [vmem:[#allocation2 + $0x13c] sm:$0xff]  ;;  %v1208_v56 = vld [vmem:[#allocation2 + $0x128] sm:$0xff] }
 0x21a   : > { %v5905_v35 = vadd.f32 %v2438_v37, %v2316_v41  ;;  %v2441_v36 = vpop.f32.mrf.mxu0  ;;  %v1552_v42 = vpack.c.bf16 %v1507_v49, %v1506_v26 }
 0x21b   : > { %v1928_v21 = vpop.f32.mrf.mxu1 }
 0x21c   : > { %v1929_v15 = vadd.f32 %v1928_v21, %v5731_v28 }
 0x21d   : > { %2480 = vmatmul.bf16.gmra.mxu0 %v1355_v61 }
 0x21e   : > { %v2052_v19 = vadd.f32 %v2051_v47, %v1929_v15  ;;  %1967 = vmatmul.bf16.gmra.mxu1 %v1547_v7 }
 0x220   : > { %v2319_v25 = vadd.f32 %v2318_v10, %v2052_v19  ;;  %v2053_v22 = vpop.f32.mrf.mxu2  ;;  %v1251_v10 = vld [vmem:[#allocation2 + $0x119] sm:$0xff]  ;;  %v1549_v19 = vpack.c.bf16 %v1460_v63, %v1459_v39 }
 0x221   : > { %v2320_v40 = vpop.f32.mrf.mxu3  ;;  %v1358_v15 = vpack.c.bf16 %v1251_v10, %v1250_v44  ;;  %v1252_v44 = vld [vmem:[#allocation2 + $0x121] sm:$0xff]  ;;  %v1253_v10 = vld [vmem:[#allocation2 + $0x129] sm:$0xff]  ;;  %v1461_v39 = vld [vmem:[#allocation2 + $0x133] sm:$0xff] }
 0x222   : > { %v5908_v16 = vadd.f32 %v2441_v36, %v2319_v25  ;;  %v2443_v37 = vpop.f32.mrf.mxu0  ;;  %v1462_v63 = vld [vmem:[#allocation2 + $0x13b] sm:$0xff] }
 0x223   : > { %v1930_v5 = vpop.f32.mrf.mxu1 }
 0x224   : > { %v1931_v59 = vadd.f32 %v1930_v5, %v5745_v27 }
 0x225   : > { %2095 = vmatmul.bf16.gmra.mxu2 %v1550_v9 }
 0x226   : > { %v2054_v28 = vadd.f32 %v2053_v22, %v1931_v59  ;;  %2362 = vmatmul.bf16.gmra.mxu3 %v1357_v4  ;;  %v1207_v59 = vld [vmem:[#allocation2 + $0x120] sm:$0xff] }
 0x228   : > { %v2321_v41 = vadd.f32 %v2320_v40, %v2054_v28  ;;  %v2056_v47 = vpop.f32.mrf.mxu2  ;;  %v1360_v28 = vpack.c.bf16 %v1208_v56, %v1207_v59  ;;  %v1508_v59 = vld [vmem:[#allocation2 + $0x144] sm:$0xff] }
 0x229   : > { %v2323_v45 = vpop.f32.mrf.mxu3 }
 0x22a   : > { %v5911_v21 = vadd.f32 %v2443_v37, %v2321_v41  ;;  %v2446_v36 = vpop.f32.mrf.mxu0 }
 0x22b   : > { %v1933_v61 = vpop.f32.mrf.mxu1 }
 0x22c   : > { %v1934_v7 = vadd.f32 %v1933_v61, %v5758_v14 }
 0x22d   : > { %2485 = vmatmul.bf16.gmra.mxu0 %v1358_v15  ;;  %v4585_v15 = vld [vmem:[%s6116_s7 + $0x180] sm:$0xff] }
 0x22e   : > { %v2057_v27 = vadd.f32 %v2056_v47, %v1934_v7  ;;  %1972 = vmatmul.bf16.gmra.mxu1 %v1549_v19  ;;  %v1361_v19 = vpack.c.bf16 %v1253_v10, %v1252_v44  ;;  %3042 = vmatpush.bf16.msra.mxu2 %v4585_v15 }
 0x230   : > { %v2324_v25 = vadd.f32 %v2323_v45, %v2057_v27  ;;  %v2058_v22 = vpop.f32.mrf.mxu2 }
 0x231   : > { %v2325_v40 = vpop.f32.mrf.mxu3 }
 0x232   : > { %v5914_v5 = vadd.f32 %v2446_v36, %v2324_v25  ;;  %v2448_v9 = vpop.f32.mrf.mxu0  ;;  %v1551_v25 = vpack.c.bf16 %v1462_v63, %v1461_v39  ;;  %v1254_v63 = vld [vmem:[#allocation2 + $0x131] sm:$0xff] }
 0x233   : > { %v1935_v37 = vpop.f32.mrf.mxu1 }
 0x234   : > { %v1936_v4 = vadd.f32 %v1935_v37, %v5766_v11  ;;  %v4593_v11 = vld [vmem:[%s6116_s7 + $0x1c0] sm:$0xff] }
 0x235   : > { %2100 = vmatmul.bf16.gmra.mxu2 %v1552_v42  ;;  %3165 = vmatpush.bf16.msra.mxu3 %v4593_v11  ;;  %v1464_v11 = vld [vmem:[#allocation2 + $0x14b] sm:$0xff] }
 0x236   : > { %v2059_v14 = vadd.f32 %v2058_v22, %v1936_v4  ;;  %2367 = vmatmul.bf16.gmra.mxu3 %v1360_v28  ;;  %v4553_v4 = vld [vmem:[%s6116_s7 + $0x80] sm:$0xff] }
 0x237   : > { %2522 = vmatpush.bf16.msra.mxu1 %v4553_v4 }
 0x238   : > { %v2326_v41 = vadd.f32 %v2325_v40, %v2059_v14  ;;  %v2061_v47 = vpop.f32.mrf.mxu2  ;;  %v1509_v40 = vld [vmem:[#allocation2 + $0x14c] sm:$0xff] }
 0x239   : > { %v2328_v45 = vpop.f32.mrf.mxu3  ;;  %v1554_v14 = vpack.c.bf16 %v1509_v40, %v1508_v59  ;;  %v1511_v59 = vld [vmem:[#allocation2 + $0x15c] sm:$0xff] }
 0x23a   : > { %v5917_v61 = vadd.f32 %v2448_v9, %v2326_v41  ;;  %v2451_v36 = vpop.f32.mrf.mxu0  ;;  %v1210_v9 = vld [vmem:[#allocation2 + $0x138] sm:$0xff]  ;;  %v1209_v41 = vld [vmem:[#allocation2 + $0x130] sm:$0xff] }
 0x23b   : > { %v1938_v7 = vpop.f32.mrf.mxu1  ;;  %v1363_v44 = vpack.c.bf16 %v1210_v9, %v1209_v41 }
 0x23c   : > { %v1939_v27 = vadd.f32 %v1938_v7, %v5782_v3  ;;  %v4601_v3 = vld [vmem:[%s6116_s7 + $0x200] sm:$0xff] }
 0x23d   : > { %2490 = vmatmul.bf16.gmra.mxu0 %v1361_v19 }
 0x23e   : > { %v2062_v22 = vadd.f32 %v2061_v47, %v1939_v27  ;;  %1977 = vmatmul.bf16.gmra.mxu1 %v1551_v25  ;;  %3288 = vmatpush.bf16.msra.mxu0 %v4601_v3  ;;  %v1463_v25 = vld [vmem:[#allocation2 + $0x143] sm:$0xff] }
 0x23f   : > { %v1211_v3 = vld [vmem:[#allocation2 + $0x140] sm:$0xff] }
 0x240   : > { %v2329_v26 = vadd.f32 %v2328_v45, %v2062_v22  ;;  %v2063_v49 = vpop.f32.mrf.mxu2 }
 0x241   : > { %v2330_v56 = vpop.f32.mrf.mxu3 }
 0x242   : > { %v5926_v37 = vadd.f32 %v2451_v36, %v2329_v26  ;;  %v2453_v42 = vpop.f32.mrf.mxu0  ;;  %v1255_v36 = vld [vmem:[#allocation2 + $0x139] sm:$0xff]  ;;  %v1553_v26 = vpack.c.bf16 %v1464_v11, %v1463_v25  ;;  %v1256_v25 = vld [vmem:[#allocation2 + $0x141] sm:$0xff] }
 0x243   : > { %v1940_v28 = vpop.f32.mrf.mxu1  ;;  %v1364_v22 = vpack.c.bf16 %v1255_v36, %v1254_v63  ;;  %v1257_v63 = vld [vmem:[#allocation2 + $0x149] sm:$0xff]  ;;  %v1466_v11 = vld [vmem:[#allocation2 + $0x15b] sm:$0xff] }
 0x244   : > { %v1941_v47 = vadd.f32 %v1940_v28, %v5796_v60 }
 0x245   : > { %2105 = vmatmul.bf16.gmra.mxu2 %v1554_v14 }
 0x246   : > { %v2064_v10 = vadd.f32 %v2063_v49, %v1941_v47  ;;  %2372 = vmatmul.bf16.gmra.mxu3 %v1363_v44  ;;  %v1212_v47 = vld [vmem:[#allocation2 + $0x148] sm:$0xff] }
 0x248   : > { %v2331_v45 = vadd.f32 %v2330_v56, %v2064_v10  ;;  %v2066_v39 = vpop.f32.mrf.mxu2  ;;  %v1510_v56 = vld [vmem:[#allocation2 + $0x154] sm:$0xff]  ;;  %v1366_v10 = vpack.c.bf16 %v1212_v47, %v1211_v3 }
 0x249   : > { %v2333_v15 = vpop.f32.mrf.mxu3  ;;  %v1556_v41 = vpack.c.bf16 %v1511_v59, %v1510_v56  ;;  %v1512_v56 = vld [vmem:[#allocation2 + $0x164] sm:$0xff]  ;;  %v1513_v59 = vld [vmem:[#allocation2 + $0x16c] sm:$0xff]  ;;  %v1214_v3 = vld [vmem:[#allocation2 + $0x158] sm:$0xff] }
 0x24a   : > { %v5935_v7 = vadd.f32 %v2453_v42, %v2331_v45  ;;  %v2456_v19 = vpop.f32.mrf.mxu0  ;;  %v1559_v47 = vpack.c.bf16 %v1513_v59, %v1512_v56  ;;  %v1514_v56 = vld [vmem:[#allocation2 + $0x174] sm:$0xff] }
 0x24b   : > { %v1943_v27 = vpop.f32.mrf.mxu1 }
 0x24c   : > { %v1944_v60 = vadd.f32 %v1943_v27, %v5810_v54 }
 0x24d   : > { %2495 = vmatmul.bf16.gmra.mxu0 %v1364_v22 }
 0x24e   : > { %v2067_v40 = vadd.f32 %v2066_v39, %v1944_v60  ;;  %1982 = vmatmul.bf16.gmra.mxu1 %v1553_v26  ;;  %v1367_v60 = vpack.c.bf16 %v1257_v63, %v1256_v25  ;;  %v1258_v63 = vld [vmem:[#allocation2 + $0x151] sm:$0xff] }
 0x24f   : > { %v1468_v25 = vld [vmem:[#allocation2 + $0x16b] sm:$0xff] }
 0x250   : > { %v2334_v49 = vadd.f32 %v2333_v15, %v2067_v40  ;;  %v2068_v9 = vpop.f32.mrf.mxu2  ;;  %v1465_v15 = vld [vmem:[#allocation2 + $0x153] sm:$0xff] }
 0x251   : > { %v2335_v4 = vpop.f32.mrf.mxu3  ;;  %v1555_v40 = vpack.c.bf16 %v1466_v11, %v1465_v15  ;;  %v1467_v11 = vld [vmem:[#allocation2 + $0x163] sm:$0xff] }
 0x252   : > { %v5938_v28 = vadd.f32 %v2456_v19, %v2334_v49  ;;  %v2458_v42 = vpop.f32.mrf.mxu0 }
 0x253   : > { %v1945_v14 = vpop.f32.mrf.mxu1 }
 0x254   : > { %v1946_v44 = vadd.f32 %v1945_v14, %v5816_v24 }
 0x255   : > { %2110 = vmatmul.bf16.gmra.mxu2 %v1556_v41 }
 0x256   : > { %v2069_v54 = vadd.f32 %v2068_v9, %v1946_v44  ;;  %2377 = vmatmul.bf16.gmra.mxu3 %v1366_v10  ;;  %v1213_v44 = vld [vmem:[#allocation2 + $0x150] sm:$0xff] }
 0x258   : > { %v2336_v45 = vadd.f32 %v2335_v4, %v2069_v54  ;;  %v2071_v39 = vpop.f32.mrf.mxu2  ;;  %v1369_v54 = vpack.c.bf16 %v1214_v3, %v1213_v44 }
 0x259   : > { %v2338_v36 = vpop.f32.mrf.mxu3 }
 0x25a   : > { %v5941_v27 = vadd.f32 %v2458_v42, %v2336_v45  ;;  %v2461_v19 = vpop.f32.mrf.mxu0 }
 0x25b   : > { %v1948_v22 = vpop.f32.mrf.mxu1 }
 0x25c   : > { %v1949_v26 = vadd.f32 %v1948_v22, %v5680_v32 }
 0x25d   : > { %2500 = vmatmul.bf16.gmra.mxu0 %v1367_v60 }
 0x25e   : > { %v2072_v24 = vadd.f32 %v2071_v39, %v1949_v26  ;;  %1987 = vmatmul.bf16.gmra.mxu1 %v1555_v40 }
 0x260   : > { %v2339_v49 = vadd.f32 %v2338_v36, %v2072_v24  ;;  %v2073_v9 = vpop.f32.mrf.mxu2  ;;  %v1259_v36 = vld [vmem:[#allocation2 + $0x159] sm:$0xff]  ;;  %v1558_v24 = vpack.c.bf16 %v1468_v25, %v1467_v11 }
 0x261   : > { %v2340_v4 = vpop.f32.mrf.mxu3  ;;  %v1370_v26 = vpack.c.bf16 %v1259_v36, %v1258_v63  ;;  %v1469_v63 = vld [vmem:[#allocation2 + $0x173] sm:$0xff] }
 0x262   : > { %v5944_v14 = vadd.f32 %v2461_v19, %v2339_v49  ;;  %v2463_v42 = vpop.f32.mrf.mxu0 }
 0x263   : > { %v1950_v41 = vpop.f32.mrf.mxu1 }
 0x264   : > { %v1951_v10 = vadd.f32 %v1950_v41, %v5692_v12 }
 0x265   : > { %2115 = vmatmul.bf16.gmra.mxu2 %v1559_v47 }
 0x266   : > { %v2074_v32 = vadd.f32 %v2073_v9, %v1951_v10  ;;  %2382 = vmatmul.bf16.gmra.mxu3 %v1369_v54 }
 0x268   : > { %v2341_v45 = vadd.f32 %v2340_v4, %v2074_v32  ;;  %v2076_v39 = vpop.f32.mrf.mxu2  ;;  %v1215_v4 = vld [vmem:[#allocation2 + $0x160] sm:$0xff] }
 0x269   : > { %v2343_v15 = vpop.f32.mrf.mxu3  ;;  %v1372_v10 = vpack.c.bf16 %v1215_v4, %v1215_v4 }
 0x26a   : > { %v5947_v22 = vadd.f32 %v2463_v42, %v2341_v45  ;;  %v2466_v19 = vpop.f32.mrf.mxu0  ;;  %v1562_v42 = vpack.c.bf16 %v1514_v56, %v1514_v56  ;;  %v1260_v45 = vld [vmem:[#allocation2 + $0x161] sm:$0xff] }
 0x26b   : > { %v1953_v60 = vpop.f32.mrf.mxu1  ;;  %v1373_v25 = vpack.c.bf16 %v1260_v45, %v1260_v45  ;;  %v1261_v45 = vld [vmem:[#allocation2 + $0x2] sm:$0xff] }
 0x26c   : > { %v1954_v40 = vadd.f32 %v1953_v60, %v5698_v29  ;;  %v1561_v60 = vpack.c.bf16 %v1469_v63, %v1469_v63 }
 0x26d   : > { %2505 = vmatmul.bf16.gmra.mxu0 %v1370_v26 }
 0x26e   : > { %v2077_v12 = vadd.f32 %v2076_v39, %v1954_v40  ;;  %1992 = vmatmul.bf16.gmra.mxu1 %v1558_v24  ;;  %v2639_v24 = vld [vmem:[#allocation2 + $0x2c] sm:$0xff] }
 0x270   : > { %v2344_v49 = vadd.f32 %v2343_v15, %v2077_v12  ;;  %v2078_v9 = vpop.f32.mrf.mxu2 }
 0x271   : > { %v2345_v59 = vpop.f32.mrf.mxu3 }
 0x272   : > { %v5950_v3 = vadd.f32 %v2466_v19, %v2344_v49  ;;  %v2468_v41 = vpop.f32.mrf.mxu0  ;;  %v2684_v49 = vld [vmem:[#allocation2 + $0x2d] sm:$0xff] }
 0x273   : > { %v1955_v47 = vpop.f32.mrf.mxu1 }
 0x274   : > { %v1956_v44 = vadd.f32 %v1955_v47, %v5706_v0  ;;  %v2683_v47 = vld [vmem:[#allocation2 + $0x25] sm:$0xff] }
 0x275   : > { %2120 = vmatmul.bf16.gmra.mxu2 %v1562_v42 }
 0x276   : > { %v2079_v54 = vadd.f32 %v2078_v9, %v1956_v44  ;;  %2387 = vmatmul.bf16.gmra.mxu3 %v1372_v10  ;;  %v2774_v44 = vpack.c.bf16 %v2684_v49, %v2683_v47 }
 0x278   : > { %v2346_v29 = vadd.f32 %v2345_v59, %v2079_v54  ;;  %v2081_v32 = vpop.f32.mrf.mxu2  ;;  %v2638_v59 = vld [vmem:[#allocation2 + $0x24] sm:$0xff] }
 0x279   : > { %v2348_v39 = vpop.f32.mrf.mxu3 }
 0x27a   : > { %v5953_v36 = vadd.f32 %v2468_v41, %v2346_v29  ;;  %v2471_v15 = vpop.f32.mrf.mxu0  ;;  %v2773_v41 = vpack.c.bf16 %v2639_v24, %v2638_v59  ;;  %v2729_v29 = vld [vmem:[#allocation2 + $0x2e] sm:$0xff] }
 0x27b   : > { %v1958_v11 = vpop.f32.mrf.mxu1  ;;  %v2640_v24 = vld [vmem:[#allocation2 + $0x34] sm:$0xff] }
 0x27c   : > { %v1959_v19 = vadd.f32 %v1958_v11, %v5714_v1  ;;  %v2685_v59 = vld [vmem:[#allocation2 + $0x35] sm:$0xff] }
 0x27d   : > { %2510 = vmatmul.bf16.gmra.mxu0 %v1373_v25  ;;  %v1262_v25 = vld [vmem:[#allocation2 + $0xa] sm:$0xff] }
 0x27e   : > { %v2082_v26 = vadd.f32 %v2081_v32, %v1959_v19  ;;  %1997 = vmatmul.bf16.gmra.mxu1 %v1561_v60 }
 0x280   : > { %v2349_v0 = vadd.f32 %v2348_v39, %v2082_v26  ;;  %v2083_v40 = vpop.f32.mrf.mxu2  ;;  %v1308_v26 = vpack.c.bf16 %v1262_v25, %v1261_v45 }
 0x281   : > { %v2350_v12 = vpop.f32.mrf.mxu3 }
 0x282   : > { %v5956_v9 = vadd.f32 %v2471_v15, %v2349_v0  ;;  %v2473_v56 = vpop.f32.mrf.mxu0  ;;  %v2728_v15 = vld [vmem:[#allocation2 + $0x26] sm:$0xff] }
 0x283   : > { %v1960_v4 = vpop.f32.mrf.mxu1  ;;  %v2775_v19 = vpack.c.bf16 %v2729_v29, %v2728_v15  ;;  %v2730_v29 = vld [vmem:[#allocation2 + $0x36] sm:$0xff] }
 0x284   : > { %v1961_v42 = vadd.f32 %v1960_v4, %v5733_v43  ;;  %v2686_v4 = vld [vmem:[#allocation2 + $0x3d] sm:$0xff] }
 0x285   : > { %3043 = vmatmul.bf16.vlgmr.msra.gmra.mxu2 %v2773_v41 }
 0x286   : > { %v2084_v1 = vadd.f32 %v2083_v40, %v1961_v42  ;;  %3166 = vmatmul.bf16.vlgmr.msra.gmra.mxu3 %v2774_v44 }
 0x288   : > { %v2351_v10 = vadd.f32 %v2350_v12, %v2084_v1  ;;  %v2086_v54 = vpop.f32.mrf.mxu2  ;;  %v2641_v12 = vld [vmem:[#allocation2 + $0x3c] sm:$0xff]  ;;  %v2777_v1 = vpack.c.bf16 %v2686_v4, %v2685_v59 }
 0x289   : > { %v2353_v32 = vpop.f32.mrf.mxu3  ;;  %v2776_v42 = vpack.c.bf16 %v2641_v12, %v2640_v24  ;;  %v2687_v24 = vld [vmem:[#allocation2 + $0x45] sm:$0xff]  ;;  %v2688_v12 = vld [vmem:[#allocation2 + $0x4d] sm:$0xff] }
 0x28a   : > { %v5959_v39 = vadd.f32 %v2473_v56, %v2351_v10  ;;  %v2476_v63 = vpop.f32.mrf.mxu0 }
 0x28b   : > { %v1963_v11 = vpop.f32.mrf.mxu1 }
 0x28c   : > { %v1964_v60 = vadd.f32 %v1963_v11, %v5747_v13 }
 0x28d   : > { %3289 = vmatmul.bf16.vlgmr.msra.gmra.mxu0 %v2775_v19 }
 0x28e   : > { %v2087_v43 = vadd.f32 %v2086_v54, %v1964_v60  ;;  %2523 = vmatmul.bf16.vlgmr.msra.gmra.mxu1 %v1308_v26 }
 0x290   : > { %v2354_v0 = vadd.f32 %v2353_v32, %v2087_v43  ;;  %v2088_v40 = vpop.f32.mrf.mxu2  ;;  %v2731_v32 = vld [vmem:[#allocation2 + $0x3e] sm:$0xff] }
 0x291   : > { %v2355_v49 = vpop.f32.mrf.mxu3  ;;  %v2642_v43 = vld [vmem:[#allocation2 + $0x44] sm:$0xff] }
 0x292   : > { %v5962_v56 = vadd.f32 %v2476_v63, %v2354_v0  ;;  %v2478_v41 = vpop.f32.mrf.mxu0  ;;  %v2778_v63 = vpack.c.bf16 %v2731_v32, %v2730_v29  ;;  %v2643_v0 = vld [vmem:[#allocation2 + $0x4c] sm:$0xff] }
 0x293   : > { %v1965_v47 = vpop.f32.mrf.mxu1 }
 0x294   : > { %v1966_v44 = vadd.f32 %v1965_v47, %v5760_v18 }
 0x295   : > { %3048 = vmatmul.bf16.gmra.mxu2 %v2776_v42  ;;  %v2780_v42 = vpack.c.bf16 %v2688_v12, %v2687_v24  ;;  %v2689_v12 = vld [vmem:[#allocation2 + $0x55] sm:$0xff] }
 0x296   : > { %v2089_v13 = vadd.f32 %v2088_v40, %v1966_v44  ;;  %3171 = vmatmul.bf16.gmra.mxu3 %v2777_v1  ;;  %v2732_v1 = vld [vmem:[#allocation2 + $0x46] sm:$0xff] }
 0x298   : > { %v2356_v10 = vadd.f32 %v2355_v49, %v2089_v13  ;;  %v2091_v54 = vpop.f32.mrf.mxu2  ;;  %v2733_v13 = vld [vmem:[#allocation2 + $0x4e] sm:$0xff] }
 0x299   : > { %v2358_v45 = vpop.f32.mrf.mxu3 }
 0x29a   : > { %v5965_v15 = vadd.f32 %v2478_v41, %v2356_v10  ;;  %v2481_v11 = vpop.f32.mrf.mxu0  ;;  %v2779_v41 = vpack.c.bf16 %v2643_v0, %v2642_v43  ;;  %v2644_v0 = vld [vmem:[#allocation2 + $0x54] sm:$0xff] }
 0x29b   : > { %v1968_v25 = vpop.f32.mrf.mxu1 }
 0x29c   : > { %v1969_v19 = vadd.f32 %v1968_v25, %v5768_v62 }
 0x29d   : > { %3294 = vmatmul.bf16.gmra.mxu0 %v2778_v63 }
 0x29e   : > { %v2092_v60 = vadd.f32 %v2091_v54, %v1969_v19  ;;  %2528 = vmatmul.bf16.gmra.mxu1 %v5245_v33  ;;  %v2645_v19 = vld [vmem:[#allocation2 + $0x5c] sm:$0xff] }
 0x29f   : > { %v2782_v24 = vpack.c.bf16 %v2645_v19, %v2644_v0  ;;  %v2692_v0 = vld [vmem:[#allocation2 + $0x6d] sm:$0xff] }
 0x2a0   : > { %v2359_v18 = vadd.f32 %v2358_v45, %v2092_v60  ;;  %v2093_v26 = vpop.f32.mrf.mxu2  ;;  %v2781_v45 = vpack.c.bf16 %v2733_v13, %v2732_v1 }
 0x2a1   : > { %v2360_v40 = vpop.f32.mrf.mxu3 }
 0x2a2   : > { %v5969_v49 = vadd.f32 %v2481_v11, %v2359_v18  ;;  %v2483_v59 = vpop.f32.mrf.mxu0  ;;  %v2690_v18 = vld [vmem:[#allocation2 + $0x5d] sm:$0xff] }
 0x2a3   : > { %v1970_v4 = vpop.f32.mrf.mxu1 }
 0x2a4   : > { %v1971_v47 = vadd.f32 %v1970_v4, %v5784_v8  ;;  %v2783_v4 = vpack.c.bf16 %v2690_v18, %v2689_v12 }
 0x2a5   : > { %3053 = vmatmul.bf16.gmra.mxu2 %v2779_v41 }
 0x2a6   : > { %v2094_v62 = vadd.f32 %v2093_v26, %v1971_v47  ;;  %3176 = vmatmul.bf16.gmra.mxu3 %v2780_v42  ;;  %v2735_v47 = vld [vmem:[#allocation2 + $0x5e] sm:$0xff] }
 0x2a8   : > { %v2361_v44 = vadd.f32 %v2360_v40, %v2094_v62  ;;  %v2096_v33 = vpop.f32.mrf.mxu2 }
 0x2a9   : > { %v2363_v10 = vpop.f32.mrf.mxu3 }
 0x2aa   : > { %v5972_v54 = vadd.f32 %v2483_v59, %v2361_v44  ;;  %v2486_v29 = vpop.f32.mrf.mxu0 }
 0x2ab   : > { %v1973_v32 = vpop.f32.mrf.mxu1 }
 0x2ac   : > { %v1974_v11 = vadd.f32 %v1973_v32, %v5798_v30  ;;  %v6174_v32 = vld [vmem:[#allocation10_spill] sm:$0xff] }
 0x2ad   : > { %3299 = vmatmul.bf16.gmra.mxu0 %v2781_v45 }
 0x2ae   : > { %v2097_v25 = vadd.f32 %v2096_v33, %v1974_v11  ;;  %2533 = vmatmul.bf16.gmra.mxu1 %v5346_v23  ;;  %v2734_v33 = vld [vmem:[#allocation2 + $0x56] sm:$0xff]  ;;  %v2646_v11 = vld [vmem:[#allocation2 + $0x64] sm:$0xff] }
 0x2af   : > { %v2784_v13 = vpack.c.bf16 %v2735_v47, %v2734_v33 }
 0x2b0   : > { %v2364_v8 = vadd.f32 %v2363_v10, %v2097_v25  ;;  %v2098_v63 = vpop.f32.mrf.mxu2 }
 0x2b1   : > { %v2365_v60 = vpop.f32.mrf.mxu3 }
 0x2b2   : > { %v5976_v26 = vadd.f32 %v2486_v29, %v2364_v8  ;;  %v2488_v43 = vpop.f32.mrf.mxu0  ;;  %v2691_v8 = vld [vmem:[#allocation2 + $0x65] sm:$0xff] }
 0x2b3   : > { %v1975_v40 = vpop.f32.mrf.mxu1  ;;  %v2786_v12 = vpack.c.bf16 %v2692_v0, %v2691_v8  ;;  %v2693_v8 = vld [vmem:[#allocation2 + $0x75] sm:$0xff] }
 0x2b4   : > { %v1976_v59 = vadd.f32 %v1975_v40, %v5812_v55  ;;  %v6175_v40 = vld [vmem:[#allocation22_spill] sm:$0xff] }
 0x2b5   : > { %3058 = vmatmul.bf16.gmra.mxu2 %v2782_v24 }
 0x2b6   : > { %v2099_v30 = vadd.f32 %v2098_v63, %v1976_v59  ;;  %3181 = vmatmul.bf16.gmra.mxu3 %v2783_v4 }
 0x2b8   : > { %v2366_v41 = vadd.f32 %v2365_v60, %v2099_v30  ;;  %v2101_v23 = vpop.f32.mrf.mxu2  ;;  %v2647_v60 = vld [vmem:[#allocation2 + $0x6c] sm:$0xff] }
 0x2b9   : > { %v2368_v42 = vpop.f32.mrf.mxu3  ;;  %v2736_v30 = vld [vmem:[#allocation2 + $0x66] sm:$0xff] }
 0x2ba   : > { %v5979_v62 = vadd.f32 %v2488_v43, %v2366_v41  ;;  %v2491_v44 = vpop.f32.mrf.mxu0  ;;  %v2785_v43 = vpack.c.bf16 %v2647_v60, %v2646_v11  ;;  %v2649_v11 = vld [vmem:[#allocation2 + $0x7c] sm:$0xff] }
 0x2bb   : > { %v1978_v1 = vpop.f32.mrf.mxu1  ;;  %v2694_v60 = vld [vmem:[#allocation2 + $0x7d] sm:$0xff] }
 0x2bc   : > { %v1979_v10 = vadd.f32 %v1978_v1, %v5700_v50  ;;  %v6176_v1 = vld [vmem:[#allocation23_spill] sm:$0xff] }
 0x2bd   : > { %3304 = vmatmul.bf16.gmra.mxu0 %v2784_v13 }
 0x2be   : > { %v2102_v29 = vadd.f32 %v2101_v23, %v1979_v10  ;;  %2538 = vmatmul.bf16.gmra.mxu1 %v6174_v32 }
 0x2c0   : > { %v2369_v55 = vadd.f32 %v2368_v42, %v2102_v29  ;;  %v2103_v45 = vpop.f32.mrf.mxu2  ;;  %v2737_v42 = vld [vmem:[#allocation2 + $0x6e] sm:$0xff] }
 0x2c1   : > { %v2370_v25 = vpop.f32.mrf.mxu3  ;;  %v2787_v33 = vpack.c.bf16 %v2737_v42, %v2736_v30  ;;  %v6177_v29 = vld [vmem:[#allocation14_spill] sm:$0xff]  ;;  %v2738_v30 = vld [vmem:[#allocation2 + $0x76] sm:$0xff] }
 0x2c2   : > { %v5983_v63 = vadd.f32 %v2491_v44, %v2369_v55  ;;  %v2493_v19 = vpop.f32.mrf.mxu0 }
 0x2c3   : > { %v1980_v18 = vpop.f32.mrf.mxu1 }
 0x2c4   : > { %v1981_v24 = vadd.f32 %v1980_v18, %v6175_v40  ;;  %v6178_v40 = vld [vmem:[#allocation24_spill] sm:$0xff] }
 0x2c5   : > { %3063 = vmatmul.bf16.gmra.mxu2 %v2785_v43 }
 0x2c6   : > { %v2104_v50 = vadd.f32 %v2103_v45, %v1981_v24  ;;  %3186 = vmatmul.bf16.gmra.mxu3 %v2786_v12  ;;  %v2648_v45 = vld [vmem:[#allocation2 + $0x74] sm:$0xff]  ;;  %v2789_v12 = vpack.c.bf16 %v2694_v60, %v2693_v8  ;;  %v2651_v8 = vld [vmem:[#allocation2 + $0x8c] sm:$0xff] }
 0x2c7   : > { %v2788_v0 = vpack.c.bf16 %v2649_v11, %v2648_v45  ;;  %v2695_v60 = vld [vmem:[#allocation2 + $0x85] sm:$0xff] }
 0x2c8   : > { %v2371_v59 = vadd.f32 %v2370_v25, %v2104_v50  ;;  %v2106_v4 = vpop.f32.mrf.mxu2 }
 0x2c9   : > { %v2373_v41 = vpop.f32.mrf.mxu3 }
 0x2ca   : > { %v5986_v23 = vadd.f32 %v2493_v19, %v2371_v59  ;;  %v2496_v47 = vpop.f32.mrf.mxu0 }
 0x2cb   : > { %v1983_v44 = vpop.f32.mrf.mxu1 }
 0x2cc   : > { %v1984_v13 = vadd.f32 %v1983_v44, %v6176_v1 }
 0x2cd   : > { %3309 = vmatmul.bf16.gmra.mxu0 %v2787_v33 }
 0x2ce   : > { %v2107_v10 = vadd.f32 %v2106_v4, %v1984_v13  ;;  %2543 = vmatmul.bf16.gmra.mxu1 %v6177_v29  ;;  %v6179_v13 = vld [vmem:[#allocation25_spill] sm:$0xff] }
 0x2d0   : > { %v2374_v32 = vadd.f32 %v2373_v41, %v2107_v10  ;;  %v2108_v55 = vpop.f32.mrf.mxu2  ;;  %v2739_v41 = vld [vmem:[#allocation2 + $0x7e] sm:$0xff] }
 0x2d1   : > { %v2375_v25 = vpop.f32.mrf.mxu3 }
 0x2d2   : > { %v5990_v18 = vadd.f32 %v2496_v47, %v2374_v32  ;;  %v2498_v19 = vpop.f32.mrf.mxu0  ;;  %v2790_v47 = vpack.c.bf16 %v2739_v41, %v2738_v30  ;;  %v6180_v32 = vld [vmem:[#allocation17_spill] sm:$0xff] }
 0x2d3   : > { %v1985_v43 = vpop.f32.mrf.mxu1 }
 0x2d4   : > { %v1986_v24 = vadd.f32 %v1985_v43, %v6178_v40  ;;  %v2696_v43 = vld [vmem:[#allocation2 + $0x8d] sm:$0xff] }
 0x2d5   : > { %3068 = vmatmul.bf16.gmra.mxu2 %v2788_v0 }
 0x2d6   : > { %v2109_v50 = vadd.f32 %v2108_v55, %v1986_v24  ;;  %3191 = vmatmul.bf16.gmra.mxu3 %v2789_v12  ;;  %v2650_v55 = vld [vmem:[#allocation2 + $0x84] sm:$0xff] }
 0x2d7   : > { %v2791_v24 = vpack.c.bf16 %v2651_v8, %v2650_v55  ;;  %v6181_v12 = vld [vmem:[#allocation26_spill] sm:$0xff]  ;;  %v6184_v8 = vld [vmem:[#allocation20_spill] sm:$0xff] }
 0x2d8   : > { %v2376_v59 = vadd.f32 %v2375_v25, %v2109_v50  ;;  %v2111_v4 = vpop.f32.mrf.mxu2 }
 0x2d9   : > { %v2378_v42 = vpop.f32.mrf.mxu3 }
 0x2da   : > { %v5993_v44 = vadd.f32 %v2498_v19, %v2376_v59  ;;  %v2501_v33 = vpop.f32.mrf.mxu0  ;;  %v2792_v59 = vpack.c.bf16 %v2696_v43, %v2695_v60 }
 0x2db   : > { %v1988_v1 = vpop.f32.mrf.mxu1 }
 0x2dc   : > { %v1989_v10 = vadd.f32 %v1988_v1, %v6179_v13  ;;  %v2741_v1 = vld [vmem:[#allocation2 + $0x8e] sm:$0xff] }
 0x2dd   : > { %3314 = vmatmul.bf16.gmra.mxu0 %v2790_v47 }
 0x2de   : > { %v2112_v29 = vadd.f32 %v2111_v4, %v1989_v10  ;;  %2548 = vmatmul.bf16.gmra.mxu1 %v6180_v32  ;;  %v6183_v32 = vld [vmem:[#allocation27_spill] sm:$0xff] }
 0x2e0   : > { %v2379_v45 = vadd.f32 %v2378_v42, %v2112_v29  ;;  %v2113_v11 = vpop.f32.mrf.mxu2  ;;  %v2740_v42 = vld [vmem:[#allocation2 + $0x86] sm:$0xff] }
 0x2e1   : > { %v2380_v25 = vpop.f32.mrf.mxu3 }
 0x2e2   : > { %v5997_v0 = vadd.f32 %v2501_v33, %v2379_v45  ;;  %v2503_v19 = vpop.f32.mrf.mxu0  ;;  %v2793_v33 = vpack.c.bf16 %v2741_v1, %v2740_v42 }
 0x2e3   : > { %v1990_v40 = vpop.f32.mrf.mxu1 }
 0x2e4   : > { %v1991_v50 = vadd.f32 %v1990_v40, %v6181_v12  ;;  %v2653_v40 = vld [vmem:[#allocation2 + $0x9c] sm:$0xff] }
 0x2e5   : > { %3073 = vmatmul.bf16.gmra.mxu2 %v2791_v24  ;;  %v2697_v24 = vld [vmem:[#allocation2 + $0x95] sm:$0xff]  ;;  %v2698_v12 = vld [vmem:[#allocation2 + $0x9d] sm:$0xff] }
 0x2e6   : > { %v2114_v30 = vadd.f32 %v2113_v11, %v1991_v50  ;;  %3196 = vmatmul.bf16.gmra.mxu3 %v2792_v59  ;;  %v2652_v11 = vld [vmem:[#allocation2 + $0x94] sm:$0xff]  ;;  %v2795_v1 = vpack.c.bf16 %v2698_v12, %v2697_v24 }
 0x2e8   : > { %v2381_v4 = vadd.f32 %v2380_v25, %v2114_v30  ;;  %v2116_v41 = vpop.f32.mrf.mxu2  ;;  %v2794_v30 = vpack.c.bf16 %v2653_v40, %v2652_v11  ;;  %v6189_v40 = vld [vmem:[#allocation4_spill] sm:$0xff] }
 0x2e9   : > { %v2383_v47 = vpop.f32.mrf.mxu3 }
 0x2ea   : > { %v6000_v13 = vadd.f32 %v2503_v19, %v2381_v4  ;;  %v2506_v10 = vpop.f32.mrf.mxu0  ;;  %v6186_v4 = vld [vmem:[#allocation28_spill] sm:$0xff] }
 0x2eb   : > { %v1993_v29 = vpop.f32.mrf.mxu1 }
 0x2ec   : > { %6182 = vst [vmem:[#allocation10_spill] sm:$0xff] %v6000_v13  ;;  %v1994_v45 = vadd.f32 %v1993_v29, %v6183_v32  ;;  %v2743_v32 = vld [vmem:[#allocation2 + $0x9e] sm:$0xff] }
 0x2ed   : > { %3319 = vmatmul.bf16.gmra.mxu0 %v2793_v33 }
 0x2ee   : > { %v2117_v55 = vadd.f32 %v2116_v41, %v1994_v45  ;;  %2553 = vmatmul.bf16.gmra.mxu1 %v6184_v8 }
 0x2f0   : > { %v2384_v60 = vadd.f32 %v2383_v47, %v2117_v55  ;;  %v2118_v43 = vpop.f32.mrf.mxu2  ;;  %v2742_v47 = vld [vmem:[#allocation2 + $0x96] sm:$0xff] }
 0x2f1   : > { %v2385_v25 = vpop.f32.mrf.mxu3 }
 0x2f2   : > { %v6004_v50 = vadd.f32 %v2506_v10, %v2384_v60  ;;  %v2508_v19 = vpop.f32.mrf.mxu0  ;;  %v2796_v10 = vpack.c.bf16 %v2743_v32, %v2742_v47  ;;  %v6188_v60 = vld [vmem:[#allocation29_spill] sm:$0xff]  ;;  %v2745_v47 = vld [vmem:[#allocation2 + $0xae] sm:$0xff] }
 0x2f3   : > { %v1995_v59 = vpop.f32.mrf.mxu1 }
 0x2f4   : > { %6185 = vst [vmem:[#allocation22_spill] sm:$0xff] %v6004_v50  ;;  %v1996_v42 = vadd.f32 %v1995_v59, %v6186_v4 }
 0x2f5   : > { %3078 = vmatmul.bf16.gmra.mxu2 %v2794_v30 }
 0x2f6   : > { %v2119_v29 = vadd.f32 %v2118_v43, %v1996_v42  ;;  %3201 = vmatmul.bf16.gmra.mxu3 %v2795_v1  ;;  %v2655_v43 = vld [vmem:[#allocation2 + $0xac] sm:$0xff]  ;;  %v2654_v42 = vld [vmem:[#allocation2 + $0xa4] sm:$0xff] }
 0x2f7   : > { %v2797_v1 = vpack.c.bf16 %v2655_v43, %v2654_v42  ;;  %v2657_v43 = vld [vmem:[#allocation2 + $0xbc] sm:$0xff] }
 0x2f8   : > { %v2386_v41 = vadd.f32 %v2385_v25, %v2119_v29  ;;  %v2121_v33 = vpop.f32.mrf.mxu2  ;;  %v2700_v25 = vld [vmem:[#allocation2 + $0xad] sm:$0xff]  ;;  %v2699_v29 = vld [vmem:[#allocation2 + $0xa5] sm:$0xff] }
 0x2f9   : > { %v2388_v45 = vpop.f32.mrf.mxu3 }
 0x2fa   : > { %v6007_v55 = vadd.f32 %v2508_v19, %v2386_v41  ;;  %v2511_v8 = vpop.f32.mrf.mxu0  ;;  %v2798_v41 = vpack.c.bf16 %v2700_v25, %v2699_v29  ;;  %v2701_v25 = vld [vmem:[#allocation2 + $0xb5] sm:$0xff] }
 0x2fb   : > { %v1998_v13 = vpop.f32.mrf.mxu1 }
 0x2fc   : > { %6187 = vst [vmem:[#allocation23_spill] sm:$0xff] %v6007_v55  ;;  %v1999_v50 = vadd.f32 %v1998_v13, %v6188_v60  ;;  %v2748_v55 = vld [vmem:[#allocation2 + $0xc6] sm:$0xff] }
 0x2fd   : > { %3324 = vmatmul.bf16.gmra.mxu0 %v2796_v10 }
 0x2fe   : > { %v2122_v11 = vadd.f32 %v2121_v33, %v1999_v50  ;;  %2558 = vmatmul.bf16.gmra.mxu1 %v6189_v40  ;;  %v6191_v40 = vld [vmem:[#allocation7_spill] sm:$0xff] }
 0x300   : > { %v2389_v24 = vadd.f32 %v2388_v45, %v2122_v11  ;;  %v2123_v12 = vpop.f32.mrf.mxu2  ;;  %v2744_v45 = vld [vmem:[#allocation2 + $0xa6] sm:$0xff] }
 0x301   : > { %v2390_v59 = vpop.f32.mrf.mxu3  ;;  %v2799_v60 = vpack.c.bf16 %v2745_v47, %v2744_v45  ;;  %v2656_v12 = vld [vmem:[#allocation2 + $0xb4] sm:$0xff]  ;;  %v3502_v45 = vpop.permute.xlu0 %3501 }
 0x302   : > { %v6011_v30 = vadd.f32 %v2511_v8, %v2389_v24  ;;  %v2513_v4 = vpop.f32.mrf.mxu0 }
 0x303   : > { %v2000_v19 = vpop.f32.mrf.mxu1  ;;  %v2702_v4 = vld [vmem:[#allocation2 + $0xbd] sm:$0xff] }
 0x304   : > { %6190 = vst [vmem:[#allocation14_spill] sm:$0xff] %v6011_v30 }
 0x305   : > { %3083 = vmatmul.bf16.gmra.mxu2 %v2797_v1 }
 0x306   : > { %3206 = vmatmul.bf16.gmra.mxu3 %v2798_v41  ;;  %v2800_v41 = vpack.c.bf16 %v2657_v43, %v2656_v12 }
 0x308   : > { %v3044_v13 = vpop.f32.mrf.mxu2 }
 0x309   : > { %v3167_v50 = vpop.f32.mrf.mxu3 }
 0x30a   : > { %v3168_v33 = vadd.f32 %v3167_v50, %v3044_v13  ;;  %v3290_v32 = vpop.f32.mrf.mxu0  ;;  %v2801_v50 = vpack.c.bf16 %v2702_v4, %v2701_v25 }
 0x30b   : > { %v2524_v10 = vpop.f32.mrf.mxu1 }
 0x30c   : > { %v2525_v8 = vadd.f32 %v2524_v10, %v5819_v57  ;;  %v3291_v11 = vadd.f32 %v3290_v32, %v3168_v33  ;;  %v3497_v57 = vpop.permute.xlu2 %3496 }
 0x30d   : > { %3329 = vmatmul.bf16.gmra.mxu0 %v2799_v60 }
 0x30e   : > { %2563 = vmatmul.bf16.gmra.mxu1 %v6191_v40  ;;  %v3404_v42 = vadd.f32 %v3291_v11, %v2525_v8  ;;  %v2746_v11 = vld [vmem:[#allocation2 + $0xb6] sm:$0xff] }
 0x310   : > { %v3046_v24 = vpop.f32.mrf.mxu2  ;;  %v3719_v33 = vmul.f32 %v3497_v57, %v3404_v42 }
 0x311   : > { %v3169_v59 = vpop.f32.mrf.mxu3 }
 0x312   : > { %v3170_v19 = vadd.f32 %v3169_v59, %v3046_v24  ;;  %v3292_v1 = vpop.f32.mrf.mxu0  ;;  %v3814_v24 = vmul.f32 %v3719_v33, %v3719_v33 }
 0x313   : > { %v2526_v29 = vpop.f32.mrf.mxu1 }
 0x314   : > { %v2527_v13 = vadd.f32 %v2526_v29, %v5822_v31  ;;  %v3293_v47 = vadd.f32 %v3292_v1, %v3170_v19  ;;  %v2747_v31 = vld [vmem:[#allocation2 + $0xbe] sm:$0xff] }
 0x315   : > { %3088 = vmatmul.bf16.gmra.mxu2 %v2800_v41  ;;  %v2802_v19 = vpack.c.bf16 %v2747_v31, %v2746_v11 }
 0x316   : > { %v3405_v32 = vadd.f32 %v3293_v47, %v2527_v13  ;;  %3211 = vmatmul.bf16.gmra.mxu3 %v2801_v50  ;;  %v6192_v47 = vld [vmem:[#allocation11_spill] sm:$0xff] }
 0x318   : > { %v3720_v10 = vmul.f32 %v3502_v45, %v3405_v32  ;;  %v4708_v60 = vpack.c.bf16 %v3405_v32, %v3404_v42  ;;  %v3049_v8 = vpop.f32.mrf.mxu2  ;;  %v3507_v42 = vpop.permute.xlu1 %3506  ;;  %v2658_v32 = vld [vmem:[#allocation2 + $0xc4] sm:$0xff]  ;;  %v2659_v45 = vld [vmem:[#allocation2 + $0xcc] sm:$0xff] }
 0x319   : > { %v3172_v40 = vpop.f32.mrf.mxu3 }
 0x31a   : > { %v3764_v12 = vadd.f32 %v3720_v10, %v3719_v33  ;;  %v3815_v43 = vmul.f32 %v3720_v10, %v3720_v10  ;;  %4709 = vst [vmem:[%s6020_s25] sm:$0xff] %v4708_v60   ;;  %v3173_v59 = vadd.f32 %v3172_v40, %v3049_v8  ;;  %v3295_v25 = vpop.f32.mrf.mxu0  ;;  %v2703_v10 = vld [vmem:[#allocation2 + $0xc5] sm:$0xff]  ;;  %v2704_v60 = vld [vmem:[#allocation2 + $0xcd] sm:$0xff] }
 0x31b   : > { %v2529_v4 = vpop.f32.mrf.mxu1 }
 0x31c   : > { %v3859_v1 = vadd.f32 %v3815_v43, %v3814_v24  ;;  %v2530_v29 = vadd.f32 %v2529_v4, %v5825_v2  ;;  %v3296_v41 = vadd.f32 %v3295_v25, %v3173_v59  ;;  %v2803_v24 = vpack.c.bf16 %v2659_v45, %v2658_v32  ;;  %v6193_v43 = vld [vmem:[#allocation30_spill] sm:$0xff] }
 0x31d   : > { %3334 = vmatmul.bf16.gmra.mxu0 %v2802_v19  ;;  %v2804_v4 = vpack.c.bf16 %v2704_v60, %v2703_v10 }
 0x31e   : > { %v3406_v13 = vadd.f32 %v3296_v41, %v2530_v29  ;;  %2568 = vmatmul.bf16.gmra.mxu1 %v6192_v47  ;;  %v3512_v29 = vpop.permute.xlu2 %3511 }
 0x320   : > { %v3721_v50 = vmul.f32 %v3507_v42, %v3406_v13  ;;  %v3051_v57 = vpop.f32.mrf.mxu2 }
 0x321   : > { %v3174_v33 = vpop.f32.mrf.mxu3 }
 0x322   : > { %v3765_v8 = vadd.f32 %v3764_v12, %v3721_v50  ;;  %v3816_v40 = vmul.f32 %v3721_v50, %v3721_v50  ;;  %v3175_v30 = vadd.f32 %v3174_v33, %v3051_v57  ;;  %v3297_v11 = vpop.f32.mrf.mxu0  ;;  %v2749_v12 = vld [vmem:[#allocation2 + $0xce] sm:$0xff] }
 0x323   : > { %v2531_v31 = vpop.f32.mrf.mxu1 }
 0x324   : > { %v3860_v2 = vadd.f32 %v3859_v1, %v3816_v40  ;;  %v2532_v59 = vadd.f32 %v2531_v31, %v6193_v43  ;;  %v3298_v25 = vadd.f32 %v3297_v11, %v3175_v30  ;;  %v2805_v40 = vpack.c.bf16 %v2749_v12, %v2748_v55  ;;  %v6194_v11 = vld [vmem:[#allocation15_spill] sm:$0xff] }
 0x325   : > { %3093 = vmatmul.bf16.gmra.mxu2 %v2803_v24 }
 0x326   : > { %v3407_v19 = vadd.f32 %v3298_v25, %v2532_v59  ;;  %3216 = vmatmul.bf16.gmra.mxu3 %v2804_v4  ;;  %v2660_v59 = vld [vmem:[#allocation2 + $0xd4] sm:$0xff]  ;;  %v2661_v25 = vld [vmem:[#allocation2 + $0xdc] sm:$0xff] }
 0x327   : > { %v2705_v4 = vld [vmem:[#allocation2 + $0xd5] sm:$0xff] }
 0x328   : > { %v3722_v41 = vmul.f32 %v3512_v29, %v3407_v19  ;;  %v4713_v47 = vpack.c.bf16 %v3407_v19, %v3406_v13  ;;  %v3054_v42 = vpop.f32.mrf.mxu2  ;;  %v3517_v13 = vpop.permute.xlu0 %3516  ;;  %v2706_v19 = vld [vmem:[#allocation2 + $0xdd] sm:$0xff] }
 0x329   : > { %v3177_v50 = vpop.f32.mrf.mxu3 }
 0x32a   : > { %v3766_v57 = vadd.f32 %v3765_v8, %v3722_v41  ;;  %v3817_v33 = vmul.f32 %v3722_v41, %v3722_v41  ;;  %4837 = vst [vmem:[%s6020_s25 + $0x8] sm:$0xff] %v4713_v47   ;;  %v3178_v32 = vadd.f32 %v3177_v50, %v3054_v42  ;;  %v3300_v1 = vpop.f32.mrf.mxu0  ;;  %v2806_v42 = vpack.c.bf16 %v2661_v25, %v2660_v59 }
 0x32b   : > { %v2534_v45 = vpop.f32.mrf.mxu1 }
 0x32c   : > { %v3861_v31 = vadd.f32 %v3860_v2, %v3817_v33  ;;  %v2535_v30 = vadd.f32 %v2534_v45, %v5843_v48  ;;  %v3301_v10 = vadd.f32 %v3300_v1, %v3178_v32  ;;  %v2807_v33 = vpack.c.bf16 %v2706_v19, %v2705_v4  ;;  %v3522_v1 = vpop.permute.xlu1 %3521 }
 0x32d   : > { %3339 = vmatmul.bf16.gmra.mxu0 %v2805_v40 }
 0x32e   : > { %v3408_v60 = vadd.f32 %v3301_v10, %v2535_v30  ;;  %2573 = vmatmul.bf16.gmra.mxu1 %v6194_v11  ;;  %v2750_v10 = vld [vmem:[#allocation2 + $0xd6] sm:$0xff] }
 0x330   : > { %v3723_v24 = vmul.f32 %v3517_v13, %v3408_v60  ;;  %v3056_v43 = vpop.f32.mrf.mxu2 }
 0x331   : > { %v3179_v8 = vpop.f32.mrf.mxu3 }
 0x332   : > { %v3767_v29 = vadd.f32 %v3766_v57, %v3723_v24  ;;  %v3818_v41 = vmul.f32 %v3723_v24, %v3723_v24  ;;  %v3180_v47 = vadd.f32 %v3179_v8, %v3056_v43  ;;  %v3302_v55 = vpop.f32.mrf.mxu0  ;;  %v2751_v57 = vld [vmem:[#allocation2 + $0xde] sm:$0xff] }
 0x333   : > { %v2536_v2 = vpop.f32.mrf.mxu1  ;;  %v2808_v25 = vpack.c.bf16 %v2751_v57, %v2750_v10 }
 0x334   : > { %v3862_v48 = vadd.f32 %v3861_v31, %v3818_v41  ;;  %v2537_v12 = vadd.f32 %v2536_v2, %v5846_v51  ;;  %v3303_v50 = vadd.f32 %v3302_v55, %v3180_v47  ;;  %v6195_v41 = vld [vmem:[#allocation18_spill] sm:$0xff] }
 0x335   : > { %3098 = vmatmul.bf16.gmra.mxu2 %v2806_v42  ;;  %v2662_v2 = vld [vmem:[#allocation2 + $0xe4] sm:$0xff]  ;;  %v2663_v42 = vld [vmem:[#allocation2 + $0xec] sm:$0xff] }
 0x336   : > { %v3409_v32 = vadd.f32 %v3303_v50, %v2537_v12  ;;  %3221 = vmatmul.bf16.gmra.mxu3 %v2807_v33  ;;  %v2707_v12 = vld [vmem:[#allocation2 + $0xe5] sm:$0xff]  ;;  %v2708_v50 = vld [vmem:[#allocation2 + $0xed] sm:$0xff] }
 0x337   : > { %v2810_v57 = vpack.c.bf16 %v2708_v50, %v2707_v12  ;;  %v6196_v12 = vld [vmem:[#allocation21_spill] sm:$0xff] }
 0x338   : > { %v3724_v45 = vmul.f32 %v3522_v1, %v3409_v32  ;;  %v4718_v40 = vpack.c.bf16 %v3409_v32, %v3408_v60  ;;  %v3059_v30 = vpop.f32.mrf.mxu2  ;;  %v3527_v60 = vpop.permute.xlu2 %3526 }
 0x339   : > { %v3182_v11 = vpop.f32.mrf.mxu3 }
 0x33a   : > { %v3768_v13 = vadd.f32 %v3767_v29, %v3724_v45  ;;  %v3819_v24 = vmul.f32 %v3724_v45, %v3724_v45  ;;  %4838 = vst [vmem:[%s6020_s25 + $0x10] sm:$0xff] %v4718_v40   ;;  %v3183_v43 = vadd.f32 %v3182_v11, %v3059_v30  ;;  %v3305_v31 = vpop.f32.mrf.mxu0  ;;  %v2809_v40 = vpack.c.bf16 %v2663_v42, %v2662_v2 }
 0x33b   : > { %v2539_v59 = vpop.f32.mrf.mxu1 }
 0x33c   : > { %v3863_v51 = vadd.f32 %v3862_v48, %v3819_v24  ;;  %v2540_v8 = vadd.f32 %v2539_v59, %v5849_v46  ;;  %v3306_v4 = vadd.f32 %v3305_v31, %v3183_v43  ;;  %v3532_v24 = vpop.permute.xlu0 %3531 }
 0x33d   : > { %3344 = vmatmul.bf16.gmra.mxu0 %v2808_v25  ;;  %v2752_v25 = vld [vmem:[#allocation2 + $0xe6] sm:$0xff] }
 0x33e   : > { %v3410_v19 = vadd.f32 %v3306_v4, %v2540_v8  ;;  %2578 = vmatmul.bf16.gmra.mxu1 %v6195_v41 }
 0x340   : > { %v3725_v47 = vmul.f32 %v3527_v60, %v3410_v19  ;;  %v3061_v55 = vpop.f32.mrf.mxu2 }
 0x341   : > { %v3184_v29 = vpop.f32.mrf.mxu3 }
 0x342   : > { %v3769_v33 = vadd.f32 %v3768_v13, %v3725_v47  ;;  %v3820_v32 = vmul.f32 %v3725_v47, %v3725_v47  ;;  %v3185_v1 = vadd.f32 %v3184_v29, %v3061_v55  ;;  %v3307_v45 = vpop.f32.mrf.mxu0  ;;  %v2753_v13 = vld [vmem:[#allocation2 + $0xee] sm:$0xff] }
 0x343   : > { %v2541_v48 = vpop.f32.mrf.mxu1  ;;  %v2811_v55 = vpack.c.bf16 %v2753_v13, %v2752_v25  ;;  %v3542_v13 = vpop.permute.xlu2 %3541 }
 0x344   : > { %v3864_v46 = vadd.f32 %v3863_v51, %v3820_v32  ;;  %v2542_v30 = vadd.f32 %v2541_v48, %v5857_v17  ;;  %v3308_v10 = vadd.f32 %v3307_v45, %v3185_v1  ;;  %v2664_v1 = vld [vmem:[#allocation2 + $0xf4] sm:$0xff]  ;;  %v2665_v45 = vld [vmem:[#allocation2 + $0xfc] sm:$0xff] }
 0x345   : > { %3103 = vmatmul.bf16.gmra.mxu2 %v2809_v40  ;;  %v2709_v48 = vld [vmem:[#allocation2 + $0xf5] sm:$0xff]  ;;  %v2710_v40 = vld [vmem:[#allocation2 + $0xfd] sm:$0xff] }
 0x346   : > { %v3411_v11 = vadd.f32 %v3308_v10, %v2542_v30  ;;  %3226 = vmatmul.bf16.gmra.mxu3 %v2810_v57 }
 0x348   : > { %v3726_v43 = vmul.f32 %v3532_v24, %v3411_v11  ;;  %v4723_v31 = vpack.c.bf16 %v3411_v11, %v3410_v19  ;;  %v3064_v59 = vpop.f32.mrf.mxu2  ;;  %v3537_v19 = vpop.permute.xlu1 %3536  ;;  %v2812_v24 = vpack.c.bf16 %v2665_v45, %v2664_v1  ;;  %v6197_v45 = vld [vmem:[#allocation3_spill] sm:$0xff] }
 0x349   : > { %v3187_v8 = vpop.f32.mrf.mxu3 }
 0x34a   : > { %v3770_v4 = vadd.f32 %v3769_v33, %v3726_v43  ;;  %v3821_v41 = vmul.f32 %v3726_v43, %v3726_v43  ;;  %4839 = vst [vmem:[%s6020_s25 + $0x18] sm:$0xff] %v4723_v31   ;;  %v3188_v60 = vadd.f32 %v3187_v8, %v3064_v59  ;;  %v3310_v51 = vpop.f32.mrf.mxu0  ;;  %v2813_v59 = vpack.c.bf16 %v2710_v40, %v2709_v48  ;;  %v2667_v40 = vld [vmem:[#allocation2 + $0x10c] sm:$0xff] }
 0x34b   : > { %v2544_v47 = vpop.f32.mrf.mxu1 }
 0x34c   : > { %v3865_v17 = vadd.f32 %v3864_v46, %v3821_v41  ;;  %v2545_v2 = vadd.f32 %v2544_v47, %v5860_v53  ;;  %v3311_v42 = vadd.f32 %v3310_v51, %v3188_v60  ;;  %v2754_v51 = vld [vmem:[#allocation2 + $0xf6] sm:$0xff] }
 0x34d   : > { %3349 = vmatmul.bf16.gmra.mxu0 %v2811_v55 }
 0x34e   : > { %v3412_v29 = vadd.f32 %v3311_v42, %v2545_v2  ;;  %2583 = vmatmul.bf16.gmra.mxu1 %v6196_v12 }
 0x350   : > { %v3727_v50 = vmul.f32 %v3537_v19, %v3412_v29  ;;  %v3066_v32 = vpop.f32.mrf.mxu2 }
 0x351   : > { %v3189_v33 = vpop.f32.mrf.mxu3 }
 0x352   : > { %v3771_v30 = vadd.f32 %v3770_v4, %v3727_v50  ;;  %v3822_v10 = vmul.f32 %v3727_v50, %v3727_v50  ;;  %v3190_v57 = vadd.f32 %v3189_v33, %v3066_v32  ;;  %v3312_v11 = vpop.f32.mrf.mxu0  ;;  %v2755_v4 = vld [vmem:[#allocation2 + $0xfe] sm:$0xff] }
 0x353   : > { %v2546_v46 = vpop.f32.mrf.mxu1  ;;  %v2814_v19 = vpack.c.bf16 %v2755_v4, %v2754_v51 }
 0x354   : > { %v3866_v53 = vadd.f32 %v3865_v17, %v3822_v10  ;;  %v2547_v43 = vadd.f32 %v2546_v46, %v5869_v58  ;;  %v3313_v31 = vadd.f32 %v3312_v11, %v3190_v57 }
 0x355   : > { %3108 = vmatmul.bf16.gmra.mxu2 %v2812_v24 }
 0x356   : > { %v3413_v25 = vadd.f32 %v3313_v31, %v2547_v43  ;;  %3231 = vmatmul.bf16.gmra.mxu3 %v2813_v59  ;;  %v2666_v43 = vld [vmem:[#allocation2 + $0x104] sm:$0xff] }
 0x357   : > { %v2711_v59 = vld [vmem:[#allocation2 + $0x105] sm:$0xff] }
 0x358   : > { %v3728_v8 = vmul.f32 %v3542_v13, %v3413_v25  ;;  %v4728_v41 = vpack.c.bf16 %v3413_v25, %v3412_v29  ;;  %v3069_v60 = vpop.f32.mrf.mxu2  ;;  %v3547_v29 = vpop.permute.xlu0 %3546 }
 0x359   : > { %v3192_v47 = vpop.f32.mrf.mxu3 }
 0x35a   : > { %v3772_v55 = vadd.f32 %v3771_v30, %v3728_v8  ;;  %v3823_v2 = vmul.f32 %v3728_v8, %v3728_v8  ;;  %4840 = vst [vmem:[%s6020_s25 + $0x20] sm:$0xff] %v4728_v41   ;;  %v3193_v42 = vadd.f32 %v3192_v47, %v3069_v60  ;;  %v3315_v17 = vpop.f32.mrf.mxu0  ;;  %v2712_v30 = vld [vmem:[#allocation2 + $0x10d] sm:$0xff]  ;;  %v3552_v60 = vpop.permute.xlu1 %3551 }
 0x35b   : > { %v2549_v12 = vpop.f32.mrf.mxu1  ;;  %v2816_v8 = vpack.c.bf16 %v2712_v30, %v2711_v59  ;;  %v2668_v30 = vld [vmem:[#allocation2 + $0x114] sm:$0xff] }
 0x35c   : > { %v3867_v58 = vadd.f32 %v3866_v53, %v3823_v2  ;;  %v2550_v50 = vadd.f32 %v2549_v12, %v5878_v52  ;;  %v3316_v32 = vadd.f32 %v3315_v17, %v3193_v42  ;;  %v2815_v53 = vpack.c.bf16 %v2667_v40, %v2666_v43 }
 0x35d   : > { %3354 = vmatmul.bf16.gmra.mxu0 %v2814_v19 }
 0x35e   : > { %v3414_v1 = vadd.f32 %v3316_v32, %v2550_v50  ;;  %2588 = vmatmul.bf16.gmra.mxu1 %v6197_v45  ;;  %v2756_v50 = vld [vmem:[#allocation2 + $0x106] sm:$0xff] }
 0x360   : > { %v3729_v33 = vmul.f32 %v3547_v29, %v3414_v1  ;;  %v3071_v48 = vpop.f32.mrf.mxu2 }
 0x361   : > { %v3194_v10 = vpop.f32.mrf.mxu3 }
 0x362   : > { %v3773_v57 = vadd.f32 %v3772_v55, %v3729_v33  ;;  %v3824_v11 = vmul.f32 %v3729_v33, %v3729_v33  ;;  %v3195_v46 = vadd.f32 %v3194_v10, %v3071_v48  ;;  %v3317_v24 = vpop.f32.mrf.mxu0  ;;  %v2757_v55 = vld [vmem:[#allocation2 + $0x10e] sm:$0xff]  ;;  %v6198_v48 = vld [vmem:[#allocation5_spill] sm:$0xff] }
 0x363   : > { %v2551_v31 = vpop.f32.mrf.mxu1  ;;  %v2817_v32 = vpack.c.bf16 %v2757_v55, %v2756_v50 }
 0x364   : > { %v3868_v52 = vadd.f32 %v3867_v58, %v3824_v11  ;;  %v2552_v25 = vadd.f32 %v2551_v31, %v5881_v34  ;;  %v3318_v13 = vadd.f32 %v3317_v24, %v3195_v46  ;;  %v2713_v46 = vld [vmem:[#allocation2 + $0x115] sm:$0xff]  ;;  %v2714_v24 = vld [vmem:[#allocation2 + $0x11d] sm:$0xff] }
 0x365   : > { %3113 = vmatmul.bf16.gmra.mxu2 %v2815_v53 }
 0x366   : > { %v3415_v41 = vadd.f32 %v3318_v13, %v2552_v25  ;;  %3236 = vmatmul.bf16.gmra.mxu3 %v2816_v8 }
 0x368   : > { %v3730_v51 = vmul.f32 %v3552_v60, %v3415_v41  ;;  %v4733_v4 = vpack.c.bf16 %v3415_v41, %v3414_v1  ;;  %v3074_v47 = vpop.f32.mrf.mxu2  ;;  %v3557_v1 = vpop.permute.xlu2 %3556  ;;  %v2819_v41 = vpack.c.bf16 %v2714_v24, %v2713_v46  ;;  %v2715_v46 = vld [vmem:[#allocation2 + $0x125] sm:$0xff]  ;;  %v2716_v24 = vld [vmem:[#allocation2 + $0x12d] sm:$0xff] }
 0x369   : > { %v3197_v2 = vpop.f32.mrf.mxu3 }
 0x36a   : > { %v3774_v42 = vadd.f32 %v3773_v57, %v3730_v51  ;;  %v3825_v17 = vmul.f32 %v3730_v51, %v3730_v51  ;;  %4841 = vst [vmem:[%s6020_s25 + $0x28] sm:$0xff] %v4733_v4   ;;  %v3198_v12 = vadd.f32 %v3197_v2, %v3074_v47  ;;  %v3320_v19 = vpop.f32.mrf.mxu0  ;;  %v2669_v57 = vld [vmem:[#allocation2 + $0x11c] sm:$0xff]  ;;  %v3562_v51 = vpop.permute.xlu0 %3561 }
 0x36b   : > { %v2554_v58 = vpop.f32.mrf.mxu1  ;;  %v2818_v25 = vpack.c.bf16 %v2669_v57, %v2668_v30  ;;  %v2758_v2 = vld [vmem:[#allocation2 + $0x116] sm:$0xff]  ;;  %v2670_v30 = vld [vmem:[#allocation2 + $0x124] sm:$0xff]  ;;  %v2671_v57 = vld [vmem:[#allocation2 + $0x12c] sm:$0xff] }
 0x36c   : > { %v3869_v34 = vadd.f32 %v3868_v52, %v3825_v17  ;;  %v2555_v45 = vadd.f32 %v2554_v58, %v5884_v38  ;;  %v3321_v29 = vadd.f32 %v3320_v19, %v3198_v12 }
 0x36d   : > { %3359 = vmatmul.bf16.gmra.mxu0 %v2817_v32 }
 0x36e   : > { %v3416_v33 = vadd.f32 %v3321_v29, %v2555_v45  ;;  %2593 = vmatmul.bf16.gmra.mxu1 %v6198_v48 }
 0x370   : > { %v3731_v40 = vmul.f32 %v3557_v1, %v3416_v33  ;;  %v3076_v10 = vpop.f32.mrf.mxu2  ;;  %v6199_v1 = vld [vmem:[#allocation8_spill] sm:$0xff] }
 0x371   : > { %v3199_v11 = vpop.f32.mrf.mxu3 }
 0x372   : > { %v3775_v43 = vadd.f32 %v3774_v42, %v3731_v40  ;;  %v3826_v31 = vmul.f32 %v3731_v40, %v3731_v40  ;;  %v3200_v53 = vadd.f32 %v3199_v11, %v3076_v10  ;;  %v3322_v59 = vpop.f32.mrf.mxu0  ;;  %v2759_v42 = vld [vmem:[#allocation2 + $0x11e] sm:$0xff] }
 0x373   : > { %v2556_v52 = vpop.f32.mrf.mxu1 }
 0x374   : > { %v3870_v38 = vadd.f32 %v3869_v34, %v3826_v31  ;;  %v2557_v13 = vadd.f32 %v2556_v52, %v5887_v6  ;;  %v3323_v8 = vadd.f32 %v3322_v59, %v3200_v53  ;;  %v2820_v34 = vpack.c.bf16 %v2759_v42, %v2758_v2  ;;  %v2761_v2 = vld [vmem:[#allocation2 + $0x12e] sm:$0xff] }
 0x375   : > { %3118 = vmatmul.bf16.gmra.mxu2 %v2818_v25  ;;  %v2821_v25 = vpack.c.bf16 %v2671_v57, %v2670_v30  ;;  %v2717_v57 = vld [vmem:[#allocation2 + $0x135] sm:$0xff] }
 0x376   : > { %v3417_v60 = vadd.f32 %v3323_v8, %v2557_v13  ;;  %3241 = vmatmul.bf16.gmra.mxu3 %v2819_v41  ;;  %v2822_v8 = vpack.c.bf16 %v2716_v24, %v2715_v46 }
 0x378   : > { %v3732_v4 = vmul.f32 %v3562_v51, %v3417_v60  ;;  %v4738_v47 = vpack.c.bf16 %v3417_v60, %v3416_v33  ;;  %v3079_v55 = vpop.f32.mrf.mxu2  ;;  %v3567_v33 = vpop.permute.xlu1 %3566 }
 0x379   : > { %v3202_v17 = vpop.f32.mrf.mxu3  ;;  %v3572_v60 = vpop.permute.xlu2 %3571 }
 0x37a   : > { %v3776_v12 = vadd.f32 %v3775_v43, %v3732_v4  ;;  %v3827_v19 = vmul.f32 %v3732_v4, %v3732_v4  ;;  %4842 = vst [vmem:[%s6020_s25 + $0x30] sm:$0xff] %v4738_v47   ;;  %v3203_v50 = vadd.f32 %v3202_v17, %v3079_v55  ;;  %v3325_v58 = vpop.f32.mrf.mxu0  ;;  %v2760_v55 = vld [vmem:[#allocation2 + $0x126] sm:$0xff] }
 0x37b   : > { %v2559_v32 = vpop.f32.mrf.mxu1 }
 0x37c   : > { %v3871_v6 = vadd.f32 %v3870_v38, %v3827_v19  ;;  %v2560_v45 = vadd.f32 %v2559_v32, %v5896_v20  ;;  %v3326_v29 = vadd.f32 %v3325_v58, %v3203_v50  ;;  %v2823_v32 = vpack.c.bf16 %v2761_v2, %v2760_v55 }
 0x37d   : > { %3364 = vmatmul.bf16.gmra.mxu0 %v2820_v34 }
 0x37e   : > { %v3418_v48 = vadd.f32 %v3326_v29, %v2560_v45  ;;  %2598 = vmatmul.bf16.gmra.mxu1 %v6199_v1  ;;  %v6200_v29 = vld [vmem:[#allocation12_spill] sm:$0xff] }
 0x380   : > { %v3733_v40 = vmul.f32 %v3567_v33, %v3418_v48  ;;  %v3081_v10 = vpop.f32.mrf.mxu2 }
 0x381   : > { %v3204_v11 = vpop.f32.mrf.mxu3 }
 0x382   : > { %v3777_v43 = vadd.f32 %v3776_v12, %v3733_v40  ;;  %v3828_v31 = vmul.f32 %v3733_v40, %v3733_v40  ;;  %v3205_v53 = vadd.f32 %v3204_v11, %v3081_v10  ;;  %v3327_v59 = vpop.f32.mrf.mxu0  ;;  %v2672_v40 = vld [vmem:[#allocation2 + $0x134] sm:$0xff]  ;;  %v2673_v10 = vld [vmem:[#allocation2 + $0x13c] sm:$0xff] }
 0x383   : > { %v2561_v52 = vpop.f32.mrf.mxu1  ;;  %v2718_v11 = vld [vmem:[#allocation2 + $0x13d] sm:$0xff] }
 0x384   : > { %v3872_v20 = vadd.f32 %v3871_v6, %v3828_v31  ;;  %v2562_v38 = vadd.f32 %v2561_v52, %v5905_v35  ;;  %v3328_v13 = vadd.f32 %v3327_v59, %v3205_v53  ;;  %v2824_v59 = vpack.c.bf16 %v2673_v10, %v2672_v40 }
 0x385   : > { %3123 = vmatmul.bf16.gmra.mxu2 %v2821_v25 }
 0x386   : > { %v3419_v41 = vadd.f32 %v3328_v13, %v2562_v38  ;;  %3246 = vmatmul.bf16.gmra.mxu3 %v2822_v8  ;;  %v3582_v13 = vpop.permute.xlu1 %3581 }
 0x388   : > { %v3734_v51 = vmul.f32 %v3572_v60, %v3419_v41  ;;  %v4743_v4 = vpack.c.bf16 %v3419_v41, %v3418_v48  ;;  %v3084_v47 = vpop.f32.mrf.mxu2  ;;  %v3577_v48 = vpop.permute.xlu0 %3576 }
 0x389   : > { %v3207_v42 = vpop.f32.mrf.mxu3 }
 0x38a   : > { %v3778_v17 = vadd.f32 %v3777_v43, %v3734_v51  ;;  %v3829_v12 = vmul.f32 %v3734_v51, %v3734_v51  ;;  %4843 = vst [vmem:[%s6020_s25 + $0x38] sm:$0xff] %v4743_v4   ;;  %v3208_v19 = vadd.f32 %v3207_v42, %v3084_v47  ;;  %v3330_v50 = vpop.f32.mrf.mxu0  ;;  %v2762_v51 = vld [vmem:[#allocation2 + $0x136] sm:$0xff]  ;;  %v2763_v4 = vld [vmem:[#allocation2 + $0x13e] sm:$0xff] }
 0x38b   : > { %v2564_v58 = vpop.f32.mrf.mxu1 }
 0x38c   : > { %v3873_v35 = vadd.f32 %v3872_v20, %v3829_v12  ;;  %v2565_v34 = vadd.f32 %v2564_v58, %v5908_v16  ;;  %v3331_v6 = vadd.f32 %v3330_v50, %v3208_v19  ;;  %v2825_v20 = vpack.c.bf16 %v2718_v11, %v2717_v57  ;;  %v2674_v57 = vld [vmem:[#allocation2 + $0x144] sm:$0xff] }
 0x38d   : > { %3369 = vmatmul.bf16.gmra.mxu0 %v2823_v32  ;;  %v2826_v19 = vpack.c.bf16 %v2763_v4, %v2762_v51  ;;  %v2764_v4 = vld [vmem:[#allocation2 + $0x146] sm:$0xff] }
 0x38e   : > { %v3420_v45 = vadd.f32 %v3331_v6, %v2565_v34  ;;  %2603 = vmatmul.bf16.gmra.mxu1 %v6200_v29  ;;  %v3587_v34 = vpop.permute.xlu2 %3586  ;;  %v2675_v29 = vld [vmem:[#allocation2 + $0x14c] sm:$0xff] }
 0x390   : > { %v3735_v1 = vmul.f32 %v3577_v48, %v3420_v45  ;;  %v3086_v33 = vpop.f32.mrf.mxu2 }
 0x391   : > { %v3209_v30 = vpop.f32.mrf.mxu3 }
 0x392   : > { %v3779_v46 = vadd.f32 %v3778_v17, %v3735_v1  ;;  %v3830_v24 = vmul.f32 %v3735_v1, %v3735_v1  ;;  %v3210_v43 = vadd.f32 %v3209_v30, %v3086_v33  ;;  %v3332_v31 = vpop.f32.mrf.mxu0  ;;  %v2720_v1 = vld [vmem:[#allocation2 + $0x14d] sm:$0xff] }
 0x393   : > { %v2566_v53 = vpop.f32.mrf.mxu1 }
 0x394   : > { %v3874_v16 = vadd.f32 %v3873_v35, %v3830_v24  ;;  %v2567_v52 = vadd.f32 %v2566_v53, %v5911_v21  ;;  %v3333_v25 = vadd.f32 %v3332_v31, %v3210_v43  ;;  %v6201_v35 = vld [vmem:[#allocation16_spill] sm:$0xff]  ;;  %v2719_v24 = vld [vmem:[#allocation2 + $0x145] sm:$0xff] }
 0x395   : > { %3128 = vmatmul.bf16.gmra.mxu2 %v2824_v59  ;;  %v2828_v53 = vpack.c.bf16 %v2720_v1, %v2719_v24 }
 0x396   : > { %v3421_v38 = vadd.f32 %v3333_v25, %v2567_v52  ;;  %3251 = vmatmul.bf16.gmra.mxu3 %v2825_v20 }
 0x398   : > { %v3736_v8 = vmul.f32 %v3582_v13, %v3421_v38  ;;  %v4748_v41 = vpack.c.bf16 %v3421_v38, %v3420_v45  ;;  %v3089_v60 = vpop.f32.mrf.mxu2  ;;  %v2765_v38 = vld [vmem:[#allocation2 + $0x14e] sm:$0xff] }
 0x399   : > { %v3212_v47 = vpop.f32.mrf.mxu3 }
 0x39a   : > { %v3780_v55 = vadd.f32 %v3779_v46, %v3736_v8  ;;  %v3831_v2 = vmul.f32 %v3736_v8, %v3736_v8  ;;  %4844 = vst [vmem:[%s6020_s25 + $0x40] sm:$0xff] %v4748_v41   ;;  %v3213_v42 = vadd.f32 %v3212_v47, %v3089_v60  ;;  %v3335_v17 = vpop.f32.mrf.mxu0  ;;  %v2827_v46 = vpack.c.bf16 %v2675_v29, %v2674_v57 }
 0x39b   : > { %v2569_v12 = vpop.f32.mrf.mxu1 }
 0x39c   : > { %v3875_v21 = vadd.f32 %v3874_v16, %v3831_v2  ;;  %v2570_v50 = vadd.f32 %v2569_v12, %v5914_v5  ;;  %v3336_v58 = vadd.f32 %v3335_v17, %v3213_v42  ;;  %v3592_v16 = vpop.permute.xlu0 %3591  ;;  %v6202_v12 = vld [vmem:[#allocation19_spill] sm:$0xff] }
 0x39d   : > { %3374 = vmatmul.bf16.gmra.mxu0 %v2826_v19  ;;  %v3597_v19 = vpop.permute.xlu1 %3596 }
 0x39e   : > { %v3422_v32 = vadd.f32 %v3336_v58, %v2570_v50  ;;  %2608 = vmatmul.bf16.gmra.mxu1 %v6201_v35  ;;  %v2676_v58 = vld [vmem:[#allocation2 + $0x154] sm:$0xff] }
 0x3a0   : > { %v3737_v6 = vmul.f32 %v3587_v34, %v3422_v32  ;;  %v3091_v45 = vpop.f32.mrf.mxu2  ;;  %v2721_v34 = vld [vmem:[#allocation2 + $0x155] sm:$0xff] }
 0x3a1   : > { %v3214_v48 = vpop.f32.mrf.mxu3 }
 0x3a2   : > { %v3781_v33 = vadd.f32 %v3780_v55, %v3737_v6  ;;  %v3832_v40 = vmul.f32 %v3737_v6, %v3737_v6  ;;  %v3215_v10 = vadd.f32 %v3214_v48, %v3091_v45  ;;  %v3337_v30 = vpop.f32.mrf.mxu0  ;;  %v2829_v55 = vpack.c.bf16 %v2765_v38, %v2764_v4  ;;  %v2722_v6 = vld [vmem:[#allocation2 + $0x15d] sm:$0xff] }
 0x3a3   : > { %v2571_v11 = vpop.f32.mrf.mxu1  ;;  %v2831_v57 = vpack.c.bf16 %v2722_v6, %v2721_v34 }
 0x3a4   : > { %v3876_v5 = vadd.f32 %v3875_v21, %v3832_v40  ;;  %v2572_v43 = vadd.f32 %v2571_v11, %v5917_v61  ;;  %v3338_v31 = vadd.f32 %v3337_v30, %v3215_v10  ;;  %v3607_v4 = vpop.permute.xlu0 %3606 }
 0x3a5   : > { %3133 = vmatmul.bf16.gmra.mxu2 %v2827_v46  ;;  %v3602_v46 = vpop.permute.xlu2 %3601 }
 0x3a6   : > { %v3423_v59 = vadd.f32 %v3338_v31, %v2572_v43  ;;  %3256 = vmatmul.bf16.gmra.mxu3 %v2828_v53  ;;  %v2766_v31 = vld [vmem:[#allocation2 + $0x156] sm:$0xff]  ;;  %v2767_v53 = vld [vmem:[#allocation2 + $0x15e] sm:$0xff] }
 0x3a8   : > { %v3738_v52 = vmul.f32 %v3592_v16, %v3423_v59  ;;  %v4753_v25 = vpack.c.bf16 %v3423_v59, %v3422_v32  ;;  %v3094_v20 = vpop.f32.mrf.mxu2  ;;  %v2677_v32 = vld [vmem:[#allocation2 + $0x15c] sm:$0xff] }
 0x3a9   : > { %v3217_v13 = vpop.f32.mrf.mxu3  ;;  %v2830_v40 = vpack.c.bf16 %v2677_v32, %v2676_v58 }
 0x3aa   : > { %v3782_v8 = vadd.f32 %v3781_v33, %v3738_v52  ;;  %v3833_v41 = vmul.f32 %v3738_v52, %v3738_v52  ;;  %4845 = vst [vmem:[%s6020_s25 + $0x48] sm:$0xff] %v4753_v25   ;;  %v3218_v60 = vadd.f32 %v3217_v13, %v3094_v20  ;;  %v3340_v51 = vpop.f32.mrf.mxu0  ;;  %v2832_v13 = vpack.c.bf16 %v2767_v53, %v2766_v31 }
 0x3ab   : > { %v2574_v47 = vpop.f32.mrf.mxu1 }
 0x3ac   : > { %v3877_v61 = vadd.f32 %v3876_v5, %v3833_v41  ;;  %v2575_v2 = vadd.f32 %v2574_v47, %v5926_v37  ;;  %v3341_v42 = vadd.f32 %v3340_v51, %v3218_v60  ;;  %v6203_v51 = vld [vmem:[#allocation6_spill] sm:$0xff] }
 0x3ad   : > { %3379 = vmatmul.bf16.gmra.mxu0 %v2829_v55 }
 0x3ae   : > { %v3424_v17 = vadd.f32 %v3341_v42, %v2575_v2  ;;  %2613 = vmatmul.bf16.gmra.mxu1 %v6202_v12  ;;  %v2679_v2 = vld [vmem:[#allocation2 + $0x16c] sm:$0xff] }
 0x3af   : > { %v2724_v12 = vld [vmem:[#allocation2 + $0x16d] sm:$0xff] }
 0x3b0   : > { %v3739_v21 = vmul.f32 %v3597_v19, %v3424_v17  ;;  %v3096_v50 = vpop.f32.mrf.mxu2 }
 0x3b1   : > { %v3219_v35 = vpop.f32.mrf.mxu3 }
 0x3b2   : > { %v3783_v45 = vadd.f32 %v3782_v8, %v3739_v21  ;;  %v3834_v29 = vmul.f32 %v3739_v21, %v3739_v21  ;;  %v3220_v48 = vadd.f32 %v3219_v35, %v3096_v50  ;;  %v3342_v1 = vpop.f32.mrf.mxu0 }
 0x3b3   : > { %v2576_v33 = vpop.f32.mrf.mxu1 }
 0x3b4   : > { %v3878_v37 = vadd.f32 %v3877_v61, %v3834_v29  ;;  %v2577_v10 = vadd.f32 %v2576_v33, %v5935_v7  ;;  %v3343_v30 = vadd.f32 %v3342_v1, %v3220_v48  ;;  %v2678_v61 = vld [vmem:[#allocation2 + $0x164] sm:$0xff]  ;;  %v3612_v48 = vpop.permute.xlu1 %3611 }
 0x3b5   : > { %3138 = vmatmul.bf16.gmra.mxu2 %v2830_v40  ;;  %v2833_v35 = vpack.c.bf16 %v2679_v2, %v2678_v61  ;;  %v2725_v61 = vld [vmem:[#allocation2 + $0x175] sm:$0xff] }
 0x3b6   : > { %v3425_v11 = vadd.f32 %v3343_v30, %v2577_v10  ;;  %3261 = vmatmul.bf16.gmra.mxu3 %v2831_v57  ;;  %v2769_v10 = vld [vmem:[#allocation2 + $0x16e] sm:$0xff] }
 0x3b8   : > { %v3740_v24 = vmul.f32 %v3602_v46, %v3425_v11  ;;  %v4758_v5 = vpack.c.bf16 %v3425_v11, %v3424_v17  ;;  %v3099_v43 = vpop.f32.mrf.mxu2  ;;  %v2723_v17 = vld [vmem:[#allocation2 + $0x165] sm:$0xff] }
 0x3b9   : > { %v3222_v59 = vpop.f32.mrf.mxu3 }
 0x3ba   : > { %v3784_v16 = vadd.f32 %v3783_v45, %v3740_v24  ;;  %v3835_v52 = vmul.f32 %v3740_v24, %v3740_v24  ;;  %4846 = vst [vmem:[%s6020_s25 + $0x50] sm:$0xff] %v4758_v5   ;;  %v3223_v25 = vadd.f32 %v3222_v59, %v3099_v43  ;;  %v3345_v20 = vpop.f32.mrf.mxu0  ;;  %v2834_v45 = vpack.c.bf16 %v2724_v12, %v2723_v17 }
 0x3bb   : > { %v2579_v38 = vpop.f32.mrf.mxu1 }
 0x3bc   : > { %v3879_v7 = vadd.f32 %v3878_v37, %v3835_v52  ;;  %v2580_v8 = vadd.f32 %v2579_v38, %v5938_v28  ;;  %v3346_v41 = vadd.f32 %v3345_v20, %v3223_v25  ;;  %v2768_v37 = vld [vmem:[#allocation2 + $0x166] sm:$0xff]  ;;  %v3617_v52 = vpop.permute.xlu2 %3616  ;;  %v2681_v38 = vld [vmem:[#allocation2 + $0x17c] sm:$0xff] }
 0x3bd   : > { %3384 = vmatmul.bf16.gmra.mxu0 %v2832_v13  ;;  %v2835_v43 = vpack.c.bf16 %v2769_v10, %v2768_v37  ;;  %v6205_v10 = vld [vmem:[#allocation13_spill] sm:$0xff] }
 0x3be   : > { %v3426_v60 = vadd.f32 %v3346_v41, %v2580_v8  ;;  %2618 = vmatmul.bf16.gmra.mxu1 %v6203_v51 }
 0x3c0   : > { %v3741_v47 = vmul.f32 %v3607_v4, %v3426_v60  ;;  %v3101_v55 = vpop.f32.mrf.mxu2  ;;  %v2680_v4 = vld [vmem:[#allocation2 + $0x174] sm:$0xff] }
 0x3c1   : > { %v3224_v42 = vpop.f32.mrf.mxu3 }
 0x3c2   : > { %v3785_v19 = vadd.f32 %v3784_v16, %v3741_v47  ;;  %v3836_v21 = vmul.f32 %v3741_v47, %v3741_v47  ;;  %v3225_v50 = vadd.f32 %v3224_v42, %v3101_v55  ;;  %v3347_v58 = vpop.f32.mrf.mxu0  ;;  %v6204_v16 = vld [vmem:[#allocation9_spill] sm:$0xff]  ;;  %v2836_v55 = vpack.c.bf16 %v2681_v38, %v2680_v4 }
 0x3c3   : > { %v2581_v32 = vpop.f32.mrf.mxu1 }
 0x3c4   : > { %v3880_v28 = vadd.f32 %v3879_v7, %v3836_v21  ;;  %v2582_v34 = vadd.f32 %v2581_v32, %v5941_v27  ;;  %v3348_v6 = vadd.f32 %v3347_v58, %v3225_v50  ;;  %v2726_v7 = vld [vmem:[#allocation2 + $0x17d] sm:$0xff] }
 0x3c5   : > { %3143 = vmatmul.bf16.gmra.mxu2 %v2833_v35  ;;  %v2837_v17 = vpack.c.bf16 %v2726_v7, %v2725_v61  ;;  %v2771_v32 = vld [vmem:[#allocation2 + $0x17e] sm:$0xff] }
 0x3c6   : > { %v3427_v29 = vadd.f32 %v3348_v6, %v2582_v34  ;;  %3266 = vmatmul.bf16.gmra.mxu3 %v2834_v45 }
 0x3c8   : > { %v3742_v1 = vmul.f32 %v3612_v48, %v3427_v29  ;;  %v4763_v33 = vpack.c.bf16 %v3427_v29, %v3426_v60  ;;  %v3104_v40 = vpop.f32.mrf.mxu2  ;;  %v2770_v29 = vld [vmem:[#allocation2 + $0x176] sm:$0xff] }
 0x3c9   : > { %v3227_v30 = vpop.f32.mrf.mxu3 }
 0x3ca   : > { %v3786_v57 = vadd.f32 %v3785_v19, %v3742_v1  ;;  %v3837_v11 = vmul.f32 %v3742_v1, %v3742_v1  ;;  %4847 = vst [vmem:[%s6020_s25 + $0x58] sm:$0xff] %v4763_v33   ;;  %v3228_v46 = vadd.f32 %v3227_v30, %v3104_v40  ;;  %v3350_v24 = vpop.f32.mrf.mxu0  ;;  %v3622_v19 = vpop.permute.xlu0 %3621  ;;  %v2838_v1 = vpack.c.bf16 %v2771_v32, %v2770_v29 }
 0x3cb   : > { %v2584_v5 = vpop.f32.mrf.mxu1  ;;  %v3627_v30 = vpop.permute.xlu1 %3626 }
 0x3cc   : > { %v3881_v27 = vadd.f32 %v3880_v28, %v3837_v11  ;;  %v2585_v31 = vadd.f32 %v2584_v5, %v5944_v14  ;;  %v3351_v53 = vadd.f32 %v3350_v24, %v3228_v46  ;;  %v2682_v46 = vld [vmem:[#allocation2 + $0x184] sm:$0xff] }
 0x3cd   : > { %3389 = vmatmul.bf16.gmra.mxu0 %v2835_v43  ;;  %v2727_v5 = vld [vmem:[#allocation2 + $0x185] sm:$0xff] }
 0x3ce   : > { %v3428_v59 = vadd.f32 %v3351_v53, %v2585_v31  ;;  %2623 = vmatmul.bf16.gmra.mxu1 %v6204_v16  ;;  %v2839_v16 = vpack.c.bf16 %v2682_v46, %v2682_v46 }
 0x3d0   : > { %v3743_v25 = vmul.f32 %v3617_v52, %v3428_v59  ;;  %v3106_v20 = vpop.f32.mrf.mxu2 }
 0x3d1   : > { %v3229_v13 = vpop.f32.mrf.mxu3 }
 0x3d2   : > { %v3787_v8 = vadd.f32 %v3786_v57, %v3743_v25  ;;  %v3838_v41 = vmul.f32 %v3743_v25, %v3743_v25  ;;  %v3230_v60 = vadd.f32 %v3229_v13, %v3106_v20  ;;  %v3352_v51 = vpop.f32.mrf.mxu0  ;;  %v2840_v20 = vpack.c.bf16 %v2727_v5, %v2727_v5  ;;  %v3632_v13 = vpop.permute.xlu2 %3631 }
 0x3d3   : > { %v2586_v47 = vpop.f32.mrf.mxu1 }
 0x3d4   : > { %v3882_v14 = vadd.f32 %v3881_v27, %v3838_v41  ;;  %v2587_v2 = vadd.f32 %v2586_v47, %v5947_v22  ;;  %v3353_v42 = vadd.f32 %v3352_v51, %v3230_v60  ;;  %v2772_v60 = vld [vmem:[#allocation2 + $0x186] sm:$0xff] }
 0x3d5   : > { %3148 = vmatmul.bf16.gmra.mxu2 %v2836_v55 }
 0x3d6   : > { %v3429_v12 = vadd.f32 %v3353_v42, %v2587_v2  ;;  %3271 = vmatmul.bf16.gmra.mxu3 %v2837_v17  ;;  %v2841_v2 = vpack.c.bf16 %v2772_v60, %v2772_v60  ;;  %v4898_v42 = vld [vmem:[#allocation2 + $0x162] sm:$0xff] }
 0x3d8   : > { %v3744_v21 = vmul.f32 %v3622_v19, %v3429_v12  ;;  %v4768_v50 = vpack.c.bf16 %v3429_v12, %v3428_v59  ;;  %v3109_v58 = vpop.f32.mrf.mxu2 }
 0x3d9   : > { %v3232_v35 = vpop.f32.mrf.mxu3 }
 0x3da   : > { %v3788_v28 = vadd.f32 %v3787_v8, %v3744_v21  ;;  %v3839_v34 = vmul.f32 %v3744_v21, %v3744_v21  ;;  %4848 = vst [vmem:[%s6020_s25 + $0x60] sm:$0xff] %v4768_v50   ;;  %v3233_v6 = vadd.f32 %v3232_v35, %v3109_v58  ;;  %v3355_v45 = vpop.f32.mrf.mxu0  ;;  %v3637_v50 = vpop.permute.xlu0 %3636 }
 0x3db   : > { %v2589_v48 = vpop.f32.mrf.mxu1 }
 0x3dc   : > { %v3883_v22 = vadd.f32 %v3882_v14, %v3839_v34  ;;  %v2590_v33 = vadd.f32 %v2589_v48, %v5950_v3  ;;  %v3356_v40 = vadd.f32 %v3355_v45, %v3233_v6 }
 0x3dd   : > { %3394 = vmatmul.bf16.gmra.mxu0 %v2838_v1 }
 0x3de   : > { %v3430_v37 = vadd.f32 %v3356_v40, %v2590_v33  ;;  %2628 = vmatmul.bf16.gmra.mxu1 %v6205_v10 }
 0x3e0   : > { %v3745_v57 = vmul.f32 %v3627_v30, %v3430_v37  ;;  %v3111_v11 = vpop.f32.mrf.mxu2 }
 0x3e1   : > { %v3234_v24 = vpop.f32.mrf.mxu3 }
 0x3e2   : > { %v3789_v43 = vadd.f32 %v3788_v28, %v3745_v57  ;;  %v3840_v27 = vmul.f32 %v3745_v57, %v3745_v57  ;;  %v3235_v31 = vadd.f32 %v3234_v24, %v3111_v11  ;;  %v3357_v53 = vpop.f32.mrf.mxu0 }
 0x3e3   : > { %v2591_v59 = vpop.f32.mrf.mxu1 }
 0x3e4   : > { %v3884_v52 = vadd.f32 %v3883_v22, %v3840_v27  ;;  %v2592_v3 = vadd.f32 %v2591_v59, %v5953_v36  ;;  %v3358_v25 = vadd.f32 %v3357_v53, %v3235_v31  ;;  %v1374_v36 = vpack.c.bf16 %v4898_v42, %v4898_v42  ;;  %v3647_v59 = vpop.permute.xlu2 %3646 }
 0x3e5   : > { %3153 = vmatmul.bf16.gmra.mxu2 %v2839_v16 }
 0x3e6   : > { %v3431_v38 = vadd.f32 %v3358_v25, %v2592_v3  ;;  %3276 = vmatmul.bf16.gmra.mxu3 %v2840_v20 }
 0x3e8   : > { %v3746_v7 = vmul.f32 %v3632_v13, %v3431_v38  ;;  %v4773_v8 = vpack.c.bf16 %v3431_v38, %v3430_v37  ;;  %v3114_v41 = vpop.f32.mrf.mxu2 }
 0x3e9   : > { %v3237_v51 = vpop.f32.mrf.mxu3 }
 0x3ea   : > { %v3790_v4 = vadd.f32 %v3789_v43, %v3746_v7  ;;  %v3841_v47 = vmul.f32 %v3746_v7, %v3746_v7  ;;  %4849 = vst [vmem:[%s6020_s25 + $0x68] sm:$0xff] %v4773_v8   ;;  %v3238_v55 = vadd.f32 %v3237_v51, %v3114_v41  ;;  %v3360_v61 = vpop.f32.mrf.mxu0  ;;  %v3652_v51 = vpop.permute.xlu0 %3651 }
 0x3eb   : > { %v2594_v14 = vpop.f32.mrf.mxu1 }
 0x3ec   : > { %v3885_v17 = vadd.f32 %v3884_v52, %v3841_v47  ;;  %v2595_v12 = vadd.f32 %v2594_v14, %v5956_v9  ;;  %v3361_v19 = vadd.f32 %v3360_v61, %v3238_v55  ;;  %v3642_v9 = vpop.permute.xlu1 %3641 }
 0x3ed   : > { %3399 = vmatmul.bf16.gmra.mxu0 %v2841_v2 }
 0x3ee   : > { %v3432_v21 = vadd.f32 %v3361_v19, %v2595_v12  ;;  %2633 = vmatmul.bf16.gmra.mxu1 %v1374_v36 }
 0x3f0   : > { %v3747_v58 = vmul.f32 %v3637_v50, %v3432_v21  ;;  %v3116_v32 = vpop.f32.mrf.mxu2 }
 0x3f1   : > { %v3239_v35 = vpop.f32.mrf.mxu3 }
 0x3f2   : > { %v3791_v28 = vadd.f32 %v3790_v4, %v3747_v58  ;;  %v3842_v34 = vmul.f32 %v3747_v58, %v3747_v58  ;;  %v3240_v6 = vadd.f32 %v3239_v35, %v3116_v32  ;;  %v3362_v45 = vpop.f32.mrf.mxu0 }
 0x3f3   : > { %v2596_v29 = vpop.f32.mrf.mxu1 }
 0x3f4   : > { %v3886_v48 = vadd.f32 %v3885_v17, %v3842_v34  ;;  %v2597_v1 = vadd.f32 %v2596_v29, %v5959_v39  ;;  %v3363_v22 = vadd.f32 %v3362_v45, %v3240_v6  ;;  %v3657_v50 = vpop.permute.xlu1 %3656 }
 0x3f6   : > { %v3433_v33 = vadd.f32 %v3363_v22, %v2597_v1 }
 0x3f8   : > { %v3748_v40 = vmul.f32 %v3642_v9, %v3433_v33  ;;  %v4778_v37 = vpack.c.bf16 %v3433_v33, %v3432_v21  ;;  %v3119_v10 = vpop.f32.mrf.mxu2  ;;  %v3662_v33 = vpop.permute.xlu2 %3661 }
 0x3f9   : > { %v3242_v30 = vpop.f32.mrf.mxu3 }
 0x3fa   : > { %v3792_v57 = vadd.f32 %v3791_v28, %v3748_v40  ;;  %v3843_v11 = vmul.f32 %v3748_v40, %v3748_v40  ;;  %4850 = vst [vmem:[%s6020_s25 + $0x70] sm:$0xff] %v4778_v37   ;;  %v3243_v46 = vadd.f32 %v3242_v30, %v3119_v10  ;;  %v3365_v24 = vpop.f32.mrf.mxu0 }
 0x3fb   : > { %v2599_v5 = vpop.f32.mrf.mxu1 }
 0x3fc   : > { %v3887_v43 = vadd.f32 %v3886_v48, %v3843_v11  ;;  %v2600_v27 = vadd.f32 %v2599_v5, %v5962_v56  ;;  %v3366_v31 = vadd.f32 %v3365_v24, %v3243_v46 }
 0x3fe   : > { %v3434_v53 = vadd.f32 %v3366_v31, %v2600_v27  ;;  %v3667_v31 = vpop.permute.xlu0 %3666 }
 0x400   : > { %v3749_v39 = vmul.f32 %v3647_v59, %v3434_v53  ;;  %v3121_v16 = vpop.f32.mrf.mxu2 }
 0x401   : > { %v3244_v52 = vpop.f32.mrf.mxu3 }
 0x402   : > { %v3793_v3 = vadd.f32 %v3792_v57, %v3749_v39  ;;  %v3844_v25 = vmul.f32 %v3749_v39, %v3749_v39  ;;  %v3245_v20 = vadd.f32 %v3244_v52, %v3121_v16  ;;  %v3367_v38 = vpop.f32.mrf.mxu0 }
 0x403   : > { %v2601_v13 = vpop.f32.mrf.mxu1 }
 0x404   : > { %v3888_v7 = vadd.f32 %v3887_v43, %v3844_v25  ;;  %v2602_v8 = vadd.f32 %v2601_v13, %v5965_v15  ;;  %v3368_v41 = vadd.f32 %v3367_v38, %v3245_v20 }
 0x406   : > { %v3435_v60 = vadd.f32 %v3368_v41, %v2602_v8  ;;  %v3672_v8 = vpop.permute.xlu1 %3671 }
 0x408   : > { %v3750_v4 = vmul.f32 %v3652_v51, %v3435_v60  ;;  %v4783_v56 = vpack.c.bf16 %v3435_v60, %v3434_v53  ;;  %v3124_v47 = vpop.f32.mrf.mxu2 }
 0x409   : > { %v3247_v55 = vpop.f32.mrf.mxu3 }
 0x40a   : > { %v3794_v61 = vadd.f32 %v3793_v3, %v3750_v4  ;;  %v3845_v14 = vmul.f32 %v3750_v4, %v3750_v4  ;;  %4851 = vst [vmem:[%s6020_s25 + $0x78] sm:$0xff] %v4783_v56   ;;  %v3248_v2 = vadd.f32 %v3247_v55, %v3124_v47  ;;  %v3370_v42 = vpop.f32.mrf.mxu0 }
 0x40b   : > { %v2604_v36 = vpop.f32.mrf.mxu1 }
 0x40c   : > { %v3889_v17 = vadd.f32 %v3888_v7, %v3845_v14  ;;  %v2605_v12 = vadd.f32 %v2604_v36, %v5969_v49  ;;  %v3371_v19 = vadd.f32 %v3370_v42, %v3248_v2 }
 0x40e   : > { %v3436_v21 = vadd.f32 %v3371_v19, %v2605_v12 }
 0x410   : > { %v3751_v15 = vmul.f32 %v3657_v50, %v3436_v21  ;;  %v3126_v58 = vpop.f32.mrf.mxu2 }
 0x411   : > { %v3249_v32 = vpop.f32.mrf.mxu3 }
 0x412   : > { %v3795_v35 = vadd.f32 %v3794_v61, %v3751_v15  ;;  %v3846_v28 = vmul.f32 %v3751_v15, %v3751_v15  ;;  %v3250_v34 = vadd.f32 %v3249_v32, %v3126_v58  ;;  %v3372_v6 = vpop.f32.mrf.mxu0 }
 0x413   : > { %v2606_v45 = vpop.f32.mrf.mxu1 }
 0x414   : > { %v3890_v29 = vadd.f32 %v3889_v17, %v3846_v28  ;;  %v2607_v48 = vadd.f32 %v2606_v45, %v5972_v54  ;;  %v3373_v1 = vadd.f32 %v3372_v6, %v3250_v34  ;;  %v3677_v17 = vpop.permute.xlu2 %3676  ;;  %v3682_v45 = vpop.permute.xlu0 %3681 }
 0x416   : > { %v3437_v22 = vadd.f32 %v3373_v1, %v2607_v48 }
 0x418   : > { %v3752_v9 = vmul.f32 %v3662_v33, %v3437_v22  ;;  %v4788_v49 = vpack.c.bf16 %v3437_v22, %v3436_v21  ;;  %v3129_v40 = vpop.f32.mrf.mxu2 }
 0x419   : > { %v3252_v37 = vpop.f32.mrf.mxu3 }
 0x41a   : > { %v3796_v10 = vadd.f32 %v3795_v35, %v3752_v9  ;;  %v3847_v30 = vmul.f32 %v3752_v9, %v3752_v9  ;;  %4852 = vst [vmem:[%s6020_s25 + $0x80] sm:$0xff] %v4788_v49   ;;  %v3253_v57 = vadd.f32 %v3252_v37, %v3129_v40  ;;  %v3375_v11 = vpop.f32.mrf.mxu0 }
 0x41b   : > { %v2609_v46 = vpop.f32.mrf.mxu1 }
 0x41c   : > { %v3891_v24 = vadd.f32 %v3890_v29, %v3847_v30  ;;  %v2610_v5 = vadd.f32 %v2609_v46, %v5976_v26  ;;  %v3376_v43 = vadd.f32 %v3375_v11, %v3253_v57  ;;  %v3687_v11 = vpop.permute.xlu1 %3686 }
 0x41e   : > { %v3438_v27 = vadd.f32 %v3376_v43, %v2610_v5 }
 0x420   : > { %v3753_v54 = vmul.f32 %v3667_v31, %v3438_v27  ;;  %v3131_v53 = vpop.f32.mrf.mxu2 }
 0x421   : > { %v3254_v59 = vpop.f32.mrf.mxu3 }
 0x422   : > { %v3797_v39 = vadd.f32 %v3796_v10, %v3753_v54  ;;  %v3848_v16 = vmul.f32 %v3753_v54, %v3753_v54  ;;  %v3255_v52 = vadd.f32 %v3254_v59, %v3131_v53  ;;  %v3377_v3 = vpop.f32.mrf.mxu0 }
 0x423   : > { %v2611_v25 = vpop.f32.mrf.mxu1 }
 0x424   : > { %v3892_v20 = vadd.f32 %v3891_v24, %v3848_v16  ;;  %v2612_v38 = vadd.f32 %v2611_v25, %v5979_v62  ;;  %v3378_v13 = vadd.f32 %v3377_v3, %v3255_v52  ;;  %v3692_v52 = vpop.permute.xlu2 %3691 }
 0x426   : > { %v3439_v7 = vadd.f32 %v3378_v13, %v2612_v38 }
 0x428   : > { %v3754_v41 = vmul.f32 %v3672_v8, %v3439_v7  ;;  %v4793_v26 = vpack.c.bf16 %v3439_v7, %v3438_v27  ;;  %v3134_v60 = vpop.f32.mrf.mxu2 }
 0x429   : > { %v3257_v51 = vpop.f32.mrf.mxu3 }
 0x42a   : > { %v3798_v4 = vadd.f32 %v3797_v39, %v3754_v41  ;;  %v3849_v56 = vmul.f32 %v3754_v41, %v3754_v41  ;;  %4853 = vst [vmem:[%s6020_s25 + $0x88] sm:$0xff] %v4793_v26   ;;  %v3258_v47 = vadd.f32 %v3257_v51, %v3134_v60  ;;  %v3380_v55 = vpop.f32.mrf.mxu0 }
 0x42b   : > { %v2614_v61 = vpop.f32.mrf.mxu1 }
 0x42c   : > { %v3893_v14 = vadd.f32 %v3892_v20, %v3849_v56  ;;  %v2615_v2 = vadd.f32 %v2614_v61, %v5983_v63  ;;  %v3381_v42 = vadd.f32 %v3380_v55, %v3258_v47  ;;  %v3697_v56 = vpop.permute.xlu0 %3696 }
 0x42e   : > { %v3440_v36 = vadd.f32 %v3381_v42, %v2615_v2 }
 0x430   : > { %v3755_v62 = vmul.f32 %v3677_v17, %v3440_v36  ;;  %v3136_v12 = vpop.f32.mrf.mxu2 }
 0x431   : > { %v3259_v19 = vpop.f32.mrf.mxu3 }
 0x432   : > { %v3799_v21 = vadd.f32 %v3798_v4, %v3755_v62  ;;  %v3850_v50 = vmul.f32 %v3755_v62, %v3755_v62  ;;  %v3260_v15 = vadd.f32 %v3259_v19, %v3136_v12  ;;  %v3382_v58 = vpop.f32.mrf.mxu0  ;;  %v6206_v62 = vld [vmem:[#allocation10_spill] sm:$0xff] }
 0x433   : > { %v2616_v32 = vpop.f32.mrf.mxu1 }
 0x434   : > { %v3894_v35 = vadd.f32 %v3893_v14, %v3850_v50  ;;  %v2617_v28 = vadd.f32 %v2616_v32, %v5986_v23  ;;  %v3383_v34 = vadd.f32 %v3382_v58, %v3260_v15  ;;  %v3702_v50 = vpop.permute.xlu1 %3701 }
 0x436   : > { %v3441_v6 = vadd.f32 %v3383_v34, %v2617_v28 }
 0x438   : > { %v3756_v29 = vmul.f32 %v3682_v45, %v3441_v6  ;;  %v4798_v63 = vpack.c.bf16 %v3441_v6, %v3440_v36  ;;  %v3139_v48 = vpop.f32.mrf.mxu2 }
 0x439   : > { %v3262_v1 = vpop.f32.mrf.mxu3 }
 0x43a   : > { %v3800_v22 = vadd.f32 %v3799_v21, %v3756_v29  ;;  %v3851_v33 = vmul.f32 %v3756_v29, %v3756_v29  ;;  %4854 = vst [vmem:[%s6020_s25 + $0x90] sm:$0xff] %v4798_v63   ;;  %v3263_v9 = vadd.f32 %v3262_v1, %v3139_v48  ;;  %v3385_v49 = vpop.f32.mrf.mxu0  ;;  %v6207_v63 = vld [vmem:[#allocation22_spill] sm:$0xff] }
 0x43b   : > { %v2619_v40 = vpop.f32.mrf.mxu1 }
 0x43c   : > { %v3895_v37 = vadd.f32 %v3894_v35, %v3851_v33  ;;  %v2620_v10 = vadd.f32 %v2619_v40, %v5990_v18  ;;  %v3386_v30 = vadd.f32 %v3385_v49, %v3263_v9  ;;  %v3707_v33 = vpop.permute.xlu2 %3706 }
 0x43e   : > { %v3442_v57 = vadd.f32 %v3386_v30, %v2620_v10 }
 0x440   : > { %v3757_v23 = vmul.f32 %v3687_v11, %v3442_v57  ;;  %v3141_v46 = vpop.f32.mrf.mxu2 }
 0x441   : > { %v3264_v24 = vpop.f32.mrf.mxu3 }
 0x442   : > { %v3801_v5 = vadd.f32 %v3800_v22, %v3757_v23  ;;  %v3852_v43 = vmul.f32 %v3757_v23, %v3757_v23  ;;  %v3265_v27 = vadd.f32 %v3264_v24, %v3141_v46  ;;  %v3387_v31 = vpop.f32.mrf.mxu0  ;;  %v6208_v46 = vld [vmem:[#allocation23_spill] sm:$0xff] }
 0x443   : > { %v2621_v54 = vpop.f32.mrf.mxu1 }
 0x444   : > { %v3896_v53 = vadd.f32 %v3895_v37, %v3852_v43  ;;  %v2622_v59 = vadd.f32 %v2621_v54, %v5993_v44  ;;  %v3388_v39 = vadd.f32 %v3387_v31, %v3265_v27  ;;  %v3712_v27 = vpop.permute.xlu0 %3711 }
 0x446   : > { %v3443_v16 = vadd.f32 %v3388_v39, %v2622_v59 }
 0x448   : > { %v3758_v3 = vmul.f32 %v3692_v52, %v3443_v16  ;;  %v4803_v18 = vpack.c.bf16 %v3443_v16, %v3442_v57  ;;  %v3144_v25 = vpop.f32.mrf.mxu2 }
 0x449   : > { %v3267_v20 = vpop.f32.mrf.mxu3 }
 0x44a   : > { %v3802_v38 = vadd.f32 %v3801_v5, %v3758_v3  ;;  %v3853_v13 = vmul.f32 %v3758_v3, %v3758_v3  ;;  %4855 = vst [vmem:[%s6020_s25 + $0x98] sm:$0xff] %v4803_v18   ;;  %v3268_v7 = vadd.f32 %v3267_v20, %v3144_v25  ;;  %v3390_v8 = vpop.f32.mrf.mxu0  ;;  %v6209_v20 = vld [vmem:[#allocation14_spill] sm:$0xff] }
 0x44b   : > { %v2624_v41 = vpop.f32.mrf.mxu1 }
 0x44c   : > { %v3897_v26 = vadd.f32 %v3896_v53, %v3853_v13  ;;  %v2625_v60 = vadd.f32 %v2624_v41, %v5997_v0  ;;  %v3391_v51 = vadd.f32 %v3390_v8, %v3268_v7  ;;  %v3717_v8 = vpop.permute.xlu1 %3716 }
 0x44e   : > { %v3444_v4 = vadd.f32 %v3391_v51, %v2625_v60 }
 0x450   : > { %v3759_v44 = vmul.f32 %v3697_v56, %v3444_v4  ;;  %v3146_v47 = vpop.f32.mrf.mxu2 }
 0x451   : > { %v3269_v55 = vpop.f32.mrf.mxu3 }
 0x452   : > { %v3803_v61 = vadd.f32 %v3802_v38, %v3759_v44  ;;  %v3854_v14 = vmul.f32 %v3759_v44, %v3759_v44  ;;  %v3270_v2 = vadd.f32 %v3269_v55, %v3146_v47  ;;  %v3392_v42 = vpop.f32.mrf.mxu0 }
 0x453   : > { %v2626_v36 = vpop.f32.mrf.mxu1 }
 0x454   : > { %v3898_v17 = vadd.f32 %v3897_v26, %v3854_v14  ;;  %v2627_v12 = vadd.f32 %v2626_v36, %v6206_v62  ;;  %v3393_v19 = vadd.f32 %v3392_v42, %v3270_v2 }
 0x456   : > { %v3445_v21 = vadd.f32 %v3393_v19, %v2627_v12 }
 0x458   : > { %v3760_v15 = vmul.f32 %v3702_v50, %v3445_v21  ;;  %v4808_v0 = vpack.c.bf16 %v3445_v21, %v3444_v4  ;;  %v3149_v58 = vpop.f32.mrf.mxu2 }
 0x459   : > { %v3272_v32 = vpop.f32.mrf.mxu3 }
 0x45a   : > { %v3804_v35 = vadd.f32 %v3803_v61, %v3760_v15  ;;  %v3855_v28 = vmul.f32 %v3760_v15, %v3760_v15  ;;  %4856 = vst [vmem:[%s6020_s25 + $0xa0] sm:$0xff] %v4808_v0   ;;  %v3273_v34 = vadd.f32 %v3272_v32, %v3149_v58  ;;  %v3395_v6 = vpop.f32.mrf.mxu0 }
 0x45b   : > { %v2629_v45 = vpop.f32.mrf.mxu1 }
 0x45c   : > { %v3899_v29 = vadd.f32 %v3898_v17, %v3855_v28  ;;  %v2630_v48 = vadd.f32 %v2629_v45, %v6207_v63  ;;  %v3396_v1 = vadd.f32 %v3395_v6, %v3273_v34 }
 0x45e   : > { %v3446_v22 = vadd.f32 %v3396_v1, %v2630_v48 }
 0x460   : > { %v3761_v9 = vmul.f32 %v3707_v33, %v3446_v22  ;;  %v3151_v49 = vpop.f32.mrf.mxu2 }
 0x461   : > { %v3274_v40 = vpop.f32.mrf.mxu3 }
 0x462   : > { %v3805_v37 = vadd.f32 %v3804_v35, %v3761_v9  ;;  %v3856_v10 = vmul.f32 %v3761_v9, %v3761_v9  ;;  %v3275_v30 = vadd.f32 %v3274_v40, %v3151_v49  ;;  %v3397_v57 = vpop.f32.mrf.mxu0 }
 0x463   : > { %v2631_v11 = vpop.f32.mrf.mxu1 }
 0x464   : > { %v3900_v23 = vadd.f32 %v3899_v29, %v3856_v10  ;;  %v2632_v24 = vadd.f32 %v2631_v11, %v6208_v46  ;;  %v3398_v5 = vadd.f32 %v3397_v57, %v3275_v30 }
 0x466   : > { %v3447_v43 = vadd.f32 %v3398_v5, %v2632_v24 }
 0x468   : > { %v3762_v31 = vmul.f32 %v3712_v27, %v3447_v43  ;;  %v4813_v54 = vpack.c.bf16 %v3447_v43, %v3446_v22  ;;  %v3154_v53 = vpop.f32.mrf.mxu2 }
 0x469   : > { %v3277_v59 = vpop.f32.mrf.mxu3 }
 0x46a   : > { %v3806_v39 = vadd.f32 %v3805_v37, %v3762_v31  ;;  %v3857_v16 = vmul.f32 %v3762_v31, %v3762_v31  ;;  %4857 = vst [vmem:[%s6020_s25 + $0xa8] sm:$0xff] %v4813_v54   ;;  %v3278_v52 = vadd.f32 %v3277_v59, %v3154_v53  ;;  %v3400_v3 = vpop.f32.mrf.mxu0 }
 0x46b   : > { %v2634_v18 = vpop.f32.mrf.mxu1 }
 0x46c   : > { %v3901_v25 = vadd.f32 %v3900_v23, %v3857_v16  ;;  %v2635_v38 = vadd.f32 %v2634_v18, %v6209_v20  ;;  %v3401_v13 = vadd.f32 %v3400_v3, %v3278_v52 }
 0x46e   : > { %v3448_v7 = vadd.f32 %v3401_v13, %v2635_v38 }
 0x470   : > { %v3763_v41 = vmul.f32 %v3717_v8, %v3448_v7  ;;  %v3956_v26 = vpack.c.bf16 %v3448_v7, %v3448_v7  ;;  %v3156_v60 = vpop.f32.mrf.mxu2 }
 0x471   : > { %v3279_v51 = vpop.f32.mrf.mxu3 }
 0x472   : > { %v3807_v4 = vadd.f32 %v3806_v39, %v3763_v41  ;;  %v3858_v56 = vmul.f32 %v3763_v41, %v3763_v41  ;;  %4001 = vst [vmem:[%s6020_s25 + $0xb0] sm:$0xf] %v3956_v26  ;;  %v3402_v44 = vpop.f32.mrf.mxu0 }
 0x473   : > { %v2636_v47 = vpop.f32.mrf.mxu1 }
 0x474   : > { %v3808_v55 = vrot.slane %v3807_v4, 4  ;;  %v3902_v61 = vadd.f32 %v3901_v25, %v3858_v56 }
 0x476   : > { %v3809_v14 = vadd.f32 %v3808_v55, %v3807_v4  ;;  %v3903_v2 = vrot.slane %v3902_v61, 4 }
 0x478   : > { %v3810_v42 = vrot.slane %v3809_v14, 2  ;;  %v3904_v36 = vadd.f32 %v3903_v2, %v3902_v61 }
 0x47a   : > { %v3811_v17 = vadd.f32 %v3810_v42, %v3809_v14  ;;  %v3905_v62 = vrot.slane %v3904_v36, 2 }
 0x47c   : > { %v3812_v12 = vrot.slane %v3811_v17, 1  ;;  %v3906_v19 = vadd.f32 %v3905_v62, %v3904_v36 }
 0x47e   : > { %v3907_v21 = vrot.slane %v3906_v19, 1  ;;  %v3813_v50 = vadd.f32 %v3812_v12, %v3811_v17 }
 0x480   : > { %v3908_v15 = vadd.f32 %v3907_v21, %v3906_v19 }
 0x482   : > { %v3910_v0 = vsel %vm3909_vm10, %v3813_v50, %v3908_v15 }
 0x483   : > { %3911 = vst [vmem:[%s462_s27] sm:$0x3] %v3910_v0 }
 0x484 PF: > { %s20_s30 = sadd.s32 1, %s4920_s30  }
 0x485   : > { %p17_p7 = scmp.ge.s32.totalorder %s20_s30, 4  }
 0x487   :  { %19 = sbr.rel (!%p17_p7) target bundleno = 1 (0x1), region = 108 }

</bundles_post_ra>
